<compile_context>
chip_gen: v5e
topology: v5e:2x2
jax: 0.10.0
libtpu: 0.0.40
codegen_flags: <defaults>
</compile_context>

<pallas_src>
import functools
import math

import jax
import jax.numpy as jnp
from jax import lax
from jax.experimental import pallas as pl
from jax.experimental.pallas import tpu as pltpu


def _shift(x, d, axis):
    """y[..., i, ...] = x[..., i + d, ...] via an XLU rotate (wrap-around).

    Callers arrange (zero halo rows/cols from the wrapper) that every wrapped
    element which can reach a real output pixel is zero, reproducing the
    reference's zero-padding without padded scratch or misaligned slices.
    """
    size = x.shape[axis]
    shift = (-d) % size
    if shift == 0:
        return x
    return pltpu.roll(x, shift, axis)


def _xtloss_kernel(left_hbm, right_hbm, disp_hbm, out_ref,
                   lwin, rwin, dwin, sem, *,
                   H, W, tile_h, halo, win_h, smax):
    b = pl.program_id(0)                       # batch image
    t = pl.program_id(1)                       # row tile
    row0 = pl.multiple_of(t * tile_h, 8)       # first padded-coords row of the halo window

    # ---- manual halo DMA: rows [row0, row0 + win_h) of this image -----------
    copies = []
    for i, (src, dst) in enumerate(((left_hbm, lwin),
                                    (right_hbm, rwin),
                                    (disp_hbm, dwin))):
        cp = pltpu.make_async_copy(src.at[b, pl.ds(row0, win_h), :],
                                   dst, sem.at[i])
        cp.start()
        copies.append(cp)
    for cp in copies:
        cp.wait()

    left = lwin[...]
    right = rwin[...]
    disp = dwin[...]

    # ---- warp (grid_sample: bilinear, zeros padding, align_corners=False) ---
    # recon[r, c] = sum_s relu(1 - |disp - s|) * right[r, c - s]
    # TODO(synk): for large max_disp (>~16) switch to a lax.fori_loop over s
    # with a dynamic-shift pltpu.roll (or a floor/frac two-tap scheme) instead
    # of a full unroll; at small max_disp the unrolled form is cheapest.
    recon = jnp.zeros_like(left)
    for s in range(smax + 1):
        w_s = jnp.maximum(1.0 - jnp.abs(disp - float(s)), 0.0)
        recon = recon + w_s * _shift(right, -s, axis=1)

    # ---- LCN: 9x9 local contrast normalization, separable box filter --------
    K = 9
    kp = K // 2
    inv_k2 = 1.0 / (K * K)
    var_scale = float(K * K) / float(K * K - 1)

    def box_mean(x):
        h = x
        for d in range(1, kp + 1):             # 9-tap horizontal pass (lanes)
            h = h + _shift(x, d, axis=1) + _shift(x, -d, axis=1)
        v = h
        for d in range(1, kp + 1):             # 9-tap vertical pass (sublanes)
            v = v + _shift(h, d, axis=0) + _shift(h, -d, axis=0)
        return v * inv_k2

    def lcn(x):
        m = box_mean(x)
        msq = box_mean(x * x)
        # Faithful to the reference: this is the (unbiased) variance, no sqrt,
        # no clamp at zero.
        var = (msq - m * m) * var_scale
        return (x - m) / (var + 1e-6), var

    recon_lcn, _ = lcn(recon)
    left_lcn, left_std = lcn(left)

    cost = jnp.abs((left_lcn - recon_lcn) * left_std)

    # Zero the cost outside the true HxW image so the ASW taps see the same
    # zero padding F.pad gives the reference (left is already zero there).
    g_rows = lax.broadcasted_iota(jnp.int32, cost.shape, 0) + row0
    g_cols = lax.broadcasted_iota(jnp.int32, cost.shape, 1)
    in_img = (g_rows >= halo) & (g_rows < halo + H) & (g_cols < W)
    cost = jnp.where(in_img, cost, 0.0)

    # ---- ASW: 12x12 adaptive support-weight aggregation ---------------------
    KA = 12
    pad_len = KA // 2                          # offsets in [-6, 5]
    neg_inv_sigma = -0.5                       # sigma_omega = 2; mul, not div

    wsum = jnp.zeros_like(left)
    csum = jnp.zeros_like(left)
    for i in range(KA):
        di = i - pad_len
        img_r = _shift(left, di, axis=0)       # hoist the sublane roll
        cst_r = _shift(cost, di, axis=0)
        for j in range(KA):
            dj = j - pad_len
            w_t = jnp.exp(jnp.abs(left - _shift(img_r, dj, axis=1))
                          * neg_inv_sigma)
            wsum = wsum + w_t
            csum = csum + w_t * _shift(cst_r, dj, axis=1)

    asw = csum * pl.reciprocal(wsum, approx=True)

    # Write back only this tile's rows (halo rows belong to neighbours).
    out_ref[...] = asw[halo:halo + tile_h, :]


def xt_loss(left_img, right_img, dispmap, max_disp, *, tile_h=None):
    """left_img, right_img: (N, 1, H, W); dispmap: (N, H, W). Returns scalar."""
    N, C, H, W = left_img.shape
    assert C == 1, "LCN conv weight (1,1,k,k) requires a single channel"

    left = left_img[:, 0].astype(jnp.float32)
    right = right_img[:, 0].astype(jnp.float32)
    disp = dispmap.astype(jnp.float32)

    smax = int(math.ceil(max_disp))

    # Lane-dense width: pad W up to a multiple of 128, keeping at least the
    # column halo needed by the warp (smax), LCN (4) and ASW (6) taps as zeros
    # so wrapped rolls read zeros (== the reference's zero padding).
    halo_w = max(6, smax)
    w_pad = pl.cdiv(W + halo_w, 128) * 128

    # Row tiles with a 16-row halo (>= 6 ASW + 4 LCN reach, 8-aligned).
    halo = 16
    if tile_h is None:
        tile_h = 8 if H <= 64 else 64
    assert tile_h % 8 == 0
    n_tiles = pl.cdiv(H, tile_h)
    h_tiles = n_tiles * tile_h
    win_h = tile_h + 2 * halo

    def pad_plane(x):
        return jnp.pad(x, ((0, 0),
                           (halo, halo + (h_tiles - H)),
                           (0, w_pad - W)))

    leftp, rightp, dispp = pad_plane(left), pad_plane(right), pad_plane(disp)

    kern = functools.partial(_xtloss_kernel, H=H, W=W, tile_h=tile_h,
                             halo=halo, win_h=win_h, smax=smax)

    cost_asw = pl.pallas_call(
        kern,
        out_shape=jax.ShapeDtypeStruct((N, h_tiles, w_pad), jnp.float32),
        grid_spec=pltpu.PrefetchScalarGridSpec(
            num_scalar_prefetch=0,
            grid=(N, n_tiles),
            in_specs=[
                pl.BlockSpec(memory_space=pl.ANY),   # left  (raw HBM ref)
                pl.BlockSpec(memory_space=pl.ANY),   # right (raw HBM ref)
                pl.BlockSpec(memory_space=pl.ANY),   # disp  (raw HBM ref)
            ],
            out_specs=pl.BlockSpec((None, tile_h, w_pad),
                                   lambda b, t: (b, t, 0)),
            scratch_shapes=[
                pltpu.VMEM((win_h, w_pad), jnp.float32),   # left window
                pltpu.VMEM((win_h, w_pad), jnp.float32),   # right window
                pltpu.VMEM((win_h, w_pad), jnp.float32),   # disp window
                pltpu.SemaphoreType.DMA((3,)),
            ],
        ),
        compiler_params=pltpu.CompilerParams(
            dimension_semantics=("parallel", "parallel"),
            vmem_limit_bytes=32 * 1024 * 1024),
    )(leftp, rightp, dispp)

    # Global mean over the real HxW region only (pad rows/cols excluded).
    return jnp.mean(cost_asw[:, :H, :W])


if __name__ == "__main__":
    key = jax.random.PRNGKey(0)
    k1, k2, k3 = jax.random.split(key, 3)

    N, C, H, W = 2, 1, 16, 16
    max_disp = 4

    left_img = jax.random.normal(k1, (N, C, H, W), dtype=jnp.float32)
    right_img = jax.random.normal(k2, (N, C, H, W), dtype=jnp.float32)
    dispmap = jax.random.uniform(k3, (N, H, W), minval=0.0,
                                 maxval=float(max_disp), dtype=jnp.float32)

    loss = xt_loss(left_img, right_img, dispmap, max_disp)
    loss = jax.block_until_ready(loss)

    assert loss.shape == () and bool(jnp.isfinite(loss))
    print("KERNEL_OK")
</pallas_src>

<mosaic_0001>
module attributes {stable_mosaic.version = 11 : i64} {
  func.func @_xtloss_kernel(%arg0: i32, %arg1: i32, %arg2: memref<2x48x128xf32, #tpu.memory_space<any>>, %arg3: memref<2x48x128xf32, #tpu.memory_space<any>>, %arg4: memref<2x48x128xf32, #tpu.memory_space<any>>, %arg5: memref<1x8x128xf32, #tpu.memory_space<vmem>>, %arg6: memref<40x128xf32, #tpu.memory_space<vmem>>, %arg7: memref<40x128xf32, #tpu.memory_space<vmem>>, %arg8: memref<40x128xf32, #tpu.memory_space<vmem>>, %arg9: memref<3x!tpu.dma_semaphore, #tpu.memory_space<semaphore_mem>>) attributes {dimension_semantics = [#tpu.dimension_semantics<parallel>, #tpu.dimension_semantics<parallel>], iteration_bounds = array<i64: 2, 2>, scalar_prefetch = 0 : i64, scratch_operands = 4 : i64, tpu.core_type = #tpu.core_type<tc>, window_params = [{}, {}, {}, {transform_indices = @transform_3, window_bounds = array<i64: 1, 8, 128>}]} {
    %c8_i32 = arith.constant 8 : i32
    %0 = arith.muli %arg1, %c8_i32 : i32
    %1 = tpu.assume_multiple %0, 8 : i32
    %c0_i32 = arith.constant 0 : i32
    %c0_i32_0 = arith.constant 0 : i32
    %2 = tpu.memref_slice %arg2[%arg0, %1, %c0_i32_0] : memref<2x48x128xf32, #tpu.memory_space<any>> -> memref<1x40x128xf32, #tpu.memory_space<any>>
    %3 = tpu.memref_squeeze %2 : memref<1x40x128xf32, #tpu.memory_space<any>> -> memref<40x128xf32, #tpu.memory_space<any>>
    %4 = tpu.memref_slice %arg9[%c0_i32] : memref<3x!tpu.dma_semaphore, #tpu.memory_space<semaphore_mem>> -> memref<1x!tpu.dma_semaphore, #tpu.memory_space<semaphore_mem>>
    %5 = tpu.memref_squeeze %4 : memref<1x!tpu.dma_semaphore, #tpu.memory_space<semaphore_mem>> -> memref<!tpu.dma_semaphore, #tpu.memory_space<semaphore_mem>>
    tpu.enqueue_dma source(%3 : memref<40x128xf32, #tpu.memory_space<any>>) target(%arg6 : memref<40x128xf32, #tpu.memory_space<vmem>>) target_semaphore(%5 : memref<!tpu.dma_semaphore, #tpu.memory_space<semaphore_mem>>)
    %c1_i32 = arith.constant 1 : i32
    %c0_i32_1 = arith.constant 0 : i32
    %6 = tpu.memref_slice %arg3[%arg0, %1, %c0_i32_1] : memref<2x48x128xf32, #tpu.memory_space<any>> -> memref<1x40x128xf32, #tpu.memory_space<any>>
    %7 = tpu.memref_squeeze %6 : memref<1x40x128xf32, #tpu.memory_space<any>> -> memref<40x128xf32, #tpu.memory_space<any>>
    %8 = tpu.memref_slice %arg9[%c1_i32] : memref<3x!tpu.dma_semaphore, #tpu.memory_space<semaphore_mem>> -> memref<1x!tpu.dma_semaphore, #tpu.memory_space<semaphore_mem>>
    %9 = tpu.memref_squeeze %8 : memref<1x!tpu.dma_semaphore, #tpu.memory_space<semaphore_mem>> -> memref<!tpu.dma_semaphore, #tpu.memory_space<semaphore_mem>>
    tpu.enqueue_dma source(%7 : memref<40x128xf32, #tpu.memory_space<any>>) target(%arg7 : memref<40x128xf32, #tpu.memory_space<vmem>>) target_semaphore(%9 : memref<!tpu.dma_semaphore, #tpu.memory_space<semaphore_mem>>)
    %c2_i32 = arith.constant 2 : i32
    %c0_i32_2 = arith.constant 0 : i32
    %10 = tpu.memref_slice %arg4[%arg0, %1, %c0_i32_2] : memref<2x48x128xf32, #tpu.memory_space<any>> -> memref<1x40x128xf32, #tpu.memory_space<any>>
    %11 = tpu.memref_squeeze %10 : memref<1x40x128xf32, #tpu.memory_space<any>> -> memref<40x128xf32, #tpu.memory_space<any>>
    %12 = tpu.memref_slice %arg9[%c2_i32] : memref<3x!tpu.dma_semaphore, #tpu.memory_space<semaphore_mem>> -> memref<1x!tpu.dma_semaphore, #tpu.memory_space<semaphore_mem>>
    %13 = tpu.memref_squeeze %12 : memref<1x!tpu.dma_semaphore, #tpu.memory_space<semaphore_mem>> -> memref<!tpu.dma_semaphore, #tpu.memory_space<semaphore_mem>>
    tpu.enqueue_dma source(%11 : memref<40x128xf32, #tpu.memory_space<any>>) target(%arg8 : memref<40x128xf32, #tpu.memory_space<vmem>>) target_semaphore(%13 : memref<!tpu.dma_semaphore, #tpu.memory_space<semaphore_mem>>)
    %c0_i32_3 = arith.constant 0 : i32
    %c0_i32_4 = arith.constant 0 : i32
    %14 = tpu.memref_slice %arg2[%arg0, %1, %c0_i32_4] : memref<2x48x128xf32, #tpu.memory_space<any>> -> memref<1x40x128xf32, #tpu.memory_space<any>>
    %15 = tpu.memref_squeeze %14 : memref<1x40x128xf32, #tpu.memory_space<any>> -> memref<40x128xf32, #tpu.memory_space<any>>
    %16 = tpu.memref_slice %arg9[%c0_i32_3] : memref<3x!tpu.dma_semaphore, #tpu.memory_space<semaphore_mem>> -> memref<1x!tpu.dma_semaphore, #tpu.memory_space<semaphore_mem>>
    %17 = tpu.memref_squeeze %16 : memref<1x!tpu.dma_semaphore, #tpu.memory_space<semaphore_mem>> -> memref<!tpu.dma_semaphore, #tpu.memory_space<semaphore_mem>>
    tpu.wait_dma2 semaphore(%17 : memref<!tpu.dma_semaphore, #tpu.memory_space<semaphore_mem>>) src(%15 : memref<40x128xf32, #tpu.memory_space<any>>) dst(%arg6 : memref<40x128xf32, #tpu.memory_space<vmem>>)
    %c1_i32_5 = arith.constant 1 : i32
    %c0_i32_6 = arith.constant 0 : i32
    %18 = tpu.memref_slice %arg3[%arg0, %1, %c0_i32_6] : memref<2x48x128xf32, #tpu.memory_space<any>> -> memref<1x40x128xf32, #tpu.memory_space<any>>
    %19 = tpu.memref_squeeze %18 : memref<1x40x128xf32, #tpu.memory_space<any>> -> memref<40x128xf32, #tpu.memory_space<any>>
    %20 = tpu.memref_slice %arg9[%c1_i32_5] : memref<3x!tpu.dma_semaphore, #tpu.memory_space<semaphore_mem>> -> memref<1x!tpu.dma_semaphore, #tpu.memory_space<semaphore_mem>>
    %21 = tpu.memref_squeeze %20 : memref<1x!tpu.dma_semaphore, #tpu.memory_space<semaphore_mem>> -> memref<!tpu.dma_semaphore, #tpu.memory_space<semaphore_mem>>
    tpu.wait_dma2 semaphore(%21 : memref<!tpu.dma_semaphore, #tpu.memory_space<semaphore_mem>>) src(%19 : memref<40x128xf32, #tpu.memory_space<any>>) dst(%arg7 : memref<40x128xf32, #tpu.memory_space<vmem>>)
    %c2_i32_7 = arith.constant 2 : i32
    %c0_i32_8 = arith.constant 0 : i32
    %22 = tpu.memref_slice %arg4[%arg0, %1, %c0_i32_8] : memref<2x48x128xf32, #tpu.memory_space<any>> -> memref<1x40x128xf32, #tpu.memory_space<any>>
    %23 = tpu.memref_squeeze %22 : memref<1x40x128xf32, #tpu.memory_space<any>> -> memref<40x128xf32, #tpu.memory_space<any>>
    %24 = tpu.memref_slice %arg9[%c2_i32_7] : memref<3x!tpu.dma_semaphore, #tpu.memory_space<semaphore_mem>> -> memref<1x!tpu.dma_semaphore, #tpu.memory_space<semaphore_mem>>
    %25 = tpu.memref_squeeze %24 : memref<1x!tpu.dma_semaphore, #tpu.memory_space<semaphore_mem>> -> memref<!tpu.dma_semaphore, #tpu.memory_space<semaphore_mem>>
    tpu.wait_dma2 semaphore(%25 : memref<!tpu.dma_semaphore, #tpu.memory_space<semaphore_mem>>) src(%23 : memref<40x128xf32, #tpu.memory_space<any>>) dst(%arg8 : memref<40x128xf32, #tpu.memory_space<vmem>>)
    %c0 = arith.constant 0 : index
    %c0_9 = arith.constant 0 : index
    %26 = vector.load %arg6[%c0, %c0_9] : memref<40x128xf32, #tpu.memory_space<vmem>>, vector<40x128xf32>
    %c0_10 = arith.constant 0 : index
    %c0_11 = arith.constant 0 : index
    %27 = vector.load %arg7[%c0_10, %c0_11] : memref<40x128xf32, #tpu.memory_space<vmem>>, vector<40x128xf32>
    %c0_12 = arith.constant 0 : index
    %c0_13 = arith.constant 0 : index
    %28 = vector.load %arg8[%c0_12, %c0_13] : memref<40x128xf32, #tpu.memory_space<vmem>>, vector<40x128xf32>
    %cst = arith.constant 0.000000e+00 : f32
    %29 = vector.broadcast %cst : f32 to vector<40x128xf32>
    %cst_14 = arith.constant 0.000000e+00 : f32
    %30 = vector.broadcast %cst_14 : f32 to vector<40x128xf32>
    %31 = arith.subf %28, %30 : vector<40x128xf32>
    %32 = math.absf %31 : vector<40x128xf32>
    %cst_15 = arith.constant 1.000000e+00 : f32
    %33 = vector.broadcast %cst_15 : f32 to vector<40x128xf32>
    %34 = arith.subf %33, %32 : vector<40x128xf32>
    %cst_16 = arith.constant 0.000000e+00 : f32
    %35 = vector.broadcast %cst_16 : f32 to vector<40x128xf32>
    %36 = arith.maximumf %34, %35 : vector<40x128xf32>
    %37 = arith.mulf %36, %27 : vector<40x128xf32>
    %38 = arith.addf %29, %37 : vector<40x128xf32>
    %cst_17 = arith.constant 1.000000e+00 : f32
    %39 = vector.broadcast %cst_17 : f32 to vector<40x128xf32>
    %40 = arith.subf %28, %39 : vector<40x128xf32>
    %41 = math.absf %40 : vector<40x128xf32>
    %cst_18 = arith.constant 1.000000e+00 : f32
    %42 = vector.broadcast %cst_18 : f32 to vector<40x128xf32>
    %43 = arith.subf %42, %41 : vector<40x128xf32>
    %cst_19 = arith.constant 0.000000e+00 : f32
    %44 = vector.broadcast %cst_19 : f32 to vector<40x128xf32>
    %45 = arith.maximumf %43, %44 : vector<40x128xf32>
    %c1_i32_20 = arith.constant 1 : i32
    %46 = tpu.dynamic_rotate %27 by %c1_i32_20 dim 1 : vector<40x128xf32>, i32 -> vector<40x128xf32>
    %47 = arith.mulf %45, %46 : vector<40x128xf32>
    %48 = arith.addf %38, %47 : vector<40x128xf32>
    %cst_21 = arith.constant 2.000000e+00 : f32
    %49 = vector.broadcast %cst_21 : f32 to vector<40x128xf32>
    %50 = arith.subf %28, %49 : vector<40x128xf32>
    %51 = math.absf %50 : vector<40x128xf32>
    %cst_22 = arith.constant 1.000000e+00 : f32
    %52 = vector.broadcast %cst_22 : f32 to vector<40x128xf32>
    %53 = arith.subf %52, %51 : vector<40x128xf32>
    %cst_23 = arith.constant 0.000000e+00 : f32
    %54 = vector.broadcast %cst_23 : f32 to vector<40x128xf32>
    %55 = arith.maximumf %53, %54 : vector<40x128xf32>
    %c2_i32_24 = arith.constant 2 : i32
    %56 = tpu.dynamic_rotate %27 by %c2_i32_24 dim 1 : vector<40x128xf32>, i32 -> vector<40x128xf32>
    %57 = arith.mulf %55, %56 : vector<40x128xf32>
    %58 = arith.addf %48, %57 : vector<40x128xf32>
    %cst_25 = arith.constant 3.000000e+00 : f32
    %59 = vector.broadcast %cst_25 : f32 to vector<40x128xf32>
    %60 = arith.subf %28, %59 : vector<40x128xf32>
    %61 = math.absf %60 : vector<40x128xf32>
    %cst_26 = arith.constant 1.000000e+00 : f32
    %62 = vector.broadcast %cst_26 : f32 to vector<40x128xf32>
    %63 = arith.subf %62, %61 : vector<40x128xf32>
    %cst_27 = arith.constant 0.000000e+00 : f32
    %64 = vector.broadcast %cst_27 : f32 to vector<40x128xf32>
    %65 = arith.maximumf %63, %64 : vector<40x128xf32>
    %c3_i32 = arith.constant 3 : i32
    %66 = tpu.dynamic_rotate %27 by %c3_i32 dim 1 : vector<40x128xf32>, i32 -> vector<40x128xf32>
    %67 = arith.mulf %65, %66 : vector<40x128xf32>
    %68 = arith.addf %58, %67 : vector<40x128xf32>
    %cst_28 = arith.constant 4.000000e+00 : f32
    %69 = vector.broadcast %cst_28 : f32 to vector<40x128xf32>
    %70 = arith.subf %28, %69 : vector<40x128xf32>
    %71 = math.absf %70 : vector<40x128xf32>
    %cst_29 = arith.constant 1.000000e+00 : f32
    %72 = vector.broadcast %cst_29 : f32 to vector<40x128xf32>
    %73 = arith.subf %72, %71 : vector<40x128xf32>
    %cst_30 = arith.constant 0.000000e+00 : f32
    %74 = vector.broadcast %cst_30 : f32 to vector<40x128xf32>
    %75 = arith.maximumf %73, %74 : vector<40x128xf32>
    %c4_i32 = arith.constant 4 : i32
    %76 = tpu.dynamic_rotate %27 by %c4_i32 dim 1 : vector<40x128xf32>, i32 -> vector<40x128xf32>
    %77 = arith.mulf %75, %76 : vector<40x128xf32>
    %78 = arith.addf %68, %77 : vector<40x128xf32>
    %c127_i32 = arith.constant 127 : i32
    %79 = tpu.dynamic_rotate %78 by %c127_i32 dim 1 : vector<40x128xf32>, i32 -> vector<40x128xf32>
    %80 = arith.addf %78, %79 : vector<40x128xf32>
    %c1_i32_31 = arith.constant 1 : i32
    %81 = tpu.dynamic_rotate %78 by %c1_i32_31 dim 1 : vector<40x128xf32>, i32 -> vector<40x128xf32>
    %82 = arith.addf %80, %81 : vector<40x128xf32>
    %c126_i32 = arith.constant 126 : i32
    %83 = tpu.dynamic_rotate %78 by %c126_i32 dim 1 : vector<40x128xf32>, i32 -> vector<40x128xf32>
    %84 = arith.addf %82, %83 : vector<40x128xf32>
    %c2_i32_32 = arith.constant 2 : i32
    %85 = tpu.dynamic_rotate %78 by %c2_i32_32 dim 1 : vector<40x128xf32>, i32 -> vector<40x128xf32>
    %86 = arith.addf %84, %85 : vector<40x128xf32>
    %c125_i32 = arith.constant 125 : i32
    %87 = tpu.dynamic_rotate %78 by %c125_i32 dim 1 : vector<40x128xf32>, i32 -> vector<40x128xf32>
    %88 = arith.addf %86, %87 : vector<40x128xf32>
    %c3_i32_33 = arith.constant 3 : i32
    %89 = tpu.dynamic_rotate %78 by %c3_i32_33 dim 1 : vector<40x128xf32>, i32 -> vector<40x128xf32>
    %90 = arith.addf %88, %89 : vector<40x128xf32>
    %c124_i32 = arith.constant 124 : i32
    %91 = tpu.dynamic_rotate %78 by %c124_i32 dim 1 : vector<40x128xf32>, i32 -> vector<40x128xf32>
    %92 = arith.addf %90, %91 : vector<40x128xf32>
    %c4_i32_34 = arith.constant 4 : i32
    %93 = tpu.dynamic_rotate %78 by %c4_i32_34 dim 1 : vector<40x128xf32>, i32 -> vector<40x128xf32>
    %94 = arith.addf %92, %93 : vector<40x128xf32>
    %c39_i32 = arith.constant 39 : i32
    %95 = tpu.dynamic_rotate %94 by %c39_i32 dim 0 : vector<40x128xf32>, i32 -> vector<40x128xf32>
    %96 = arith.addf %94, %95 : vector<40x128xf32>
    %c1_i32_35 = arith.constant 1 : i32
    %97 = tpu.dynamic_rotate %94 by %c1_i32_35 dim 0 : vector<40x128xf32>, i32 -> vector<40x128xf32>
    %98 = arith.addf %96, %97 : vector<40x128xf32>
    %c38_i32 = arith.constant 38 : i32
    %99 = tpu.dynamic_rotate %94 by %c38_i32 dim 0 : vector<40x128xf32>, i32 -> vector<40x128xf32>
    %100 = arith.addf %98, %99 : vector<40x128xf32>
    %c2_i32_36 = arith.constant 2 : i32
    %101 = tpu.dynamic_rotate %94 by %c2_i32_36 dim 0 : vector<40x128xf32>, i32 -> vector<40x128xf32>
    %102 = arith.addf %100, %101 : vector<40x128xf32>
    %c37_i32 = arith.constant 37 : i32
    %103 = tpu.dynamic_rotate %94 by %c37_i32 dim 0 : vector<40x128xf32>, i32 -> vector<40x128xf32>
    %104 = arith.addf %102, %103 : vector<40x128xf32>
    %c3_i32_37 = arith.constant 3 : i32
    %105 = tpu.dynamic_rotate %94 by %c3_i32_37 dim 0 : vector<40x128xf32>, i32 -> vector<40x128xf32>
    %106 = arith.addf %104, %105 : vector<40x128xf32>
    %c36_i32 = arith.constant 36 : i32
    %107 = tpu.dynamic_rotate %94 by %c36_i32 dim 0 : vector<40x128xf32>, i32 -> vector<40x128xf32>
    %108 = arith.addf %106, %107 : vector<40x128xf32>
    %c4_i32_38 = arith.constant 4 : i32
    %109 = tpu.dynamic_rotate %94 by %c4_i32_38 dim 0 : vector<40x128xf32>, i32 -> vector<40x128xf32>
    %110 = arith.addf %108, %109 : vector<40x128xf32>
    %cst_39 = arith.constant 0.0123456791 : f32
    %111 = vector.broadcast %cst_39 : f32 to vector<40x128xf32>
    %112 = arith.mulf %110, %111 : vector<40x128xf32>
    %113 = arith.mulf %78, %78 : vector<40x128xf32>
    %c127_i32_40 = arith.constant 127 : i32
    %114 = tpu.dynamic_rotate %113 by %c127_i32_40 dim 1 : vector<40x128xf32>, i32 -> vector<40x128xf32>
    %115 = arith.addf %113, %114 : vector<40x128xf32>
    %c1_i32_41 = arith.constant 1 : i32
    %116 = tpu.dynamic_rotate %113 by %c1_i32_41 dim 1 : vector<40x128xf32>, i32 -> vector<40x128xf32>
    %117 = arith.addf %115, %116 : vector<40x128xf32>
    %c126_i32_42 = arith.constant 126 : i32
    %118 = tpu.dynamic_rotate %113 by %c126_i32_42 dim 1 : vector<40x128xf32>, i32 -> vector<40x128xf32>
    %119 = arith.addf %117, %118 : vector<40x128xf32>
    %c2_i32_43 = arith.constant 2 : i32
    %120 = tpu.dynamic_rotate %113 by %c2_i32_43 dim 1 : vector<40x128xf32>, i32 -> vector<40x128xf32>
    %121 = arith.addf %119, %120 : vector<40x128xf32>
    %c125_i32_44 = arith.constant 125 : i32
    %122 = tpu.dynamic_rotate %113 by %c125_i32_44 dim 1 : vector<40x128xf32>, i32 -> vector<40x128xf32>
    %123 = arith.addf %121, %122 : vector<40x128xf32>
    %c3_i32_45 = arith.constant 3 : i32
    %124 = tpu.dynamic_rotate %113 by %c3_i32_45 dim 1 : vector<40x128xf32>, i32 -> vector<40x128xf32>
    %125 = arith.addf %123, %124 : vector<40x128xf32>
    %c124_i32_46 = arith.constant 124 : i32
    %126 = tpu.dynamic_rotate %113 by %c124_i32_46 dim 1 : vector<40x128xf32>, i32 -> vector<40x128xf32>
    %127 = arith.addf %125, %126 : vector<40x128xf32>
    %c4_i32_47 = arith.constant 4 : i32
    %128 = tpu.dynamic_rotate %113 by %c4_i32_47 dim 1 : vector<40x128xf32>, i32 -> vector<40x128xf32>
    %129 = arith.addf %127, %128 : vector<40x128xf32>
    %c39_i32_48 = arith.constant 39 : i32
    %130 = tpu.dynamic_rotate %129 by %c39_i32_48 dim 0 : vector<40x128xf32>, i32 -> vector<40x128xf32>
    %131 = arith.addf %129, %130 : vector<40x128xf32>
    %c1_i32_49 = arith.constant 1 : i32
    %132 = tpu.dynamic_rotate %129 by %c1_i32_49 dim 0 : vector<40x128xf32>, i32 -> vector<40x128xf32>
    %133 = arith.addf %131, %132 : vector<40x128xf32>
    %c38_i32_50 = arith.constant 38 : i32
    %134 = tpu.dynamic_rotate %129 by %c38_i32_50 dim 0 : vector<40x128xf32>, i32 -> vector<40x128xf32>
    %135 = arith.addf %133, %134 : vector<40x128xf32>
    %c2_i32_51 = arith.constant 2 : i32
    %136 = tpu.dynamic_rotate %129 by %c2_i32_51 dim 0 : vector<40x128xf32>, i32 -> vector<40x128xf32>
    %137 = arith.addf %135, %136 : vector<40x128xf32>
    %c37_i32_52 = arith.constant 37 : i32
    %138 = tpu.dynamic_rotate %129 by %c37_i32_52 dim 0 : vector<40x128xf32>, i32 -> vector<40x128xf32>
    %139 = arith.addf %137, %138 : vector<40x128xf32>
    %c3_i32_53 = arith.constant 3 : i32
    %140 = tpu.dynamic_rotate %129 by %c3_i32_53 dim 0 : vector<40x128xf32>, i32 -> vector<40x128xf32>
    %141 = arith.addf %139, %140 : vector<40x128xf32>
    %c36_i32_54 = arith.constant 36 : i32
    %142 = tpu.dynamic_rotate %129 by %c36_i32_54 dim 0 : vector<40x128xf32>, i32 -> vector<40x128xf32>
    %143 = arith.addf %141, %142 : vector<40x128xf32>
    %c4_i32_55 = arith.constant 4 : i32
    %144 = tpu.dynamic_rotate %129 by %c4_i32_55 dim 0 : vector<40x128xf32>, i32 -> vector<40x128xf32>
    %145 = arith.addf %143, %144 : vector<40x128xf32>
    %cst_56 = arith.constant 0.0123456791 : f32
    %146 = vector.broadcast %cst_56 : f32 to vector<40x128xf32>
    %147 = arith.mulf %145, %146 : vector<40x128xf32>
    %148 = arith.mulf %112, %112 : vector<40x128xf32>
    %149 = arith.subf %147, %148 : vector<40x128xf32>
    %cst_57 = arith.constant 1.012500e+00 : f32
    %150 = vector.broadcast %cst_57 : f32 to vector<40x128xf32>
    %151 = arith.mulf %149, %150 : vector<40x128xf32>
    %152 = arith.subf %78, %112 : vector<40x128xf32>
    %cst_58 = arith.constant 9.99999997E-7 : f32
    %153 = vector.broadcast %cst_58 : f32 to vector<40x128xf32>
    %154 = arith.addf %151, %153 : vector<40x128xf32>
    %155 = arith.divf %152, %154 : vector<40x128xf32>
    %c127_i32_59 = arith.constant 127 : i32
    %156 = tpu.dynamic_rotate %26 by %c127_i32_59 dim 1 : vector<40x128xf32>, i32 -> vector<40x128xf32>
    %157 = arith.addf %26, %156 : vector<40x128xf32>
    %c1_i32_60 = arith.constant 1 : i32
    %158 = tpu.dynamic_rotate %26 by %c1_i32_60 dim 1 : vector<40x128xf32>, i32 -> vector<40x128xf32>
    %159 = arith.addf %157, %158 : vector<40x128xf32>
    %c126_i32_61 = arith.constant 126 : i32
    %160 = tpu.dynamic_rotate %26 by %c126_i32_61 dim 1 : vector<40x128xf32>, i32 -> vector<40x128xf32>
    %161 = arith.addf %159, %160 : vector<40x128xf32>
    %c2_i32_62 = arith.constant 2 : i32
    %162 = tpu.dynamic_rotate %26 by %c2_i32_62 dim 1 : vector<40x128xf32>, i32 -> vector<40x128xf32>
    %163 = arith.addf %161, %162 : vector<40x128xf32>
    %c125_i32_63 = arith.constant 125 : i32
    %164 = tpu.dynamic_rotate %26 by %c125_i32_63 dim 1 : vector<40x128xf32>, i32 -> vector<40x128xf32>
    %165 = arith.addf %163, %164 : vector<40x128xf32>
    %c3_i32_64 = arith.constant 3 : i32
    %166 = tpu.dynamic_rotate %26 by %c3_i32_64 dim 1 : vector<40x128xf32>, i32 -> vector<40x128xf32>
    %167 = arith.addf %165, %166 : vector<40x128xf32>
    %c124_i32_65 = arith.constant 124 : i32
    %168 = tpu.dynamic_rotate %26 by %c124_i32_65 dim 1 : vector<40x128xf32>, i32 -> vector<40x128xf32>
    %169 = arith.addf %167, %168 : vector<40x128xf32>
    %c4_i32_66 = arith.constant 4 : i32
    %170 = tpu.dynamic_rotate %26 by %c4_i32_66 dim 1 : vector<40x128xf32>, i32 -> vector<40x128xf32>
    %171 = arith.addf %169, %170 : vector<40x128xf32>
    %c39_i32_67 = arith.constant 39 : i32
    %172 = tpu.dynamic_rotate %171 by %c39_i32_67 dim 0 : vector<40x128xf32>, i32 -> vector<40x128xf32>
    %173 = arith.addf %171, %172 : vector<40x128xf32>
    %c1_i32_68 = arith.constant 1 : i32
    %174 = tpu.dynamic_rotate %171 by %c1_i32_68 dim 0 : vector<40x128xf32>, i32 -> vector<40x128xf32>
    %175 = arith.addf %173, %174 : vector<40x128xf32>
    %c38_i32_69 = arith.constant 38 : i32
    %176 = tpu.dynamic_rotate %171 by %c38_i32_69 dim 0 : vector<40x128xf32>, i32 -> vector<40x128xf32>
    %177 = arith.addf %175, %176 : vector<40x128xf32>
    %c2_i32_70 = arith.constant 2 : i32
    %178 = tpu.dynamic_rotate %171 by %c2_i32_70 dim 0 : vector<40x128xf32>, i32 -> vector<40x128xf32>
    %179 = arith.addf %177, %178 : vector<40x128xf32>
    %c37_i32_71 = arith.constant 37 : i32
    %180 = tpu.dynamic_rotate %171 by %c37_i32_71 dim 0 : vector<40x128xf32>, i32 -> vector<40x128xf32>
    %181 = arith.addf %179, %180 : vector<40x128xf32>
    %c3_i32_72 = arith.constant 3 : i32
    %182 = tpu.dynamic_rotate %171 by %c3_i32_72 dim 0 : vector<40x128xf32>, i32 -> vector<40x128xf32>
    %183 = arith.addf %181, %182 : vector<40x128xf32>
    %c36_i32_73 = arith.constant 36 : i32
    %184 = tpu.dynamic_rotate %171 by %c36_i32_73 dim 0 : vector<40x128xf32>, i32 -> vector<40x128xf32>
    %185 = arith.addf %183, %184 : vector<40x128xf32>
    %c4_i32_74 = arith.constant 4 : i32
    %186 = tpu.dynamic_rotate %171 by %c4_i32_74 dim 0 : vector<40x128xf32>, i32 -> vector<40x128xf32>
    %187 = arith.addf %185, %186 : vector<40x128xf32>
    %cst_75 = arith.constant 0.0123456791 : f32
    %188 = vector.broadcast %cst_75 : f32 to vector<40x128xf32>
    %189 = arith.mulf %187, %188 : vector<40x128xf32>
    %190 = arith.mulf %26, %26 : vector<40x128xf32>
    %c127_i32_76 = arith.constant 127 : i32
    %191 = tpu.dynamic_rotate %190 by %c127_i32_76 dim 1 : vector<40x128xf32>, i32 -> vector<40x128xf32>
    %192 = arith.addf %190, %191 : vector<40x128xf32>
    %c1_i32_77 = arith.constant 1 : i32
    %193 = tpu.dynamic_rotate %190 by %c1_i32_77 dim 1 : vector<40x128xf32>, i32 -> vector<40x128xf32>
    %194 = arith.addf %192, %193 : vector<40x128xf32>
    %c126_i32_78 = arith.constant 126 : i32
    %195 = tpu.dynamic_rotate %190 by %c126_i32_78 dim 1 : vector<40x128xf32>, i32 -> vector<40x128xf32>
    %196 = arith.addf %194, %195 : vector<40x128xf32>
    %c2_i32_79 = arith.constant 2 : i32
    %197 = tpu.dynamic_rotate %190 by %c2_i32_79 dim 1 : vector<40x128xf32>, i32 -> vector<40x128xf32>
    %198 = arith.addf %196, %197 : vector<40x128xf32>
    %c125_i32_80 = arith.constant 125 : i32
    %199 = tpu.dynamic_rotate %190 by %c125_i32_80 dim 1 : vector<40x128xf32>, i32 -> vector<40x128xf32>
    %200 = arith.addf %198, %199 : vector<40x128xf32>
    %c3_i32_81 = arith.constant 3 : i32
    %201 = tpu.dynamic_rotate %190 by %c3_i32_81 dim 1 : vector<40x128xf32>, i32 -> vector<40x128xf32>
    %202 = arith.addf %200, %201 : vector<40x128xf32>
    %c124_i32_82 = arith.constant 124 : i32
    %203 = tpu.dynamic_rotate %190 by %c124_i32_82 dim 1 : vector<40x128xf32>, i32 -> vector<40x128xf32>
    %204 = arith.addf %202, %203 : vector<40x128xf32>
    %c4_i32_83 = arith.constant 4 : i32
    %205 = tpu.dynamic_rotate %190 by %c4_i32_83 dim 1 : vector<40x128xf32>, i32 -> vector<40x128xf32>
    %206 = arith.addf %204, %205 : vector<40x128xf32>
    %c39_i32_84 = arith.constant 39 : i32
    %207 = tpu.dynamic_rotate %206 by %c39_i32_84 dim 0 : vector<40x128xf32>, i32 -> vector<40x128xf32>
    %208 = arith.addf %206, %207 : vector<40x128xf32>
    %c1_i32_85 = arith.constant 1 : i32
    %209 = tpu.dynamic_rotate %206 by %c1_i32_85 dim 0 : vector<40x128xf32>, i32 -> vector<40x128xf32>
    %210 = arith.addf %208, %209 : vector<40x128xf32>
    %c38_i32_86 = arith.constant 38 : i32
    %211 = tpu.dynamic_rotate %206 by %c38_i32_86 dim 0 : vector<40x128xf32>, i32 -> vector<40x128xf32>
    %212 = arith.addf %210, %211 : vector<40x128xf32>
    %c2_i32_87 = arith.constant 2 : i32
    %213 = tpu.dynamic_rotate %206 by %c2_i32_87 dim 0 : vector<40x128xf32>, i32 -> vector<40x128xf32>
    %214 = arith.addf %212, %213 : vector<40x128xf32>
    %c37_i32_88 = arith.constant 37 : i32
    %215 = tpu.dynamic_rotate %206 by %c37_i32_88 dim 0 : vector<40x128xf32>, i32 -> vector<40x128xf32>
    %216 = arith.addf %214, %215 : vector<40x128xf32>
    %c3_i32_89 = arith.constant 3 : i32
    %217 = tpu.dynamic_rotate %206 by %c3_i32_89 dim 0 : vector<40x128xf32>, i32 -> vector<40x128xf32>
    %218 = arith.addf %216, %217 : vector<40x128xf32>
    %c36_i32_90 = arith.constant 36 : i32
    %219 = tpu.dynamic_rotate %206 by %c36_i32_90 dim 0 : vector<40x128xf32>, i32 -> vector<40x128xf32>
    %220 = arith.addf %218, %219 : vector<40x128xf32>
    %c4_i32_91 = arith.constant 4 : i32
    %221 = tpu.dynamic_rotate %206 by %c4_i32_91 dim 0 : vector<40x128xf32>, i32 -> vector<40x128xf32>
    %222 = arith.addf %220, %221 : vector<40x128xf32>
    %cst_92 = arith.constant 0.0123456791 : f32
    %223 = vector.broadcast %cst_92 : f32 to vector<40x128xf32>
    %224 = arith.mulf %222, %223 : vector<40x128xf32>
    %225 = arith.mulf %189, %189 : vector<40x128xf32>
    %226 = arith.subf %224, %225 : vector<40x128xf32>
    %cst_93 = arith.constant 1.012500e+00 : f32
    %227 = vector.broadcast %cst_93 : f32 to vector<40x128xf32>
    %228 = arith.mulf %226, %227 : vector<40x128xf32>
    %229 = arith.subf %26, %189 : vector<40x128xf32>
    %cst_94 = arith.constant 9.99999997E-7 : f32
    %230 = vector.broadcast %cst_94 : f32 to vector<40x128xf32>
    %231 = arith.addf %228, %230 : vector<40x128xf32>
    %232 = arith.divf %229, %231 : vector<40x128xf32>
    %233 = arith.subf %232, %155 : vector<40x128xf32>
    %234 = arith.mulf %233, %228 : vector<40x128xf32>
    %235 = math.absf %234 : vector<40x128xf32>
    %236 = tpu.iota {dimensions = array<i32: 0>} : vector<40x128xi32>
    %237 = vector.broadcast %1 : i32 to vector<40x128xi32>
    %238 = arith.addi %236, %237 : vector<40x128xi32>
    %239 = tpu.iota {dimensions = array<i32: 1>} : vector<40x128xi32>
    %c16_i32 = arith.constant 16 : i32
    %240 = vector.broadcast %c16_i32 : i32 to vector<40x128xi32>
    %241 = arith.cmpi sge, %238, %240 : vector<40x128xi32>
    %c32_i32 = arith.constant 32 : i32
    %242 = vector.broadcast %c32_i32 : i32 to vector<40x128xi32>
    %243 = arith.cmpi slt, %238, %242 : vector<40x128xi32>
    %244 = arith.andi %241, %243 : vector<40x128xi1>
    %c16_i32_95 = arith.constant 16 : i32
    %245 = vector.broadcast %c16_i32_95 : i32 to vector<40x128xi32>
    %246 = arith.cmpi slt, %239, %245 : vector<40x128xi32>
    %247 = arith.andi %244, %246 : vector<40x128xi1>
    %cst_96 = arith.constant 0.000000e+00 : f32
    %248 = vector.broadcast %cst_96 : f32 to vector<40x128xf32>
    %249 = arith.select %247, %235, %248 : vector<40x128xi1>, vector<40x128xf32>
    %cst_97 = arith.constant 0.000000e+00 : f32
    %250 = vector.broadcast %cst_97 : f32 to vector<40x128xf32>
    %cst_98 = arith.constant 0.000000e+00 : f32
    %251 = vector.broadcast %cst_98 : f32 to vector<40x128xf32>
    %c6_i32 = arith.constant 6 : i32
    %252 = tpu.dynamic_rotate %26 by %c6_i32 dim 0 : vector<40x128xf32>, i32 -> vector<40x128xf32>
    %c6_i32_99 = arith.constant 6 : i32
    %253 = tpu.dynamic_rotate %249 by %c6_i32_99 dim 0 : vector<40x128xf32>, i32 -> vector<40x128xf32>
    %c6_i32_100 = arith.constant 6 : i32
    %254 = tpu.dynamic_rotate %252 by %c6_i32_100 dim 1 : vector<40x128xf32>, i32 -> vector<40x128xf32>
    %255 = arith.subf %26, %254 : vector<40x128xf32>
    %256 = math.absf %255 : vector<40x128xf32>
    %cst_101 = arith.constant -5.000000e-01 : f32
    %257 = vector.broadcast %cst_101 : f32 to vector<40x128xf32>
    %258 = arith.mulf %256, %257 : vector<40x128xf32>
    %259 = math.exp %258 : vector<40x128xf32>
    %260 = arith.addf %250, %259 : vector<40x128xf32>
    %c6_i32_102 = arith.constant 6 : i32
    %261 = tpu.dynamic_rotate %253 by %c6_i32_102 dim 1 : vector<40x128xf32>, i32 -> vector<40x128xf32>
    %262 = arith.mulf %259, %261 : vector<40x128xf32>
    %263 = arith.addf %251, %262 : vector<40x128xf32>
    %c5_i32 = arith.constant 5 : i32
    %264 = tpu.dynamic_rotate %252 by %c5_i32 dim 1 : vector<40x128xf32>, i32 -> vector<40x128xf32>
    %265 = arith.subf %26, %264 : vector<40x128xf32>
    %266 = math.absf %265 : vector<40x128xf32>
    %cst_103 = arith.constant -5.000000e-01 : f32
    %267 = vector.broadcast %cst_103 : f32 to vector<40x128xf32>
    %268 = arith.mulf %266, %267 : vector<40x128xf32>
    %269 = math.exp %268 : vector<40x128xf32>
    %270 = arith.addf %260, %269 : vector<40x128xf32>
    %c5_i32_104 = arith.constant 5 : i32
    %271 = tpu.dynamic_rotate %253 by %c5_i32_104 dim 1 : vector<40x128xf32>, i32 -> vector<40x128xf32>
    %272 = arith.mulf %269, %271 : vector<40x128xf32>
    %273 = arith.addf %263, %272 : vector<40x128xf32>
    %c4_i32_105 = arith.constant 4 : i32
    %274 = tpu.dynamic_rotate %252 by %c4_i32_105 dim 1 : vector<40x128xf32>, i32 -> vector<40x128xf32>
    %275 = arith.subf %26, %274 : vector<40x128xf32>
    %276 = math.absf %275 : vector<40x128xf32>
    %cst_106 = arith.constant -5.000000e-01 : f32
    %277 = vector.broadcast %cst_106 : f32 to vector<40x128xf32>
    %278 = arith.mulf %276, %277 : vector<40x128xf32>
    %279 = math.exp %278 : vector<40x128xf32>
    %280 = arith.addf %270, %279 : vector<40x128xf32>
    %c4_i32_107 = arith.constant 4 : i32
    %281 = tpu.dynamic_rotate %253 by %c4_i32_107 dim 1 : vector<40x128xf32>, i32 -> vector<40x128xf32>
    %282 = arith.mulf %279, %281 : vector<40x128xf32>
    %283 = arith.addf %273, %282 : vector<40x128xf32>
    %c3_i32_108 = arith.constant 3 : i32
    %284 = tpu.dynamic_rotate %252 by %c3_i32_108 dim 1 : vector<40x128xf32>, i32 -> vector<40x128xf32>
    %285 = arith.subf %26, %284 : vector<40x128xf32>
    %286 = math.absf %285 : vector<40x128xf32>
    %cst_109 = arith.constant -5.000000e-01 : f32
    %287 = vector.broadcast %cst_109 : f32 to vector<40x128xf32>
    %288 = arith.mulf %286, %287 : vector<40x128xf32>
    %289 = math.exp %288 : vector<40x128xf32>
    %290 = arith.addf %280, %289 : vector<40x128xf32>
    %c3_i32_110 = arith.constant 3 : i32
    %291 = tpu.dynamic_rotate %253 by %c3_i32_110 dim 1 : vector<40x128xf32>, i32 -> vector<40x128xf32>
    %292 = arith.mulf %289, %291 : vector<40x128xf32>
    %293 = arith.addf %283, %292 : vector<40x128xf32>
    %c2_i32_111 = arith.constant 2 : i32
    %294 = tpu.dynamic_rotate %252 by %c2_i32_111 dim 1 : vector<40x128xf32>, i32 -> vector<40x128xf32>
    %295 = arith.subf %26, %294 : vector<40x128xf32>
    %296 = math.absf %295 : vector<40x128xf32>
    %cst_112 = arith.constant -5.000000e-01 : f32
    %297 = vector.broadcast %cst_112 : f32 to vector<40x128xf32>
    %298 = arith.mulf %296, %297 : vector<40x128xf32>
    %299 = math.exp %298 : vector<40x128xf32>
    %300 = arith.addf %290, %299 : vector<40x128xf32>
    %c2_i32_113 = arith.constant 2 : i32
    %301 = tpu.dynamic_rotate %253 by %c2_i32_113 dim 1 : vector<40x128xf32>, i32 -> vector<40x128xf32>
    %302 = arith.mulf %299, %301 : vector<40x128xf32>
    %303 = arith.addf %293, %302 : vector<40x128xf32>
    %c1_i32_114 = arith.constant 1 : i32
    %304 = tpu.dynamic_rotate %252 by %c1_i32_114 dim 1 : vector<40x128xf32>, i32 -> vector<40x128xf32>
    %305 = arith.subf %26, %304 : vector<40x128xf32>
    %306 = math.absf %305 : vector<40x128xf32>
    %cst_115 = arith.constant -5.000000e-01 : f32
    %307 = vector.broadcast %cst_115 : f32 to vector<40x128xf32>
    %308 = arith.mulf %306, %307 : vector<40x128xf32>
    %309 = math.exp %308 : vector<40x128xf32>
    %310 = arith.addf %300, %309 : vector<40x128xf32>
    %c1_i32_116 = arith.constant 1 : i32
    %311 = tpu.dynamic_rotate %253 by %c1_i32_116 dim 1 : vector<40x128xf32>, i32 -> vector<40x128xf32>
    %312 = arith.mulf %309, %311 : vector<40x128xf32>
    %313 = arith.addf %303, %312 : vector<40x128xf32>
    %314 = arith.subf %26, %252 : vector<40x128xf32>
    %315 = math.absf %314 : vector<40x128xf32>
    %cst_117 = arith.constant -5.000000e-01 : f32
    %316 = vector.broadcast %cst_117 : f32 to vector<40x128xf32>
    %317 = arith.mulf %315, %316 : vector<40x128xf32>
    %318 = math.exp %317 : vector<40x128xf32>
    %319 = arith.addf %310, %318 : vector<40x128xf32>
    %320 = arith.mulf %318, %253 : vector<40x128xf32>
    %321 = arith.addf %313, %320 : vector<40x128xf32>
    %c127_i32_118 = arith.constant 127 : i32
    %322 = tpu.dynamic_rotate %252 by %c127_i32_118 dim 1 : vector<40x128xf32>, i32 -> vector<40x128xf32>
    %323 = arith.subf %26, %322 : vector<40x128xf32>
    %324 = math.absf %323 : vector<40x128xf32>
    %cst_119 = arith.constant -5.000000e-01 : f32
    %325 = vector.broadcast %cst_119 : f32 to vector<40x128xf32>
    %326 = arith.mulf %324, %325 : vector<40x128xf32>
    %327 = math.exp %326 : vector<40x128xf32>
    %328 = arith.addf %319, %327 : vector<40x128xf32>
    %c127_i32_120 = arith.constant 127 : i32
    %329 = tpu.dynamic_rotate %253 by %c127_i32_120 dim 1 : vector<40x128xf32>, i32 -> vector<40x128xf32>
    %330 = arith.mulf %327, %329 : vector<40x128xf32>
    %331 = arith.addf %321, %330 : vector<40x128xf32>
    %c126_i32_121 = arith.constant 126 : i32
    %332 = tpu.dynamic_rotate %252 by %c126_i32_121 dim 1 : vector<40x128xf32>, i32 -> vector<40x128xf32>
    %333 = arith.subf %26, %332 : vector<40x128xf32>
    %334 = math.absf %333 : vector<40x128xf32>
    %cst_122 = arith.constant -5.000000e-01 : f32
    %335 = vector.broadcast %cst_122 : f32 to vector<40x128xf32>
    %336 = arith.mulf %334, %335 : vector<40x128xf32>
    %337 = math.exp %336 : vector<40x128xf32>
    %338 = arith.addf %328, %337 : vector<40x128xf32>
    %c126_i32_123 = arith.constant 126 : i32
    %339 = tpu.dynamic_rotate %253 by %c126_i32_123 dim 1 : vector<40x128xf32>, i32 -> vector<40x128xf32>
    %340 = arith.mulf %337, %339 : vector<40x128xf32>
    %341 = arith.addf %331, %340 : vector<40x128xf32>
    %c125_i32_124 = arith.constant 125 : i32
    %342 = tpu.dynamic_rotate %252 by %c125_i32_124 dim 1 : vector<40x128xf32>, i32 -> vector<40x128xf32>
    %343 = arith.subf %26, %342 : vector<40x128xf32>
    %344 = math.absf %343 : vector<40x128xf32>
    %cst_125 = arith.constant -5.000000e-01 : f32
    %345 = vector.broadcast %cst_125 : f32 to vector<40x128xf32>
    %346 = arith.mulf %344, %345 : vector<40x128xf32>
    %347 = math.exp %346 : vector<40x128xf32>
    %348 = arith.addf %338, %347 : vector<40x128xf32>
    %c125_i32_126 = arith.constant 125 : i32
    %349 = tpu.dynamic_rotate %253 by %c125_i32_126 dim 1 : vector<40x128xf32>, i32 -> vector<40x128xf32>
    %350 = arith.mulf %347, %349 : vector<40x128xf32>
    %351 = arith.addf %341, %350 : vector<40x128xf32>
    %c124_i32_127 = arith.constant 124 : i32
    %352 = tpu.dynamic_rotate %252 by %c124_i32_127 dim 1 : vector<40x128xf32>, i32 -> vector<40x128xf32>
    %353 = arith.subf %26, %352 : vector<40x128xf32>
    %354 = math.absf %353 : vector<40x128xf32>
    %cst_128 = arith.constant -5.000000e-01 : f32
    %355 = vector.broadcast %cst_128 : f32 to vector<40x128xf32>
    %356 = arith.mulf %354, %355 : vector<40x128xf32>
    %357 = math.exp %356 : vector<40x128xf32>
    %358 = arith.addf %348, %357 : vector<40x128xf32>
    %c124_i32_129 = arith.constant 124 : i32
    %359 = tpu.dynamic_rotate %253 by %c124_i32_129 dim 1 : vector<40x128xf32>, i32 -> vector<40x128xf32>
    %360 = arith.mulf %357, %359 : vector<40x128xf32>
    %361 = arith.addf %351, %360 : vector<40x128xf32>
    %c123_i32 = arith.constant 123 : i32
    %362 = tpu.dynamic_rotate %252 by %c123_i32 dim 1 : vector<40x128xf32>, i32 -> vector<40x128xf32>
    %363 = arith.subf %26, %362 : vector<40x128xf32>
    %364 = math.absf %363 : vector<40x128xf32>
    %cst_130 = arith.constant -5.000000e-01 : f32
    %365 = vector.broadcast %cst_130 : f32 to vector<40x128xf32>
    %366 = arith.mulf %364, %365 : vector<40x128xf32>
    %367 = math.exp %366 : vector<40x128xf32>
    %368 = arith.addf %358, %367 : vector<40x128xf32>
    %c123_i32_131 = arith.constant 123 : i32
    %369 = tpu.dynamic_rotate %253 by %c123_i32_131 dim 1 : vector<40x128xf32>, i32 -> vector<40x128xf32>
    %370 = arith.mulf %367, %369 : vector<40x128xf32>
    %371 = arith.addf %361, %370 : vector<40x128xf32>
    %c5_i32_132 = arith.constant 5 : i32
    %372 = tpu.dynamic_rotate %26 by %c5_i32_132 dim 0 : vector<40x128xf32>, i32 -> vector<40x128xf32>
    %c5_i32_133 = arith.constant 5 : i32
    %373 = tpu.dynamic_rotate %249 by %c5_i32_133 dim 0 : vector<40x128xf32>, i32 -> vector<40x128xf32>
    %c6_i32_134 = arith.constant 6 : i32
    %374 = tpu.dynamic_rotate %372 by %c6_i32_134 dim 1 : vector<40x128xf32>, i32 -> vector<40x128xf32>
    %375 = arith.subf %26, %374 : vector<40x128xf32>
    %376 = math.absf %375 : vector<40x128xf32>
    %cst_135 = arith.constant -5.000000e-01 : f32
    %377 = vector.broadcast %cst_135 : f32 to vector<40x128xf32>
    %378 = arith.mulf %376, %377 : vector<40x128xf32>
    %379 = math.exp %378 : vector<40x128xf32>
    %380 = arith.addf %368, %379 : vector<40x128xf32>
    %c6_i32_136 = arith.constant 6 : i32
    %381 = tpu.dynamic_rotate %373 by %c6_i32_136 dim 1 : vector<40x128xf32>, i32 -> vector<40x128xf32>
    %382 = arith.mulf %379, %381 : vector<40x128xf32>
    %383 = arith.addf %371, %382 : vector<40x128xf32>
    %c5_i32_137 = arith.constant 5 : i32
    %384 = tpu.dynamic_rotate %372 by %c5_i32_137 dim 1 : vector<40x128xf32>, i32 -> vector<40x128xf32>
    %385 = arith.subf %26, %384 : vector<40x128xf32>
    %386 = math.absf %385 : vector<40x128xf32>
    %cst_138 = arith.constant -5.000000e-01 : f32
    %387 = vector.broadcast %cst_138 : f32 to vector<40x128xf32>
    %388 = arith.mulf %386, %387 : vector<40x128xf32>
    %389 = math.exp %388 : vector<40x128xf32>
    %390 = arith.addf %380, %389 : vector<40x128xf32>
    %c5_i32_139 = arith.constant 5 : i32
    %391 = tpu.dynamic_rotate %373 by %c5_i32_139 dim 1 : vector<40x128xf32>, i32 -> vector<40x128xf32>
    %392 = arith.mulf %389, %391 : vector<40x128xf32>
    %393 = arith.addf %383, %392 : vector<40x128xf32>
    %c4_i32_140 = arith.constant 4 : i32
    %394 = tpu.dynamic_rotate %372 by %c4_i32_140 dim 1 : vector<40x128xf32>, i32 -> vector<40x128xf32>
    %395 = arith.subf %26, %394 : vector<40x128xf32>
    %396 = math.absf %395 : vector<40x128xf32>
    %cst_141 = arith.constant -5.000000e-01 : f32
    %397 = vector.broadcast %cst_141 : f32 to vector<40x128xf32>
    %398 = arith.mulf %396, %397 : vector<40x128xf32>
    %399 = math.exp %398 : vector<40x128xf32>
    %400 = arith.addf %390, %399 : vector<40x128xf32>
    %c4_i32_142 = arith.constant 4 : i32
    %401 = tpu.dynamic_rotate %373 by %c4_i32_142 dim 1 : vector<40x128xf32>, i32 -> vector<40x128xf32>
    %402 = arith.mulf %399, %401 : vector<40x128xf32>
    %403 = arith.addf %393, %402 : vector<40x128xf32>
    %c3_i32_143 = arith.constant 3 : i32
    %404 = tpu.dynamic_rotate %372 by %c3_i32_143 dim 1 : vector<40x128xf32>, i32 -> vector<40x128xf32>
    %405 = arith.subf %26, %404 : vector<40x128xf32>
    %406 = math.absf %405 : vector<40x128xf32>
    %cst_144 = arith.constant -5.000000e-01 : f32
    %407 = vector.broadcast %cst_144 : f32 to vector<40x128xf32>
    %408 = arith.mulf %406, %407 : vector<40x128xf32>
    %409 = math.exp %408 : vector<40x128xf32>
    %410 = arith.addf %400, %409 : vector<40x128xf32>
    %c3_i32_145 = arith.constant 3 : i32
    %411 = tpu.dynamic_rotate %373 by %c3_i32_145 dim 1 : vector<40x128xf32>, i32 -> vector<40x128xf32>
    %412 = arith.mulf %409, %411 : vector<40x128xf32>
    %413 = arith.addf %403, %412 : vector<40x128xf32>
    %c2_i32_146 = arith.constant 2 : i32
    %414 = tpu.dynamic_rotate %372 by %c2_i32_146 dim 1 : vector<40x128xf32>, i32 -> vector<40x128xf32>
    %415 = arith.subf %26, %414 : vector<40x128xf32>
    %416 = math.absf %415 : vector<40x128xf32>
    %cst_147 = arith.constant -5.000000e-01 : f32
    %417 = vector.broadcast %cst_147 : f32 to vector<40x128xf32>
    %418 = arith.mulf %416, %417 : vector<40x128xf32>
    %419 = math.exp %418 : vector<40x128xf32>
    %420 = arith.addf %410, %419 : vector<40x128xf32>
    %c2_i32_148 = arith.constant 2 : i32
    %421 = tpu.dynamic_rotate %373 by %c2_i32_148 dim 1 : vector<40x128xf32>, i32 -> vector<40x128xf32>
    %422 = arith.mulf %419, %421 : vector<40x128xf32>
    %423 = arith.addf %413, %422 : vector<40x128xf32>
    %c1_i32_149 = arith.constant 1 : i32
    %424 = tpu.dynamic_rotate %372 by %c1_i32_149 dim 1 : vector<40x128xf32>, i32 -> vector<40x128xf32>
    %425 = arith.subf %26, %424 : vector<40x128xf32>
    %426 = math.absf %425 : vector<40x128xf32>
    %cst_150 = arith.constant -5.000000e-01 : f32
    %427 = vector.broadcast %cst_150 : f32 to vector<40x128xf32>
    %428 = arith.mulf %426, %427 : vector<40x128xf32>
    %429 = math.exp %428 : vector<40x128xf32>
    %430 = arith.addf %420, %429 : vector<40x128xf32>
    %c1_i32_151 = arith.constant 1 : i32
    %431 = tpu.dynamic_rotate %373 by %c1_i32_151 dim 1 : vector<40x128xf32>, i32 -> vector<40x128xf32>
    %432 = arith.mulf %429, %431 : vector<40x128xf32>
    %433 = arith.addf %423, %432 : vector<40x128xf32>
    %434 = arith.subf %26, %372 : vector<40x128xf32>
    %435 = math.absf %434 : vector<40x128xf32>
    %cst_152 = arith.constant -5.000000e-01 : f32
    %436 = vector.broadcast %cst_152 : f32 to vector<40x128xf32>
    %437 = arith.mulf %435, %436 : vector<40x128xf32>
    %438 = math.exp %437 : vector<40x128xf32>
    %439 = arith.addf %430, %438 : vector<40x128xf32>
    %440 = arith.mulf %438, %373 : vector<40x128xf32>
    %441 = arith.addf %433, %440 : vector<40x128xf32>
    %c127_i32_153 = arith.constant 127 : i32
    %442 = tpu.dynamic_rotate %372 by %c127_i32_153 dim 1 : vector<40x128xf32>, i32 -> vector<40x128xf32>
    %443 = arith.subf %26, %442 : vector<40x128xf32>
    %444 = math.absf %443 : vector<40x128xf32>
    %cst_154 = arith.constant -5.000000e-01 : f32
    %445 = vector.broadcast %cst_154 : f32 to vector<40x128xf32>
    %446 = arith.mulf %444, %445 : vector<40x128xf32>
    %447 = math.exp %446 : vector<40x128xf32>
    %448 = arith.addf %439, %447 : vector<40x128xf32>
    %c127_i32_155 = arith.constant 127 : i32
    %449 = tpu.dynamic_rotate %373 by %c127_i32_155 dim 1 : vector<40x128xf32>, i32 -> vector<40x128xf32>
    %450 = arith.mulf %447, %449 : vector<40x128xf32>
    %451 = arith.addf %441, %450 : vector<40x128xf32>
    %c126_i32_156 = arith.constant 126 : i32
    %452 = tpu.dynamic_rotate %372 by %c126_i32_156 dim 1 : vector<40x128xf32>, i32 -> vector<40x128xf32>
    %453 = arith.subf %26, %452 : vector<40x128xf32>
    %454 = math.absf %453 : vector<40x128xf32>
    %cst_157 = arith.constant -5.000000e-01 : f32
    %455 = vector.broadcast %cst_157 : f32 to vector<40x128xf32>
    %456 = arith.mulf %454, %455 : vector<40x128xf32>
    %457 = math.exp %456 : vector<40x128xf32>
    %458 = arith.addf %448, %457 : vector<40x128xf32>
    %c126_i32_158 = arith.constant 126 : i32
    %459 = tpu.dynamic_rotate %373 by %c126_i32_158 dim 1 : vector<40x128xf32>, i32 -> vector<40x128xf32>
    %460 = arith.mulf %457, %459 : vector<40x128xf32>
    %461 = arith.addf %451, %460 : vector<40x128xf32>
    %c125_i32_159 = arith.constant 125 : i32
    %462 = tpu.dynamic_rotate %372 by %c125_i32_159 dim 1 : vector<40x128xf32>, i32 -> vector<40x128xf32>
    %463 = arith.subf %26, %462 : vector<40x128xf32>
    %464 = math.absf %463 : vector<40x128xf32>
    %cst_160 = arith.constant -5.000000e-01 : f32
    %465 = vector.broadcast %cst_160 : f32 to vector<40x128xf32>
    %466 = arith.mulf %464, %465 : vector<40x128xf32>
    %467 = math.exp %466 : vector<40x128xf32>
    %468 = arith.addf %458, %467 : vector<40x128xf32>
    %c125_i32_161 = arith.constant 125 : i32
    %469 = tpu.dynamic_rotate %373 by %c125_i32_161 dim 1 : vector<40x128xf32>, i32 -> vector<40x128xf32>
    %470 = arith.mulf %467, %469 : vector<40x128xf32>
    %471 = arith.addf %461, %470 : vector<40x128xf32>
    %c124_i32_162 = arith.constant 124 : i32
    %472 = tpu.dynamic_rotate %372 by %c124_i32_162 dim 1 : vector<40x128xf32>, i32 -> vector<40x128xf32>
    %473 = arith.subf %26, %472 : vector<40x128xf32>
    %474 = math.absf %473 : vector<40x128xf32>
    %cst_163 = arith.constant -5.000000e-01 : f32
    %475 = vector.broadcast %cst_163 : f32 to vector<40x128xf32>
    %476 = arith.mulf %474, %475 : vector<40x128xf32>
    %477 = math.exp %476 : vector<40x128xf32>
    %478 = arith.addf %468, %477 : vector<40x128xf32>
    %c124_i32_164 = arith.constant 124 : i32
    %479 = tpu.dynamic_rotate %373 by %c124_i32_164 dim 1 : vector<40x128xf32>, i32 -> vector<40x128xf32>
    %480 = arith.mulf %477, %479 : vector<40x128xf32>
    %481 = arith.addf %471, %480 : vector<40x128xf32>
    %c123_i32_165 = arith.constant 123 : i32
    %482 = tpu.dynamic_rotate %372 by %c123_i32_165 dim 1 : vector<40x128xf32>, i32 -> vector<40x128xf32>
    %483 = arith.subf %26, %482 : vector<40x128xf32>
    %484 = math.absf %483 : vector<40x128xf32>
    %cst_166 = arith.constant -5.000000e-01 : f32
    %485 = vector.broadcast %cst_166 : f32 to vector<40x128xf32>
    %486 = arith.mulf %484, %485 : vector<40x128xf32>
    %487 = math.exp %486 : vector<40x128xf32>
    %488 = arith.addf %478, %487 : vector<40x128xf32>
    %c123_i32_167 = arith.constant 123 : i32
    %489 = tpu.dynamic_rotate %373 by %c123_i32_167 dim 1 : vector<40x128xf32>, i32 -> vector<40x128xf32>
    %490 = arith.mulf %487, %489 : vector<40x128xf32>
    %491 = arith.addf %481, %490 : vector<40x128xf32>
    %c4_i32_168 = arith.constant 4 : i32
    %492 = tpu.dynamic_rotate %26 by %c4_i32_168 dim 0 : vector<40x128xf32>, i32 -> vector<40x128xf32>
    %c4_i32_169 = arith.constant 4 : i32
    %493 = tpu.dynamic_rotate %249 by %c4_i32_169 dim 0 : vector<40x128xf32>, i32 -> vector<40x128xf32>
    %c6_i32_170 = arith.constant 6 : i32
    %494 = tpu.dynamic_rotate %492 by %c6_i32_170 dim 1 : vector<40x128xf32>, i32 -> vector<40x128xf32>
    %495 = arith.subf %26, %494 : vector<40x128xf32>
    %496 = math.absf %495 : vector<40x128xf32>
    %cst_171 = arith.constant -5.000000e-01 : f32
    %497 = vector.broadcast %cst_171 : f32 to vector<40x128xf32>
    %498 = arith.mulf %496, %497 : vector<40x128xf32>
    %499 = math.exp %498 : vector<40x128xf32>
    %500 = arith.addf %488, %499 : vector<40x128xf32>
    %c6_i32_172 = arith.constant 6 : i32
    %501 = tpu.dynamic_rotate %493 by %c6_i32_172 dim 1 : vector<40x128xf32>, i32 -> vector<40x128xf32>
    %502 = arith.mulf %499, %501 : vector<40x128xf32>
    %503 = arith.addf %491, %502 : vector<40x128xf32>
    %c5_i32_173 = arith.constant 5 : i32
    %504 = tpu.dynamic_rotate %492 by %c5_i32_173 dim 1 : vector<40x128xf32>, i32 -> vector<40x128xf32>
    %505 = arith.subf %26, %504 : vector<40x128xf32>
    %506 = math.absf %505 : vector<40x128xf32>
    %cst_174 = arith.constant -5.000000e-01 : f32
    %507 = vector.broadcast %cst_174 : f32 to vector<40x128xf32>
    %508 = arith.mulf %506, %507 : vector<40x128xf32>
    %509 = math.exp %508 : vector<40x128xf32>
    %510 = arith.addf %500, %509 : vector<40x128xf32>
    %c5_i32_175 = arith.constant 5 : i32
    %511 = tpu.dynamic_rotate %493 by %c5_i32_175 dim 1 : vector<40x128xf32>, i32 -> vector<40x128xf32>
    %512 = arith.mulf %509, %511 : vector<40x128xf32>
    %513 = arith.addf %503, %512 : vector<40x128xf32>
    %c4_i32_176 = arith.constant 4 : i32
    %514 = tpu.dynamic_rotate %492 by %c4_i32_176 dim 1 : vector<40x128xf32>, i32 -> vector<40x128xf32>
    %515 = arith.subf %26, %514 : vector<40x128xf32>
    %516 = math.absf %515 : vector<40x128xf32>
    %cst_177 = arith.constant -5.000000e-01 : f32
    %517 = vector.broadcast %cst_177 : f32 to vector<40x128xf32>
    %518 = arith.mulf %516, %517 : vector<40x128xf32>
    %519 = math.exp %518 : vector<40x128xf32>
    %520 = arith.addf %510, %519 : vector<40x128xf32>
    %c4_i32_178 = arith.constant 4 : i32
    %521 = tpu.dynamic_rotate %493 by %c4_i32_178 dim 1 : vector<40x128xf32>, i32 -> vector<40x128xf32>
    %522 = arith.mulf %519, %521 : vector<40x128xf32>
    %523 = arith.addf %513, %522 : vector<40x128xf32>
    %c3_i32_179 = arith.constant 3 : i32
    %524 = tpu.dynamic_rotate %492 by %c3_i32_179 dim 1 : vector<40x128xf32>, i32 -> vector<40x128xf32>
    %525 = arith.subf %26, %524 : vector<40x128xf32>
    %526 = math.absf %525 : vector<40x128xf32>
    %cst_180 = arith.constant -5.000000e-01 : f32
    %527 = vector.broadcast %cst_180 : f32 to vector<40x128xf32>
    %528 = arith.mulf %526, %527 : vector<40x128xf32>
    %529 = math.exp %528 : vector<40x128xf32>
    %530 = arith.addf %520, %529 : vector<40x128xf32>
    %c3_i32_181 = arith.constant 3 : i32
    %531 = tpu.dynamic_rotate %493 by %c3_i32_181 dim 1 : vector<40x128xf32>, i32 -> vector<40x128xf32>
    %532 = arith.mulf %529, %531 : vector<40x128xf32>
    %533 = arith.addf %523, %532 : vector<40x128xf32>
    %c2_i32_182 = arith.constant 2 : i32
    %534 = tpu.dynamic_rotate %492 by %c2_i32_182 dim 1 : vector<40x128xf32>, i32 -> vector<40x128xf32>
    %535 = arith.subf %26, %534 : vector<40x128xf32>
    %536 = math.absf %535 : vector<40x128xf32>
    %cst_183 = arith.constant -5.000000e-01 : f32
    %537 = vector.broadcast %cst_183 : f32 to vector<40x128xf32>
    %538 = arith.mulf %536, %537 : vector<40x128xf32>
    %539 = math.exp %538 : vector<40x128xf32>
    %540 = arith.addf %530, %539 : vector<40x128xf32>
    %c2_i32_184 = arith.constant 2 : i32
    %541 = tpu.dynamic_rotate %493 by %c2_i32_184 dim 1 : vector<40x128xf32>, i32 -> vector<40x128xf32>
    %542 = arith.mulf %539, %541 : vector<40x128xf32>
    %543 = arith.addf %533, %542 : vector<40x128xf32>
    %c1_i32_185 = arith.constant 1 : i32
    %544 = tpu.dynamic_rotate %492 by %c1_i32_185 dim 1 : vector<40x128xf32>, i32 -> vector<40x128xf32>
    %545 = arith.subf %26, %544 : vector<40x128xf32>
    %546 = math.absf %545 : vector<40x128xf32>
    %cst_186 = arith.constant -5.000000e-01 : f32
    %547 = vector.broadcast %cst_186 : f32 to vector<40x128xf32>
    %548 = arith.mulf %546, %547 : vector<40x128xf32>
    %549 = math.exp %548 : vector<40x128xf32>
    %550 = arith.addf %540, %549 : vector<40x128xf32>
    %c1_i32_187 = arith.constant 1 : i32
    %551 = tpu.dynamic_rotate %493 by %c1_i32_187 dim 1 : vector<40x128xf32>, i32 -> vector<40x128xf32>
    %552 = arith.mulf %549, %551 : vector<40x128xf32>
    %553 = arith.addf %543, %552 : vector<40x128xf32>
    %554 = arith.subf %26, %492 : vector<40x128xf32>
    %555 = math.absf %554 : vector<40x128xf32>
    %cst_188 = arith.constant -5.000000e-01 : f32
    %556 = vector.broadcast %cst_188 : f32 to vector<40x128xf32>
    %557 = arith.mulf %555, %556 : vector<40x128xf32>
    %558 = math.exp %557 : vector<40x128xf32>
    %559 = arith.addf %550, %558 : vector<40x128xf32>
    %560 = arith.mulf %558, %493 : vector<40x128xf32>
    %561 = arith.addf %553, %560 : vector<40x128xf32>
    %c127_i32_189 = arith.constant 127 : i32
    %562 = tpu.dynamic_rotate %492 by %c127_i32_189 dim 1 : vector<40x128xf32>, i32 -> vector<40x128xf32>
    %563 = arith.subf %26, %562 : vector<40x128xf32>
    %564 = math.absf %563 : vector<40x128xf32>
    %cst_190 = arith.constant -5.000000e-01 : f32
    %565 = vector.broadcast %cst_190 : f32 to vector<40x128xf32>
    %566 = arith.mulf %564, %565 : vector<40x128xf32>
    %567 = math.exp %566 : vector<40x128xf32>
    %568 = arith.addf %559, %567 : vector<40x128xf32>
    %c127_i32_191 = arith.constant 127 : i32
    %569 = tpu.dynamic_rotate %493 by %c127_i32_191 dim 1 : vector<40x128xf32>, i32 -> vector<40x128xf32>
    %570 = arith.mulf %567, %569 : vector<40x128xf32>
    %571 = arith.addf %561, %570 : vector<40x128xf32>
    %c126_i32_192 = arith.constant 126 : i32
    %572 = tpu.dynamic_rotate %492 by %c126_i32_192 dim 1 : vector<40x128xf32>, i32 -> vector<40x128xf32>
    %573 = arith.subf %26, %572 : vector<40x128xf32>
    %574 = math.absf %573 : vector<40x128xf32>
    %cst_193 = arith.constant -5.000000e-01 : f32
    %575 = vector.broadcast %cst_193 : f32 to vector<40x128xf32>
    %576 = arith.mulf %574, %575 : vector<40x128xf32>
    %577 = math.exp %576 : vector<40x128xf32>
    %578 = arith.addf %568, %577 : vector<40x128xf32>
    %c126_i32_194 = arith.constant 126 : i32
    %579 = tpu.dynamic_rotate %493 by %c126_i32_194 dim 1 : vector<40x128xf32>, i32 -> vector<40x128xf32>
    %580 = arith.mulf %577, %579 : vector<40x128xf32>
    %581 = arith.addf %571, %580 : vector<40x128xf32>
    %c125_i32_195 = arith.constant 125 : i32
    %582 = tpu.dynamic_rotate %492 by %c125_i32_195 dim 1 : vector<40x128xf32>, i32 -> vector<40x128xf32>
    %583 = arith.subf %26, %582 : vector<40x128xf32>
    %584 = math.absf %583 : vector<40x128xf32>
    %cst_196 = arith.constant -5.000000e-01 : f32
    %585 = vector.broadcast %cst_196 : f32 to vector<40x128xf32>
    %586 = arith.mulf %584, %585 : vector<40x128xf32>
    %587 = math.exp %586 : vector<40x128xf32>
    %588 = arith.addf %578, %587 : vector<40x128xf32>
    %c125_i32_197 = arith.constant 125 : i32
    %589 = tpu.dynamic_rotate %493 by %c125_i32_197 dim 1 : vector<40x128xf32>, i32 -> vector<40x128xf32>
    %590 = arith.mulf %587, %589 : vector<40x128xf32>
    %591 = arith.addf %581, %590 : vector<40x128xf32>
    %c124_i32_198 = arith.constant 124 : i32
    %592 = tpu.dynamic_rotate %492 by %c124_i32_198 dim 1 : vector<40x128xf32>, i32 -> vector<40x128xf32>
    %593 = arith.subf %26, %592 : vector<40x128xf32>
    %594 = math.absf %593 : vector<40x128xf32>
    %cst_199 = arith.constant -5.000000e-01 : f32
    %595 = vector.broadcast %cst_199 : f32 to vector<40x128xf32>
    %596 = arith.mulf %594, %595 : vector<40x128xf32>
    %597 = math.exp %596 : vector<40x128xf32>
    %598 = arith.addf %588, %597 : vector<40x128xf32>
    %c124_i32_200 = arith.constant 124 : i32
    %599 = tpu.dynamic_rotate %493 by %c124_i32_200 dim 1 : vector<40x128xf32>, i32 -> vector<40x128xf32>
    %600 = arith.mulf %597, %599 : vector<40x128xf32>
    %601 = arith.addf %591, %600 : vector<40x128xf32>
    %c123_i32_201 = arith.constant 123 : i32
    %602 = tpu.dynamic_rotate %492 by %c123_i32_201 dim 1 : vector<40x128xf32>, i32 -> vector<40x128xf32>
    %603 = arith.subf %26, %602 : vector<40x128xf32>
    %604 = math.absf %603 : vector<40x128xf32>
    %cst_202 = arith.constant -5.000000e-01 : f32
    %605 = vector.broadcast %cst_202 : f32 to vector<40x128xf32>
    %606 = arith.mulf %604, %605 : vector<40x128xf32>
    %607 = math.exp %606 : vector<40x128xf32>
    %608 = arith.addf %598, %607 : vector<40x128xf32>
    %c123_i32_203 = arith.constant 123 : i32
    %609 = tpu.dynamic_rotate %493 by %c123_i32_203 dim 1 : vector<40x128xf32>, i32 -> vector<40x128xf32>
    %610 = arith.mulf %607, %609 : vector<40x128xf32>
    %611 = arith.addf %601, %610 : vector<40x128xf32>
    %c3_i32_204 = arith.constant 3 : i32
    %612 = tpu.dynamic_rotate %26 by %c3_i32_204 dim 0 : vector<40x128xf32>, i32 -> vector<40x128xf32>
    %c3_i32_205 = arith.constant 3 : i32
    %613 = tpu.dynamic_rotate %249 by %c3_i32_205 dim 0 : vector<40x128xf32>, i32 -> vector<40x128xf32>
    %c6_i32_206 = arith.constant 6 : i32
    %614 = tpu.dynamic_rotate %612 by %c6_i32_206 dim 1 : vector<40x128xf32>, i32 -> vector<40x128xf32>
    %615 = arith.subf %26, %614 : vector<40x128xf32>
    %616 = math.absf %615 : vector<40x128xf32>
    %cst_207 = arith.constant -5.000000e-01 : f32
    %617 = vector.broadcast %cst_207 : f32 to vector<40x128xf32>
    %618 = arith.mulf %616, %617 : vector<40x128xf32>
    %619 = math.exp %618 : vector<40x128xf32>
    %620 = arith.addf %608, %619 : vector<40x128xf32>
    %c6_i32_208 = arith.constant 6 : i32
    %621 = tpu.dynamic_rotate %613 by %c6_i32_208 dim 1 : vector<40x128xf32>, i32 -> vector<40x128xf32>
    %622 = arith.mulf %619, %621 : vector<40x128xf32>
    %623 = arith.addf %611, %622 : vector<40x128xf32>
    %c5_i32_209 = arith.constant 5 : i32
    %624 = tpu.dynamic_rotate %612 by %c5_i32_209 dim 1 : vector<40x128xf32>, i32 -> vector<40x128xf32>
    %625 = arith.subf %26, %624 : vector<40x128xf32>
    %626 = math.absf %625 : vector<40x128xf32>
    %cst_210 = arith.constant -5.000000e-01 : f32
    %627 = vector.broadcast %cst_210 : f32 to vector<40x128xf32>
    %628 = arith.mulf %626, %627 : vector<40x128xf32>
    %629 = math.exp %628 : vector<40x128xf32>
    %630 = arith.addf %620, %629 : vector<40x128xf32>
    %c5_i32_211 = arith.constant 5 : i32
    %631 = tpu.dynamic_rotate %613 by %c5_i32_211 dim 1 : vector<40x128xf32>, i32 -> vector<40x128xf32>
    %632 = arith.mulf %629, %631 : vector<40x128xf32>
    %633 = arith.addf %623, %632 : vector<40x128xf32>
    %c4_i32_212 = arith.constant 4 : i32
    %634 = tpu.dynamic_rotate %612 by %c4_i32_212 dim 1 : vector<40x128xf32>, i32 -> vector<40x128xf32>
    %635 = arith.subf %26, %634 : vector<40x128xf32>
    %636 = math.absf %635 : vector<40x128xf32>
    %cst_213 = arith.constant -5.000000e-01 : f32
    %637 = vector.broadcast %cst_213 : f32 to vector<40x128xf32>
    %638 = arith.mulf %636, %637 : vector<40x128xf32>
    %639 = math.exp %638 : vector<40x128xf32>
    %640 = arith.addf %630, %639 : vector<40x128xf32>
    %c4_i32_214 = arith.constant 4 : i32
    %641 = tpu.dynamic_rotate %613 by %c4_i32_214 dim 1 : vector<40x128xf32>, i32 -> vector<40x128xf32>
    %642 = arith.mulf %639, %641 : vector<40x128xf32>
    %643 = arith.addf %633, %642 : vector<40x128xf32>
    %c3_i32_215 = arith.constant 3 : i32
    %644 = tpu.dynamic_rotate %612 by %c3_i32_215 dim 1 : vector<40x128xf32>, i32 -> vector<40x128xf32>
    %645 = arith.subf %26, %644 : vector<40x128xf32>
    %646 = math.absf %645 : vector<40x128xf32>
    %cst_216 = arith.constant -5.000000e-01 : f32
    %647 = vector.broadcast %cst_216 : f32 to vector<40x128xf32>
    %648 = arith.mulf %646, %647 : vector<40x128xf32>
    %649 = math.exp %648 : vector<40x128xf32>
    %650 = arith.addf %640, %649 : vector<40x128xf32>
    %c3_i32_217 = arith.constant 3 : i32
    %651 = tpu.dynamic_rotate %613 by %c3_i32_217 dim 1 : vector<40x128xf32>, i32 -> vector<40x128xf32>
    %652 = arith.mulf %649, %651 : vector<40x128xf32>
    %653 = arith.addf %643, %652 : vector<40x128xf32>
    %c2_i32_218 = arith.constant 2 : i32
    %654 = tpu.dynamic_rotate %612 by %c2_i32_218 dim 1 : vector<40x128xf32>, i32 -> vector<40x128xf32>
    %655 = arith.subf %26, %654 : vector<40x128xf32>
    %656 = math.absf %655 : vector<40x128xf32>
    %cst_219 = arith.constant -5.000000e-01 : f32
    %657 = vector.broadcast %cst_219 : f32 to vector<40x128xf32>
    %658 = arith.mulf %656, %657 : vector<40x128xf32>
    %659 = math.exp %658 : vector<40x128xf32>
    %660 = arith.addf %650, %659 : vector<40x128xf32>
    %c2_i32_220 = arith.constant 2 : i32
    %661 = tpu.dynamic_rotate %613 by %c2_i32_220 dim 1 : vector<40x128xf32>, i32 -> vector<40x128xf32>
    %662 = arith.mulf %659, %661 : vector<40x128xf32>
    %663 = arith.addf %653, %662 : vector<40x128xf32>
    %c1_i32_221 = arith.constant 1 : i32
    %664 = tpu.dynamic_rotate %612 by %c1_i32_221 dim 1 : vector<40x128xf32>, i32 -> vector<40x128xf32>
    %665 = arith.subf %26, %664 : vector<40x128xf32>
    %666 = math.absf %665 : vector<40x128xf32>
    %cst_222 = arith.constant -5.000000e-01 : f32
    %667 = vector.broadcast %cst_222 : f32 to vector<40x128xf32>
    %668 = arith.mulf %666, %667 : vector<40x128xf32>
    %669 = math.exp %668 : vector<40x128xf32>
    %670 = arith.addf %660, %669 : vector<40x128xf32>
    %c1_i32_223 = arith.constant 1 : i32
    %671 = tpu.dynamic_rotate %613 by %c1_i32_223 dim 1 : vector<40x128xf32>, i32 -> vector<40x128xf32>
    %672 = arith.mulf %669, %671 : vector<40x128xf32>
    %673 = arith.addf %663, %672 : vector<40x128xf32>
    %674 = arith.subf %26, %612 : vector<40x128xf32>
    %675 = math.absf %674 : vector<40x128xf32>
    %cst_224 = arith.constant -5.000000e-01 : f32
    %676 = vector.broadcast %cst_224 : f32 to vector<40x128xf32>
    %677 = arith.mulf %675, %676 : vector<40x128xf32>
    %678 = math.exp %677 : vector<40x128xf32>
    %679 = arith.addf %670, %678 : vector<40x128xf32>
    %680 = arith.mulf %678, %613 : vector<40x128xf32>
    %681 = arith.addf %673, %680 : vector<40x128xf32>
    %c127_i32_225 = arith.constant 127 : i32
    %682 = tpu.dynamic_rotate %612 by %c127_i32_225 dim 1 : vector<40x128xf32>, i32 -> vector<40x128xf32>
    %683 = arith.subf %26, %682 : vector<40x128xf32>
    %684 = math.absf %683 : vector<40x128xf32>
    %cst_226 = arith.constant -5.000000e-01 : f32
    %685 = vector.broadcast %cst_226 : f32 to vector<40x128xf32>
    %686 = arith.mulf %684, %685 : vector<40x128xf32>
    %687 = math.exp %686 : vector<40x128xf32>
    %688 = arith.addf %679, %687 : vector<40x128xf32>
    %c127_i32_227 = arith.constant 127 : i32
    %689 = tpu.dynamic_rotate %613 by %c127_i32_227 dim 1 : vector<40x128xf32>, i32 -> vector<40x128xf32>
    %690 = arith.mulf %687, %689 : vector<40x128xf32>
    %691 = arith.addf %681, %690 : vector<40x128xf32>
    %c126_i32_228 = arith.constant 126 : i32
    %692 = tpu.dynamic_rotate %612 by %c126_i32_228 dim 1 : vector<40x128xf32>, i32 -> vector<40x128xf32>
    %693 = arith.subf %26, %692 : vector<40x128xf32>
    %694 = math.absf %693 : vector<40x128xf32>
    %cst_229 = arith.constant -5.000000e-01 : f32
    %695 = vector.broadcast %cst_229 : f32 to vector<40x128xf32>
    %696 = arith.mulf %694, %695 : vector<40x128xf32>
    %697 = math.exp %696 : vector<40x128xf32>
    %698 = arith.addf %688, %697 : vector<40x128xf32>
    %c126_i32_230 = arith.constant 126 : i32
    %699 = tpu.dynamic_rotate %613 by %c126_i32_230 dim 1 : vector<40x128xf32>, i32 -> vector<40x128xf32>
    %700 = arith.mulf %697, %699 : vector<40x128xf32>
    %701 = arith.addf %691, %700 : vector<40x128xf32>
    %c125_i32_231 = arith.constant 125 : i32
    %702 = tpu.dynamic_rotate %612 by %c125_i32_231 dim 1 : vector<40x128xf32>, i32 -> vector<40x128xf32>
    %703 = arith.subf %26, %702 : vector<40x128xf32>
    %704 = math.absf %703 : vector<40x128xf32>
    %cst_232 = arith.constant -5.000000e-01 : f32
    %705 = vector.broadcast %cst_232 : f32 to vector<40x128xf32>
    %706 = arith.mulf %704, %705 : vector<40x128xf32>
    %707 = math.exp %706 : vector<40x128xf32>
    %708 = arith.addf %698, %707 : vector<40x128xf32>
    %c125_i32_233 = arith.constant 125 : i32
    %709 = tpu.dynamic_rotate %613 by %c125_i32_233 dim 1 : vector<40x128xf32>, i32 -> vector<40x128xf32>
    %710 = arith.mulf %707, %709 : vector<40x128xf32>
    %711 = arith.addf %701, %710 : vector<40x128xf32>
    %c124_i32_234 = arith.constant 124 : i32
    %712 = tpu.dynamic_rotate %612 by %c124_i32_234 dim 1 : vector<40x128xf32>, i32 -> vector<40x128xf32>
    %713 = arith.subf %26, %712 : vector<40x128xf32>
    %714 = math.absf %713 : vector<40x128xf32>
    %cst_235 = arith.constant -5.000000e-01 : f32
    %715 = vector.broadcast %cst_235 : f32 to vector<40x128xf32>
    %716 = arith.mulf %714, %715 : vector<40x128xf32>
    %717 = math.exp %716 : vector<40x128xf32>
    %718 = arith.addf %708, %717 : vector<40x128xf32>
    %c124_i32_236 = arith.constant 124 : i32
    %719 = tpu.dynamic_rotate %613 by %c124_i32_236 dim 1 : vector<40x128xf32>, i32 -> vector<40x128xf32>
    %720 = arith.mulf %717, %719 : vector<40x128xf32>
    %721 = arith.addf %711, %720 : vector<40x128xf32>
    %c123_i32_237 = arith.constant 123 : i32
    %722 = tpu.dynamic_rotate %612 by %c123_i32_237 dim 1 : vector<40x128xf32>, i32 -> vector<40x128xf32>
    %723 = arith.subf %26, %722 : vector<40x128xf32>
    %724 = math.absf %723 : vector<40x128xf32>
    %cst_238 = arith.constant -5.000000e-01 : f32
    %725 = vector.broadcast %cst_238 : f32 to vector<40x128xf32>
    %726 = arith.mulf %724, %725 : vector<40x128xf32>
    %727 = math.exp %726 : vector<40x128xf32>
    %728 = arith.addf %718, %727 : vector<40x128xf32>
    %c123_i32_239 = arith.constant 123 : i32
    %729 = tpu.dynamic_rotate %613 by %c123_i32_239 dim 1 : vector<40x128xf32>, i32 -> vector<40x128xf32>
    %730 = arith.mulf %727, %729 : vector<40x128xf32>
    %731 = arith.addf %721, %730 : vector<40x128xf32>
    %c2_i32_240 = arith.constant 2 : i32
    %732 = tpu.dynamic_rotate %26 by %c2_i32_240 dim 0 : vector<40x128xf32>, i32 -> vector<40x128xf32>
    %c2_i32_241 = arith.constant 2 : i32
    %733 = tpu.dynamic_rotate %249 by %c2_i32_241 dim 0 : vector<40x128xf32>, i32 -> vector<40x128xf32>
    %c6_i32_242 = arith.constant 6 : i32
    %734 = tpu.dynamic_rotate %732 by %c6_i32_242 dim 1 : vector<40x128xf32>, i32 -> vector<40x128xf32>
    %735 = arith.subf %26, %734 : vector<40x128xf32>
    %736 = math.absf %735 : vector<40x128xf32>
    %cst_243 = arith.constant -5.000000e-01 : f32
    %737 = vector.broadcast %cst_243 : f32 to vector<40x128xf32>
    %738 = arith.mulf %736, %737 : vector<40x128xf32>
    %739 = math.exp %738 : vector<40x128xf32>
    %740 = arith.addf %728, %739 : vector<40x128xf32>
    %c6_i32_244 = arith.constant 6 : i32
    %741 = tpu.dynamic_rotate %733 by %c6_i32_244 dim 1 : vector<40x128xf32>, i32 -> vector<40x128xf32>
    %742 = arith.mulf %739, %741 : vector<40x128xf32>
    %743 = arith.addf %731, %742 : vector<40x128xf32>
    %c5_i32_245 = arith.constant 5 : i32
    %744 = tpu.dynamic_rotate %732 by %c5_i32_245 dim 1 : vector<40x128xf32>, i32 -> vector<40x128xf32>
    %745 = arith.subf %26, %744 : vector<40x128xf32>
    %746 = math.absf %745 : vector<40x128xf32>
    %cst_246 = arith.constant -5.000000e-01 : f32
    %747 = vector.broadcast %cst_246 : f32 to vector<40x128xf32>
    %748 = arith.mulf %746, %747 : vector<40x128xf32>
    %749 = math.exp %748 : vector<40x128xf32>
    %750 = arith.addf %740, %749 : vector<40x128xf32>
    %c5_i32_247 = arith.constant 5 : i32
    %751 = tpu.dynamic_rotate %733 by %c5_i32_247 dim 1 : vector<40x128xf32>, i32 -> vector<40x128xf32>
    %752 = arith.mulf %749, %751 : vector<40x128xf32>
    %753 = arith.addf %743, %752 : vector<40x128xf32>
    %c4_i32_248 = arith.constant 4 : i32
    %754 = tpu.dynamic_rotate %732 by %c4_i32_248 dim 1 : vector<40x128xf32>, i32 -> vector<40x128xf32>
    %755 = arith.subf %26, %754 : vector<40x128xf32>
    %756 = math.absf %755 : vector<40x128xf32>
    %cst_249 = arith.constant -5.000000e-01 : f32
    %757 = vector.broadcast %cst_249 : f32 to vector<40x128xf32>
    %758 = arith.mulf %756, %757 : vector<40x128xf32>
    %759 = math.exp %758 : vector<40x128xf32>
    %760 = arith.addf %750, %759 : vector<40x128xf32>
    %c4_i32_250 = arith.constant 4 : i32
    %761 = tpu.dynamic_rotate %733 by %c4_i32_250 dim 1 : vector<40x128xf32>, i32 -> vector<40x128xf32>
    %762 = arith.mulf %759, %761 : vector<40x128xf32>
    %763 = arith.addf %753, %762 : vector<40x128xf32>
    %c3_i32_251 = arith.constant 3 : i32
    %764 = tpu.dynamic_rotate %732 by %c3_i32_251 dim 1 : vector<40x128xf32>, i32 -> vector<40x128xf32>
    %765 = arith.subf %26, %764 : vector<40x128xf32>
    %766 = math.absf %765 : vector<40x128xf32>
    %cst_252 = arith.constant -5.000000e-01 : f32
    %767 = vector.broadcast %cst_252 : f32 to vector<40x128xf32>
    %768 = arith.mulf %766, %767 : vector<40x128xf32>
    %769 = math.exp %768 : vector<40x128xf32>
    %770 = arith.addf %760, %769 : vector<40x128xf32>
    %c3_i32_253 = arith.constant 3 : i32
    %771 = tpu.dynamic_rotate %733 by %c3_i32_253 dim 1 : vector<40x128xf32>, i32 -> vector<40x128xf32>
    %772 = arith.mulf %769, %771 : vector<40x128xf32>
    %773 = arith.addf %763, %772 : vector<40x128xf32>
    %c2_i32_254 = arith.constant 2 : i32
    %774 = tpu.dynamic_rotate %732 by %c2_i32_254 dim 1 : vector<40x128xf32>, i32 -> vector<40x128xf32>
    %775 = arith.subf %26, %774 : vector<40x128xf32>
    %776 = math.absf %775 : vector<40x128xf32>
    %cst_255 = arith.constant -5.000000e-01 : f32
    %777 = vector.broadcast %cst_255 : f32 to vector<40x128xf32>
    %778 = arith.mulf %776, %777 : vector<40x128xf32>
    %779 = math.exp %778 : vector<40x128xf32>
    %780 = arith.addf %770, %779 : vector<40x128xf32>
    %c2_i32_256 = arith.constant 2 : i32
    %781 = tpu.dynamic_rotate %733 by %c2_i32_256 dim 1 : vector<40x128xf32>, i32 -> vector<40x128xf32>
    %782 = arith.mulf %779, %781 : vector<40x128xf32>
    %783 = arith.addf %773, %782 : vector<40x128xf32>
    %c1_i32_257 = arith.constant 1 : i32
    %784 = tpu.dynamic_rotate %732 by %c1_i32_257 dim 1 : vector<40x128xf32>, i32 -> vector<40x128xf32>
    %785 = arith.subf %26, %784 : vector<40x128xf32>
    %786 = math.absf %785 : vector<40x128xf32>
    %cst_258 = arith.constant -5.000000e-01 : f32
    %787 = vector.broadcast %cst_258 : f32 to vector<40x128xf32>
    %788 = arith.mulf %786, %787 : vector<40x128xf32>
    %789 = math.exp %788 : vector<40x128xf32>
    %790 = arith.addf %780, %789 : vector<40x128xf32>
    %c1_i32_259 = arith.constant 1 : i32
    %791 = tpu.dynamic_rotate %733 by %c1_i32_259 dim 1 : vector<40x128xf32>, i32 -> vector<40x128xf32>
    %792 = arith.mulf %789, %791 : vector<40x128xf32>
    %793 = arith.addf %783, %792 : vector<40x128xf32>
    %794 = arith.subf %26, %732 : vector<40x128xf32>
    %795 = math.absf %794 : vector<40x128xf32>
    %cst_260 = arith.constant -5.000000e-01 : f32
    %796 = vector.broadcast %cst_260 : f32 to vector<40x128xf32>
    %797 = arith.mulf %795, %796 : vector<40x128xf32>
    %798 = math.exp %797 : vector<40x128xf32>
    %799 = arith.addf %790, %798 : vector<40x128xf32>
    %800 = arith.mulf %798, %733 : vector<40x128xf32>
    %801 = arith.addf %793, %800 : vector<40x128xf32>
    %c127_i32_261 = arith.constant 127 : i32
    %802 = tpu.dynamic_rotate %732 by %c127_i32_261 dim 1 : vector<40x128xf32>, i32 -> vector<40x128xf32>
    %803 = arith.subf %26, %802 : vector<40x128xf32>
    %804 = math.absf %803 : vector<40x128xf32>
    %cst_262 = arith.constant -5.000000e-01 : f32
    %805 = vector.broadcast %cst_262 : f32 to vector<40x128xf32>
    %806 = arith.mulf %804, %805 : vector<40x128xf32>
    %807 = math.exp %806 : vector<40x128xf32>
    %808 = arith.addf %799, %807 : vector<40x128xf32>
    %c127_i32_263 = arith.constant 127 : i32
    %809 = tpu.dynamic_rotate %733 by %c127_i32_263 dim 1 : vector<40x128xf32>, i32 -> vector<40x128xf32>
    %810 = arith.mulf %807, %809 : vector<40x128xf32>
    %811 = arith.addf %801, %810 : vector<40x128xf32>
    %c126_i32_264 = arith.constant 126 : i32
    %812 = tpu.dynamic_rotate %732 by %c126_i32_264 dim 1 : vector<40x128xf32>, i32 -> vector<40x128xf32>
    %813 = arith.subf %26, %812 : vector<40x128xf32>
    %814 = math.absf %813 : vector<40x128xf32>
    %cst_265 = arith.constant -5.000000e-01 : f32
    %815 = vector.broadcast %cst_265 : f32 to vector<40x128xf32>
    %816 = arith.mulf %814, %815 : vector<40x128xf32>
    %817 = math.exp %816 : vector<40x128xf32>
    %818 = arith.addf %808, %817 : vector<40x128xf32>
    %c126_i32_266 = arith.constant 126 : i32
    %819 = tpu.dynamic_rotate %733 by %c126_i32_266 dim 1 : vector<40x128xf32>, i32 -> vector<40x128xf32>
    %820 = arith.mulf %817, %819 : vector<40x128xf32>
    %821 = arith.addf %811, %820 : vector<40x128xf32>
    %c125_i32_267 = arith.constant 125 : i32
    %822 = tpu.dynamic_rotate %732 by %c125_i32_267 dim 1 : vector<40x128xf32>, i32 -> vector<40x128xf32>
    %823 = arith.subf %26, %822 : vector<40x128xf32>
    %824 = math.absf %823 : vector<40x128xf32>
    %cst_268 = arith.constant -5.000000e-01 : f32
    %825 = vector.broadcast %cst_268 : f32 to vector<40x128xf32>
    %826 = arith.mulf %824, %825 : vector<40x128xf32>
    %827 = math.exp %826 : vector<40x128xf32>
    %828 = arith.addf %818, %827 : vector<40x128xf32>
    %c125_i32_269 = arith.constant 125 : i32
    %829 = tpu.dynamic_rotate %733 by %c125_i32_269 dim 1 : vector<40x128xf32>, i32 -> vector<40x128xf32>
    %830 = arith.mulf %827, %829 : vector<40x128xf32>
    %831 = arith.addf %821, %830 : vector<40x128xf32>
    %c124_i32_270 = arith.constant 124 : i32
    %832 = tpu.dynamic_rotate %732 by %c124_i32_270 dim 1 : vector<40x128xf32>, i32 -> vector<40x128xf32>
    %833 = arith.subf %26, %832 : vector<40x128xf32>
    %834 = math.absf %833 : vector<40x128xf32>
    %cst_271 = arith.constant -5.000000e-01 : f32
    %835 = vector.broadcast %cst_271 : f32 to vector<40x128xf32>
    %836 = arith.mulf %834, %835 : vector<40x128xf32>
    %837 = math.exp %836 : vector<40x128xf32>
    %838 = arith.addf %828, %837 : vector<40x128xf32>
    %c124_i32_272 = arith.constant 124 : i32
    %839 = tpu.dynamic_rotate %733 by %c124_i32_272 dim 1 : vector<40x128xf32>, i32 -> vector<40x128xf32>
    %840 = arith.mulf %837, %839 : vector<40x128xf32>
    %841 = arith.addf %831, %840 : vector<40x128xf32>
    %c123_i32_273 = arith.constant 123 : i32
    %842 = tpu.dynamic_rotate %732 by %c123_i32_273 dim 1 : vector<40x128xf32>, i32 -> vector<40x128xf32>
    %843 = arith.subf %26, %842 : vector<40x128xf32>
    %844 = math.absf %843 : vector<40x128xf32>
    %cst_274 = arith.constant -5.000000e-01 : f32
    %845 = vector.broadcast %cst_274 : f32 to vector<40x128xf32>
    %846 = arith.mulf %844, %845 : vector<40x128xf32>
    %847 = math.exp %846 : vector<40x128xf32>
    %848 = arith.addf %838, %847 : vector<40x128xf32>
    %c123_i32_275 = arith.constant 123 : i32
    %849 = tpu.dynamic_rotate %733 by %c123_i32_275 dim 1 : vector<40x128xf32>, i32 -> vector<40x128xf32>
    %850 = arith.mulf %847, %849 : vector<40x128xf32>
    %851 = arith.addf %841, %850 : vector<40x128xf32>
    %c1_i32_276 = arith.constant 1 : i32
    %852 = tpu.dynamic_rotate %26 by %c1_i32_276 dim 0 : vector<40x128xf32>, i32 -> vector<40x128xf32>
    %c1_i32_277 = arith.constant 1 : i32
    %853 = tpu.dynamic_rotate %249 by %c1_i32_277 dim 0 : vector<40x128xf32>, i32 -> vector<40x128xf32>
    %c6_i32_278 = arith.constant 6 : i32
    %854 = tpu.dynamic_rotate %852 by %c6_i32_278 dim 1 : vector<40x128xf32>, i32 -> vector<40x128xf32>
    %855 = arith.subf %26, %854 : vector<40x128xf32>
    %856 = math.absf %855 : vector<40x128xf32>
    %cst_279 = arith.constant -5.000000e-01 : f32
    %857 = vector.broadcast %cst_279 : f32 to vector<40x128xf32>
    %858 = arith.mulf %856, %857 : vector<40x128xf32>
    %859 = math.exp %858 : vector<40x128xf32>
    %860 = arith.addf %848, %859 : vector<40x128xf32>
    %c6_i32_280 = arith.constant 6 : i32
    %861 = tpu.dynamic_rotate %853 by %c6_i32_280 dim 1 : vector<40x128xf32>, i32 -> vector<40x128xf32>
    %862 = arith.mulf %859, %861 : vector<40x128xf32>
    %863 = arith.addf %851, %862 : vector<40x128xf32>
    %c5_i32_281 = arith.constant 5 : i32
    %864 = tpu.dynamic_rotate %852 by %c5_i32_281 dim 1 : vector<40x128xf32>, i32 -> vector<40x128xf32>
    %865 = arith.subf %26, %864 : vector<40x128xf32>
    %866 = math.absf %865 : vector<40x128xf32>
    %cst_282 = arith.constant -5.000000e-01 : f32
    %867 = vector.broadcast %cst_282 : f32 to vector<40x128xf32>
    %868 = arith.mulf %866, %867 : vector<40x128xf32>
    %869 = math.exp %868 : vector<40x128xf32>
    %870 = arith.addf %860, %869 : vector<40x128xf32>
    %c5_i32_283 = arith.constant 5 : i32
    %871 = tpu.dynamic_rotate %853 by %c5_i32_283 dim 1 : vector<40x128xf32>, i32 -> vector<40x128xf32>
    %872 = arith.mulf %869, %871 : vector<40x128xf32>
    %873 = arith.addf %863, %872 : vector<40x128xf32>
    %c4_i32_284 = arith.constant 4 : i32
    %874 = tpu.dynamic_rotate %852 by %c4_i32_284 dim 1 : vector<40x128xf32>, i32 -> vector<40x128xf32>
    %875 = arith.subf %26, %874 : vector<40x128xf32>
    %876 = math.absf %875 : vector<40x128xf32>
    %cst_285 = arith.constant -5.000000e-01 : f32
    %877 = vector.broadcast %cst_285 : f32 to vector<40x128xf32>
    %878 = arith.mulf %876, %877 : vector<40x128xf32>
    %879 = math.exp %878 : vector<40x128xf32>
    %880 = arith.addf %870, %879 : vector<40x128xf32>
    %c4_i32_286 = arith.constant 4 : i32
    %881 = tpu.dynamic_rotate %853 by %c4_i32_286 dim 1 : vector<40x128xf32>, i32 -> vector<40x128xf32>
    %882 = arith.mulf %879, %881 : vector<40x128xf32>
    %883 = arith.addf %873, %882 : vector<40x128xf32>
    %c3_i32_287 = arith.constant 3 : i32
    %884 = tpu.dynamic_rotate %852 by %c3_i32_287 dim 1 : vector<40x128xf32>, i32 -> vector<40x128xf32>
    %885 = arith.subf %26, %884 : vector<40x128xf32>
    %886 = math.absf %885 : vector<40x128xf32>
    %cst_288 = arith.constant -5.000000e-01 : f32
    %887 = vector.broadcast %cst_288 : f32 to vector<40x128xf32>
    %888 = arith.mulf %886, %887 : vector<40x128xf32>
    %889 = math.exp %888 : vector<40x128xf32>
    %890 = arith.addf %880, %889 : vector<40x128xf32>
    %c3_i32_289 = arith.constant 3 : i32
    %891 = tpu.dynamic_rotate %853 by %c3_i32_289 dim 1 : vector<40x128xf32>, i32 -> vector<40x128xf32>
    %892 = arith.mulf %889, %891 : vector<40x128xf32>
    %893 = arith.addf %883, %892 : vector<40x128xf32>
    %c2_i32_290 = arith.constant 2 : i32
    %894 = tpu.dynamic_rotate %852 by %c2_i32_290 dim 1 : vector<40x128xf32>, i32 -> vector<40x128xf32>
    %895 = arith.subf %26, %894 : vector<40x128xf32>
    %896 = math.absf %895 : vector<40x128xf32>
    %cst_291 = arith.constant -5.000000e-01 : f32
    %897 = vector.broadcast %cst_291 : f32 to vector<40x128xf32>
    %898 = arith.mulf %896, %897 : vector<40x128xf32>
    %899 = math.exp %898 : vector<40x128xf32>
    %900 = arith.addf %890, %899 : vector<40x128xf32>
    %c2_i32_292 = arith.constant 2 : i32
    %901 = tpu.dynamic_rotate %853 by %c2_i32_292 dim 1 : vector<40x128xf32>, i32 -> vector<40x128xf32>
    %902 = arith.mulf %899, %901 : vector<40x128xf32>
    %903 = arith.addf %893, %902 : vector<40x128xf32>
    %c1_i32_293 = arith.constant 1 : i32
    %904 = tpu.dynamic_rotate %852 by %c1_i32_293 dim 1 : vector<40x128xf32>, i32 -> vector<40x128xf32>
    %905 = arith.subf %26, %904 : vector<40x128xf32>
    %906 = math.absf %905 : vector<40x128xf32>
    %cst_294 = arith.constant -5.000000e-01 : f32
    %907 = vector.broadcast %cst_294 : f32 to vector<40x128xf32>
    %908 = arith.mulf %906, %907 : vector<40x128xf32>
    %909 = math.exp %908 : vector<40x128xf32>
    %910 = arith.addf %900, %909 : vector<40x128xf32>
    %c1_i32_295 = arith.constant 1 : i32
    %911 = tpu.dynamic_rotate %853 by %c1_i32_295 dim 1 : vector<40x128xf32>, i32 -> vector<40x128xf32>
    %912 = arith.mulf %909, %911 : vector<40x128xf32>
    %913 = arith.addf %903, %912 : vector<40x128xf32>
    %914 = arith.subf %26, %852 : vector<40x128xf32>
    %915 = math.absf %914 : vector<40x128xf32>
    %cst_296 = arith.constant -5.000000e-01 : f32
    %916 = vector.broadcast %cst_296 : f32 to vector<40x128xf32>
    %917 = arith.mulf %915, %916 : vector<40x128xf32>
    %918 = math.exp %917 : vector<40x128xf32>
    %919 = arith.addf %910, %918 : vector<40x128xf32>
    %920 = arith.mulf %918, %853 : vector<40x128xf32>
    %921 = arith.addf %913, %920 : vector<40x128xf32>
    %c127_i32_297 = arith.constant 127 : i32
    %922 = tpu.dynamic_rotate %852 by %c127_i32_297 dim 1 : vector<40x128xf32>, i32 -> vector<40x128xf32>
    %923 = arith.subf %26, %922 : vector<40x128xf32>
    %924 = math.absf %923 : vector<40x128xf32>
    %cst_298 = arith.constant -5.000000e-01 : f32
    %925 = vector.broadcast %cst_298 : f32 to vector<40x128xf32>
    %926 = arith.mulf %924, %925 : vector<40x128xf32>
    %927 = math.exp %926 : vector<40x128xf32>
    %928 = arith.addf %919, %927 : vector<40x128xf32>
    %c127_i32_299 = arith.constant 127 : i32
    %929 = tpu.dynamic_rotate %853 by %c127_i32_299 dim 1 : vector<40x128xf32>, i32 -> vector<40x128xf32>
    %930 = arith.mulf %927, %929 : vector<40x128xf32>
    %931 = arith.addf %921, %930 : vector<40x128xf32>
    %c126_i32_300 = arith.constant 126 : i32
    %932 = tpu.dynamic_rotate %852 by %c126_i32_300 dim 1 : vector<40x128xf32>, i32 -> vector<40x128xf32>
    %933 = arith.subf %26, %932 : vector<40x128xf32>
    %934 = math.absf %933 : vector<40x128xf32>
    %cst_301 = arith.constant -5.000000e-01 : f32
    %935 = vector.broadcast %cst_301 : f32 to vector<40x128xf32>
    %936 = arith.mulf %934, %935 : vector<40x128xf32>
    %937 = math.exp %936 : vector<40x128xf32>
    %938 = arith.addf %928, %937 : vector<40x128xf32>
    %c126_i32_302 = arith.constant 126 : i32
    %939 = tpu.dynamic_rotate %853 by %c126_i32_302 dim 1 : vector<40x128xf32>, i32 -> vector<40x128xf32>
    %940 = arith.mulf %937, %939 : vector<40x128xf32>
    %941 = arith.addf %931, %940 : vector<40x128xf32>
    %c125_i32_303 = arith.constant 125 : i32
    %942 = tpu.dynamic_rotate %852 by %c125_i32_303 dim 1 : vector<40x128xf32>, i32 -> vector<40x128xf32>
    %943 = arith.subf %26, %942 : vector<40x128xf32>
    %944 = math.absf %943 : vector<40x128xf32>
    %cst_304 = arith.constant -5.000000e-01 : f32
    %945 = vector.broadcast %cst_304 : f32 to vector<40x128xf32>
    %946 = arith.mulf %944, %945 : vector<40x128xf32>
    %947 = math.exp %946 : vector<40x128xf32>
    %948 = arith.addf %938, %947 : vector<40x128xf32>
    %c125_i32_305 = arith.constant 125 : i32
    %949 = tpu.dynamic_rotate %853 by %c125_i32_305 dim 1 : vector<40x128xf32>, i32 -> vector<40x128xf32>
    %950 = arith.mulf %947, %949 : vector<40x128xf32>
    %951 = arith.addf %941, %950 : vector<40x128xf32>
    %c124_i32_306 = arith.constant 124 : i32
    %952 = tpu.dynamic_rotate %852 by %c124_i32_306 dim 1 : vector<40x128xf32>, i32 -> vector<40x128xf32>
    %953 = arith.subf %26, %952 : vector<40x128xf32>
    %954 = math.absf %953 : vector<40x128xf32>
    %cst_307 = arith.constant -5.000000e-01 : f32
    %955 = vector.broadcast %cst_307 : f32 to vector<40x128xf32>
    %956 = arith.mulf %954, %955 : vector<40x128xf32>
    %957 = math.exp %956 : vector<40x128xf32>
    %958 = arith.addf %948, %957 : vector<40x128xf32>
    %c124_i32_308 = arith.constant 124 : i32
    %959 = tpu.dynamic_rotate %853 by %c124_i32_308 dim 1 : vector<40x128xf32>, i32 -> vector<40x128xf32>
    %960 = arith.mulf %957, %959 : vector<40x128xf32>
    %961 = arith.addf %951, %960 : vector<40x128xf32>
    %c123_i32_309 = arith.constant 123 : i32
    %962 = tpu.dynamic_rotate %852 by %c123_i32_309 dim 1 : vector<40x128xf32>, i32 -> vector<40x128xf32>
    %963 = arith.subf %26, %962 : vector<40x128xf32>
    %964 = math.absf %963 : vector<40x128xf32>
    %cst_310 = arith.constant -5.000000e-01 : f32
    %965 = vector.broadcast %cst_310 : f32 to vector<40x128xf32>
    %966 = arith.mulf %964, %965 : vector<40x128xf32>
    %967 = math.exp %966 : vector<40x128xf32>
    %968 = arith.addf %958, %967 : vector<40x128xf32>
    %c123_i32_311 = arith.constant 123 : i32
    %969 = tpu.dynamic_rotate %853 by %c123_i32_311 dim 1 : vector<40x128xf32>, i32 -> vector<40x128xf32>
    %970 = arith.mulf %967, %969 : vector<40x128xf32>
    %971 = arith.addf %961, %970 : vector<40x128xf32>
    %c6_i32_312 = arith.constant 6 : i32
    %972 = tpu.dynamic_rotate %26 by %c6_i32_312 dim 1 : vector<40x128xf32>, i32 -> vector<40x128xf32>
    %973 = arith.subf %26, %972 : vector<40x128xf32>
    %974 = math.absf %973 : vector<40x128xf32>
    %cst_313 = arith.constant -5.000000e-01 : f32
    %975 = vector.broadcast %cst_313 : f32 to vector<40x128xf32>
    %976 = arith.mulf %974, %975 : vector<40x128xf32>
    %977 = math.exp %976 : vector<40x128xf32>
    %978 = arith.addf %968, %977 : vector<40x128xf32>
    %c6_i32_314 = arith.constant 6 : i32
    %979 = tpu.dynamic_rotate %249 by %c6_i32_314 dim 1 : vector<40x128xf32>, i32 -> vector<40x128xf32>
    %980 = arith.mulf %977, %979 : vector<40x128xf32>
    %981 = arith.addf %971, %980 : vector<40x128xf32>
    %c5_i32_315 = arith.constant 5 : i32
    %982 = tpu.dynamic_rotate %26 by %c5_i32_315 dim 1 : vector<40x128xf32>, i32 -> vector<40x128xf32>
    %983 = arith.subf %26, %982 : vector<40x128xf32>
    %984 = math.absf %983 : vector<40x128xf32>
    %cst_316 = arith.constant -5.000000e-01 : f32
    %985 = vector.broadcast %cst_316 : f32 to vector<40x128xf32>
    %986 = arith.mulf %984, %985 : vector<40x128xf32>
    %987 = math.exp %986 : vector<40x128xf32>
    %988 = arith.addf %978, %987 : vector<40x128xf32>
    %c5_i32_317 = arith.constant 5 : i32
    %989 = tpu.dynamic_rotate %249 by %c5_i32_317 dim 1 : vector<40x128xf32>, i32 -> vector<40x128xf32>
    %990 = arith.mulf %987, %989 : vector<40x128xf32>
    %991 = arith.addf %981, %990 : vector<40x128xf32>
    %c4_i32_318 = arith.constant 4 : i32
    %992 = tpu.dynamic_rotate %26 by %c4_i32_318 dim 1 : vector<40x128xf32>, i32 -> vector<40x128xf32>
    %993 = arith.subf %26, %992 : vector<40x128xf32>
    %994 = math.absf %993 : vector<40x128xf32>
    %cst_319 = arith.constant -5.000000e-01 : f32
    %995 = vector.broadcast %cst_319 : f32 to vector<40x128xf32>
    %996 = arith.mulf %994, %995 : vector<40x128xf32>
    %997 = math.exp %996 : vector<40x128xf32>
    %998 = arith.addf %988, %997 : vector<40x128xf32>
    %c4_i32_320 = arith.constant 4 : i32
    %999 = tpu.dynamic_rotate %249 by %c4_i32_320 dim 1 : vector<40x128xf32>, i32 -> vector<40x128xf32>
    %1000 = arith.mulf %997, %999 : vector<40x128xf32>
    %1001 = arith.addf %991, %1000 : vector<40x128xf32>
    %c3_i32_321 = arith.constant 3 : i32
    %1002 = tpu.dynamic_rotate %26 by %c3_i32_321 dim 1 : vector<40x128xf32>, i32 -> vector<40x128xf32>
    %1003 = arith.subf %26, %1002 : vector<40x128xf32>
    %1004 = math.absf %1003 : vector<40x128xf32>
    %cst_322 = arith.constant -5.000000e-01 : f32
    %1005 = vector.broadcast %cst_322 : f32 to vector<40x128xf32>
    %1006 = arith.mulf %1004, %1005 : vector<40x128xf32>
    %1007 = math.exp %1006 : vector<40x128xf32>
    %1008 = arith.addf %998, %1007 : vector<40x128xf32>
    %c3_i32_323 = arith.constant 3 : i32
    %1009 = tpu.dynamic_rotate %249 by %c3_i32_323 dim 1 : vector<40x128xf32>, i32 -> vector<40x128xf32>
    %1010 = arith.mulf %1007, %1009 : vector<40x128xf32>
    %1011 = arith.addf %1001, %1010 : vector<40x128xf32>
    %c2_i32_324 = arith.constant 2 : i32
    %1012 = tpu.dynamic_rotate %26 by %c2_i32_324 dim 1 : vector<40x128xf32>, i32 -> vector<40x128xf32>
    %1013 = arith.subf %26, %1012 : vector<40x128xf32>
    %1014 = math.absf %1013 : vector<40x128xf32>
    %cst_325 = arith.constant -5.000000e-01 : f32
    %1015 = vector.broadcast %cst_325 : f32 to vector<40x128xf32>
    %1016 = arith.mulf %1014, %1015 : vector<40x128xf32>
    %1017 = math.exp %1016 : vector<40x128xf32>
    %1018 = arith.addf %1008, %1017 : vector<40x128xf32>
    %c2_i32_326 = arith.constant 2 : i32
    %1019 = tpu.dynamic_rotate %249 by %c2_i32_326 dim 1 : vector<40x128xf32>, i32 -> vector<40x128xf32>
    %1020 = arith.mulf %1017, %1019 : vector<40x128xf32>
    %1021 = arith.addf %1011, %1020 : vector<40x128xf32>
    %c1_i32_327 = arith.constant 1 : i32
    %1022 = tpu.dynamic_rotate %26 by %c1_i32_327 dim 1 : vector<40x128xf32>, i32 -> vector<40x128xf32>
    %1023 = arith.subf %26, %1022 : vector<40x128xf32>
    %1024 = math.absf %1023 : vector<40x128xf32>
    %cst_328 = arith.constant -5.000000e-01 : f32
    %1025 = vector.broadcast %cst_328 : f32 to vector<40x128xf32>
    %1026 = arith.mulf %1024, %1025 : vector<40x128xf32>
    %1027 = math.exp %1026 : vector<40x128xf32>
    %1028 = arith.addf %1018, %1027 : vector<40x128xf32>
    %c1_i32_329 = arith.constant 1 : i32
    %1029 = tpu.dynamic_rotate %249 by %c1_i32_329 dim 1 : vector<40x128xf32>, i32 -> vector<40x128xf32>
    %1030 = arith.mulf %1027, %1029 : vector<40x128xf32>
    %1031 = arith.addf %1021, %1030 : vector<40x128xf32>
    %1032 = arith.subf %26, %26 : vector<40x128xf32>
    %1033 = math.absf %1032 : vector<40x128xf32>
    %cst_330 = arith.constant -5.000000e-01 : f32
    %1034 = vector.broadcast %cst_330 : f32 to vector<40x128xf32>
    %1035 = arith.mulf %1033, %1034 : vector<40x128xf32>
    %1036 = math.exp %1035 : vector<40x128xf32>
    %1037 = arith.addf %1028, %1036 : vector<40x128xf32>
    %1038 = arith.mulf %1036, %249 : vector<40x128xf32>
    %1039 = arith.addf %1031, %1038 : vector<40x128xf32>
    %c127_i32_331 = arith.constant 127 : i32
    %1040 = tpu.dynamic_rotate %26 by %c127_i32_331 dim 1 : vector<40x128xf32>, i32 -> vector<40x128xf32>
    %1041 = arith.subf %26, %1040 : vector<40x128xf32>
    %1042 = math.absf %1041 : vector<40x128xf32>
    %cst_332 = arith.constant -5.000000e-01 : f32
    %1043 = vector.broadcast %cst_332 : f32 to vector<40x128xf32>
    %1044 = arith.mulf %1042, %1043 : vector<40x128xf32>
    %1045 = math.exp %1044 : vector<40x128xf32>
    %1046 = arith.addf %1037, %1045 : vector<40x128xf32>
    %c127_i32_333 = arith.constant 127 : i32
    %1047 = tpu.dynamic_rotate %249 by %c127_i32_333 dim 1 : vector<40x128xf32>, i32 -> vector<40x128xf32>
    %1048 = arith.mulf %1045, %1047 : vector<40x128xf32>
    %1049 = arith.addf %1039, %1048 : vector<40x128xf32>
    %c126_i32_334 = arith.constant 126 : i32
    %1050 = tpu.dynamic_rotate %26 by %c126_i32_334 dim 1 : vector<40x128xf32>, i32 -> vector<40x128xf32>
    %1051 = arith.subf %26, %1050 : vector<40x128xf32>
    %1052 = math.absf %1051 : vector<40x128xf32>
    %cst_335 = arith.constant -5.000000e-01 : f32
    %1053 = vector.broadcast %cst_335 : f32 to vector<40x128xf32>
    %1054 = arith.mulf %1052, %1053 : vector<40x128xf32>
    %1055 = math.exp %1054 : vector<40x128xf32>
    %1056 = arith.addf %1046, %1055 : vector<40x128xf32>
    %c126_i32_336 = arith.constant 126 : i32
    %1057 = tpu.dynamic_rotate %249 by %c126_i32_336 dim 1 : vector<40x128xf32>, i32 -> vector<40x128xf32>
    %1058 = arith.mulf %1055, %1057 : vector<40x128xf32>
    %1059 = arith.addf %1049, %1058 : vector<40x128xf32>
    %c125_i32_337 = arith.constant 125 : i32
    %1060 = tpu.dynamic_rotate %26 by %c125_i32_337 dim 1 : vector<40x128xf32>, i32 -> vector<40x128xf32>
    %1061 = arith.subf %26, %1060 : vector<40x128xf32>
    %1062 = math.absf %1061 : vector<40x128xf32>
    %cst_338 = arith.constant -5.000000e-01 : f32
    %1063 = vector.broadcast %cst_338 : f32 to vector<40x128xf32>
    %1064 = arith.mulf %1062, %1063 : vector<40x128xf32>
    %1065 = math.exp %1064 : vector<40x128xf32>
    %1066 = arith.addf %1056, %1065 : vector<40x128xf32>
    %c125_i32_339 = arith.constant 125 : i32
    %1067 = tpu.dynamic_rotate %249 by %c125_i32_339 dim 1 : vector<40x128xf32>, i32 -> vector<40x128xf32>
    %1068 = arith.mulf %1065, %1067 : vector<40x128xf32>
    %1069 = arith.addf %1059, %1068 : vector<40x128xf32>
    %c124_i32_340 = arith.constant 124 : i32
    %1070 = tpu.dynamic_rotate %26 by %c124_i32_340 dim 1 : vector<40x128xf32>, i32 -> vector<40x128xf32>
    %1071 = arith.subf %26, %1070 : vector<40x128xf32>
    %1072 = math.absf %1071 : vector<40x128xf32>
    %cst_341 = arith.constant -5.000000e-01 : f32
    %1073 = vector.broadcast %cst_341 : f32 to vector<40x128xf32>
    %1074 = arith.mulf %1072, %1073 : vector<40x128xf32>
    %1075 = math.exp %1074 : vector<40x128xf32>
    %1076 = arith.addf %1066, %1075 : vector<40x128xf32>
    %c124_i32_342 = arith.constant 124 : i32
    %1077 = tpu.dynamic_rotate %249 by %c124_i32_342 dim 1 : vector<40x128xf32>, i32 -> vector<40x128xf32>
    %1078 = arith.mulf %1075, %1077 : vector<40x128xf32>
    %1079 = arith.addf %1069, %1078 : vector<40x128xf32>
    %c123_i32_343 = arith.constant 123 : i32
    %1080 = tpu.dynamic_rotate %26 by %c123_i32_343 dim 1 : vector<40x128xf32>, i32 -> vector<40x128xf32>
    %1081 = arith.subf %26, %1080 : vector<40x128xf32>
    %1082 = math.absf %1081 : vector<40x128xf32>
    %cst_344 = arith.constant -5.000000e-01 : f32
    %1083 = vector.broadcast %cst_344 : f32 to vector<40x128xf32>
    %1084 = arith.mulf %1082, %1083 : vector<40x128xf32>
    %1085 = math.exp %1084 : vector<40x128xf32>
    %1086 = arith.addf %1076, %1085 : vector<40x128xf32>
    %c123_i32_345 = arith.constant 123 : i32
    %1087 = tpu.dynamic_rotate %249 by %c123_i32_345 dim 1 : vector<40x128xf32>, i32 -> vector<40x128xf32>
    %1088 = arith.mulf %1085, %1087 : vector<40x128xf32>
    %1089 = arith.addf %1079, %1088 : vector<40x128xf32>
    %c39_i32_346 = arith.constant 39 : i32
    %1090 = tpu.dynamic_rotate %26 by %c39_i32_346 dim 0 : vector<40x128xf32>, i32 -> vector<40x128xf32>
    %c39_i32_347 = arith.constant 39 : i32
    %1091 = tpu.dynamic_rotate %249 by %c39_i32_347 dim 0 : vector<40x128xf32>, i32 -> vector<40x128xf32>
    %c6_i32_348 = arith.constant 6 : i32
    %1092 = tpu.dynamic_rotate %1090 by %c6_i32_348 dim 1 : vector<40x128xf32>, i32 -> vector<40x128xf32>
    %1093 = arith.subf %26, %1092 : vector<40x128xf32>
    %1094 = math.absf %1093 : vector<40x128xf32>
    %cst_349 = arith.constant -5.000000e-01 : f32
    %1095 = vector.broadcast %cst_349 : f32 to vector<40x128xf32>
    %1096 = arith.mulf %1094, %1095 : vector<40x128xf32>
    %1097 = math.exp %1096 : vector<40x128xf32>
    %1098 = arith.addf %1086, %1097 : vector<40x128xf32>
    %c6_i32_350 = arith.constant 6 : i32
    %1099 = tpu.dynamic_rotate %1091 by %c6_i32_350 dim 1 : vector<40x128xf32>, i32 -> vector<40x128xf32>
    %1100 = arith.mulf %1097, %1099 : vector<40x128xf32>
    %1101 = arith.addf %1089, %1100 : vector<40x128xf32>
    %c5_i32_351 = arith.constant 5 : i32
    %1102 = tpu.dynamic_rotate %1090 by %c5_i32_351 dim 1 : vector<40x128xf32>, i32 -> vector<40x128xf32>
    %1103 = arith.subf %26, %1102 : vector<40x128xf32>
    %1104 = math.absf %1103 : vector<40x128xf32>
    %cst_352 = arith.constant -5.000000e-01 : f32
    %1105 = vector.broadcast %cst_352 : f32 to vector<40x128xf32>
    %1106 = arith.mulf %1104, %1105 : vector<40x128xf32>
    %1107 = math.exp %1106 : vector<40x128xf32>
    %1108 = arith.addf %1098, %1107 : vector<40x128xf32>
    %c5_i32_353 = arith.constant 5 : i32
    %1109 = tpu.dynamic_rotate %1091 by %c5_i32_353 dim 1 : vector<40x128xf32>, i32 -> vector<40x128xf32>
    %1110 = arith.mulf %1107, %1109 : vector<40x128xf32>
    %1111 = arith.addf %1101, %1110 : vector<40x128xf32>
    %c4_i32_354 = arith.constant 4 : i32
    %1112 = tpu.dynamic_rotate %1090 by %c4_i32_354 dim 1 : vector<40x128xf32>, i32 -> vector<40x128xf32>
    %1113 = arith.subf %26, %1112 : vector<40x128xf32>
    %1114 = math.absf %1113 : vector<40x128xf32>
    %cst_355 = arith.constant -5.000000e-01 : f32
    %1115 = vector.broadcast %cst_355 : f32 to vector<40x128xf32>
    %1116 = arith.mulf %1114, %1115 : vector<40x128xf32>
    %1117 = math.exp %1116 : vector<40x128xf32>
    %1118 = arith.addf %1108, %1117 : vector<40x128xf32>
    %c4_i32_356 = arith.constant 4 : i32
    %1119 = tpu.dynamic_rotate %1091 by %c4_i32_356 dim 1 : vector<40x128xf32>, i32 -> vector<40x128xf32>
    %1120 = arith.mulf %1117, %1119 : vector<40x128xf32>
    %1121 = arith.addf %1111, %1120 : vector<40x128xf32>
    %c3_i32_357 = arith.constant 3 : i32
    %1122 = tpu.dynamic_rotate %1090 by %c3_i32_357 dim 1 : vector<40x128xf32>, i32 -> vector<40x128xf32>
    %1123 = arith.subf %26, %1122 : vector<40x128xf32>
    %1124 = math.absf %1123 : vector<40x128xf32>
    %cst_358 = arith.constant -5.000000e-01 : f32
    %1125 = vector.broadcast %cst_358 : f32 to vector<40x128xf32>
    %1126 = arith.mulf %1124, %1125 : vector<40x128xf32>
    %1127 = math.exp %1126 : vector<40x128xf32>
    %1128 = arith.addf %1118, %1127 : vector<40x128xf32>
    %c3_i32_359 = arith.constant 3 : i32
    %1129 = tpu.dynamic_rotate %1091 by %c3_i32_359 dim 1 : vector<40x128xf32>, i32 -> vector<40x128xf32>
    %1130 = arith.mulf %1127, %1129 : vector<40x128xf32>
    %1131 = arith.addf %1121, %1130 : vector<40x128xf32>
    %c2_i32_360 = arith.constant 2 : i32
    %1132 = tpu.dynamic_rotate %1090 by %c2_i32_360 dim 1 : vector<40x128xf32>, i32 -> vector<40x128xf32>
    %1133 = arith.subf %26, %1132 : vector<40x128xf32>
    %1134 = math.absf %1133 : vector<40x128xf32>
    %cst_361 = arith.constant -5.000000e-01 : f32
    %1135 = vector.broadcast %cst_361 : f32 to vector<40x128xf32>
    %1136 = arith.mulf %1134, %1135 : vector<40x128xf32>
    %1137 = math.exp %1136 : vector<40x128xf32>
    %1138 = arith.addf %1128, %1137 : vector<40x128xf32>
    %c2_i32_362 = arith.constant 2 : i32
    %1139 = tpu.dynamic_rotate %1091 by %c2_i32_362 dim 1 : vector<40x128xf32>, i32 -> vector<40x128xf32>
    %1140 = arith.mulf %1137, %1139 : vector<40x128xf32>
    %1141 = arith.addf %1131, %1140 : vector<40x128xf32>
    %c1_i32_363 = arith.constant 1 : i32
    %1142 = tpu.dynamic_rotate %1090 by %c1_i32_363 dim 1 : vector<40x128xf32>, i32 -> vector<40x128xf32>
    %1143 = arith.subf %26, %1142 : vector<40x128xf32>
    %1144 = math.absf %1143 : vector<40x128xf32>
    %cst_364 = arith.constant -5.000000e-01 : f32
    %1145 = vector.broadcast %cst_364 : f32 to vector<40x128xf32>
    %1146 = arith.mulf %1144, %1145 : vector<40x128xf32>
    %1147 = math.exp %1146 : vector<40x128xf32>
    %1148 = arith.addf %1138, %1147 : vector<40x128xf32>
    %c1_i32_365 = arith.constant 1 : i32
    %1149 = tpu.dynamic_rotate %1091 by %c1_i32_365 dim 1 : vector<40x128xf32>, i32 -> vector<40x128xf32>
    %1150 = arith.mulf %1147, %1149 : vector<40x128xf32>
    %1151 = arith.addf %1141, %1150 : vector<40x128xf32>
    %1152 = arith.subf %26, %1090 : vector<40x128xf32>
    %1153 = math.absf %1152 : vector<40x128xf32>
    %cst_366 = arith.constant -5.000000e-01 : f32
    %1154 = vector.broadcast %cst_366 : f32 to vector<40x128xf32>
    %1155 = arith.mulf %1153, %1154 : vector<40x128xf32>
    %1156 = math.exp %1155 : vector<40x128xf32>
    %1157 = arith.addf %1148, %1156 : vector<40x128xf32>
    %1158 = arith.mulf %1156, %1091 : vector<40x128xf32>
    %1159 = arith.addf %1151, %1158 : vector<40x128xf32>
    %c127_i32_367 = arith.constant 127 : i32
    %1160 = tpu.dynamic_rotate %1090 by %c127_i32_367 dim 1 : vector<40x128xf32>, i32 -> vector<40x128xf32>
    %1161 = arith.subf %26, %1160 : vector<40x128xf32>
    %1162 = math.absf %1161 : vector<40x128xf32>
    %cst_368 = arith.constant -5.000000e-01 : f32
    %1163 = vector.broadcast %cst_368 : f32 to vector<40x128xf32>
    %1164 = arith.mulf %1162, %1163 : vector<40x128xf32>
    %1165 = math.exp %1164 : vector<40x128xf32>
    %1166 = arith.addf %1157, %1165 : vector<40x128xf32>
    %c127_i32_369 = arith.constant 127 : i32
    %1167 = tpu.dynamic_rotate %1091 by %c127_i32_369 dim 1 : vector<40x128xf32>, i32 -> vector<40x128xf32>
    %1168 = arith.mulf %1165, %1167 : vector<40x128xf32>
    %1169 = arith.addf %1159, %1168 : vector<40x128xf32>
    %c126_i32_370 = arith.constant 126 : i32
    %1170 = tpu.dynamic_rotate %1090 by %c126_i32_370 dim 1 : vector<40x128xf32>, i32 -> vector<40x128xf32>
    %1171 = arith.subf %26, %1170 : vector<40x128xf32>
    %1172 = math.absf %1171 : vector<40x128xf32>
    %cst_371 = arith.constant -5.000000e-01 : f32
    %1173 = vector.broadcast %cst_371 : f32 to vector<40x128xf32>
    %1174 = arith.mulf %1172, %1173 : vector<40x128xf32>
    %1175 = math.exp %1174 : vector<40x128xf32>
    %1176 = arith.addf %1166, %1175 : vector<40x128xf32>
    %c126_i32_372 = arith.constant 126 : i32
    %1177 = tpu.dynamic_rotate %1091 by %c126_i32_372 dim 1 : vector<40x128xf32>, i32 -> vector<40x128xf32>
    %1178 = arith.mulf %1175, %1177 : vector<40x128xf32>
    %1179 = arith.addf %1169, %1178 : vector<40x128xf32>
    %c125_i32_373 = arith.constant 125 : i32
    %1180 = tpu.dynamic_rotate %1090 by %c125_i32_373 dim 1 : vector<40x128xf32>, i32 -> vector<40x128xf32>
    %1181 = arith.subf %26, %1180 : vector<40x128xf32>
    %1182 = math.absf %1181 : vector<40x128xf32>
    %cst_374 = arith.constant -5.000000e-01 : f32
    %1183 = vector.broadcast %cst_374 : f32 to vector<40x128xf32>
    %1184 = arith.mulf %1182, %1183 : vector<40x128xf32>
    %1185 = math.exp %1184 : vector<40x128xf32>
    %1186 = arith.addf %1176, %1185 : vector<40x128xf32>
    %c125_i32_375 = arith.constant 125 : i32
    %1187 = tpu.dynamic_rotate %1091 by %c125_i32_375 dim 1 : vector<40x128xf32>, i32 -> vector<40x128xf32>
    %1188 = arith.mulf %1185, %1187 : vector<40x128xf32>
    %1189 = arith.addf %1179, %1188 : vector<40x128xf32>
    %c124_i32_376 = arith.constant 124 : i32
    %1190 = tpu.dynamic_rotate %1090 by %c124_i32_376 dim 1 : vector<40x128xf32>, i32 -> vector<40x128xf32>
    %1191 = arith.subf %26, %1190 : vector<40x128xf32>
    %1192 = math.absf %1191 : vector<40x128xf32>
    %cst_377 = arith.constant -5.000000e-01 : f32
    %1193 = vector.broadcast %cst_377 : f32 to vector<40x128xf32>
    %1194 = arith.mulf %1192, %1193 : vector<40x128xf32>
    %1195 = math.exp %1194 : vector<40x128xf32>
    %1196 = arith.addf %1186, %1195 : vector<40x128xf32>
    %c124_i32_378 = arith.constant 124 : i32
    %1197 = tpu.dynamic_rotate %1091 by %c124_i32_378 dim 1 : vector<40x128xf32>, i32 -> vector<40x128xf32>
    %1198 = arith.mulf %1195, %1197 : vector<40x128xf32>
    %1199 = arith.addf %1189, %1198 : vector<40x128xf32>
    %c123_i32_379 = arith.constant 123 : i32
    %1200 = tpu.dynamic_rotate %1090 by %c123_i32_379 dim 1 : vector<40x128xf32>, i32 -> vector<40x128xf32>
    %1201 = arith.subf %26, %1200 : vector<40x128xf32>
    %1202 = math.absf %1201 : vector<40x128xf32>
    %cst_380 = arith.constant -5.000000e-01 : f32
    %1203 = vector.broadcast %cst_380 : f32 to vector<40x128xf32>
    %1204 = arith.mulf %1202, %1203 : vector<40x128xf32>
    %1205 = math.exp %1204 : vector<40x128xf32>
    %1206 = arith.addf %1196, %1205 : vector<40x128xf32>
    %c123_i32_381 = arith.constant 123 : i32
    %1207 = tpu.dynamic_rotate %1091 by %c123_i32_381 dim 1 : vector<40x128xf32>, i32 -> vector<40x128xf32>
    %1208 = arith.mulf %1205, %1207 : vector<40x128xf32>
    %1209 = arith.addf %1199, %1208 : vector<40x128xf32>
    %c38_i32_382 = arith.constant 38 : i32
    %1210 = tpu.dynamic_rotate %26 by %c38_i32_382 dim 0 : vector<40x128xf32>, i32 -> vector<40x128xf32>
    %c38_i32_383 = arith.constant 38 : i32
    %1211 = tpu.dynamic_rotate %249 by %c38_i32_383 dim 0 : vector<40x128xf32>, i32 -> vector<40x128xf32>
    %c6_i32_384 = arith.constant 6 : i32
    %1212 = tpu.dynamic_rotate %1210 by %c6_i32_384 dim 1 : vector<40x128xf32>, i32 -> vector<40x128xf32>
    %1213 = arith.subf %26, %1212 : vector<40x128xf32>
    %1214 = math.absf %1213 : vector<40x128xf32>
    %cst_385 = arith.constant -5.000000e-01 : f32
    %1215 = vector.broadcast %cst_385 : f32 to vector<40x128xf32>
    %1216 = arith.mulf %1214, %1215 : vector<40x128xf32>
    %1217 = math.exp %1216 : vector<40x128xf32>
    %1218 = arith.addf %1206, %1217 : vector<40x128xf32>
    %c6_i32_386 = arith.constant 6 : i32
    %1219 = tpu.dynamic_rotate %1211 by %c6_i32_386 dim 1 : vector<40x128xf32>, i32 -> vector<40x128xf32>
    %1220 = arith.mulf %1217, %1219 : vector<40x128xf32>
    %1221 = arith.addf %1209, %1220 : vector<40x128xf32>
    %c5_i32_387 = arith.constant 5 : i32
    %1222 = tpu.dynamic_rotate %1210 by %c5_i32_387 dim 1 : vector<40x128xf32>, i32 -> vector<40x128xf32>
    %1223 = arith.subf %26, %1222 : vector<40x128xf32>
    %1224 = math.absf %1223 : vector<40x128xf32>
    %cst_388 = arith.constant -5.000000e-01 : f32
    %1225 = vector.broadcast %cst_388 : f32 to vector<40x128xf32>
    %1226 = arith.mulf %1224, %1225 : vector<40x128xf32>
    %1227 = math.exp %1226 : vector<40x128xf32>
    %1228 = arith.addf %1218, %1227 : vector<40x128xf32>
    %c5_i32_389 = arith.constant 5 : i32
    %1229 = tpu.dynamic_rotate %1211 by %c5_i32_389 dim 1 : vector<40x128xf32>, i32 -> vector<40x128xf32>
    %1230 = arith.mulf %1227, %1229 : vector<40x128xf32>
    %1231 = arith.addf %1221, %1230 : vector<40x128xf32>
    %c4_i32_390 = arith.constant 4 : i32
    %1232 = tpu.dynamic_rotate %1210 by %c4_i32_390 dim 1 : vector<40x128xf32>, i32 -> vector<40x128xf32>
    %1233 = arith.subf %26, %1232 : vector<40x128xf32>
    %1234 = math.absf %1233 : vector<40x128xf32>
    %cst_391 = arith.constant -5.000000e-01 : f32
    %1235 = vector.broadcast %cst_391 : f32 to vector<40x128xf32>
    %1236 = arith.mulf %1234, %1235 : vector<40x128xf32>
    %1237 = math.exp %1236 : vector<40x128xf32>
    %1238 = arith.addf %1228, %1237 : vector<40x128xf32>
    %c4_i32_392 = arith.constant 4 : i32
    %1239 = tpu.dynamic_rotate %1211 by %c4_i32_392 dim 1 : vector<40x128xf32>, i32 -> vector<40x128xf32>
    %1240 = arith.mulf %1237, %1239 : vector<40x128xf32>
    %1241 = arith.addf %1231, %1240 : vector<40x128xf32>
    %c3_i32_393 = arith.constant 3 : i32
    %1242 = tpu.dynamic_rotate %1210 by %c3_i32_393 dim 1 : vector<40x128xf32>, i32 -> vector<40x128xf32>
    %1243 = arith.subf %26, %1242 : vector<40x128xf32>
    %1244 = math.absf %1243 : vector<40x128xf32>
    %cst_394 = arith.constant -5.000000e-01 : f32
    %1245 = vector.broadcast %cst_394 : f32 to vector<40x128xf32>
    %1246 = arith.mulf %1244, %1245 : vector<40x128xf32>
    %1247 = math.exp %1246 : vector<40x128xf32>
    %1248 = arith.addf %1238, %1247 : vector<40x128xf32>
    %c3_i32_395 = arith.constant 3 : i32
    %1249 = tpu.dynamic_rotate %1211 by %c3_i32_395 dim 1 : vector<40x128xf32>, i32 -> vector<40x128xf32>
    %1250 = arith.mulf %1247, %1249 : vector<40x128xf32>
    %1251 = arith.addf %1241, %1250 : vector<40x128xf32>
    %c2_i32_396 = arith.constant 2 : i32
    %1252 = tpu.dynamic_rotate %1210 by %c2_i32_396 dim 1 : vector<40x128xf32>, i32 -> vector<40x128xf32>
    %1253 = arith.subf %26, %1252 : vector<40x128xf32>
    %1254 = math.absf %1253 : vector<40x128xf32>
    %cst_397 = arith.constant -5.000000e-01 : f32
    %1255 = vector.broadcast %cst_397 : f32 to vector<40x128xf32>
    %1256 = arith.mulf %1254, %1255 : vector<40x128xf32>
    %1257 = math.exp %1256 : vector<40x128xf32>
    %1258 = arith.addf %1248, %1257 : vector<40x128xf32>
    %c2_i32_398 = arith.constant 2 : i32
    %1259 = tpu.dynamic_rotate %1211 by %c2_i32_398 dim 1 : vector<40x128xf32>, i32 -> vector<40x128xf32>
    %1260 = arith.mulf %1257, %1259 : vector<40x128xf32>
    %1261 = arith.addf %1251, %1260 : vector<40x128xf32>
    %c1_i32_399 = arith.constant 1 : i32
    %1262 = tpu.dynamic_rotate %1210 by %c1_i32_399 dim 1 : vector<40x128xf32>, i32 -> vector<40x128xf32>
    %1263 = arith.subf %26, %1262 : vector<40x128xf32>
    %1264 = math.absf %1263 : vector<40x128xf32>
    %cst_400 = arith.constant -5.000000e-01 : f32
    %1265 = vector.broadcast %cst_400 : f32 to vector<40x128xf32>
    %1266 = arith.mulf %1264, %1265 : vector<40x128xf32>
    %1267 = math.exp %1266 : vector<40x128xf32>
    %1268 = arith.addf %1258, %1267 : vector<40x128xf32>
    %c1_i32_401 = arith.constant 1 : i32
    %1269 = tpu.dynamic_rotate %1211 by %c1_i32_401 dim 1 : vector<40x128xf32>, i32 -> vector<40x128xf32>
    %1270 = arith.mulf %1267, %1269 : vector<40x128xf32>
    %1271 = arith.addf %1261, %1270 : vector<40x128xf32>
    %1272 = arith.subf %26, %1210 : vector<40x128xf32>
    %1273 = math.absf %1272 : vector<40x128xf32>
    %cst_402 = arith.constant -5.000000e-01 : f32
    %1274 = vector.broadcast %cst_402 : f32 to vector<40x128xf32>
    %1275 = arith.mulf %1273, %1274 : vector<40x128xf32>
    %1276 = math.exp %1275 : vector<40x128xf32>
    %1277 = arith.addf %1268, %1276 : vector<40x128xf32>
    %1278 = arith.mulf %1276, %1211 : vector<40x128xf32>
    %1279 = arith.addf %1271, %1278 : vector<40x128xf32>
    %c127_i32_403 = arith.constant 127 : i32
    %1280 = tpu.dynamic_rotate %1210 by %c127_i32_403 dim 1 : vector<40x128xf32>, i32 -> vector<40x128xf32>
    %1281 = arith.subf %26, %1280 : vector<40x128xf32>
    %1282 = math.absf %1281 : vector<40x128xf32>
    %cst_404 = arith.constant -5.000000e-01 : f32
    %1283 = vector.broadcast %cst_404 : f32 to vector<40x128xf32>
    %1284 = arith.mulf %1282, %1283 : vector<40x128xf32>
    %1285 = math.exp %1284 : vector<40x128xf32>
    %1286 = arith.addf %1277, %1285 : vector<40x128xf32>
    %c127_i32_405 = arith.constant 127 : i32
    %1287 = tpu.dynamic_rotate %1211 by %c127_i32_405 dim 1 : vector<40x128xf32>, i32 -> vector<40x128xf32>
    %1288 = arith.mulf %1285, %1287 : vector<40x128xf32>
    %1289 = arith.addf %1279, %1288 : vector<40x128xf32>
    %c126_i32_406 = arith.constant 126 : i32
    %1290 = tpu.dynamic_rotate %1210 by %c126_i32_406 dim 1 : vector<40x128xf32>, i32 -> vector<40x128xf32>
    %1291 = arith.subf %26, %1290 : vector<40x128xf32>
    %1292 = math.absf %1291 : vector<40x128xf32>
    %cst_407 = arith.constant -5.000000e-01 : f32
    %1293 = vector.broadcast %cst_407 : f32 to vector<40x128xf32>
    %1294 = arith.mulf %1292, %1293 : vector<40x128xf32>
    %1295 = math.exp %1294 : vector<40x128xf32>
    %1296 = arith.addf %1286, %1295 : vector<40x128xf32>
    %c126_i32_408 = arith.constant 126 : i32
    %1297 = tpu.dynamic_rotate %1211 by %c126_i32_408 dim 1 : vector<40x128xf32>, i32 -> vector<40x128xf32>
    %1298 = arith.mulf %1295, %1297 : vector<40x128xf32>
    %1299 = arith.addf %1289, %1298 : vector<40x128xf32>
    %c125_i32_409 = arith.constant 125 : i32
    %1300 = tpu.dynamic_rotate %1210 by %c125_i32_409 dim 1 : vector<40x128xf32>, i32 -> vector<40x128xf32>
    %1301 = arith.subf %26, %1300 : vector<40x128xf32>
    %1302 = math.absf %1301 : vector<40x128xf32>
    %cst_410 = arith.constant -5.000000e-01 : f32
    %1303 = vector.broadcast %cst_410 : f32 to vector<40x128xf32>
    %1304 = arith.mulf %1302, %1303 : vector<40x128xf32>
    %1305 = math.exp %1304 : vector<40x128xf32>
    %1306 = arith.addf %1296, %1305 : vector<40x128xf32>
    %c125_i32_411 = arith.constant 125 : i32
    %1307 = tpu.dynamic_rotate %1211 by %c125_i32_411 dim 1 : vector<40x128xf32>, i32 -> vector<40x128xf32>
    %1308 = arith.mulf %1305, %1307 : vector<40x128xf32>
    %1309 = arith.addf %1299, %1308 : vector<40x128xf32>
    %c124_i32_412 = arith.constant 124 : i32
    %1310 = tpu.dynamic_rotate %1210 by %c124_i32_412 dim 1 : vector<40x128xf32>, i32 -> vector<40x128xf32>
    %1311 = arith.subf %26, %1310 : vector<40x128xf32>
    %1312 = math.absf %1311 : vector<40x128xf32>
    %cst_413 = arith.constant -5.000000e-01 : f32
    %1313 = vector.broadcast %cst_413 : f32 to vector<40x128xf32>
    %1314 = arith.mulf %1312, %1313 : vector<40x128xf32>
    %1315 = math.exp %1314 : vector<40x128xf32>
    %1316 = arith.addf %1306, %1315 : vector<40x128xf32>
    %c124_i32_414 = arith.constant 124 : i32
    %1317 = tpu.dynamic_rotate %1211 by %c124_i32_414 dim 1 : vector<40x128xf32>, i32 -> vector<40x128xf32>
    %1318 = arith.mulf %1315, %1317 : vector<40x128xf32>
    %1319 = arith.addf %1309, %1318 : vector<40x128xf32>
    %c123_i32_415 = arith.constant 123 : i32
    %1320 = tpu.dynamic_rotate %1210 by %c123_i32_415 dim 1 : vector<40x128xf32>, i32 -> vector<40x128xf32>
    %1321 = arith.subf %26, %1320 : vector<40x128xf32>
    %1322 = math.absf %1321 : vector<40x128xf32>
    %cst_416 = arith.constant -5.000000e-01 : f32
    %1323 = vector.broadcast %cst_416 : f32 to vector<40x128xf32>
    %1324 = arith.mulf %1322, %1323 : vector<40x128xf32>
    %1325 = math.exp %1324 : vector<40x128xf32>
    %1326 = arith.addf %1316, %1325 : vector<40x128xf32>
    %c123_i32_417 = arith.constant 123 : i32
    %1327 = tpu.dynamic_rotate %1211 by %c123_i32_417 dim 1 : vector<40x128xf32>, i32 -> vector<40x128xf32>
    %1328 = arith.mulf %1325, %1327 : vector<40x128xf32>
    %1329 = arith.addf %1319, %1328 : vector<40x128xf32>
    %c37_i32_418 = arith.constant 37 : i32
    %1330 = tpu.dynamic_rotate %26 by %c37_i32_418 dim 0 : vector<40x128xf32>, i32 -> vector<40x128xf32>
    %c37_i32_419 = arith.constant 37 : i32
    %1331 = tpu.dynamic_rotate %249 by %c37_i32_419 dim 0 : vector<40x128xf32>, i32 -> vector<40x128xf32>
    %c6_i32_420 = arith.constant 6 : i32
    %1332 = tpu.dynamic_rotate %1330 by %c6_i32_420 dim 1 : vector<40x128xf32>, i32 -> vector<40x128xf32>
    %1333 = arith.subf %26, %1332 : vector<40x128xf32>
    %1334 = math.absf %1333 : vector<40x128xf32>
    %cst_421 = arith.constant -5.000000e-01 : f32
    %1335 = vector.broadcast %cst_421 : f32 to vector<40x128xf32>
    %1336 = arith.mulf %1334, %1335 : vector<40x128xf32>
    %1337 = math.exp %1336 : vector<40x128xf32>
    %1338 = arith.addf %1326, %1337 : vector<40x128xf32>
    %c6_i32_422 = arith.constant 6 : i32
    %1339 = tpu.dynamic_rotate %1331 by %c6_i32_422 dim 1 : vector<40x128xf32>, i32 -> vector<40x128xf32>
    %1340 = arith.mulf %1337, %1339 : vector<40x128xf32>
    %1341 = arith.addf %1329, %1340 : vector<40x128xf32>
    %c5_i32_423 = arith.constant 5 : i32
    %1342 = tpu.dynamic_rotate %1330 by %c5_i32_423 dim 1 : vector<40x128xf32>, i32 -> vector<40x128xf32>
    %1343 = arith.subf %26, %1342 : vector<40x128xf32>
    %1344 = math.absf %1343 : vector<40x128xf32>
    %cst_424 = arith.constant -5.000000e-01 : f32
    %1345 = vector.broadcast %cst_424 : f32 to vector<40x128xf32>
    %1346 = arith.mulf %1344, %1345 : vector<40x128xf32>
    %1347 = math.exp %1346 : vector<40x128xf32>
    %1348 = arith.addf %1338, %1347 : vector<40x128xf32>
    %c5_i32_425 = arith.constant 5 : i32
    %1349 = tpu.dynamic_rotate %1331 by %c5_i32_425 dim 1 : vector<40x128xf32>, i32 -> vector<40x128xf32>
    %1350 = arith.mulf %1347, %1349 : vector<40x128xf32>
    %1351 = arith.addf %1341, %1350 : vector<40x128xf32>
    %c4_i32_426 = arith.constant 4 : i32
    %1352 = tpu.dynamic_rotate %1330 by %c4_i32_426 dim 1 : vector<40x128xf32>, i32 -> vector<40x128xf32>
    %1353 = arith.subf %26, %1352 : vector<40x128xf32>
    %1354 = math.absf %1353 : vector<40x128xf32>
    %cst_427 = arith.constant -5.000000e-01 : f32
    %1355 = vector.broadcast %cst_427 : f32 to vector<40x128xf32>
    %1356 = arith.mulf %1354, %1355 : vector<40x128xf32>
    %1357 = math.exp %1356 : vector<40x128xf32>
    %1358 = arith.addf %1348, %1357 : vector<40x128xf32>
    %c4_i32_428 = arith.constant 4 : i32
    %1359 = tpu.dynamic_rotate %1331 by %c4_i32_428 dim 1 : vector<40x128xf32>, i32 -> vector<40x128xf32>
    %1360 = arith.mulf %1357, %1359 : vector<40x128xf32>
    %1361 = arith.addf %1351, %1360 : vector<40x128xf32>
    %c3_i32_429 = arith.constant 3 : i32
    %1362 = tpu.dynamic_rotate %1330 by %c3_i32_429 dim 1 : vector<40x128xf32>, i32 -> vector<40x128xf32>
    %1363 = arith.subf %26, %1362 : vector<40x128xf32>
    %1364 = math.absf %1363 : vector<40x128xf32>
    %cst_430 = arith.constant -5.000000e-01 : f32
    %1365 = vector.broadcast %cst_430 : f32 to vector<40x128xf32>
    %1366 = arith.mulf %1364, %1365 : vector<40x128xf32>
    %1367 = math.exp %1366 : vector<40x128xf32>
    %1368 = arith.addf %1358, %1367 : vector<40x128xf32>
    %c3_i32_431 = arith.constant 3 : i32
    %1369 = tpu.dynamic_rotate %1331 by %c3_i32_431 dim 1 : vector<40x128xf32>, i32 -> vector<40x128xf32>
    %1370 = arith.mulf %1367, %1369 : vector<40x128xf32>
    %1371 = arith.addf %1361, %1370 : vector<40x128xf32>
    %c2_i32_432 = arith.constant 2 : i32
    %1372 = tpu.dynamic_rotate %1330 by %c2_i32_432 dim 1 : vector<40x128xf32>, i32 -> vector<40x128xf32>
    %1373 = arith.subf %26, %1372 : vector<40x128xf32>
    %1374 = math.absf %1373 : vector<40x128xf32>
    %cst_433 = arith.constant -5.000000e-01 : f32
    %1375 = vector.broadcast %cst_433 : f32 to vector<40x128xf32>
    %1376 = arith.mulf %1374, %1375 : vector<40x128xf32>
    %1377 = math.exp %1376 : vector<40x128xf32>
    %1378 = arith.addf %1368, %1377 : vector<40x128xf32>
    %c2_i32_434 = arith.constant 2 : i32
    %1379 = tpu.dynamic_rotate %1331 by %c2_i32_434 dim 1 : vector<40x128xf32>, i32 -> vector<40x128xf32>
    %1380 = arith.mulf %1377, %1379 : vector<40x128xf32>
    %1381 = arith.addf %1371, %1380 : vector<40x128xf32>
    %c1_i32_435 = arith.constant 1 : i32
    %1382 = tpu.dynamic_rotate %1330 by %c1_i32_435 dim 1 : vector<40x128xf32>, i32 -> vector<40x128xf32>
    %1383 = arith.subf %26, %1382 : vector<40x128xf32>
    %1384 = math.absf %1383 : vector<40x128xf32>
    %cst_436 = arith.constant -5.000000e-01 : f32
    %1385 = vector.broadcast %cst_436 : f32 to vector<40x128xf32>
    %1386 = arith.mulf %1384, %1385 : vector<40x128xf32>
    %1387 = math.exp %1386 : vector<40x128xf32>
    %1388 = arith.addf %1378, %1387 : vector<40x128xf32>
    %c1_i32_437 = arith.constant 1 : i32
    %1389 = tpu.dynamic_rotate %1331 by %c1_i32_437 dim 1 : vector<40x128xf32>, i32 -> vector<40x128xf32>
    %1390 = arith.mulf %1387, %1389 : vector<40x128xf32>
    %1391 = arith.addf %1381, %1390 : vector<40x128xf32>
    %1392 = arith.subf %26, %1330 : vector<40x128xf32>
    %1393 = math.absf %1392 : vector<40x128xf32>
    %cst_438 = arith.constant -5.000000e-01 : f32
    %1394 = vector.broadcast %cst_438 : f32 to vector<40x128xf32>
    %1395 = arith.mulf %1393, %1394 : vector<40x128xf32>
    %1396 = math.exp %1395 : vector<40x128xf32>
    %1397 = arith.addf %1388, %1396 : vector<40x128xf32>
    %1398 = arith.mulf %1396, %1331 : vector<40x128xf32>
    %1399 = arith.addf %1391, %1398 : vector<40x128xf32>
    %c127_i32_439 = arith.constant 127 : i32
    %1400 = tpu.dynamic_rotate %1330 by %c127_i32_439 dim 1 : vector<40x128xf32>, i32 -> vector<40x128xf32>
    %1401 = arith.subf %26, %1400 : vector<40x128xf32>
    %1402 = math.absf %1401 : vector<40x128xf32>
    %cst_440 = arith.constant -5.000000e-01 : f32
    %1403 = vector.broadcast %cst_440 : f32 to vector<40x128xf32>
    %1404 = arith.mulf %1402, %1403 : vector<40x128xf32>
    %1405 = math.exp %1404 : vector<40x128xf32>
    %1406 = arith.addf %1397, %1405 : vector<40x128xf32>
    %c127_i32_441 = arith.constant 127 : i32
    %1407 = tpu.dynamic_rotate %1331 by %c127_i32_441 dim 1 : vector<40x128xf32>, i32 -> vector<40x128xf32>
    %1408 = arith.mulf %1405, %1407 : vector<40x128xf32>
    %1409 = arith.addf %1399, %1408 : vector<40x128xf32>
    %c126_i32_442 = arith.constant 126 : i32
    %1410 = tpu.dynamic_rotate %1330 by %c126_i32_442 dim 1 : vector<40x128xf32>, i32 -> vector<40x128xf32>
    %1411 = arith.subf %26, %1410 : vector<40x128xf32>
    %1412 = math.absf %1411 : vector<40x128xf32>
    %cst_443 = arith.constant -5.000000e-01 : f32
    %1413 = vector.broadcast %cst_443 : f32 to vector<40x128xf32>
    %1414 = arith.mulf %1412, %1413 : vector<40x128xf32>
    %1415 = math.exp %1414 : vector<40x128xf32>
    %1416 = arith.addf %1406, %1415 : vector<40x128xf32>
    %c126_i32_444 = arith.constant 126 : i32
    %1417 = tpu.dynamic_rotate %1331 by %c126_i32_444 dim 1 : vector<40x128xf32>, i32 -> vector<40x128xf32>
    %1418 = arith.mulf %1415, %1417 : vector<40x128xf32>
    %1419 = arith.addf %1409, %1418 : vector<40x128xf32>
    %c125_i32_445 = arith.constant 125 : i32
    %1420 = tpu.dynamic_rotate %1330 by %c125_i32_445 dim 1 : vector<40x128xf32>, i32 -> vector<40x128xf32>
    %1421 = arith.subf %26, %1420 : vector<40x128xf32>
    %1422 = math.absf %1421 : vector<40x128xf32>
    %cst_446 = arith.constant -5.000000e-01 : f32
    %1423 = vector.broadcast %cst_446 : f32 to vector<40x128xf32>
    %1424 = arith.mulf %1422, %1423 : vector<40x128xf32>
    %1425 = math.exp %1424 : vector<40x128xf32>
    %1426 = arith.addf %1416, %1425 : vector<40x128xf32>
    %c125_i32_447 = arith.constant 125 : i32
    %1427 = tpu.dynamic_rotate %1331 by %c125_i32_447 dim 1 : vector<40x128xf32>, i32 -> vector<40x128xf32>
    %1428 = arith.mulf %1425, %1427 : vector<40x128xf32>
    %1429 = arith.addf %1419, %1428 : vector<40x128xf32>
    %c124_i32_448 = arith.constant 124 : i32
    %1430 = tpu.dynamic_rotate %1330 by %c124_i32_448 dim 1 : vector<40x128xf32>, i32 -> vector<40x128xf32>
    %1431 = arith.subf %26, %1430 : vector<40x128xf32>
    %1432 = math.absf %1431 : vector<40x128xf32>
    %cst_449 = arith.constant -5.000000e-01 : f32
    %1433 = vector.broadcast %cst_449 : f32 to vector<40x128xf32>
    %1434 = arith.mulf %1432, %1433 : vector<40x128xf32>
    %1435 = math.exp %1434 : vector<40x128xf32>
    %1436 = arith.addf %1426, %1435 : vector<40x128xf32>
    %c124_i32_450 = arith.constant 124 : i32
    %1437 = tpu.dynamic_rotate %1331 by %c124_i32_450 dim 1 : vector<40x128xf32>, i32 -> vector<40x128xf32>
    %1438 = arith.mulf %1435, %1437 : vector<40x128xf32>
    %1439 = arith.addf %1429, %1438 : vector<40x128xf32>
    %c123_i32_451 = arith.constant 123 : i32
    %1440 = tpu.dynamic_rotate %1330 by %c123_i32_451 dim 1 : vector<40x128xf32>, i32 -> vector<40x128xf32>
    %1441 = arith.subf %26, %1440 : vector<40x128xf32>
    %1442 = math.absf %1441 : vector<40x128xf32>
    %cst_452 = arith.constant -5.000000e-01 : f32
    %1443 = vector.broadcast %cst_452 : f32 to vector<40x128xf32>
    %1444 = arith.mulf %1442, %1443 : vector<40x128xf32>
    %1445 = math.exp %1444 : vector<40x128xf32>
    %1446 = arith.addf %1436, %1445 : vector<40x128xf32>
    %c123_i32_453 = arith.constant 123 : i32
    %1447 = tpu.dynamic_rotate %1331 by %c123_i32_453 dim 1 : vector<40x128xf32>, i32 -> vector<40x128xf32>
    %1448 = arith.mulf %1445, %1447 : vector<40x128xf32>
    %1449 = arith.addf %1439, %1448 : vector<40x128xf32>
    %c36_i32_454 = arith.constant 36 : i32
    %1450 = tpu.dynamic_rotate %26 by %c36_i32_454 dim 0 : vector<40x128xf32>, i32 -> vector<40x128xf32>
    %c36_i32_455 = arith.constant 36 : i32
    %1451 = tpu.dynamic_rotate %249 by %c36_i32_455 dim 0 : vector<40x128xf32>, i32 -> vector<40x128xf32>
    %c6_i32_456 = arith.constant 6 : i32
    %1452 = tpu.dynamic_rotate %1450 by %c6_i32_456 dim 1 : vector<40x128xf32>, i32 -> vector<40x128xf32>
    %1453 = arith.subf %26, %1452 : vector<40x128xf32>
    %1454 = math.absf %1453 : vector<40x128xf32>
    %cst_457 = arith.constant -5.000000e-01 : f32
    %1455 = vector.broadcast %cst_457 : f32 to vector<40x128xf32>
    %1456 = arith.mulf %1454, %1455 : vector<40x128xf32>
    %1457 = math.exp %1456 : vector<40x128xf32>
    %1458 = arith.addf %1446, %1457 : vector<40x128xf32>
    %c6_i32_458 = arith.constant 6 : i32
    %1459 = tpu.dynamic_rotate %1451 by %c6_i32_458 dim 1 : vector<40x128xf32>, i32 -> vector<40x128xf32>
    %1460 = arith.mulf %1457, %1459 : vector<40x128xf32>
    %1461 = arith.addf %1449, %1460 : vector<40x128xf32>
    %c5_i32_459 = arith.constant 5 : i32
    %1462 = tpu.dynamic_rotate %1450 by %c5_i32_459 dim 1 : vector<40x128xf32>, i32 -> vector<40x128xf32>
    %1463 = arith.subf %26, %1462 : vector<40x128xf32>
    %1464 = math.absf %1463 : vector<40x128xf32>
    %cst_460 = arith.constant -5.000000e-01 : f32
    %1465 = vector.broadcast %cst_460 : f32 to vector<40x128xf32>
    %1466 = arith.mulf %1464, %1465 : vector<40x128xf32>
    %1467 = math.exp %1466 : vector<40x128xf32>
    %1468 = arith.addf %1458, %1467 : vector<40x128xf32>
    %c5_i32_461 = arith.constant 5 : i32
    %1469 = tpu.dynamic_rotate %1451 by %c5_i32_461 dim 1 : vector<40x128xf32>, i32 -> vector<40x128xf32>
    %1470 = arith.mulf %1467, %1469 : vector<40x128xf32>
    %1471 = arith.addf %1461, %1470 : vector<40x128xf32>
    %c4_i32_462 = arith.constant 4 : i32
    %1472 = tpu.dynamic_rotate %1450 by %c4_i32_462 dim 1 : vector<40x128xf32>, i32 -> vector<40x128xf32>
    %1473 = arith.subf %26, %1472 : vector<40x128xf32>
    %1474 = math.absf %1473 : vector<40x128xf32>
    %cst_463 = arith.constant -5.000000e-01 : f32
    %1475 = vector.broadcast %cst_463 : f32 to vector<40x128xf32>
    %1476 = arith.mulf %1474, %1475 : vector<40x128xf32>
    %1477 = math.exp %1476 : vector<40x128xf32>
    %1478 = arith.addf %1468, %1477 : vector<40x128xf32>
    %c4_i32_464 = arith.constant 4 : i32
    %1479 = tpu.dynamic_rotate %1451 by %c4_i32_464 dim 1 : vector<40x128xf32>, i32 -> vector<40x128xf32>
    %1480 = arith.mulf %1477, %1479 : vector<40x128xf32>
    %1481 = arith.addf %1471, %1480 : vector<40x128xf32>
    %c3_i32_465 = arith.constant 3 : i32
    %1482 = tpu.dynamic_rotate %1450 by %c3_i32_465 dim 1 : vector<40x128xf32>, i32 -> vector<40x128xf32>
    %1483 = arith.subf %26, %1482 : vector<40x128xf32>
    %1484 = math.absf %1483 : vector<40x128xf32>
    %cst_466 = arith.constant -5.000000e-01 : f32
    %1485 = vector.broadcast %cst_466 : f32 to vector<40x128xf32>
    %1486 = arith.mulf %1484, %1485 : vector<40x128xf32>
    %1487 = math.exp %1486 : vector<40x128xf32>
    %1488 = arith.addf %1478, %1487 : vector<40x128xf32>
    %c3_i32_467 = arith.constant 3 : i32
    %1489 = tpu.dynamic_rotate %1451 by %c3_i32_467 dim 1 : vector<40x128xf32>, i32 -> vector<40x128xf32>
    %1490 = arith.mulf %1487, %1489 : vector<40x128xf32>
    %1491 = arith.addf %1481, %1490 : vector<40x128xf32>
    %c2_i32_468 = arith.constant 2 : i32
    %1492 = tpu.dynamic_rotate %1450 by %c2_i32_468 dim 1 : vector<40x128xf32>, i32 -> vector<40x128xf32>
    %1493 = arith.subf %26, %1492 : vector<40x128xf32>
    %1494 = math.absf %1493 : vector<40x128xf32>
    %cst_469 = arith.constant -5.000000e-01 : f32
    %1495 = vector.broadcast %cst_469 : f32 to vector<40x128xf32>
    %1496 = arith.mulf %1494, %1495 : vector<40x128xf32>
    %1497 = math.exp %1496 : vector<40x128xf32>
    %1498 = arith.addf %1488, %1497 : vector<40x128xf32>
    %c2_i32_470 = arith.constant 2 : i32
    %1499 = tpu.dynamic_rotate %1451 by %c2_i32_470 dim 1 : vector<40x128xf32>, i32 -> vector<40x128xf32>
    %1500 = arith.mulf %1497, %1499 : vector<40x128xf32>
    %1501 = arith.addf %1491, %1500 : vector<40x128xf32>
    %c1_i32_471 = arith.constant 1 : i32
    %1502 = tpu.dynamic_rotate %1450 by %c1_i32_471 dim 1 : vector<40x128xf32>, i32 -> vector<40x128xf32>
    %1503 = arith.subf %26, %1502 : vector<40x128xf32>
    %1504 = math.absf %1503 : vector<40x128xf32>
    %cst_472 = arith.constant -5.000000e-01 : f32
    %1505 = vector.broadcast %cst_472 : f32 to vector<40x128xf32>
    %1506 = arith.mulf %1504, %1505 : vector<40x128xf32>
    %1507 = math.exp %1506 : vector<40x128xf32>
    %1508 = arith.addf %1498, %1507 : vector<40x128xf32>
    %c1_i32_473 = arith.constant 1 : i32
    %1509 = tpu.dynamic_rotate %1451 by %c1_i32_473 dim 1 : vector<40x128xf32>, i32 -> vector<40x128xf32>
    %1510 = arith.mulf %1507, %1509 : vector<40x128xf32>
    %1511 = arith.addf %1501, %1510 : vector<40x128xf32>
    %1512 = arith.subf %26, %1450 : vector<40x128xf32>
    %1513 = math.absf %1512 : vector<40x128xf32>
    %cst_474 = arith.constant -5.000000e-01 : f32
    %1514 = vector.broadcast %cst_474 : f32 to vector<40x128xf32>
    %1515 = arith.mulf %1513, %1514 : vector<40x128xf32>
    %1516 = math.exp %1515 : vector<40x128xf32>
    %1517 = arith.addf %1508, %1516 : vector<40x128xf32>
    %1518 = arith.mulf %1516, %1451 : vector<40x128xf32>
    %1519 = arith.addf %1511, %1518 : vector<40x128xf32>
    %c127_i32_475 = arith.constant 127 : i32
    %1520 = tpu.dynamic_rotate %1450 by %c127_i32_475 dim 1 : vector<40x128xf32>, i32 -> vector<40x128xf32>
    %1521 = arith.subf %26, %1520 : vector<40x128xf32>
    %1522 = math.absf %1521 : vector<40x128xf32>
    %cst_476 = arith.constant -5.000000e-01 : f32
    %1523 = vector.broadcast %cst_476 : f32 to vector<40x128xf32>
    %1524 = arith.mulf %1522, %1523 : vector<40x128xf32>
    %1525 = math.exp %1524 : vector<40x128xf32>
    %1526 = arith.addf %1517, %1525 : vector<40x128xf32>
    %c127_i32_477 = arith.constant 127 : i32
    %1527 = tpu.dynamic_rotate %1451 by %c127_i32_477 dim 1 : vector<40x128xf32>, i32 -> vector<40x128xf32>
    %1528 = arith.mulf %1525, %1527 : vector<40x128xf32>
    %1529 = arith.addf %1519, %1528 : vector<40x128xf32>
    %c126_i32_478 = arith.constant 126 : i32
    %1530 = tpu.dynamic_rotate %1450 by %c126_i32_478 dim 1 : vector<40x128xf32>, i32 -> vector<40x128xf32>
    %1531 = arith.subf %26, %1530 : vector<40x128xf32>
    %1532 = math.absf %1531 : vector<40x128xf32>
    %cst_479 = arith.constant -5.000000e-01 : f32
    %1533 = vector.broadcast %cst_479 : f32 to vector<40x128xf32>
    %1534 = arith.mulf %1532, %1533 : vector<40x128xf32>
    %1535 = math.exp %1534 : vector<40x128xf32>
    %1536 = arith.addf %1526, %1535 : vector<40x128xf32>
    %c126_i32_480 = arith.constant 126 : i32
    %1537 = tpu.dynamic_rotate %1451 by %c126_i32_480 dim 1 : vector<40x128xf32>, i32 -> vector<40x128xf32>
    %1538 = arith.mulf %1535, %1537 : vector<40x128xf32>
    %1539 = arith.addf %1529, %1538 : vector<40x128xf32>
    %c125_i32_481 = arith.constant 125 : i32
    %1540 = tpu.dynamic_rotate %1450 by %c125_i32_481 dim 1 : vector<40x128xf32>, i32 -> vector<40x128xf32>
    %1541 = arith.subf %26, %1540 : vector<40x128xf32>
    %1542 = math.absf %1541 : vector<40x128xf32>
    %cst_482 = arith.constant -5.000000e-01 : f32
    %1543 = vector.broadcast %cst_482 : f32 to vector<40x128xf32>
    %1544 = arith.mulf %1542, %1543 : vector<40x128xf32>
    %1545 = math.exp %1544 : vector<40x128xf32>
    %1546 = arith.addf %1536, %1545 : vector<40x128xf32>
    %c125_i32_483 = arith.constant 125 : i32
    %1547 = tpu.dynamic_rotate %1451 by %c125_i32_483 dim 1 : vector<40x128xf32>, i32 -> vector<40x128xf32>
    %1548 = arith.mulf %1545, %1547 : vector<40x128xf32>
    %1549 = arith.addf %1539, %1548 : vector<40x128xf32>
    %c124_i32_484 = arith.constant 124 : i32
    %1550 = tpu.dynamic_rotate %1450 by %c124_i32_484 dim 1 : vector<40x128xf32>, i32 -> vector<40x128xf32>
    %1551 = arith.subf %26, %1550 : vector<40x128xf32>
    %1552 = math.absf %1551 : vector<40x128xf32>
    %cst_485 = arith.constant -5.000000e-01 : f32
    %1553 = vector.broadcast %cst_485 : f32 to vector<40x128xf32>
    %1554 = arith.mulf %1552, %1553 : vector<40x128xf32>
    %1555 = math.exp %1554 : vector<40x128xf32>
    %1556 = arith.addf %1546, %1555 : vector<40x128xf32>
    %c124_i32_486 = arith.constant 124 : i32
    %1557 = tpu.dynamic_rotate %1451 by %c124_i32_486 dim 1 : vector<40x128xf32>, i32 -> vector<40x128xf32>
    %1558 = arith.mulf %1555, %1557 : vector<40x128xf32>
    %1559 = arith.addf %1549, %1558 : vector<40x128xf32>
    %c123_i32_487 = arith.constant 123 : i32
    %1560 = tpu.dynamic_rotate %1450 by %c123_i32_487 dim 1 : vector<40x128xf32>, i32 -> vector<40x128xf32>
    %1561 = arith.subf %26, %1560 : vector<40x128xf32>
    %1562 = math.absf %1561 : vector<40x128xf32>
    %cst_488 = arith.constant -5.000000e-01 : f32
    %1563 = vector.broadcast %cst_488 : f32 to vector<40x128xf32>
    %1564 = arith.mulf %1562, %1563 : vector<40x128xf32>
    %1565 = math.exp %1564 : vector<40x128xf32>
    %1566 = arith.addf %1556, %1565 : vector<40x128xf32>
    %c123_i32_489 = arith.constant 123 : i32
    %1567 = tpu.dynamic_rotate %1451 by %c123_i32_489 dim 1 : vector<40x128xf32>, i32 -> vector<40x128xf32>
    %1568 = arith.mulf %1565, %1567 : vector<40x128xf32>
    %1569 = arith.addf %1559, %1568 : vector<40x128xf32>
    %c35_i32 = arith.constant 35 : i32
    %1570 = tpu.dynamic_rotate %26 by %c35_i32 dim 0 : vector<40x128xf32>, i32 -> vector<40x128xf32>
    %c35_i32_490 = arith.constant 35 : i32
    %1571 = tpu.dynamic_rotate %249 by %c35_i32_490 dim 0 : vector<40x128xf32>, i32 -> vector<40x128xf32>
    %c6_i32_491 = arith.constant 6 : i32
    %1572 = tpu.dynamic_rotate %1570 by %c6_i32_491 dim 1 : vector<40x128xf32>, i32 -> vector<40x128xf32>
    %1573 = arith.subf %26, %1572 : vector<40x128xf32>
    %1574 = math.absf %1573 : vector<40x128xf32>
    %cst_492 = arith.constant -5.000000e-01 : f32
    %1575 = vector.broadcast %cst_492 : f32 to vector<40x128xf32>
    %1576 = arith.mulf %1574, %1575 : vector<40x128xf32>
    %1577 = math.exp %1576 : vector<40x128xf32>
    %1578 = arith.addf %1566, %1577 : vector<40x128xf32>
    %c6_i32_493 = arith.constant 6 : i32
    %1579 = tpu.dynamic_rotate %1571 by %c6_i32_493 dim 1 : vector<40x128xf32>, i32 -> vector<40x128xf32>
    %1580 = arith.mulf %1577, %1579 : vector<40x128xf32>
    %1581 = arith.addf %1569, %1580 : vector<40x128xf32>
    %c5_i32_494 = arith.constant 5 : i32
    %1582 = tpu.dynamic_rotate %1570 by %c5_i32_494 dim 1 : vector<40x128xf32>, i32 -> vector<40x128xf32>
    %1583 = arith.subf %26, %1582 : vector<40x128xf32>
    %1584 = math.absf %1583 : vector<40x128xf32>
    %cst_495 = arith.constant -5.000000e-01 : f32
    %1585 = vector.broadcast %cst_495 : f32 to vector<40x128xf32>
    %1586 = arith.mulf %1584, %1585 : vector<40x128xf32>
    %1587 = math.exp %1586 : vector<40x128xf32>
    %1588 = arith.addf %1578, %1587 : vector<40x128xf32>
    %c5_i32_496 = arith.constant 5 : i32
    %1589 = tpu.dynamic_rotate %1571 by %c5_i32_496 dim 1 : vector<40x128xf32>, i32 -> vector<40x128xf32>
    %1590 = arith.mulf %1587, %1589 : vector<40x128xf32>
    %1591 = arith.addf %1581, %1590 : vector<40x128xf32>
    %c4_i32_497 = arith.constant 4 : i32
    %1592 = tpu.dynamic_rotate %1570 by %c4_i32_497 dim 1 : vector<40x128xf32>, i32 -> vector<40x128xf32>
    %1593 = arith.subf %26, %1592 : vector<40x128xf32>
    %1594 = math.absf %1593 : vector<40x128xf32>
    %cst_498 = arith.constant -5.000000e-01 : f32
    %1595 = vector.broadcast %cst_498 : f32 to vector<40x128xf32>
    %1596 = arith.mulf %1594, %1595 : vector<40x128xf32>
    %1597 = math.exp %1596 : vector<40x128xf32>
    %1598 = arith.addf %1588, %1597 : vector<40x128xf32>
    %c4_i32_499 = arith.constant 4 : i32
    %1599 = tpu.dynamic_rotate %1571 by %c4_i32_499 dim 1 : vector<40x128xf32>, i32 -> vector<40x128xf32>
    %1600 = arith.mulf %1597, %1599 : vector<40x128xf32>
    %1601 = arith.addf %1591, %1600 : vector<40x128xf32>
    %c3_i32_500 = arith.constant 3 : i32
    %1602 = tpu.dynamic_rotate %1570 by %c3_i32_500 dim 1 : vector<40x128xf32>, i32 -> vector<40x128xf32>
    %1603 = arith.subf %26, %1602 : vector<40x128xf32>
    %1604 = math.absf %1603 : vector<40x128xf32>
    %cst_501 = arith.constant -5.000000e-01 : f32
    %1605 = vector.broadcast %cst_501 : f32 to vector<40x128xf32>
    %1606 = arith.mulf %1604, %1605 : vector<40x128xf32>
    %1607 = math.exp %1606 : vector<40x128xf32>
    %1608 = arith.addf %1598, %1607 : vector<40x128xf32>
    %c3_i32_502 = arith.constant 3 : i32
    %1609 = tpu.dynamic_rotate %1571 by %c3_i32_502 dim 1 : vector<40x128xf32>, i32 -> vector<40x128xf32>
    %1610 = arith.mulf %1607, %1609 : vector<40x128xf32>
    %1611 = arith.addf %1601, %1610 : vector<40x128xf32>
    %c2_i32_503 = arith.constant 2 : i32
    %1612 = tpu.dynamic_rotate %1570 by %c2_i32_503 dim 1 : vector<40x128xf32>, i32 -> vector<40x128xf32>
    %1613 = arith.subf %26, %1612 : vector<40x128xf32>
    %1614 = math.absf %1613 : vector<40x128xf32>
    %cst_504 = arith.constant -5.000000e-01 : f32
    %1615 = vector.broadcast %cst_504 : f32 to vector<40x128xf32>
    %1616 = arith.mulf %1614, %1615 : vector<40x128xf32>
    %1617 = math.exp %1616 : vector<40x128xf32>
    %1618 = arith.addf %1608, %1617 : vector<40x128xf32>
    %c2_i32_505 = arith.constant 2 : i32
    %1619 = tpu.dynamic_rotate %1571 by %c2_i32_505 dim 1 : vector<40x128xf32>, i32 -> vector<40x128xf32>
    %1620 = arith.mulf %1617, %1619 : vector<40x128xf32>
    %1621 = arith.addf %1611, %1620 : vector<40x128xf32>
    %c1_i32_506 = arith.constant 1 : i32
    %1622 = tpu.dynamic_rotate %1570 by %c1_i32_506 dim 1 : vector<40x128xf32>, i32 -> vector<40x128xf32>
    %1623 = arith.subf %26, %1622 : vector<40x128xf32>
    %1624 = math.absf %1623 : vector<40x128xf32>
    %cst_507 = arith.constant -5.000000e-01 : f32
    %1625 = vector.broadcast %cst_507 : f32 to vector<40x128xf32>
    %1626 = arith.mulf %1624, %1625 : vector<40x128xf32>
    %1627 = math.exp %1626 : vector<40x128xf32>
    %1628 = arith.addf %1618, %1627 : vector<40x128xf32>
    %c1_i32_508 = arith.constant 1 : i32
    %1629 = tpu.dynamic_rotate %1571 by %c1_i32_508 dim 1 : vector<40x128xf32>, i32 -> vector<40x128xf32>
    %1630 = arith.mulf %1627, %1629 : vector<40x128xf32>
    %1631 = arith.addf %1621, %1630 : vector<40x128xf32>
    %1632 = arith.subf %26, %1570 : vector<40x128xf32>
    %1633 = math.absf %1632 : vector<40x128xf32>
    %cst_509 = arith.constant -5.000000e-01 : f32
    %1634 = vector.broadcast %cst_509 : f32 to vector<40x128xf32>
    %1635 = arith.mulf %1633, %1634 : vector<40x128xf32>
    %1636 = math.exp %1635 : vector<40x128xf32>
    %1637 = arith.addf %1628, %1636 : vector<40x128xf32>
    %1638 = arith.mulf %1636, %1571 : vector<40x128xf32>
    %1639 = arith.addf %1631, %1638 : vector<40x128xf32>
    %c127_i32_510 = arith.constant 127 : i32
    %1640 = tpu.dynamic_rotate %1570 by %c127_i32_510 dim 1 : vector<40x128xf32>, i32 -> vector<40x128xf32>
    %1641 = arith.subf %26, %1640 : vector<40x128xf32>
    %1642 = math.absf %1641 : vector<40x128xf32>
    %cst_511 = arith.constant -5.000000e-01 : f32
    %1643 = vector.broadcast %cst_511 : f32 to vector<40x128xf32>
    %1644 = arith.mulf %1642, %1643 : vector<40x128xf32>
    %1645 = math.exp %1644 : vector<40x128xf32>
    %1646 = arith.addf %1637, %1645 : vector<40x128xf32>
    %c127_i32_512 = arith.constant 127 : i32
    %1647 = tpu.dynamic_rotate %1571 by %c127_i32_512 dim 1 : vector<40x128xf32>, i32 -> vector<40x128xf32>
    %1648 = arith.mulf %1645, %1647 : vector<40x128xf32>
    %1649 = arith.addf %1639, %1648 : vector<40x128xf32>
    %c126_i32_513 = arith.constant 126 : i32
    %1650 = tpu.dynamic_rotate %1570 by %c126_i32_513 dim 1 : vector<40x128xf32>, i32 -> vector<40x128xf32>
    %1651 = arith.subf %26, %1650 : vector<40x128xf32>
    %1652 = math.absf %1651 : vector<40x128xf32>
    %cst_514 = arith.constant -5.000000e-01 : f32
    %1653 = vector.broadcast %cst_514 : f32 to vector<40x128xf32>
    %1654 = arith.mulf %1652, %1653 : vector<40x128xf32>
    %1655 = math.exp %1654 : vector<40x128xf32>
    %1656 = arith.addf %1646, %1655 : vector<40x128xf32>
    %c126_i32_515 = arith.constant 126 : i32
    %1657 = tpu.dynamic_rotate %1571 by %c126_i32_515 dim 1 : vector<40x128xf32>, i32 -> vector<40x128xf32>
    %1658 = arith.mulf %1655, %1657 : vector<40x128xf32>
    %1659 = arith.addf %1649, %1658 : vector<40x128xf32>
    %c125_i32_516 = arith.constant 125 : i32
    %1660 = tpu.dynamic_rotate %1570 by %c125_i32_516 dim 1 : vector<40x128xf32>, i32 -> vector<40x128xf32>
    %1661 = arith.subf %26, %1660 : vector<40x128xf32>
    %1662 = math.absf %1661 : vector<40x128xf32>
    %cst_517 = arith.constant -5.000000e-01 : f32
    %1663 = vector.broadcast %cst_517 : f32 to vector<40x128xf32>
    %1664 = arith.mulf %1662, %1663 : vector<40x128xf32>
    %1665 = math.exp %1664 : vector<40x128xf32>
    %1666 = arith.addf %1656, %1665 : vector<40x128xf32>
    %c125_i32_518 = arith.constant 125 : i32
    %1667 = tpu.dynamic_rotate %1571 by %c125_i32_518 dim 1 : vector<40x128xf32>, i32 -> vector<40x128xf32>
    %1668 = arith.mulf %1665, %1667 : vector<40x128xf32>
    %1669 = arith.addf %1659, %1668 : vector<40x128xf32>
    %c124_i32_519 = arith.constant 124 : i32
    %1670 = tpu.dynamic_rotate %1570 by %c124_i32_519 dim 1 : vector<40x128xf32>, i32 -> vector<40x128xf32>
    %1671 = arith.subf %26, %1670 : vector<40x128xf32>
    %1672 = math.absf %1671 : vector<40x128xf32>
    %cst_520 = arith.constant -5.000000e-01 : f32
    %1673 = vector.broadcast %cst_520 : f32 to vector<40x128xf32>
    %1674 = arith.mulf %1672, %1673 : vector<40x128xf32>
    %1675 = math.exp %1674 : vector<40x128xf32>
    %1676 = arith.addf %1666, %1675 : vector<40x128xf32>
    %c124_i32_521 = arith.constant 124 : i32
    %1677 = tpu.dynamic_rotate %1571 by %c124_i32_521 dim 1 : vector<40x128xf32>, i32 -> vector<40x128xf32>
    %1678 = arith.mulf %1675, %1677 : vector<40x128xf32>
    %1679 = arith.addf %1669, %1678 : vector<40x128xf32>
    %c123_i32_522 = arith.constant 123 : i32
    %1680 = tpu.dynamic_rotate %1570 by %c123_i32_522 dim 1 : vector<40x128xf32>, i32 -> vector<40x128xf32>
    %1681 = arith.subf %26, %1680 : vector<40x128xf32>
    %1682 = math.absf %1681 : vector<40x128xf32>
    %cst_523 = arith.constant -5.000000e-01 : f32
    %1683 = vector.broadcast %cst_523 : f32 to vector<40x128xf32>
    %1684 = arith.mulf %1682, %1683 : vector<40x128xf32>
    %1685 = math.exp %1684 : vector<40x128xf32>
    %1686 = arith.addf %1676, %1685 : vector<40x128xf32>
    %c123_i32_524 = arith.constant 123 : i32
    %1687 = tpu.dynamic_rotate %1571 by %c123_i32_524 dim 1 : vector<40x128xf32>, i32 -> vector<40x128xf32>
    %1688 = arith.mulf %1685, %1687 : vector<40x128xf32>
    %1689 = arith.addf %1679, %1688 : vector<40x128xf32>
    %1690 = tpu.reciprocal %1686 {approx = true} : vector<40x128xf32> -> vector<40x128xf32>
    %1691 = arith.mulf %1689, %1690 : vector<40x128xf32>
    %1692 = vector.extract_strided_slice %1691 {offsets = [16, 0], sizes = [8, 128], strides = [1, 1]} : vector<40x128xf32> to vector<8x128xf32>
    %c0_525 = arith.constant 0 : index
    %c0_526 = arith.constant 0 : index
    %c0_527 = arith.constant 0 : index
    %1693 = vector.load %arg5[%c0_525, %c0_526, %c0_527] : memref<1x8x128xf32, #tpu.memory_space<vmem>>, vector<1x8x128xf32>
    %1694 = vector.shape_cast %1693 : vector<1x8x128xf32> to vector<8x128xf32>
    %1695 = vector.shape_cast %1692 : vector<8x128xf32> to vector<1x8x128xf32>
    tpu.vector_store %arg5[%c0_525, %c0_526, %c0_527], %1695 {strides = array<i32>} : memref<1x8x128xf32, #tpu.memory_space<vmem>>, vector<1x8x128xf32>,
    return
  }
  func.func @transform_3(%arg0: i32, %arg1: i32) -> (i32, i32, i32) {
    %c0_i32 = arith.constant 0 : i32
    %c0_i32_0 = arith.constant 0 : i32
    return %arg0, %arg1, %c0_i32 : i32, i32, i32
  }
}

</mosaic_0001>

<bundles_post_ra>
// kernel: tpu_custom_call.1
= control target key start
LH: loop header
LB: loop body
LE: loop exit
PB: predicated region body
PF: predicated region fallthrough
CT: control target
= control target key end

     0   :  { %8 = vsyncpa [#allocation7], 0  ;;  %s6459_s0 = inlined_call_operand.hbm [shape: f32[2,48,128], index: 0, kind: input, shape index: {}]   ;;  %s6460_s1 = inlined_call_operand.hbm [shape: f32[2,48,128], index: 1, kind: input, shape index: {}]   ;;  %s6461_s2 = inlined_call_operand.hbm [shape: f32[2,48,128], index: 2, kind: input, shape index: {}]   ;;  %s6462_s3 = inlined_call_operand.hbm [shape: f32[2,16,128], index: 3, kind: output, shape index: {}]  }
   0x1   :  { %10 = vsyncpa [#allocation7 + $0x1], 0  ;;  %s3694_s12 = smov 0   ;;  %s3696_s13 = smov 0  }
   0x2   :  { %s3698_s14 = smov 0   ;;  %s3700_s15 = smov 0  }
   0x3   :  { %s3702_s16 = smov 0  }
   0x4 LB: > { %s22_s17 = sadd.s32 1, %s3650_s14  ;;  %s25_s18 = sadd.s32 1, %s3654_s15  ;;  %s3658_s16 = sphi %s3702_s16, %s16_s16   ;;  %s3654_s15 = sphi %s3700_s15, %s6705_s15   ;;  %s3650_s14 = sphi %s3698_s14, %s6704_s14   ;;  %s3646_s13 = sphi %s3696_s13, %s6703_s13   ;;  %s3642_s12 = sphi %s3694_s12, %s6702_s12  }
   0x5   : > { %p23_p0 = scmp.ge.s32.totalorder %s22_s17, 2  ;;  %s3106_s19 = sadd.s32 4294967295, %s3658_s16  }
   0x6   : > { %p43_p1 = scmp.ne.s32.totalorder %s3646_s13, %s3642_s12  ;;  %p44_p3 = scmp.eq.s32.totalorder %s3106_s19, 3 }
   0x7   : > { %s6707_s17 = smov (%p23_p0, %s22_s17), 0  ;;  %s6709_s18 = smov (!%p23_p0, %s25_s18), %s3654_s15 }
   0x8   : > { %p27_p2 = scmp.ge.s32.totalorder %s6709_s18, 2  ;;  %s30_s20 = ssub.s32 %s3650_s14, %s6707_s17 }
   0x9   : > { %p3731_p4 = por %p44_p3, %p43_p1  ;;  %s34_s23 = sadd.s32 1, %s3646_s13 }
   0xa   : > { %s6711_s18 = smov (%p27_p2, %s6709_s18), 0  ;;  %p38_p5 = scmp.eq.s32.totalorder %s3658_s16, 3 }
   0xb   : > { %s29_s22 = ssub.s32 %s3654_s15, %s6711_s18  ;;  %p3108_p9 = scmp.ge.s32.totalorder %s3658_s16, 4 }
   0xc   : > { %s31_s24 = sor.u32 %s30_s20, %s29_s22 }
   0xd   : > { %p32_p6 = scmp.eq.s32.totalorder %s31_s24, 0  ;;  %p3107_p7 = scmp.ne.s32.totalorder %s31_s24, 0 }
   0xe   : > { %53 = sbr.rel (%p3108_p9) target bundleno = 1587 (0x633), region = 12 }
   0xf   : > { %s3740_s25 = scalar_select %p32_p6, %s3646_s13, %s34_s23  }
  0x10   : > { %p3742_p8 = por %p3107_p7, %p38_p5 }
  0x13   : > { %s6463_s27 = sand.u32 1, %s3646_s13   ;;  %s3110_s28 = sshll.u32 %s3650_s14, 3 }
  0x14   : > { %s3751_s29 = sshll.u32 %s6463_s27, 3  ;;  %s62_s30 = smul.u32 48, %s3654_s15 }
  0x15   : > { %s3660_s5 = smov [#allocation2]   ;;  %s3661_s23 = smov [#allocation3]  }
  0x16   : > { %s63_s4 = sadd.s32 %s3110_s28, %s62_s30  ;;  %s74_s6 = sshll.u32 %s3660_s5, 4  ;;  %s75_s6 = int_to_ptr.vmem [resolvable:$true] %s74_s6 }
  0x17   : > { %s64_s9 = scalar_lea.hbm %s6459_s0, %s63_s4  ;;  %s78_s20 = scalar_lea.hbm %s6460_s1, %s63_s4 }
  0x18   : > { %s72_s10 = sshll.u32 %s64_s9, 4  ;;  %s87_s22 = sshll.u32 %s78_s20, 4  ;;  %s73_s10 = int_to_ptr.hbm [resolvable:$true] %s72_s10  ;;  %s88_s22 = int_to_ptr.hbm [resolvable:$true] %s87_s22 }
  0x19   : > { %77 = dma.hbm_to_vmem [thread:$0]  %s73_s10, 640, %s75_s6, [#allocation5] }
  0x1a   : > { %s89_s24 = sshll.u32 %s3661_s23, 4  ;;  %s93_s5 = scalar_lea.hbm %s6461_s2, %s63_s4  ;;  %s90_s24 = int_to_ptr.vmem [resolvable:$true] %s89_s24 }
  0x1b   : > { %s102_s7 = sshll.u32 %s93_s5, 4  ;;  %s3662_s8 = smov [#allocation4]   ;;  %s103_s7 = int_to_ptr.hbm [resolvable:$true] %s102_s7 }
  0x1c   : > { %92 = dma.hbm_to_vmem [thread:$0]  %s88_s22, 640, %s90_s24, [#allocation5 + $0x1] }
  0x1d   : > { %s104_s9 = sshll.u32 %s3662_s8, 4  ;;  %s60_s11 = scalar_lea.vmem [#allocation6], %s3751_s29  ;;  %s105_s9 = int_to_ptr.vmem [resolvable:$true] %s104_s9 }
  0x1e   : > { %107 = dma.hbm_to_vmem [thread:$0]  %s103_s7, 640, %s105_s9, [#allocation5 + $0x2] }
  0x1f   : > { %3630 = dma.done.wait [#allocation5], 640 }
  0x20   : > { %3631 = vsyncadd [#allocation5], 4294966656 }
  0x21   : > { %3632 = dma.done.wait [#allocation5 + $0x1], 640 }
  0x22   : > { %3633 = vsyncadd [#allocation5 + $0x1], 4294966656 }
  0x23   : > { %3634 = dma.done.wait [#allocation5 + $0x2], 640 }
  0x24   : > { %3635 = vsyncadd [#allocation5 + $0x2], 4294966656  ;;  %v3766_v0 = vld [vmem:[#allocation3 + $0x10] sm:$0xff]  ;;  %v3768_v1 = vld [vmem:[#allocation3] sm:$0xff]  ;;  %s3663_s27 = smov 1   ;;  %s3664_s4 = smov 2  }
  0x25   : > { %179 = vrot.lane.b32.xlu1 %v3766_v0, %s3663_s27  ;;  %175 = vrot.lane.b32.xlu0 %v3768_v1, %s3663_s27  ;;  %v3774_v2 = vld [vmem:[#allocation3 + $0x20] sm:$0xff]  ;;  %v3778_v3 = vld [vmem:[#allocation3 + $0x18] sm:$0xff]  ;;  %v3780_v4 = vld [vmem:[#allocation3 + $0x8] sm:$0xff]  ;;  %s3665_s6 = smov 3   ;;  %s3666_s10 = smov 4  }
  0x26   : > { %183 = vrot.lane.b32.xlu2 %v3774_v2, %s3663_s27  ;;  %v3822_v8 = vld [vmem:[#allocation4 + $0x20] sm:$0xff]  ;;  %v127_v12 = vld [vmem:[#allocation4 + $0x10] sm:$0xff]  ;;  %v126_v21 = vld [vmem:[#allocation4 + $0x8] sm:$0xff]  ;;  %s3667_s19 = smov 127   ;;  %s3668_s20 = smov 126  }
  0x27   : > { %v3115_v11 = vadd.f32 -1.0, %v3822_v8  ;;  %v3113_v13 = vadd.f32 -1.0, %v127_v12  ;;  %v3829_v14 = vld [vmem:[#allocation4] sm:$0xff]  ;;  %v134_v15 = vand.u32 2147483647, %v3822_v8  ;;  %v3844_v28 = vld [vmem:[#allocation4 + $0x18] sm:$0xff] }
  0x28   : > { %v132_v17 = vand.u32 2147483647, %v127_v12  ;;  %v3111_v20 = vadd.f32 -1.0, %v3829_v14  ;;  %v130_v27 = vand.u32 2147483647, %v3829_v14  ;;  %v3112_v29 = vadd.f32 -1.0, %v126_v21 }
  0x29   : > { %v164_v16 = vand.u32 2147483647, %v3115_v11  ;;  %v162_v22 = vand.u32 2147483647, %v3113_v13  ;;  %v3839_v24 = vsub.f32 1.0, %v134_v15  ;;  %v3118_v31 = vadd.f32 -2.0, %v127_v12 }
  0x2a   : > { %v137_v26 = vsub.f32 1.0, %v132_v17  ;;  %v160_v30 = vand.u32 2147483647, %v3111_v20  ;;  %v3116_v33 = vadd.f32 -2.0, %v3829_v14  ;;  %v3114_v37 = vadd.f32 -1.0, %v3844_v28  ;;  %s3669_s22 = smov 125  }
  0x2b   : > { %v3841_v25 = vsub.f32 1.0, %v164_v16  ;;  %v167_v32 = vsub.f32 1.0, %v162_v22  ;;  %v144_v34 = vmax.f32 %v3839_v24, 0.0  ;;  %v135_v38 = vsub.f32 1.0, %v130_v27  ;;  %s3670_s23 = smov 124   ;;  %s3671_s24 = smov 6  }
  0x2c   : > { %v142_v36 = vmax.f32 %v137_v26, 0.0  ;;  %v131_v39 = vand.u32 2147483647, %v126_v21  ;;  %v161_v40 = vand.u32 2147483647, %v3112_v29  ;;  %v3117_v42 = vadd.f32 -2.0, %v126_v21 }
  0x2d   : > { %181 = vrot.lane.b32.xlu1 %v3778_v3, %s3663_s27  ;;  %177 = vrot.lane.b32.xlu0 %v3780_v4, %s3663_s27  ;;  %v174_v35 = vmax.f32 %v3841_v25, 0.0  ;;  %v165_v44 = vsub.f32 1.0, %v160_v30  ;;  %v202_v45 = vand.u32 2147483647, %v3118_v31  ;;  %v3123_v46 = vadd.f32 -3.0, %v127_v12  ;;  %s3672_s30 = smov 5  }
  0x2e   : > { %215 = vrot.lane.b32.xlu2 %v3768_v1, %s3664_s4  ;;  %v3128_v47 = vadd.f32 -4.0, %v127_v12  ;;  %v172_v48 = vmax.f32 %v167_v32, 0.0  ;;  %v200_v49 = vand.u32 2147483647, %v3116_v33  ;;  %v3122_v50 = vadd.f32 -3.0, %v126_v21  ;;  %s3132_s5 = sshll.u32 %s3654_s15, 1 }
  0x2f   : > { %v3121_v51 = vadd.f32 -3.0, %v3829_v14  ;;  %v147_v52 = vmul.f32 %v142_v36, %v3766_v0  ;;  %v133_v53 = vand.u32 2147483647, %v3844_v28  ;;  %v163_v54 = vand.u32 2147483647, %v3114_v37  ;;  %s3016_s7 = sadd.s32 %s3650_s14, %s3132_s5 }
  0x30   : > { %v3856_v55 = vadd.f32 -2.0, %v3844_v28  ;;  %v140_v56 = vmax.f32 %v135_v38, 0.0  ;;  %v136_v57 = vsub.f32 1.0, %v131_v39  ;;  %v166_v58 = vsub.f32 1.0, %v161_v40  ;;  %s3133_s8 = sshll.u32 %s3016_s7, 3 }
  0x31   : > { %v201_v59 = vand.u32 2147483647, %v3117_v42  ;;  %v170_v61 = vmax.f32 %v165_v44, 0.0  ;;  %v207_v62 = vsub.f32 1.0, %v202_v45  ;;  %v242_v63 = vand.u32 2147483647, %v3123_v46  ;;  %s3018_s14 = scalar_lea.hbm %s6462_s3, %s3133_s8 }
  0x32   : > { %v282_v11 = vand.u32 2147483647, %v3128_v47  ;;  %v205_v12 = vsub.f32 1.0, %v200_v49  ;;  %v241_v13 = vand.u32 2147483647, %v3122_v50  ;;  %v3861_v16 = vsub.f32 1.0, %v133_v53 }
  0x33   : > { %v240_v15 = vand.u32 2147483647, %v3121_v51  ;;  %v3863_v17 = vsub.f32 1.0, %v163_v54  ;;  %v203_v20 = vand.u32 2147483647, %v3856_v55  ;;  %v3127_v22 = vadd.f32 -4.0, %v126_v21 }
  0x34   : > { %v145_v26 = vmul.f32 %v140_v56, %v3768_v1  ;;  %v141_v27 = vmax.f32 %v136_v57, 0.0  ;;  %v171_v29 = vmax.f32 %v166_v58, 0.0  ;;  %v206_v30 = vsub.f32 1.0, %v201_v59 }
  0x35   : > { %219 = vrot.lane.b32.xlu1 %v3766_v0, %s3664_s4  ;;  %217 = vrot.lane.b32.xlu0 %v3780_v4, %s3664_s4  ;;  %v212_v33 = vmax.f32 %v207_v62, 0.0  ;;  %v247_v36 = vsub.f32 1.0, %v242_v63  ;;  %v287_v37 = vsub.f32 1.0, %v282_v11  ;;  %v3126_v38 = vadd.f32 -4.0, %v3829_v14 }
  0x36   : > { %221 = vrot.lane.b32.xlu2 %v3778_v3, %s3664_s4  ;;  %v246_v39 = vsub.f32 1.0, %v241_v13  ;;  %v245_v40 = vsub.f32 1.0, %v240_v15  ;;  %v3125_v44 = vadd.f32 -3.0, %v3822_v8  ;;  %v210_v45 = vmax.f32 %v205_v12, 0.0 }
  0x37   : > { %v281_v46 = vand.u32 2147483647, %v3127_v22  ;;  %v143_v47 = vmax.f32 %v3861_v16, 0.0  ;;  %v146_v49 = vmul.f32 %v141_v27, %v3780_v4  ;;  %v211_v51 = vmax.f32 %v206_v30, 0.0 }
  0x38   : > { %v252_v14 = vmax.f32 %v247_v36, 0.0  ;;  %v292_v54 = vmax.f32 %v287_v37, 0.0  ;;  %v280_v55 = vand.u32 2147483647, %v3126_v38  ;;  %v251_v56 = vmax.f32 %v246_v39, 0.0 }
  0x39   : > { %v250_v57 = vmax.f32 %v245_v40, 0.0  ;;  %v244_v59 = vand.u32 2147483647, %v3125_v44  ;;  %v286_v11 = vsub.f32 1.0, %v281_v46  ;;  %v3129_v15 = vadd.f32 -4.0, %v3844_v28 }
  0x3a   : > { %v285_v27 = vsub.f32 1.0, %v280_v55 }
  0x3b   : > { %v283_v39 = vand.u32 2147483647, %v3129_v15 }
  0x3c   : > { %v290_v44 = vmax.f32 %v285_v27, 0.0 }
  0x3d   : > { %255 = vrot.lane.b32.xlu1 %v3768_v1, %s3665_s6  ;;  %223 = vrot.lane.b32.xlu0 %v3774_v2, %s3664_s4 }
  0x3e   : > { %257 = vrot.lane.b32.xlu2 %v3780_v4, %s3665_s6 }
  0x45   : > { %261 = vrot.lane.b32.xlu1 %v3778_v3, %s3665_s6  ;;  %259 = vrot.lane.b32.xlu0 %v3766_v0, %s3665_s6 }
  0x46   : > { %263 = vrot.lane.b32.xlu2 %v3774_v2, %s3665_s6 }
  0x4d   : > { %297 = vrot.lane.b32.xlu1 %v3780_v4, %s3666_s10  ;;  %295 = vrot.lane.b32.xlu0 %v3768_v1, %s3666_s10  ;;  %v3124_v1 = vadd.f32 -3.0, %v3844_v28 }
  0x4e   : > { %299 = vrot.lane.b32.xlu2 %v3766_v0, %s3666_s10  ;;  %v3120_v0 = vadd.f32 -2.0, %v3822_v8 }
  0x4f   : > { %v243_v63 = vand.u32 2147483647, %v3124_v1 }
  0x50   : > { %v204_v42 = vand.u32 2147483647, %v3120_v0 }
  0x51   : > { %v248_v36 = vsub.f32 1.0, %v243_v63 }
  0x52   : > { %v209_v58 = vsub.f32 1.0, %v204_v42  ;;  %v291_v42 = vmax.f32 %v286_v11, 0.0 }
  0x53   : > { %v253_v1 = vmax.f32 %v248_v36, 0.0 }
  0x55   : > { %303 = vrot.lane.b32.xlu1 %v3774_v2, %s3666_s10  ;;  %301 = vrot.lane.b32.xlu0 %v3778_v3, %s3666_s10 }
  0x80   : > { %v3816_v5 = vpop.permute.xlu2 %183 }
  0x88   : > { %v3818_v6 = vpop.permute.xlu2 %215 }
  0x90   : > { %v3820_v7 = vpop.permute.xlu2 %221 }
  0x97   : > { %v3824_v9 = vpop.permute.xlu1 %179  ;;  %v3826_v10 = vpop.permute.xlu0 %175 }
  0x98   : > { %v3837_v23 = vpop.permute.xlu2 %257  ;;  %v187_v21 = vmul.f32 %v3824_v9, %v172_v48  ;;  %v185_v62 = vmul.f32 %v3826_v10, %v170_v61  ;;  %v208_v10 = vsub.f32 1.0, %v203_v20  ;;  %v214_v61 = vmax.f32 %v209_v58, 0.0 }
  0x99   : > { %v266_v38 = vmul.f32 %v3837_v23, %v251_v56  ;;  %v148_v20 = vmul.f32 %v143_v47, %v3778_v3 }
  0x9a   : > { %v192_v48 = vadd.f32 %v187_v21, %v147_v52  ;;  %v173_v52 = vmax.f32 %v3863_v17, 0.0  ;;  %v190_v30 = vadd.f32 %v185_v62, %v145_v26  ;;  %v189_v17 = vmul.f32 %v3816_v5, %v174_v35 }
  0x9b   : > { %v213_v21 = vmax.f32 %v208_v10, 0.0 }
  0x9f   : > { %v3832_v18 = vpop.permute.xlu1 %181  ;;  %v3834_v19 = vpop.permute.xlu0 %177 }
  0xa0   : > { %v3858_v60 = vpop.permute.xlu2 %263  ;;  %v186_v50 = vmul.f32 %v3834_v19, %v171_v29  ;;  %v225_v29 = vmul.f32 %v3818_v6, %v210_v45  ;;  %v149_v6 = vmul.f32 %v144_v34, %v3774_v2  ;;  %v188_v23 = vmul.f32 %v3832_v18, %v173_v52 }
  0xa1   : > { %v288_v34 = vsub.f32 1.0, %v283_v39  ;;  %v228_v18 = vmul.f32 %v3820_v7, %v213_v21 }
  0xa2   : > { %v191_v12 = vadd.f32 %v186_v50, %v146_v49  ;;  %v230_v26 = vadd.f32 %v225_v29, %v190_v30  ;;  %v194_v47 = vadd.f32 %v189_v17, %v149_v6  ;;  %v193_v49 = vadd.f32 %v188_v23, %v148_v20 }
  0xa3   : > { %v293_v55 = vmax.f32 %v288_v34, 0.0 }
  0xa4   : > { %v233_v56 = vadd.f32 %v228_v18, %v193_v49 }
  0xa7   : > { %v220_v41 = vpop.permute.xlu1 %219  ;;  %v3850_v43 = vpop.permute.xlu0 %217 }
  0xa8   : > { %v227_v53 = vmul.f32 %v220_v41, %v212_v33  ;;  %v300_v9 = vpop.permute.xlu2 %299  ;;  %v226_v4 = vmul.f32 %v3850_v43, %v211_v51  ;;  %v3130_v41 = vadd.f32 -4.0, %v3822_v8  ;;  %v249_v33 = vsub.f32 1.0, %v244_v59 }
  0xa9   : > { %v307_v22 = vmul.f32 %v300_v9, %v292_v54 }
  0xaa   : > { %v232_v0 = vadd.f32 %v227_v53, %v192_v48  ;;  %v231_v37 = vadd.f32 %v226_v4, %v191_v12  ;;  %v284_v8 = vand.u32 2147483647, %v3130_v41  ;;  %v254_v45 = vmax.f32 %v249_v33, 0.0 }
  0xac   : > { %v289_v2 = vsub.f32 1.0, %v284_v8  ;;  %v269_v53 = vmul.f32 %v3858_v60, %v254_v45 }
  0xaf   : > { %v256_v31 = vpop.permute.xlu1 %255  ;;  %v3867_v32 = vpop.permute.xlu0 %223 }
  0xb0   : > { %v265_v28 = vmul.f32 %v256_v31, %v250_v57  ;;  %v271_v31 = vadd.f32 %v266_v38, %v231_v37  ;;  %v229_v5 = vmul.f32 %v3867_v32, %v214_v61  ;;  %v294_v32 = vmax.f32 %v289_v2, 0.0 }
  0xb2   : > { %v270_v25 = vadd.f32 %v265_v28, %v230_v26 }
  0xb7   : > { %v262_v13 = vpop.permute.xlu1 %261  ;;  %v260_v19 = vpop.permute.xlu0 %259 }
  0xb8   : > { %v267_v16 = vmul.f32 %v260_v19, %v252_v14  ;;  %v234_v14 = vadd.f32 %v229_v5, %v194_v47  ;;  %v268_v54 = vmul.f32 %v262_v13, %v253_v1 }
  0xba   : > { %v272_v43 = vadd.f32 %v267_v16, %v232_v0  ;;  %v274_v58 = vadd.f32 %v269_v53, %v234_v14  ;;  %v273_v59 = vadd.f32 %v268_v54, %v233_v56 }
  0xbc   : > { %v3883_v40 = vadd.f32 %v307_v22, %v272_v43 }
  0xbe   : > { %6532 = vst [vmem:[#allocation20_spill] sm:$0xff] %v3883_v40  ;;  %319 = vrot.lane.b32.xlu1 %v3883_v40, %s3667_s19  ;;  %v4012_v15 = vmul.f32 %v3883_v40, %v3883_v40 }
  0xbf   : > { %v298_v46 = vpop.permute.xlu1 %297  ;;  %v296_v24 = vpop.permute.xlu0 %295 }
  0xc0   : > { %v306_v35 = vmul.f32 %v298_v46, %v291_v42  ;;  %v305_v3 = vmul.f32 %v296_v24, %v290_v44 }
  0xc2   : > { %v3897_v50 = vadd.f32 %v306_v35, %v271_v31  ;;  %v3899_v51 = vadd.f32 %v305_v3, %v270_v25 }
  0xc4   : > { %6533 = vst [vmem:[#allocation21_spill] sm:$0xff] %v3897_v50  ;;  %317 = vrot.lane.b32.xlu0 %v3897_v50, %s3667_s19  ;;  %315 = vrot.lane.b32.xlu2 %v3899_v51, %s3667_s19  ;;  %v3986_v11 = vmul.f32 %v3897_v50, %v3897_v50  ;;  %v3994_v4 = vmul.f32 %v3899_v51, %v3899_v51 }
  0xc6   : > { %330 = vrot.lane.b32.xlu1 %v3899_v51, %s3663_s27 }
  0xc7   : > { %v304_v7 = vpop.permute.xlu1 %303  ;;  %v302_v57 = vpop.permute.xlu0 %301 }
  0xc8   : > { %v309_v9 = vmul.f32 %v304_v7, %v294_v32  ;;  %v308_v60 = vmul.f32 %v302_v57, %v293_v55 }
  0xca   : > { %v3908_v48 = vadd.f32 %v309_v9, %v274_v58  ;;  %v3910_v62 = vadd.f32 %v308_v60, %v273_v59  ;;  %v4120_v59 = vld [vmem:[#allocation2] sm:$0xff] }
  0xcb   : > { %6538 = vst [vmem:[#allocation26_spill] sm:$0xff] %v4120_v59 }
  0xcc   : > { %323 = vrot.lane.b32.xlu0 %v3908_v48, %s3667_s19  ;;  %321 = vrot.lane.b32.xlu2 %v3910_v62, %s3667_s19  ;;  %v4002_v13 = vmul.f32 %v3908_v48, %v3908_v48  ;;  %v4016_v0 = vmul.f32 %v3910_v62, %v3910_v62 }
  0xce   : > { %336 = vrot.lane.b32.xlu1 %v3910_v62, %s3663_s27 }
  0xd4   : > { %334 = vrot.lane.b32.xlu0 %v3883_v40, %s3663_s27  ;;  %332 = vrot.lane.b32.xlu2 %v3897_v50, %s3663_s27 }
  0xd6   : > { %347 = vrot.lane.b32.xlu1 %v3897_v50, %s3668_s20 }
  0xdc   : > { %345 = vrot.lane.b32.xlu0 %v3899_v51, %s3668_s20  ;;  %338 = vrot.lane.b32.xlu2 %v3908_v48, %s3663_s27 }
  0xde   : > { %353 = vrot.lane.b32.xlu1 %v3908_v48, %s3668_s20 }
  0xe4   : > { %351 = vrot.lane.b32.xlu0 %v3910_v62, %s3668_s20  ;;  %349 = vrot.lane.b32.xlu2 %v3883_v40, %s3668_s20 }
  0xe6   : > { %364 = vrot.lane.b32.xlu1 %v3883_v40, %s3664_s4 }
  0xec   : > { %362 = vrot.lane.b32.xlu0 %v3897_v50, %s3664_s4  ;;  %360 = vrot.lane.b32.xlu2 %v3899_v51, %s3664_s4 }
  0xee   : > { %375 = vrot.lane.b32.xlu1 %v3899_v51, %s3669_s22 }
  0xf4   : > { %368 = vrot.lane.b32.xlu0 %v3908_v48, %s3664_s4  ;;  %366 = vrot.lane.b32.xlu2 %v3910_v62, %s3664_s4 }
  0xf6   : > { %381 = vrot.lane.b32.xlu1 %v3910_v62, %s3669_s22 }
  0xfc   : > { %379 = vrot.lane.b32.xlu0 %v3883_v40, %s3669_s22  ;;  %377 = vrot.lane.b32.xlu2 %v3897_v50, %s3669_s22 }
  0xfe   : > { %392 = vrot.lane.b32.xlu1 %v3897_v50, %s3665_s6 }
 0x104   : > { %390 = vrot.lane.b32.xlu0 %v3899_v51, %s3665_s6  ;;  %383 = vrot.lane.b32.xlu2 %v3908_v48, %s3669_s22 }
 0x106   : > { %398 = vrot.lane.b32.xlu1 %v3908_v48, %s3665_s6 }
 0x10c   : > { %396 = vrot.lane.b32.xlu0 %v3910_v62, %s3665_s6  ;;  %394 = vrot.lane.b32.xlu2 %v3883_v40, %s3665_s6 }
 0x10e   : > { %409 = vrot.lane.b32.xlu1 %v3883_v40, %s3670_s23 }
 0x114   : > { %407 = vrot.lane.b32.xlu0 %v3897_v50, %s3670_s23  ;;  %405 = vrot.lane.b32.xlu2 %v3899_v51, %s3670_s23 }
 0x116   : > { %420 = vrot.lane.b32.xlu1 %v3899_v51, %s3666_s10 }
 0x11c   : > { %413 = vrot.lane.b32.xlu0 %v3908_v48, %s3670_s23  ;;  %411 = vrot.lane.b32.xlu2 %v3910_v62, %s3670_s23 }
 0x11e   : > { %426 = vrot.lane.b32.xlu1 %v3910_v62, %s3666_s10  ;;  %v3978_v63 = vpop.permute.xlu2 %315 }
 0x124   : > { %424 = vrot.lane.b32.xlu0 %v3883_v40, %s3666_s10  ;;  %422 = vrot.lane.b32.xlu2 %v3897_v50, %s3666_s10 }
 0x126   : > { %529 = vrot.lane.b32.xlu1 %v3986_v11, %s3667_s19  ;;  %v3990_v12 = vpop.permute.xlu2 %321 }
 0x127   : > { %v328_v2 = vadd.f32 %v3990_v12, %v3910_v62 }
 0x12c   : > { %428 = vrot.lane.b32.xlu2 %v3908_v48, %s3666_s10  ;;  %527 = vrot.lane.b32.xlu0 %v3994_v4, %s3667_s19 }
 0x12e   : > { %535 = vrot.lane.b32.xlu1 %v4002_v13, %s3667_s19  ;;  %v4006_v19 = vpop.permute.xlu2 %332 }
 0x130   : > { %v4008_v41 = vpop.permute.xlu1 %319 }
 0x131   : > { %v327_v47 = vadd.f32 %v4008_v41, %v3883_v40 }
 0x134   : > { %531 = vrot.lane.b32.xlu2 %v4012_v15, %s3667_s19  ;;  %533 = vrot.lane.b32.xlu0 %v4016_v0, %s3667_s19 }
 0x136   : > { %v4022_v16 = vpop.permute.xlu0 %317  ;;  %546 = vrot.lane.b32.xlu1 %v4012_v15, %s3663_s27  ;;  %v339_v22 = vpop.permute.xlu2 %338 }
 0x138   : > { %v4026_v27 = vpop.permute.xlu1 %330 }
 0x13c   : > { %542 = vrot.lane.b32.xlu2 %v3994_v4, %s3663_s27  ;;  %544 = vrot.lane.b32.xlu0 %v3986_v11, %s3663_s27 }
 0x13e   : > { %v324_v29 = vpop.permute.xlu0 %323  ;;  %v4032_v52 = vpop.permute.xlu2 %349  ;;  %557 = vrot.lane.b32.xlu1 %v3994_v4, %s3668_s20 }
 0x13f   : > { %v329_v34 = vadd.f32 %v324_v29, %v3908_v48  ;;  %v6464_v48 = vlaneseq }
 0x140   : > { %v337_v10 = vpop.permute.xlu1 %336 }
 0x141   : > { %v343_v5 = vadd.f32 %v337_v10, %v328_v2  ;;  %v344_v35 = vadd.f32 %v339_v22, %v329_v34  ;;  %v4156_v34 = vld [vmem:[#allocation2 + $0x10] sm:$0xff] }
 0x142   : > { %6541 = vst [vmem:[#allocation29_spill] sm:$0xff] %v4156_v34 }
 0x144   : > { %548 = vrot.lane.b32.xlu2 %v4016_v0, %s3663_s27  ;;  %550 = vrot.lane.b32.xlu0 %v4002_v13, %s3663_s27 }
 0x146   : > { %v335_v61 = vpop.permute.xlu0 %334  ;;  %v4040_v30 = vpop.permute.xlu2 %360  ;;  %563 = vrot.lane.b32.xlu1 %v4016_v0, %s3668_s20 }
 0x147   : > { %v342_v14 = vadd.f32 %v335_v61, %v327_v47  ;;  %v4131_v61 = vshrl.u32 %v6464_v48, 7 }
 0x148   : > { %v4044_v33 = vpop.permute.xlu1 %347 }
 0x149   : > { %v357_v7 = vadd.f32 %v4032_v52, %v342_v14  ;;  %vm6509_vm0 = vcmp.lt.s32.totalorder %v4131_v61, 7  ;;  %vm6510_vm1 = vcmp.lt.s32.totalorder %v4131_v61, 1  ;;  %vm6515_vm2 = vcmp.lt.s32.totalorder %v4131_v61, 6 }
 0x14a   : > { %vm6511_vm3 = vcmp.lt.s32.totalorder %v4131_v61, 2  ;;  %vm6512_vm4 = vcmp.lt.s32.totalorder %v4131_v61, 3  ;;  %vm6514_vm5 = vcmp.lt.s32.totalorder %v4131_v61, 5  ;;  %vm6513_vm6 = vcmp.lt.s32.totalorder %v4131_v61, 4 }
 0x14c   : > { %559 = vrot.lane.b32.xlu2 %v3986_v11, %s3668_s20  ;;  %561 = vrot.lane.b32.xlu0 %v4012_v15, %s3668_s20 }
 0x14e   : > { %v4050_v36 = vpop.permute.xlu0 %345  ;;  %v367_v43 = vpop.permute.xlu2 %366  ;;  %574 = vrot.lane.b32.xlu1 %v3986_v11, %s3664_s4 }
 0x150   : > { %v354_v37 = vpop.permute.xlu1 %353 }
 0x151   : > { %v359_v49 = vadd.f32 %v354_v37, %v344_v35 }
 0x154   : > { %565 = vrot.lane.b32.xlu2 %v4002_v13, %s3668_s20  ;;  %572 = vrot.lane.b32.xlu0 %v3994_v4, %s3664_s4 }
 0x156   : > { %v352_v38 = vpop.permute.xlu0 %351  ;;  %v4058_v8 = vpop.permute.xlu2 %377  ;;  %580 = vrot.lane.b32.xlu1 %v4002_v13, %s3664_s4 }
 0x157   : > { %v358_v3 = vadd.f32 %v352_v38, %v343_v5 }
 0x158   : > { %v365_v39 = vpop.permute.xlu1 %364 }
 0x159   : > { %v373_v32 = vadd.f32 %v367_v43, %v358_v3  ;;  %v372_v9 = vadd.f32 %v365_v39, %v357_v7 }
 0x15c   : > { %576 = vrot.lane.b32.xlu2 %v4012_v15, %s3664_s4  ;;  %578 = vrot.lane.b32.xlu0 %v4016_v0, %s3664_s4 }
 0x15e   : > { %v4066_v28 = vpop.permute.xlu0 %362  ;;  %v384_v42 = vpop.permute.xlu2 %383  ;;  %591 = vrot.lane.b32.xlu1 %v4012_v15, %s3669_s22 }
 0x160   : > { %v4070_v44 = vpop.permute.xlu1 %375 }
 0x164   : > { %587 = vrot.lane.b32.xlu2 %v3994_v4, %s3669_s22  ;;  %589 = vrot.lane.b32.xlu0 %v3986_v11, %s3669_s22 }
 0x166   : > { %v369_v6 = vpop.permute.xlu0 %368  ;;  %v395_v17 = vpop.permute.xlu2 %394  ;;  %602 = vrot.lane.b32.xlu1 %v3994_v4, %s3665_s6 }
 0x167   : > { %v374_v54 = vadd.f32 %v369_v6, %v359_v49 }
 0x168   : > { %v382_v20 = vpop.permute.xlu1 %381 }
 0x169   : > { %v388_v56 = vadd.f32 %v382_v20, %v373_v32  ;;  %v389_v57 = vadd.f32 %v384_v42, %v374_v54  ;;  %v4136_v42 = vld [vmem:[#allocation2 + $0x18] sm:$0xff] }
 0x16c   : > { %593 = vrot.lane.b32.xlu2 %v4016_v0, %s3669_s22  ;;  %595 = vrot.lane.b32.xlu0 %v4002_v13, %s3669_s22 }
 0x16e   : > { %v380_v26 = vpop.permute.xlu0 %379  ;;  %v4082_v23 = vpop.permute.xlu2 %405  ;;  %608 = vrot.lane.b32.xlu1 %v4016_v0, %s3665_s6 }
 0x16f   : > { %6534 = vst [vmem:[#allocation22_spill] sm:$0xff] %v4082_v23  ;;  %v387_v22 = vadd.f32 %v380_v26, %v372_v9 }
 0x170   : > { %v4086_v21 = vpop.permute.xlu1 %392 }
 0x171   : > { %v402_v38 = vadd.f32 %v395_v17, %v387_v22 }
 0x174   : > { %604 = vrot.lane.b32.xlu2 %v3986_v11, %s3665_s6  ;;  %606 = vrot.lane.b32.xlu0 %v4012_v15, %s3665_s6 }
 0x176   : > { %v4092_v45 = vpop.permute.xlu0 %390  ;;  %v412_v31 = vpop.permute.xlu2 %411  ;;  %619 = vrot.lane.b32.xlu1 %v3986_v11, %s3670_s23 }
 0x177   : > { %6535 = vst [vmem:[#allocation23_spill] sm:$0xff] %v4092_v45 }
 0x178   : > { %v399_v1 = vpop.permute.xlu1 %398 }
 0x179   : > { %v404_v60 = vadd.f32 %v399_v1, %v389_v57 }
 0x17c   : > { %610 = vrot.lane.b32.xlu2 %v4002_v13, %s3665_s6  ;;  %617 = vrot.lane.b32.xlu0 %v3994_v4, %s3670_s23 }
 0x17e   : > { %v397_v46 = vpop.permute.xlu0 %396  ;;  %v4100_v24 = vpop.permute.xlu2 %422  ;;  %625 = vrot.lane.b32.xlu1 %v4002_v13, %s3670_s23 }
 0x17f   : > { %6536 = vst [vmem:[#allocation24_spill] sm:$0xff] %v4100_v24  ;;  %v403_v58 = vadd.f32 %v397_v46, %v388_v56 }
 0x180   : > { %v410_v25 = vpop.permute.xlu1 %409 }
 0x181   : > { %v418_v52 = vadd.f32 %v412_v31, %v403_v58  ;;  %v417_v20 = vadd.f32 %v410_v25, %v402_v38 }
 0x184   : > { %621 = vrot.lane.b32.xlu2 %v4012_v15, %s3670_s23  ;;  %623 = vrot.lane.b32.xlu0 %v4016_v0, %s3670_s23 }
 0x186   : > { %v4113_v18 = vpop.permute.xlu0 %407  ;;  %v429_v53 = vpop.permute.xlu2 %428  ;;  %636 = vrot.lane.b32.xlu1 %v4012_v15, %s3666_s10 }
 0x188   : > { %v4117_v55 = vpop.permute.xlu1 %420 }
 0x189   : > { %6537 = vst [vmem:[#allocation25_spill] sm:$0xff] %v4117_v55 }
 0x18c   : > { %632 = vrot.lane.b32.xlu2 %v3994_v4, %s3666_s10  ;;  %634 = vrot.lane.b32.xlu0 %v3986_v11, %s3666_s10 }
 0x18e   : > { %v414_v12 = vpop.permute.xlu0 %413  ;;  %v4126_v41 = vpop.permute.xlu2 %531  ;;  %785 = vrot.lane.b32.xlu1 %v4120_v59, %s3667_s19 }
 0x18f   : > { %v419_v29 = vadd.f32 %v414_v12, %v404_v60  ;;  %v539_v55 = vadd.f32 %v4126_v41, %v4012_v15 }
 0x190   : > { %v427_v10 = vpop.permute.xlu1 %426 }
 0x191   : > { %v434_v43 = vadd.f32 %v429_v53, %v419_v29  ;;  %v4133_v37 = vadd.f32 %v427_v10, %v418_v52  ;;  %v4165_v53 = vld [vmem:[#allocation2 + $0x8] sm:$0xff] }
 0x192   : > { %6542 = vst [vmem:[#allocation30_spill] sm:$0xff] %v4165_v53 }
 0x193   : > { %6539 = vst [vmem:[#allocation27_spill] sm:$0xff] %v4133_v37  ;;  %v438_v39 = vrot.slane %v434_v43, 1  ;;  %v6471_v6 = vrot.slane %v4133_v37, 1  ;;  %v462_v35 = vrot.slane %v434_v43, 2  ;;  %v451_v3 = vrot.slane %v4133_v37, 7 }
 0x194   : > { %638 = vrot.lane.b32.xlu2 %v4016_v0, %s3666_s10  ;;  %640 = vrot.lane.b32.xlu0 %v4002_v13, %s3666_s10  ;;  %v6469_v47 = vrot.slane %v4133_v37, 2  ;;  %v473_v49 = vrot.slane %v4133_v37, 6  ;;  %v495_v7 = vrot.slane %v4133_v37, 5  ;;  %v484_v57 = vrot.slane %v434_v43, 3 }
 0x195   : > { %v442_v26 = vsel %vm6509_vm0, %v6471_v6, %v438_v39  ;;  %v6467_v58 = vrot.slane %v4133_v37, 3  ;;  %v506_v38 = vrot.slane %v434_v43, 4 }
 0x196   : > { %v425_v17 = vpop.permute.xlu0 %424  ;;  %v4147_v31 = vpop.permute.xlu2 %542  ;;  %791 = vrot.lane.b32.xlu1 %v4136_v42, %s3667_s19  ;;  %v447_v1 = vadd.f32 %v442_v26, %v4133_v37  ;;  %v464_v12 = vsel %vm6515_vm2, %v6469_v47, %v462_v35  ;;  %v4206_v26 = vld [vmem:[#allocation2 + $0x20] sm:$0xff] }
 0x197   : > { %v4152_v46 = vadd.f32 %v425_v17, %v417_v20  ;;  %v486_v39 = vsel %vm6514_vm5, %v6467_v58, %v484_v57  ;;  %v505_v20 = vrot.slane %v4133_v37, 4 }
 0x198   : > { %v4154_v2 = vpop.permute.xlu1 %529 }
 0x199   : > { %6540 = vst [vmem:[#allocation28_spill] sm:$0xff] %v4152_v46  ;;  %v6470_v25 = vrot.slane %v4152_v46, 7  ;;  %v6468_v5 = vrot.slane %v4152_v46, 6  ;;  %v6466_v14 = vrot.slane %v4152_v46, 5 }
 0x19b   : > { %v453_v54 = vsel %vm6510_vm1, %v6470_v25, %v451_v3  ;;  %v475_v56 = vsel %vm6511_vm3, %v6468_v5, %v473_v49  ;;  %v497_v29 = vsel %vm6512_vm4, %v6466_v14, %v495_v7  ;;  %v508_v49 = vsel %vm6513_vm6, %v505_v20, %v506_v38 }
 0x19c   : > { %789 = vrot.lane.b32.xlu0 %v4156_v34, %s3667_s19  ;;  %787 = vrot.lane.b32.xlu2 %v4165_v53, %s3667_s19  ;;  %v458_v32 = vadd.f32 %v453_v54, %v447_v1  ;;  %v6465_v1 = vrot.slane %v4152_v46, 4 }
 0x19e   : > { %v4184_v9 = vpop.permute.xlu2 %548  ;;  %v4186_v60 = vpop.permute.xlu0 %527  ;;  %802 = vrot.lane.b32.xlu1 %v4165_v53, %s3663_s27  ;;  %v469_v22 = vadd.f32 %v464_v12, %v458_v32 }
 0x1a0   : > { %v4199_v52 = vpop.permute.xlu1 %535  ;;  %v480_v10 = vadd.f32 %v475_v56, %v469_v22  ;;  %v4224_v56 = vsel %vm6513_vm6, %v6465_v1, %v505_v20 }
 0x1a1   : > { %6543 = vst [vmem:[#allocation31_spill] sm:$0xff] %v4224_v56 }
 0x1a2   : > { %v491_v17 = vadd.f32 %v486_v39, %v480_v10 }
 0x1a4   : > { %800 = vrot.lane.b32.xlu0 %v4120_v59, %s3663_s27  ;;  %793 = vrot.lane.b32.xlu2 %v4206_v26, %s3667_s19  ;;  %v502_v43 = vadd.f32 %v497_v29, %v491_v17 }
 0x1a6   : > { %v4214_v35 = vpop.permute.xlu2 %559  ;;  %v534_v3 = vpop.permute.xlu0 %533  ;;  %808 = vrot.lane.b32.xlu1 %v4206_v26, %s3663_s27  ;;  %v513_v54 = vadd.f32 %v508_v49, %v502_v43 }
 0x1a8   : > { %v547_v32 = vpop.permute.xlu1 %546  ;;  %v4227_v7 = vadd.f32 %v513_v54, %v4224_v56 }
 0x1a9   : > { %v554_v23 = vadd.f32 %v547_v32, %v539_v55 }
 0x1ac   : > { %806 = vrot.lane.b32.xlu0 %v4136_v42, %s3663_s27  ;;  %804 = vrot.lane.b32.xlu2 %v4156_v34, %s3663_s27 }
 0x1ae   : > { %v4233_v57 = vpop.permute.xlu2 %565  ;;  %v4235_v12 = vpop.permute.xlu0 %544  ;;  %819 = vrot.lane.b32.xlu1 %v4156_v34, %s3668_s20 }
 0x1b0   : > { %v4239_v22 = vpop.permute.xlu1 %557 }
 0x1b4   : > { %817 = vrot.lane.b32.xlu0 %v4165_v53, %s3668_s20  ;;  %815 = vrot.lane.b32.xlu2 %v4120_v59, %s3668_s20 }
 0x1b6   : > { %v577_v29 = vpop.permute.xlu2 %576  ;;  %v4245_v10 = vpop.permute.xlu0 %550  ;;  %830 = vrot.lane.b32.xlu1 %v4120_v59, %s3664_s4 }
 0x1b8   : > { %v564_v38 = vpop.permute.xlu1 %563 }
 0x1bc   : > { %823 = vrot.lane.b32.xlu0 %v4206_v26, %s3668_s20  ;;  %821 = vrot.lane.b32.xlu2 %v4136_v42, %s3668_s20 }
 0x1be   : > { %v4253_v39 = vpop.permute.xlu2 %587  ;;  %v562_v20 = vpop.permute.xlu0 %561  ;;  %836 = vrot.lane.b32.xlu1 %v4136_v42, %s3664_s4 }
 0x1bf   : > { %6544 = vst [vmem:[#allocation32_spill] sm:$0xff] %v4253_v39  ;;  %v569_v24 = vadd.f32 %v562_v20, %v554_v23  ;;  %v541_v23 = vadd.f32 %v4199_v52, %v4002_v13 }
 0x1c0   : > { %v4257_v17 = vpop.permute.xlu1 %574 }
 0x1c4   : > { %834 = vrot.lane.b32.xlu0 %v4156_v34, %s3664_s4  ;;  %832 = vrot.lane.b32.xlu2 %v4165_v53, %s3664_s4 }
 0x1c6   : > { %v594_v43 = vpop.permute.xlu2 %593  ;;  %v4263_v49 = vpop.permute.xlu0 %572  ;;  %847 = vrot.lane.b32.xlu1 %v4165_v53, %s3669_s22 }
 0x1c8   : > { %v4267_v54 = vpop.permute.xlu1 %580 }
 0x1cc   : > { %845 = vrot.lane.b32.xlu0 %v4120_v59, %s3669_s22  ;;  %838 = vrot.lane.b32.xlu2 %v4206_v26, %s3664_s4 }
 0x1ce   : > { %v4273_v48 = vpop.permute.xlu2 %604  ;;  %v579_v1 = vpop.permute.xlu0 %578  ;;  %853 = vrot.lane.b32.xlu1 %v4206_v26, %s3669_s22 }
 0x1cf   : > { %6545 = vst [vmem:[#allocation33_spill] sm:$0xff] %v4273_v48 }
 0x1d0   : > { %v592_v14 = vpop.permute.xlu1 %591 }
 0x1d4   : > { %851 = vrot.lane.b32.xlu0 %v4136_v42, %s3669_s22  ;;  %849 = vrot.lane.b32.xlu2 %v4156_v34, %s3669_s22 }
 0x1d6   : > { %v4281_v58 = vpop.permute.xlu2 %610  ;;  %v4283_v5 = vpop.permute.xlu0 %589  ;;  %864 = vrot.lane.b32.xlu1 %v4156_v34, %s3665_s6 }
 0x1d8   : > { %v4287_v47 = vpop.permute.xlu1 %602 }
 0x1d9   : > { %6546 = vst [vmem:[#allocation34_spill] sm:$0xff] %v4287_v47  ;;  %v540_v47 = vadd.f32 %v534_v3, %v4016_v0  ;;  %v584_v0 = vadd.f32 %v577_v29, %v569_v24  ;;  %v556_v24 = vadd.f32 %v4245_v10, %v541_v23 }
 0x1db   : > { %v555_v39 = vadd.f32 %v4184_v9, %v540_v47  ;;  %v599_v55 = vadd.f32 %v592_v14, %v584_v0 }
 0x1dc   : > { %862 = vrot.lane.b32.xlu0 %v4165_v53, %s3665_s6  ;;  %860 = vrot.lane.b32.xlu2 %v4120_v59, %s3665_s6 }
 0x1de   : > { %v622_v25 = vpop.permute.xlu2 %621  ;;  %v596_v6 = vpop.permute.xlu0 %595  ;;  %875 = vrot.lane.b32.xlu1 %v4120_v59, %s3670_s23 }
 0x1e0   : > { %v609_v40 = vpop.permute.xlu1 %608 }
 0x1e4   : > { %868 = vrot.lane.b32.xlu0 %v4206_v26, %s3665_s6  ;;  %866 = vrot.lane.b32.xlu2 %v4136_v42, %s3665_s6 }
 0x1e6   : > { %v4299_v56 = vpop.permute.xlu2 %632  ;;  %v607_v37 = vpop.permute.xlu0 %606  ;;  %881 = vrot.lane.b32.xlu1 %v4136_v42, %s3670_s23 }
 0x1e7   : > { %6547 = vst [vmem:[#allocation35_spill] sm:$0xff] %v4299_v56  ;;  %v570_v56 = vadd.f32 %v564_v38, %v555_v39  ;;  %v614_v47 = vadd.f32 %v607_v37, %v599_v55  ;;  %v4334_v39 = vmul.f32 %v4156_v34, %v4156_v34 }
 0x1e8   : > { %v4306_v46 = vpop.permute.xlu1 %619 }
 0x1e9   : > { %v585_v15 = vadd.f32 %v579_v1, %v570_v56  ;;  %v629_v37 = vadd.f32 %v622_v25, %v614_v47  ;;  %v4366_v47 = vmul.f32 %v4165_v53, %v4165_v53 }
 0x1eb   : > { %v600_v3 = vadd.f32 %v594_v43, %v585_v15 }
 0x1ec   : > { %879 = vrot.lane.b32.xlu0 %v4156_v34, %s3670_s23  ;;  %877 = vrot.lane.b32.xlu2 %v4165_v53, %s3670_s23 }
 0x1ed   : > { %v615_v9 = vadd.f32 %v609_v40, %v600_v3  ;;  %v571_v40 = vadd.f32 %v4233_v57, %v556_v24 }
 0x1ee   : > { %v639_v45 = vpop.permute.xlu2 %638  ;;  %v4313_v48 = vpop.permute.xlu0 %617  ;;  %892 = vrot.lane.b32.xlu1 %v4165_v53, %s3666_s10 }
 0x1ef   : > { %v586_v10 = vadd.f32 %v4267_v54, %v571_v40  ;;  %v4389_v40 = vmul.f32 %v4206_v26, %v4206_v26 }
 0x1f0   : > { %v626_v41 = vpop.permute.xlu1 %625 }
 0x1f1   : > { %v601_v54 = vadd.f32 %v596_v6, %v586_v10 }
 0x1f4   : > { %890 = vrot.lane.b32.xlu0 %v4120_v59, %s3666_s10  ;;  %883 = vrot.lane.b32.xlu2 %v4206_v26, %s3670_s23 }
 0x1f6   : > { %v624_v32 = vpop.permute.xlu0 %623  ;;  %898 = vrot.lane.b32.xlu1 %v4206_v26, %s3666_s10  ;;  %v4325_v1 = vpop.permute.xlu2 %787 }
 0x1f7   : > { %6548 = vst [vmem:[#allocation36_spill] sm:$0xff] %v4325_v1  ;;  %v630_v14 = vadd.f32 %v624_v32, %v615_v9  ;;  %v4374_v9 = vmul.f32 %v4120_v59, %v4120_v59  ;;  %v616_v32 = vadd.f32 %v4281_v58, %v601_v54 }
 0x1f8   : > { %v637_v56 = vpop.permute.xlu1 %636 }
 0x1f9   : > { %v4328_v29 = vadd.f32 %v639_v45, %v630_v14  ;;  %v4330_v38 = vadd.f32 %v637_v56, %v629_v37  ;;  %6551 = vst [vmem:[#allocation39_spill] sm:$0xff] %v4374_v9  ;;  %v631_v6 = vadd.f32 %v626_v41, %v616_v32  ;;  %v4394_v41 = vmul.f32 %v4136_v42, %v4136_v42 }
 0x1fb   : > { %6549 = vst [vmem:[#allocation37_spill] sm:$0xff] %v4328_v29  ;;  %v6480_v13 = vrot.slane %v4330_v38, 7  ;;  %v660_v52 = vrot.slane %v4328_v29, 7  ;;  %v6479_v25 = vrot.slane %v4330_v38, 6  ;;  %v680_v45 = vrot.slane %v4328_v29, 6 }
 0x1fc   : > { %896 = vrot.lane.b32.xlu0 %v4136_v42, %s3666_s10  ;;  %894 = vrot.lane.b32.xlu2 %v4156_v34, %s3666_s10  ;;  %v6478_v15 = vrot.slane %v4330_v38, 5  ;;  %v700_v55 = vrot.slane %v4328_v29, 5  ;;  %v6481_v58 = vrot.slane %v4328_v29, 1 }
 0x1fd   : > { %v661_v57 = vsel %vm6510_vm1, %v6480_v13, %v660_v52  ;;  %v681_v43 = vsel %vm6511_vm3, %v6479_v25, %v680_v45  ;;  %v6482_v13 = vrot.slane %v4328_v29, 3 }
 0x1fe   : > { %v4350_v20 = vpop.permute.xlu0 %634  ;;  %992 = vrot.lane.b32.xlu1 %v4334_v39, %s3667_s19  ;;  %v4359_v0 = vpop.permute.xlu2 %793  ;;  %v701_v23 = vsel %vm6512_vm4, %v6478_v15, %v700_v55  ;;  %v6484_v55 = vrot.slane %v4328_v29, 2 }
 0x200   : > { %v4362_v3 = vpop.permute.xlu1 %785 }
 0x201   : > { %6550 = vst [vmem:[#allocation38_spill] sm:$0xff] %v4362_v3 }
 0x204   : > { %990 = vrot.lane.b32.xlu0 %v4366_v47, %s3667_s19  ;;  %988 = vrot.lane.b32.xlu2 %v4374_v9, %s3667_s19 }
 0x206   : > { %v641_v24 = vpop.permute.xlu0 %640  ;;  %1003 = vrot.lane.b32.xlu1 %v4374_v9, %s3663_s27  ;;  %v4383_v14 = vpop.permute.xlu2 %804 }
 0x207   : > { %6552 = vst [vmem:[#allocation40_spill] sm:$0xff] %v4383_v14  ;;  %v646_v37 = vadd.f32 %v641_v24, %v631_v6 }
 0x208   : > { %v4385_v56 = vpop.permute.xlu1 %791 }
 0x209   : > { %v650_v52 = vrot.slane %v646_v37, 1  ;;  %v670_v10 = vrot.slane %v646_v37, 2 }
 0x20b   : > { %v651_v45 = vsel %vm6509_vm0, %v6481_v58, %v650_v52  ;;  %v671_v52 = vsel %vm6515_vm2, %v6484_v55, %v670_v10  ;;  %v6483_v10 = vrot.slane %v4330_v38, 4 }
 0x20c   : > { %v656_v54 = vadd.f32 %v651_v45, %v4328_v29  ;;  %996 = vrot.lane.b32.xlu0 %v4389_v40, %s3667_s19  ;;  %994 = vrot.lane.b32.xlu2 %v4394_v41, %s3667_s19  ;;  %v690_v45 = vrot.slane %v646_v37, 3 }
 0x20e   : > { %v666_v32 = vadd.f32 %v661_v57, %v656_v54  ;;  %v4406_v6 = vpop.permute.xlu0 %789  ;;  %1009 = vrot.lane.b32.xlu1 %v4394_v41, %s3663_s27  ;;  %v4410_v24 = vpop.permute.xlu2 %815  ;;  %v691_v57 = vsel %vm6514_vm5, %v6482_v13, %v690_v45  ;;  %v710_v54 = vrot.slane %v646_v37, 4  ;;  %v521_v45 = vmul.f32 0.012345679, %v4227_v7 }
 0x20f   : > { %6553 = vst [vmem:[#allocation41_spill] sm:$0xff] %v4406_v6 }
 0x210   : > { %6554 = vst [vmem:[#allocation42_spill] sm:$0xff] %v4410_v24  ;;  %v676_v15 = vadd.f32 %v671_v52, %v666_v32  ;;  %v4416_v25 = vpop.permute.xlu1 %802  ;;  %v709_v24 = vrot.slane %v4328_v29, 4  ;;  %v736_v1 = vsub.f32 %v3910_v62, %v521_v45 }
 0x211   : > { %6555 = vst [vmem:[#allocation43_spill] sm:$0xff] %v4416_v25 }
 0x212   : > { %v686_v58 = vadd.f32 %v681_v43, %v676_v15  ;;  %v711_v15 = vsel %vm6513_vm6, %v709_v24, %v710_v54 }
 0x214   : > { %v696_v3 = vadd.f32 %v691_v57, %v686_v58  ;;  %1007 = vrot.lane.b32.xlu0 %v4334_v39, %s3663_s27  ;;  %1005 = vrot.lane.b32.xlu2 %v4366_v47, %s3663_s27  ;;  %v727_v57 = vmul.f32 %v521_v45, %v521_v45 }
 0x216   : > { %v706_v32 = vadd.f32 %v701_v23, %v696_v3  ;;  %v4429_v52 = vpop.permute.xlu0 %800  ;;  %1020 = vrot.lane.b32.xlu1 %v4366_v47, %s3668_s20  ;;  %v4433_v43 = vpop.permute.xlu2 %821  ;;  %v4444_v3 = vsel %vm6513_vm6, %v6483_v10, %v709_v24 }
 0x217   : > { %6556 = vst [vmem:[#allocation44_spill] sm:$0xff] %v4429_v52 }
 0x218   : > { %v716_v37 = vadd.f32 %v711_v15, %v706_v32  ;;  %v4437_v58 = vpop.permute.xlu1 %808  ;;  %6557 = vst [vmem:[#allocation45_spill] sm:$0xff] %v4444_v3 }
 0x21a   : > { %v721_v23 = vadd.f32 %v716_v37, %v4444_v3 }
 0x21c   : > { %1018 = vrot.lane.b32.xlu0 %v4374_v9, %s3668_s20  ;;  %v724_v13 = vmul.f32 0.012345679, %v721_v23  ;;  %1011 = vrot.lane.b32.xlu2 %v4389_v40, %s3663_s27 }
 0x21e   : > { %v4451_v54 = vpop.permute.xlu0 %806  ;;  %1026 = vrot.lane.b32.xlu1 %v4389_v40, %s3668_s20  ;;  %v4455_v7 = vpop.permute.xlu2 %832  ;;  %v730_v32 = vsub.f32 %v724_v13, %v727_v57 }
 0x21f   : > { %6558 = vst [vmem:[#allocation46_spill] sm:$0xff] %v4455_v7 }
 0x220   : > { %v4457_v24 = vpop.permute.xlu1 %819  ;;  %v733_v15 = vmul.f32 1.0125, %v730_v32 }
 0x221   : > { %6559 = vst [vmem:[#allocation47_spill] sm:$0xff] %v4457_v24 }
 0x222   : > { %v739_v37 = vadd.f32 1e-06, %v733_v15 }
 0x224   : > { %1024 = vrot.lane.b32.xlu0 %v4394_v41, %s3668_s20  ;;  %3200 = vrcp.f32 %v739_v37  ;;  %1022 = vrot.lane.b32.xlu2 %v4334_v39, %s3668_s20  ;;  %v781_v7 = vand.u32 2147483648, %v739_v37  ;;  %v779_v52 = vand.u32 2147483647, %v739_v37  ;;  %vm775_vm8 = vweird.f32 %v739_v37 }
 0x226   : > { %v4463_v23 = vpop.permute.xlu0 %817  ;;  %1037 = vrot.lane.b32.xlu1 %v4334_v39, %s3664_s4  ;;  %v4467_v10 = vpop.permute.xlu2 %838  ;;  %v782_v59 = vor.u32 1.1754944e-38, %v781_v7  ;;  %vm780_vm10 = vcmp.eq.f32.partialorder %v779_v52, 8.507059e+37 }
 0x227   : > { %6560 = vst [vmem:[#allocation48_spill] sm:$0xff] %v4463_v23 }
 0x228   : > { %v4469_v55 = vpop.permute.xlu1 %830 }
 0x229   : > { %6561 = vst [vmem:[#allocation49_spill] sm:$0xff] %v4469_v55 }
 0x22a   : > { %v3201_v13 = vpop.eup %3200 }
 0x22b   : > { %v771_v57 = vmul.f32 %v3201_v13, %v739_v37  ;;  %vm776_vm7 = vweird.f32 %v3201_v13 }
 0x22c   : > { %1035 = vrot.lane.b32.xlu0 %v4366_v47, %s3664_s4  ;;  %1033 = vrot.lane.b32.xlu2 %v4374_v9, %s3664_s4  ;;  %vm777_vm9 = vmor %vm775_vm8, %vm776_vm7 }
 0x22d   : > { %v772_v32 = vsub.f32 1.0, %v771_v57 }
 0x22e   : > { %v824_v15 = vpop.permute.xlu0 %823  ;;  %1048 = vrot.lane.b32.xlu1 %v4374_v9, %s3669_s22  ;;  %v4477_v3 = vpop.permute.xlu2 %849 }
 0x22f   : > { %6562 = vst [vmem:[#allocation50_spill] sm:$0xff] %v4477_v3  ;;  %v773_v23 = vmul.f32 %v3201_v13, %v772_v32 }
 0x230   : > { %v837_v55 = vpop.permute.xlu1 %836 }
 0x231   : > { %v774_v25 = vadd.f32 %v3201_v13, %v773_v23 }
 0x233   : > { %v778_v53 = vsel %vm777_vm9, %v3201_v13, %v774_v25 }
 0x234   : > { %1041 = vrot.lane.b32.xlu0 %v4389_v40, %s3664_s4  ;;  %v783_v57 = vsel %vm780_vm10, %v782_v59, %v778_v53  ;;  %1039 = vrot.lane.b32.xlu2 %v4394_v41, %s3664_s4 }
 0x235   : > { %v4484_v29 = vmul.f32 %v783_v57, %v736_v1 }
 0x236   : > { %v4486_v32 = vpop.permute.xlu0 %834  ;;  %1054 = vrot.lane.b32.xlu1 %v4394_v41, %s3669_s22  ;;  %v4490_v37 = vpop.permute.xlu2 %860 }
 0x237   : > { %6563 = vst [vmem:[#allocation51_spill] sm:$0xff] %v4484_v29 }
 0x238   : > { %6564 = vst [vmem:[#allocation52_spill] sm:$0xff] %v4486_v32  ;;  %v4492_v7 = vpop.permute.xlu1 %847 }
 0x239   : > { %6565 = vst [vmem:[#allocation53_spill] sm:$0xff] %v4490_v37 }
 0x23a   : > { %6566 = vst [vmem:[#allocation54_spill] sm:$0xff] %v4492_v7 }
 0x23c   : > { %1052 = vrot.lane.b32.xlu0 %v4334_v39, %s3669_s22  ;;  %1050 = vrot.lane.b32.xlu2 %v4366_v47, %s3669_s22 }
 0x23e   : > { %v4498_v62 = vpop.permute.xlu0 %845  ;;  %1065 = vrot.lane.b32.xlu1 %v4366_v47, %s3665_s6  ;;  %v867_v59 = vpop.permute.xlu2 %866 }
 0x23f   : > { %6567 = vst [vmem:[#allocation55_spill] sm:$0xff] %v4498_v62  ;;  %v798_v62 = vadd.f32 %v4385_v56, %v4136_v42 }
 0x240   : > { %v854_v53 = vpop.permute.xlu1 %853 }
 0x244   : > { %1063 = vrot.lane.b32.xlu0 %v4374_v9, %s3665_s6  ;;  %1056 = vrot.lane.b32.xlu2 %v4389_v40, %s3669_s22 }
 0x246   : > { %v852_v1 = vpop.permute.xlu0 %851  ;;  %1071 = vrot.lane.b32.xlu1 %v4389_v40, %s3665_s6  ;;  %v4508_v25 = vpop.permute.xlu2 %877 }
 0x247   : > { %6568 = vst [vmem:[#allocation56_spill] sm:$0xff] %v4508_v25  ;;  %v797_v25 = vadd.f32 %v4406_v6, %v4156_v34 }
 0x248   : > { %v4510_v52 = vpop.permute.xlu1 %864 }
 0x249   : > { %6569 = vst [vmem:[#allocation57_spill] sm:$0xff] %v4510_v52 }
 0x24c   : > { %1069 = vrot.lane.b32.xlu0 %v4394_v41, %s3665_s6  ;;  %1067 = vrot.lane.b32.xlu2 %v4334_v39, %s3665_s6 }
 0x24e   : > { %v4516_v45 = vpop.permute.xlu0 %862  ;;  %1082 = vrot.lane.b32.xlu1 %v4334_v39, %s3670_s23  ;;  %v884_v23 = vpop.permute.xlu2 %883 }
 0x24f   : > { %6570 = vst [vmem:[#allocation58_spill] sm:$0xff] %v4516_v45  ;;  %v799_v45 = vadd.f32 %v4359_v0, %v4206_v26  ;;  %v813_v26 = vadd.f32 %v4451_v54, %v798_v62 }
 0x250   : > { %v4520_v13 = vpop.permute.xlu1 %875 }
 0x251   : > { %6571 = vst [vmem:[#allocation59_spill] sm:$0xff] %v4520_v13  ;;  %v812_v13 = vadd.f32 %v4383_v14, %v797_v25  ;;  %v814_v7 = vadd.f32 %v4437_v58, %v799_v45  ;;  %v828_v56 = vadd.f32 %v4433_v43, %v813_v26 }
 0x253   : > { %v829_v0 = vadd.f32 %v824_v15, %v814_v7 }
 0x254   : > { %1080 = vrot.lane.b32.xlu0 %v4366_v47, %s3670_s23  ;;  %1078 = vrot.lane.b32.xlu2 %v4374_v9, %s3670_s23 }
 0x255   : > { %v844_v58 = vadd.f32 %v4467_v10, %v829_v0 }
 0x256   : > { %v869_v57 = vpop.permute.xlu0 %868  ;;  %1093 = vrot.lane.b32.xlu1 %v4374_v9, %s3666_s10  ;;  %v4528_v29 = vpop.permute.xlu2 %894  ;;  %v827_v9 = vadd.f32 %v4457_v24, %v812_v13  ;;  %v843_v13 = vadd.f32 %v837_v55, %v828_v56 }
 0x257   : > { %6572 = vst [vmem:[#allocation60_spill] sm:$0xff] %v4528_v29  ;;  %v859_v24 = vadd.f32 %v854_v53, %v844_v58 }
 0x258   : > { %v882_v37 = vpop.permute.xlu1 %881  ;;  %v842_v14 = vadd.f32 %v4486_v32, %v827_v9  ;;  %v858_v9 = vadd.f32 %v852_v1, %v843_v13 }
 0x259   : > { %v874_v7 = vadd.f32 %v869_v57, %v859_v24 }
 0x25a   : > { %v857_v45 = vadd.f32 %v4477_v3, %v842_v14  ;;  %v873_v14 = vadd.f32 %v867_v59, %v858_v9 }
 0x25b   : > { %v889_v26 = vadd.f32 %v884_v23, %v874_v7 }
 0x25c   : > { %1086 = vrot.lane.b32.xlu0 %v4389_v40, %s3670_s23  ;;  %1084 = vrot.lane.b32.xlu2 %v4394_v41, %s3670_s23  ;;  %v872_v54 = vadd.f32 %v4510_v52, %v857_v45  ;;  %v888_v55 = vadd.f32 %v882_v37, %v873_v14 }
 0x25e   : > { %v4543_v6 = vpop.permute.xlu0 %879  ;;  %1099 = vrot.lane.b32.xlu1 %v4394_v41, %s3666_s10  ;;  %v4548_v25 = vpop.permute.xlu2 %988 }
 0x25f   : > { %6573 = vst [vmem:[#allocation61_spill] sm:$0xff] %v4543_v6  ;;  %v887_v10 = vadd.f32 %v4543_v6, %v872_v54 }
 0x260   : > { %v4551_v42 = vpop.permute.xlu1 %892 }
 0x261   : > { %v4567_v0 = vadd.f32 %v4528_v29, %v887_v10 }
 0x263   : > { %v6496_v24 = vrot.slane %v4567_v0, 7  ;;  %v6498_v13 = vrot.slane %v4567_v0, 6  ;;  %v6499_v9 = vrot.slane %v4567_v0, 5 }
 0x264   : > { %1097 = vrot.lane.b32.xlu0 %v4334_v39, %s3666_s10  ;;  %1095 = vrot.lane.b32.xlu2 %v4366_v47, %s3666_s10 }
 0x266   : > { %v4561_v15 = vpop.permute.xlu0 %890  ;;  %v4563_v62 = vpop.permute.xlu2 %994 }
 0x268   : > { %v899_v43 = vpop.permute.xlu1 %898 }
 0x269   : > { %v904_v53 = vadd.f32 %v899_v43, %v889_v26 }
 0x26b   : > { %v908_v45 = vrot.slane %v904_v53, 1  ;;  %v928_v26 = vrot.slane %v904_v53, 2 }
 0x26c   : > { %1101 = vrot.lane.b32.xlu2 %v4389_v40, %s3666_s10 }
 0x26e   : > { %v897_v56 = vpop.permute.xlu0 %896  ;;  %v4573_v1 = vpop.permute.xlu2 %1005 }
 0x26f   : > { %v4571_v58 = vadd.f32 %v897_v56, %v888_v55 }
 0x270   : > { %v4576_v57 = vpop.permute.xlu1 %992 }
 0x271   : > { %v6495_v59 = vrot.slane %v4571_v58, 1  ;;  %v918_v23 = vrot.slane %v4571_v58, 7  ;;  %v938_v37 = vrot.slane %v4571_v58, 6  ;;  %v958_v54 = vrot.slane %v4571_v58, 5 }
 0x272   : > { %v6500_v43 = vrot.slane %v4571_v58, 2 }
 0x273   : > { %v909_v7 = vsel %vm6509_vm0, %v6495_v59, %v908_v45  ;;  %v919_v10 = vsel %vm6510_vm1, %v6496_v24, %v918_v23  ;;  %v939_v55 = vsel %vm6511_vm3, %v6498_v13, %v938_v37  ;;  %v959_v56 = vsel %vm6512_vm4, %v6499_v9, %v958_v54 }
 0x274   : > { %v914_v14 = vadd.f32 %v909_v7, %v4571_v58  ;;  %v326_v45 = vadd.f32 %v4022_v16, %v3897_v50  ;;  %v929_v7 = vsel %vm6515_vm2, %v6500_v43, %v928_v26  ;;  %v6503_v24 = vrot.slane %v4571_v58, 3 }
 0x275   : > { %v538_v54 = vadd.f32 %v4154_v2, %v3986_v11  ;;  %v948_v9 = vrot.slane %v904_v53, 3  ;;  %v967_v43 = vrot.slane %v4571_v58, 4  ;;  %v968_v11 = vrot.slane %v904_v53, 4 }
 0x276   : > { %v924_v59 = vadd.f32 %v919_v10, %v914_v14  ;;  %v4604_v23 = vpop.permute.xlu0 %990  ;;  %v4611_v6 = vpop.permute.xlu2 %1011  ;;  %v341_v16 = vadd.f32 %v4006_v19, %v326_v45  ;;  %v537_v45 = vadd.f32 %v4186_v60, %v3994_v4 }
 0x277   : > { %v553_v14 = vadd.f32 %v4235_v12, %v538_v54  ;;  %v949_v26 = vsel %vm6514_vm5, %v6503_v24, %v948_v9 }
 0x278   : > { %v934_v37 = vadd.f32 %v929_v7, %v924_v59  ;;  %v4613_v13 = vpop.permute.xlu1 %1003  ;;  %v325_v59 = vadd.f32 %v3978_v63, %v3899_v51  ;;  %v356_v7 = vadd.f32 %v4044_v33, %v341_v16  ;;  %v969_v51 = vsel %vm6513_vm6, %v967_v43, %v968_v11 }
 0x279   : > { %v568_v9 = vadd.f32 %v4214_v35, %v553_v14 }
 0x27a   : > { %v944_v10 = vadd.f32 %v939_v55, %v934_v37  ;;  %v340_v2 = vadd.f32 %v4026_v27, %v325_v59  ;;  %v371_v19 = vadd.f32 %v4066_v28, %v356_v7  ;;  %v6502_v37 = vrot.slane %v4567_v0, 4 }
 0x27b   : > { %v583_v28 = vadd.f32 %v4257_v17, %v568_v9 }
 0x27c   : > { %v954_v3 = vadd.f32 %v949_v26, %v944_v10  ;;  %v355_v33 = vadd.f32 %v4050_v36, %v340_v2  ;;  %v4647_v4 = vsel %vm6513_vm6, %v6502_v37, %v967_v43  ;;  %v386_v35 = vadd.f32 %v4058_v8, %v371_v19  ;;  %v6577_v26 = vld [vmem:[#allocation33_spill] sm:$0xff]  ;;  %v6582_v19 = vld [vmem:[#allocation28_spill] sm:$0xff] }
 0x27d   : > { %6575 = vst [vmem:[#allocation63_spill] sm:$0xff] %v4647_v4  ;;  %v598_v36 = vadd.f32 %v4283_v5, %v583_v28 }
 0x27e   : > { %v964_v55 = vadd.f32 %v959_v56, %v954_v3  ;;  %v4629_v12 = vpop.permute.xlu0 %996  ;;  %v4637_v63 = vpop.permute.xlu2 %1022  ;;  %v552_v3 = vadd.f32 %v4147_v31, %v537_v45  ;;  %v370_v56 = vadd.f32 %v4040_v30, %v355_v33  ;;  %v401_v54 = vadd.f32 %v4086_v21, %v386_v35  ;;  %v6578_v31 = vld [vmem:[#allocation23_spill] sm:$0xff]  ;;  %v6579_v21 = vld [vmem:[#allocation24_spill] sm:$0xff]  ;;  %v6583_v45 = vld [vmem:[#allocation34_spill] sm:$0xff] }
 0x27f   : > { %6574 = vst [vmem:[#allocation62_spill] sm:$0xff] %v4637_v63  ;;  %v613_v8 = vadd.f32 %v6577_v26, %v598_v36 }
 0x280   : > { %v974_v27 = vadd.f32 %v969_v51, %v964_v55  ;;  %v4640_v53 = vpop.permute.xlu1 %1009  ;;  %v567_v17 = vadd.f32 %v4239_v22, %v552_v3  ;;  %v385_v16 = vadd.f32 %v4070_v44, %v370_v56  ;;  %v416_v43 = vadd.f32 %v4113_v18, %v401_v54  ;;  %v6580_v44 = vld [vmem:[#allocation32_spill] sm:$0xff]  ;;  %v6581_v18 = vld [vmem:[#allocation22_spill] sm:$0xff]  ;;  %v6584_v51 = vld [vmem:[#allocation25_spill] sm:$0xff] }
 0x281   : > { %v628_v30 = vadd.f32 %v4306_v46, %v613_v8  ;;  %v436_v55 = vrot.slane %v6582_v19, 1  ;;  %v648_v56 = vrot.slane %v4330_v38, 1 }
 0x282   : > { %v4650_v60 = vadd.f32 %v974_v27, %v4647_v4  ;;  %v582_v14 = vadd.f32 %v4263_v49, %v567_v17  ;;  %v400_v5 = vadd.f32 %v6578_v31, %v385_v16  ;;  %v4671_v22 = vadd.f32 %v6579_v21, %v416_v43  ;;  %v6585_v16 = vld [vmem:[#allocation27_spill] sm:$0xff] }
 0x283   : > { %v4675_v2 = vadd.f32 %v4350_v20, %v628_v30  ;;  %v6586_v43 = vrot.slane %v6585_v16, 1 }
 0x284   : > { %6576 = vst [vmem:[#allocation64_spill] sm:$0xff] %v4650_v60  ;;  %v597_v11 = vadd.f32 %v6580_v44, %v582_v14  ;;  %v415_v49 = vadd.f32 %v6581_v18, %v400_v5  ;;  %v435_v46 = vrot.slane %v4671_v22, 1  ;;  %v449_v17 = vrot.slane %v4671_v22, 7  ;;  %v6587_v14 = vld [vmem:[#allocation35_spill] sm:$0xff] }
 0x285   : > { %v647_v35 = vrot.slane %v4675_v2, 1  ;;  %v658_v5 = vrot.slane %v4675_v2, 7  ;;  %v460_v18 = vrot.slane %v6582_v19, 2  ;;  %v471_v37 = vrot.slane %v4671_v22, 6 }
 0x286   : > { %v4659_v10 = vpop.permute.xlu0 %1007  ;;  %v4664_v59 = vpop.permute.xlu2 %1033  ;;  %v612_v9 = vadd.f32 %v6583_v45, %v597_v11  ;;  %v4681_v33 = vadd.f32 %v6584_v51, %v415_v49  ;;  %v444_v36 = vsel %vm6509_vm0, %v435_v46, %v436_v55  ;;  %v459_v46 = vrot.slane %v4671_v22, 2 }
 0x287   : > { %v653_v8 = vsel %vm6509_vm0, %v647_v35, %v648_v56  ;;  %v445_v31 = vadd.f32 %v444_v36, %v4671_v22  ;;  %v6591_v36 = vrot.slane %v6582_v19, 7 }
 0x288   : > { %v4667_v7 = vpop.permute.xlu1 %1020  ;;  %v627_v28 = vadd.f32 %v4313_v48, %v612_v9  ;;  %v448_v54 = vrot.slane %v4681_v33, 7  ;;  %v443_v48 = vsel %vm6509_vm0, %v436_v55, %v6586_v43  ;;  %v654_v21 = vadd.f32 %v653_v8, %v4675_v2  ;;  %v6588_v55 = vld [vmem:[#allocation37_spill] sm:$0xff] }
 0x289   : > { %v446_v30 = vadd.f32 %v443_v48, %v6582_v19  ;;  %v6589_v45 = vrot.slane %v6588_v55, 1  ;;  %v667_v43 = vrot.slane %v4675_v2, 2  ;;  %v6592_v48 = vrot.slane %v4330_v38, 7 }
 0x28a   : > { %v4702_v26 = vadd.f32 %v6587_v14, %v627_v28  ;;  %v455_v11 = vsel %vm6510_vm1, %v448_v54, %v449_v17  ;;  %v454_v54 = vsel %vm6510_vm1, %v449_v17, %v6591_v36  ;;  %v466_v17 = vsel %vm6515_vm2, %v459_v46, %v460_v18 }
 0x28b   : > { %v652_v9 = vsel %vm6509_vm0, %v648_v56, %v6589_v45  ;;  %v456_v28 = vadd.f32 %v455_v11, %v445_v31  ;;  %v662_v14 = vsel %vm6510_vm1, %v658_v5, %v6592_v48  ;;  %v457_v8 = vadd.f32 %v454_v54, %v446_v30 }
 0x28c   : > { %v657_v49 = vrot.slane %v4702_v26, 7  ;;  %v655_v31 = vadd.f32 %v652_v9, %v4330_v38  ;;  %v470_v45 = vrot.slane %v4681_v33, 6  ;;  %v668_v36 = vrot.slane %v4330_v38, 2 }
 0x28d   : > { %v467_v24 = vadd.f32 %v466_v17, %v456_v28  ;;  %v6593_v48 = vrot.slane %v6585_v16, 2  ;;  %v482_v28 = vrot.slane %v6582_v19, 3 }
 0x28e   : > { %v4683_v27 = vpop.permute.xlu0 %1018  ;;  %v4688_v3 = vpop.permute.xlu2 %1039  ;;  %v663_v56 = vsel %vm6510_vm1, %v657_v49, %v658_v5  ;;  %v665_v32 = vadd.f32 %v662_v14, %v655_v31  ;;  %v673_v30 = vsel %vm6515_vm2, %v667_v43, %v668_v36  ;;  %v477_v46 = vsel %vm6511_vm3, %v470_v45, %v471_v37 }
 0x28f   : > { %v664_v11 = vadd.f32 %v663_v56, %v654_v21  ;;  %v465_v5 = vsel %vm6515_vm2, %v460_v18, %v6593_v48  ;;  %v678_v21 = vrot.slane %v4675_v2, 6  ;;  %v677_v14 = vrot.slane %v4702_v26, 6  ;;  %v6596_v48 = vld [vmem:[#allocation30_spill] sm:$0xff] }
 0x290   : > { %v4690_v20 = vpop.permute.xlu1 %1026  ;;  %v468_v49 = vadd.f32 %v465_v5, %v457_v8  ;;  %v6594_v56 = vrot.slane %v6588_v55, 2  ;;  %v481_v43 = vrot.slane %v4671_v22, 3  ;;  %v478_v8 = vadd.f32 %v477_v46, %v467_v24  ;;  %v6597_v5 = vld [vmem:[#allocation36_spill] sm:$0xff] }
 0x291   : > { %v674_v9 = vadd.f32 %v673_v30, %v664_v11  ;;  %v796_v45 = vadd.f32 %v6597_v5, %v6596_v48  ;;  %v6598_v30 = vrot.slane %v6582_v19, 6  ;;  %v683_v29 = vsel %vm6511_vm3, %v677_v14, %v678_v21 }
 0x292   : > { %v672_v18 = vsel %vm6515_vm2, %v668_v36, %v6594_v56  ;;  %v687_v36 = vrot.slane %v4675_v2, 3  ;;  %v492_v56 = vrot.slane %v4681_v33, 5  ;;  %v493_v24 = vrot.slane %v4671_v22, 5 }
 0x293   : > { %v675_v11 = vadd.f32 %v672_v18, %v665_v32  ;;  %v476_v52 = vsel %vm6511_vm3, %v471_v37, %v6598_v30  ;;  %v684_v46 = vadd.f32 %v683_v29, %v674_v9  ;;  %v488_v18 = vsel %vm6514_vm5, %v481_v43, %v482_v28  ;;  %v6603_v43 = vld [vmem:[#allocation43_spill] sm:$0xff] }
 0x294   : > { %v479_v32 = vadd.f32 %v476_v52, %v468_v49  ;;  %v6599_v5 = vrot.slane %v4330_v38, 6  ;;  %v688_v37 = vrot.slane %v4330_v38, 3  ;;  %v6600_v14 = vrot.slane %v6585_v16, 3  ;;  %v6602_v52 = vld [vmem:[#allocation38_spill] sm:$0xff] }
 0x295   : > { %v489_v60 = vadd.f32 %v488_v18, %v478_v8  ;;  %v698_v9 = vrot.slane %v4675_v2, 5  ;;  %v811_v63 = vadd.f32 %v6603_v43, %v796_v45  ;;  %v6605_v8 = vld [vmem:[#allocation44_spill] sm:$0xff] }
 0x296   : > { %v4710_v44 = vpop.permute.xlu0 %1024  ;;  %v4720_v51 = vpop.permute.xlu2 %1050  ;;  %v682_v50 = vsel %vm6511_vm3, %v678_v21, %v6599_v5  ;;  %v487_v30 = vsel %vm6514_vm5, %v482_v28, %v6600_v14  ;;  %v693_v49 = vsel %vm6514_vm5, %v687_v36, %v688_v37  ;;  %v499_v21 = vsel %vm6512_vm4, %v492_v56, %v493_v24  ;;  %v6606_v36 = vld [vmem:[#allocation48_spill] sm:$0xff] }
 0x297   : > { %v685_v4 = vadd.f32 %v682_v50, %v675_v11  ;;  %v490_v5 = vadd.f32 %v487_v30, %v479_v32  ;;  %v694_v16 = vadd.f32 %v693_v49, %v684_v46  ;;  %v697_v28 = vrot.slane %v4702_v26, 5 }
 0x298   : > { %v4723_v35 = vpop.permute.xlu1 %1037  ;;  %v6604_v50 = vrot.slane %v6588_v55, 3  ;;  %v826_v18 = vadd.f32 %v6606_v36, %v811_v63  ;;  %v500_v45 = vadd.f32 %v499_v21, %v489_v60  ;;  %v503_v32 = vrot.slane %v4671_v22, 4 }
 0x299   : > { %6590 = vst [vmem:[#allocation33_spill] sm:$0xff] %v4723_v35  ;;  %v6601_v35 = vld [vmem:[#allocation26_spill] sm:$0xff]  ;;  %v6607_v46 = vrot.slane %v6582_v19, 5  ;;  %v707_v30 = vrot.slane %v4675_v2, 4  ;;  %v514_v63 = vrot.slane %v4681_v33, 4  ;;  %v6609_v22 = vrot.slane %v4330_v38, 5 }
 0x29a   : > { %v795_v29 = vadd.f32 %v6602_v52, %v6601_v35  ;;  %v692_v35 = vsel %vm6514_vm5, %v688_v37, %v6604_v50  ;;  %v703_v37 = vsel %vm6512_vm4, %v697_v28, %v698_v9  ;;  %v6611_v50 = vld [vmem:[#allocation46_spill] sm:$0xff]  ;;  %v6612_v33 = vrot.slane %v4330_v38, 4 }
 0x29b   : > { %v695_v52 = vadd.f32 %v692_v35, %v685_v4  ;;  %v498_v55 = vsel %vm6512_vm4, %v493_v24, %v6607_v46  ;;  %v704_v49 = vadd.f32 %v703_v37, %v694_v16  ;;  %v6608_v4 = vrot.slane %v6582_v19, 4  ;;  %v6610_v24 = vld [vmem:[#allocation42_spill] sm:$0xff]  ;;  %v6613_v19 = vld [vmem:[#allocation49_spill] sm:$0xff]  ;;  %v6615_v46 = vld [vmem:[#allocation31_spill] sm:$0xff] }
 0x29c   : > { %v810_v11 = vadd.f32 %v6605_v8, %v795_v29  ;;  %v501_v29 = vadd.f32 %v498_v55, %v490_v5  ;;  %v702_v43 = vsel %vm6512_vm4, %v698_v9, %v6609_v22  ;;  %v841_v28 = vadd.f32 %v6611_v50, %v826_v18  ;;  %v6614_v8 = vld [vmem:[#allocation54_spill] sm:$0xff]  ;;  %v6616_v18 = vld [vmem:[#allocation55_spill] sm:$0xff] }
 0x29d   : > { %v510_v60 = vsel %vm6513_vm6, %v503_v32, %v6608_v4  ;;  %v705_v2 = vadd.f32 %v702_v43, %v695_v52  ;;  %v713_v5 = vsel %vm6513_vm6, %v707_v30, %v6612_v33  ;;  %v515_v9 = vsel %vm6513_vm6, %v514_v63, %v503_v32  ;;  %v6617_v38 = vld [vmem:[#allocation58_spill] sm:$0xff]  ;;  %v6618_v43 = vld [vmem:[#allocation45_spill] sm:$0xff]  ;;  %v6620_v63 = vld [vmem:[#allocation56_spill] sm:$0xff] }
 0x29e   : > { %v4749_v54 = vpop.permute.xlu0 %1035  ;;  %v4759_v31 = vpop.permute.xlu2 %1056  ;;  %v825_v21 = vadd.f32 %v6610_v24, %v810_v11  ;;  %v511_v35 = vadd.f32 %v510_v60, %v500_v45  ;;  %v856_v36 = vadd.f32 %v6614_v8, %v841_v28  ;;  %v512_v55 = vadd.f32 %v6615_v46, %v501_v29  ;;  %v6619_v33 = vld [vmem:[#allocation53_spill] sm:$0xff]  ;;  %v6621_v8 = vld [vmem:[#allocation59_spill] sm:$0xff] }
 0x29f   : > { %6595 = vst [vmem:[#allocation23_spill] sm:$0xff] %v4759_v31  ;;  %v714_v37 = vadd.f32 %v713_v5, %v704_v49  ;;  %v717_v11 = vrot.slane %v4702_v26, 4  ;;  %v715_v24 = vadd.f32 %v6618_v43, %v705_v2 }
 0x2a0   : > { %v4762_v17 = vpop.permute.xlu1 %1048  ;;  %v840_v16 = vadd.f32 %v6613_v19, %v825_v21  ;;  %v871_v52 = vadd.f32 %v6617_v38, %v856_v36  ;;  %v516_v22 = vadd.f32 %v515_v9, %v511_v35  ;;  %v517_v49 = vadd.f32 %v512_v55, %v510_v60 }
 0x2a1   : > { %v718_v29 = vsel %vm6513_vm6, %v717_v11, %v707_v30  ;;  %v6519_v11 = vrot.slane %v4156_v34, 2 }
 0x2a2   : > { %v855_v45 = vadd.f32 %v6616_v18, %v840_v16  ;;  %v719_v28 = vadd.f32 %v718_v29, %v714_v37  ;;  %v886_v26 = vadd.f32 %v6620_v63, %v871_v52  ;;  %v4849_v19 = vmul.f32 0.012345679, %v516_v22 }
 0x2a3   : > { %v720_v16 = vadd.f32 %v715_v24, %v713_v5  ;;  %v4855_v36 = vmul.f32 0.012345679, %v517_v49  ;;  %v1280_v5 = vrot.slane %v6596_v48, 2  ;;  %v906_v18 = vrot.slane %v4567_v0, 1 }
 0x2a4   : > { %v870_v32 = vadd.f32 %v6619_v33, %v855_v45  ;;  %v4853_v2 = vadd.f32 %v4551_v42, %v886_v26  ;;  %v722_v46 = vmul.f32 0.012345679, %v719_v28  ;;  %v725_v55 = vmul.f32 %v4849_v19, %v4849_v19 }
 0x2a5   : > { %v723_v60 = vmul.f32 0.012345679, %v720_v16  ;;  %v726_v45 = vmul.f32 %v4855_v36, %v4855_v36  ;;  %v4878_v52 = vsel %vm6515_vm2, %v1280_v5, %v6519_v11  ;;  %v6622_v22 = vrot.slane %v4571_v58, 1  ;;  %v6623_v16 = vld [vmem:[#allocation39_spill] sm:$0xff] }
 0x2a6   : > { %v4794_v31 = vpop.permute.xlu0 %1041  ;;  %v4803_v14 = vpop.permute.xlu2 %1067  ;;  %v885_v35 = vadd.f32 %v6621_v8, %v870_v32  ;;  %v905_v42 = vrot.slane %v4853_v2, 1  ;;  %v728_v38 = vsub.f32 %v722_v46, %v725_v55  ;;  %1286 = vrot.lane.b32.xlu0 %v4878_v52, %s3671_s24  ;;  %1298 = vrot.lane.b32.xlu2 %v4878_v52, %s3672_s30  ;;  %v916_v49 = vrot.slane %v4853_v2, 7 }
 0x2a7   : > { %v910_v43 = vsel %vm6509_vm0, %v906_v18, %v6622_v22  ;;  %v729_v24 = vsub.f32 %v723_v60, %v726_v45  ;;  %v1001_v28 = vadd.f32 %v4563_v62, %v4394_v41  ;;  %v998_v8 = vadd.f32 %v4548_v25, %v6623_v16 }
 0x2a8   : > { %v4805_v56 = vpop.permute.xlu1 %1054  ;;  %v4860_v30 = vadd.f32 %v4561_v15, %v885_v35  ;;  %v911_v29 = vsel %vm6509_vm0, %v905_v42, %v906_v18  ;;  %v731_v33 = vmul.f32 1.0125, %v728_v38  ;;  %v913_v32 = vadd.f32 %v910_v43, %v4567_v0 }
 0x2a9   : > { %v999_v35 = vadd.f32 %v4604_v23, %v4366_v47  ;;  %v1002_v46 = vadd.f32 %v4629_v12, %v4389_v40  ;;  %v732_v60 = vmul.f32 1.0125, %v729_v24  ;;  %v912_v55 = vadd.f32 %v911_v29, %v4853_v2 }
 0x2aa   : > { %v915_v48 = vrot.slane %v4860_v30, 7  ;;  %v925_v41 = vrot.slane %v4853_v2, 2  ;;  %v926_v62 = vrot.slane %v4567_v0, 2  ;;  %v6624_v42 = vrot.slane %v4567_v0, 7 }
 0x2ab   : > { %v1016_v18 = vadd.f32 %v4640_v53, %v1001_v28  ;;  %v4913_v47 = vadd.f32 1e-06, %v731_v33  ;;  %v1013_v12 = vadd.f32 %v4613_v13, %v998_v8  ;;  %v1014_v45 = vadd.f32 %v4573_v1, %v999_v35 }
 0x2ac   : > { %v921_v26 = vsel %vm6510_vm1, %v915_v48, %v916_v49  ;;  %v920_v25 = vsel %vm6510_vm1, %v916_v49, %v6624_v42  ;;  %v1017_v38 = vadd.f32 %v4611_v6, %v1002_v46  ;;  %v4919_v22 = vadd.f32 1e-06, %v732_v60 }
 0x2ad   : > { %v922_v23 = vadd.f32 %v921_v26, %v912_v55  ;;  %v923_v40 = vadd.f32 %v920_v25, %v913_v32  ;;  %v1031_v48 = vadd.f32 %v4710_v44, %v1016_v18  ;;  %v931_v43 = vsel %vm6515_vm2, %v925_v41, %v926_v62 }
 0x2ae   : > { %v4833_v4 = vpop.permute.xlu0 %1052  ;;  %v4843_v50 = vpop.permute.xlu2 %1078  ;;  %v935_v24 = vrot.slane %v4860_v30, 6  ;;  %v936_v53 = vrot.slane %v4853_v2, 6  ;;  %v6625_v49 = vrot.slane %v4571_v58, 2  ;;  %v1029_v1 = vadd.f32 %v4667_v7, %v1014_v45 }
 0x2af   : > { %v1028_v6 = vadd.f32 %v4683_v27, %v1013_v12  ;;  %v1032_v44 = vadd.f32 %v4690_v20, %v1017_v38  ;;  %3202 = vrcp.f32 %v4913_v47  ;;  %v932_v28 = vadd.f32 %v931_v43, %v922_v23 }
 0x2b0   : > { %v4841_v21 = vpop.permute.xlu1 %1065  ;;  %v930_v13 = vsel %vm6515_vm2, %v926_v62, %v6625_v49  ;;  %v1000_v32 = vadd.f32 %v4576_v57, %v4334_v39  ;;  %v1046_v16 = vadd.f32 %v4688_v3, %v1031_v48  ;;  %v1044_v8 = vadd.f32 %v4749_v54, %v1029_v1  ;;  %v6627_v62 = vld [vmem:[#allocation23_spill] sm:$0xff] }
 0x2b1   : > { %v933_v33 = vadd.f32 %v930_v13, %v923_v40  ;;  %v1047_v35 = vadd.f32 %v4794_v31, %v1032_v44  ;;  %v945_v7 = vrot.slane %v4853_v2, 3  ;;  %v946_v27 = vrot.slane %v4567_v0, 3  ;;  %v6628_v40 = vld [vmem:[#allocation62_spill] sm:$0xff] }
 0x2b2   : > { %v1015_v20 = vadd.f32 %v4659_v10, %v1000_v32  ;;  %v6626_v60 = vrot.slane %v4567_v0, 6  ;;  %v941_v39 = vsel %vm6511_vm3, %v935_v24, %v936_v53  ;;  %v1043_v57 = vadd.f32 %v4664_v59, %v1028_v6  ;;  %v6630_v24 = vld [vmem:[#allocation33_spill] sm:$0xff] }
 0x2b3   : > { %v1061_v3 = vadd.f32 %v4805_v56, %v1046_v16  ;;  %3204 = vrcp.f32 %v4919_v22  ;;  %v942_v54 = vadd.f32 %v941_v39, %v932_v28  ;;  %v1059_v10 = vadd.f32 %v4720_v51, %v1044_v8 }
 0x2b4   : > { %v940_v55 = vsel %vm6511_vm3, %v936_v53, %v6626_v60  ;;  %v1058_v41 = vadd.f32 %v4762_v17, %v1043_v57  ;;  %v1062_v42 = vadd.f32 %v6627_v62, %v1047_v35  ;;  %v951_v23 = vsel %vm6514_vm5, %v945_v7, %v946_v27 }
 0x2b5   : > { %v943_v31 = vadd.f32 %v940_v55, %v933_v33  ;;  %v4953_v18 = vpop.eup %3202  ;;  %v955_v59 = vrot.slane %v4860_v30, 5  ;;  %v956_v56 = vrot.slane %v4853_v2, 5  ;;  %v1030_v12 = vadd.f32 %v6628_v40, %v1015_v20 }
 0x2b6   : > { %v4857_v9 = vpop.permute.xlu0 %1063  ;;  %v4872_v15 = vpop.permute.xlu2 %1084  ;;  %v6629_v45 = vrot.slane %v4571_v58, 3  ;;  %v1074_v51 = vadd.f32 %v4841_v21, %v1059_v10  ;;  %v952_v48 = vadd.f32 %v951_v23, %v942_v54  ;;  %v4970_v1 = vmul.f32 %v4953_v18, %v4913_v47 }
 0x2b7   : > { %v1045_v53 = vadd.f32 %v6630_v24, %v1030_v12  ;;  %v6631_v21 = vrot.slane %v4567_v0, 5  ;;  %v975_v33 = vrot.slane %v4860_v30, 4  ;;  %v961_v8 = vsel %vm6512_vm4, %v955_v59, %v956_v56 }
 0x2b8   : > { %v4864_v37 = vpop.permute.xlu1 %1071  ;;  %v950_v17 = vsel %vm6514_vm5, %v946_v27, %v6629_v45  ;;  %v962_v7 = vadd.f32 %v961_v8, %v952_v48  ;;  %v742_v55 = vsub.f32 1.0, %v4970_v1  ;;  %v6632_v39 = vrot.slane %v4567_v0, 4 }
 0x2b9   : > { %v1077_v38 = vadd.f32 %v4864_v37, %v1062_v42  ;;  %v953_v43 = vadd.f32 %v950_v17, %v943_v31  ;;  %v4973_v28 = vpop.eup %3204  ;;  %v965_v37 = vrot.slane %v4853_v2, 4  ;;  %v1060_v32 = vadd.f32 %v4833_v4, %v1045_v53 }
 0x2ba   : > { %vm746_vm11 = vweird.f32 %v4953_v18  ;;  %vm745_vm12 = vweird.f32 %v4913_v47  ;;  %vm760_vm9 = vweird.f32 %v4919_v22  ;;  %vm761_vm10 = vweird.f32 %v4973_v28 }
 0x2bb   : > { %v1075_v4 = vadd.f32 %v4803_v14, %v1060_v32  ;;  %vm5122_vm14 = vmor %vm745_vm12, %vm746_vm11 }
 0x2be   : > { %v1070_v63 = vpop.permute.xlu0 %1069  ;;  %v1096_v29 = vpop.permute.xlu2 %1095 }
 0x2bf   : > { %v1076_v25 = vadd.f32 %v1070_v63, %v1061_v3  ;;  %v1073_v63 = vadd.f32 %v4857_v9, %v1058_v41  ;;  %v960_v9 = vsel %vm6512_vm4, %v956_v56, %v6631_v21  ;;  %v6633_v3 = vld [vmem:[#allocation63_spill] sm:$0xff] }
 0x2c0   : > { %v4906_v5 = vpop.permute.xlu1 %1082  ;;  %v963_v27 = vadd.f32 %v960_v9, %v953_v43 }
 0x2c1   : > { %v1091_v58 = vadd.f32 %v4872_v15, %v1076_v25  ;;  %v1088_v15 = vadd.f32 %v4843_v50, %v1073_v63  ;;  %v4999_v50 = vmul.f32 %v4973_v28, %v4919_v22  ;;  %v1090_v14 = vadd.f32 %v4906_v5, %v1075_v4 }
 0x2c2   : > { %v973_v54 = vadd.f32 %v6633_v3, %v963_v27 }
 0x2c6   : > { %v1081_v26 = vpop.permute.xlu0 %1080  ;;  %v1102_v13 = vpop.permute.xlu2 %1101 }
 0x2c7   : > { %v1089_v6 = vadd.f32 %v1081_v26, %v1074_v51 }
 0x2c8   : > { %v1094_v46 = vpop.permute.xlu1 %1093 }
 0x2c9   : > { %v4989_v20 = vadd.f32 %v1094_v46, %v1088_v15  ;;  %v4991_v60 = vadd.f32 %v1096_v29, %v1089_v6  ;;  %v971_v46 = vsel %vm6513_vm6, %v965_v37, %v6632_v39  ;;  %v976_v29 = vsel %vm6513_vm6, %v975_v33, %v965_v37 }
 0x2ca   : > { %v972_v57 = vadd.f32 %v971_v46, %v962_v7 }
 0x2cb   : > { %v1118_v10 = vrot.slane %v4989_v20, 7  ;;  %v1138_v62 = vrot.slane %v4989_v20, 6  ;;  %v1119_v0 = vrot.slane %v4991_v60, 7  ;;  %v1158_v25 = vrot.slane %v4989_v20, 5 }
 0x2cc   : > { %v1108_v23 = vrot.slane %v4991_v60, 1  ;;  %v1128_v59 = vrot.slane %v4991_v60, 2  ;;  %v1139_v5 = vrot.slane %v4991_v60, 6  ;;  %v1148_v40 = vrot.slane %v4991_v60, 3 }
 0x2cd   : > { %v1124_v48 = vsel %vm6510_vm1, %v1118_v10, %v1119_v0  ;;  %v1159_v15 = vrot.slane %v4991_v60, 5 }
 0x2ce   : > { %v1087_v49 = vpop.permute.xlu0 %1086 }
 0x2cf   : > { %v1092_v44 = vadd.f32 %v1087_v49, %v1077_v38 }
 0x2d0   : > { %v1100_v16 = vpop.permute.xlu1 %1099 }
 0x2d1   : > { %v4985_v26 = vadd.f32 %v1100_v16, %v1091_v58  ;;  %v4987_v35 = vadd.f32 %v1102_v13, %v1092_v44 }
 0x2d3   : > { %v1110_v2 = vrot.slane %v4985_v26, 1  ;;  %v1111_v30 = vrot.slane %v4987_v35, 1  ;;  %v1121_v12 = vrot.slane %v4985_v26, 7  ;;  %v1130_v45 = vrot.slane %v4985_v26, 2 }
 0x2d4   : > { %v1131_v17 = vrot.slane %v4987_v35, 2  ;;  %v1141_v43 = vrot.slane %v4985_v26, 6  ;;  %v1161_v24 = vrot.slane %v4985_v26, 5  ;;  %v1150_v44 = vrot.slane %v4985_v26, 3 }
 0x2d5   : > { %v1112_v31 = vsel %vm6509_vm0, %v1110_v2, %v1111_v30  ;;  %v1151_v32 = vrot.slane %v4987_v35, 3 }
 0x2d6   : > { %v1098_v41 = vpop.permute.xlu0 %1097  ;;  %v1117_v42 = vadd.f32 %v1112_v31, %v4985_v26  ;;  %v1132_v33 = vsel %vm6515_vm2, %v1130_v45, %v1131_v17 }
 0x2d7   : > { %v5018_v56 = vadd.f32 %v1098_v41, %v1090_v14  ;;  %v1144_v14 = vsel %vm6511_vm3, %v1138_v62, %v1139_v5 }
 0x2d9   : > { %v1109_v51 = vrot.slane %v5018_v56, 1  ;;  %v1120_v63 = vrot.slane %v5018_v56, 7  ;;  %v1140_v38 = vrot.slane %v5018_v56, 6  ;;  %v1129_v53 = vrot.slane %v5018_v56, 2 }
 0x2da   : > { %v1160_v6 = vrot.slane %v5018_v56, 5  ;;  %v1149_v39 = vrot.slane %v5018_v56, 3 }
 0x2db   : > { %v1113_v49 = vsel %vm6509_vm0, %v1109_v51, %v1110_v2  ;;  %v1114_v13 = vsel %vm6509_vm0, %v1108_v23, %v1109_v51  ;;  %v1122_v58 = vsel %vm6510_vm1, %v1120_v63, %v1121_v12  ;;  %v1123_v16 = vsel %vm6510_vm1, %v1119_v0, %v1120_v63 }
 0x2dc   : > { %v1115_v21 = vadd.f32 %v1114_v13, %v4991_v60  ;;  %v1116_v9 = vadd.f32 %v1113_v49, %v5018_v56  ;;  %v1127_v37 = vadd.f32 %v1122_v58, %v1117_v42  ;;  %v1142_v8 = vsel %vm6511_vm3, %v1140_v38, %v1141_v43 }
 0x2dd   : > { %v1133_v4 = vsel %vm6515_vm2, %v1129_v53, %v1130_v45  ;;  %v1134_v30 = vsel %vm6515_vm2, %v1128_v59, %v1129_v53  ;;  %v1162_v3 = vsel %vm6512_vm4, %v1160_v6, %v1161_v24  ;;  %v1170_v0 = vrot.slane %v4985_v26, 4 }
 0x2de   : > { %v1125_v7 = vadd.f32 %v1124_v48, %v1115_v21  ;;  %v1126_v27 = vadd.f32 %v1123_v16, %v1116_v9  ;;  %v1137_v2 = vadd.f32 %v1132_v33, %v1127_v37  ;;  %v1152_v42 = vsel %vm6514_vm5, %v1150_v44, %v1151_v32 }
 0x2df   : > { %v1171_v23 = vrot.slane %v4987_v35, 4  ;;  %v1143_v59 = vsel %vm6511_vm3, %v1139_v5, %v1140_v38  ;;  %v977_v12 = vadd.f32 %v976_v29, %v972_v57  ;;  %v978_v63 = vadd.f32 %v973_v54, %v971_v46  ;;  %v6634_v5 = vld [vmem:[#allocation64_spill] sm:$0xff] }
 0x2e0   : > { %v1135_v31 = vadd.f32 %v1134_v30, %v1125_v7  ;;  %v1136_v41 = vadd.f32 %v1133_v4, %v1126_v27  ;;  %v1147_v10 = vadd.f32 %v1142_v8, %v1137_v2  ;;  %v1153_v62 = vsel %vm6514_vm5, %v1149_v39, %v1150_v44 }
 0x2e1   : > { %v1154_v48 = vsel %vm6514_vm5, %v1148_v40, %v1149_v39  ;;  %v1169_v26 = vrot.slane %v5018_v56, 4  ;;  %v1178_v43 = vrot.slane %v4989_v20, 4  ;;  %v1164_v29 = vsel %vm6512_vm4, %v1158_v25, %v1159_v15 }
 0x2e2   : > { %v1145_v45 = vadd.f32 %v1144_v14, %v1135_v31  ;;  %v1146_v17 = vadd.f32 %v1143_v59, %v1136_v41  ;;  %v1157_v51 = vadd.f32 %v1152_v42, %v1147_v10  ;;  %v1168_v57 = vrot.slane %v4991_v60, 4 }
 0x2e3   : > { %v1172_v46 = vsel %vm6513_vm6, %v1170_v0, %v1171_v23  ;;  %v1163_v54 = vsel %vm6512_vm4, %v1159_v15, %v1160_v6  ;;  %v5080_v40 = vmul.f32 0.012345679, %v6634_v5  ;;  %v5082_v49 = vmul.f32 0.012345679, %v977_v12 }
 0x2e4   : > { %v1155_v24 = vadd.f32 %v1154_v48, %v1145_v45  ;;  %v1156_v35 = vadd.f32 %v1153_v62, %v1146_v17  ;;  %v1167_v53 = vadd.f32 %v1162_v3, %v1157_v51  ;;  %v5084_v13 = vmul.f32 0.012345679, %v978_v63 }
 0x2e5   : > { %v1173_v60 = vsel %vm6513_vm6, %v1169_v26, %v1170_v0  ;;  %v1174_v25 = vsel %vm6513_vm6, %v1168_v57, %v1169_v26  ;;  %v757_v21 = vsub.f32 1.0, %v4999_v50  ;;  %v1179_v9 = vsel %vm6513_vm6, %v1178_v43, %v1168_v57 }
 0x2e6   : > { %v1165_v56 = vadd.f32 %v1164_v29, %v1155_v24  ;;  %v1166_v38 = vadd.f32 %v1163_v54, %v1156_v35  ;;  %v1177_v20 = vadd.f32 %v1172_v46, %v1167_v53  ;;  %v1188_v37 = vmul.f32 %v5080_v40, %v5080_v40 }
 0x2e7   : > { %v743_v8 = vmul.f32 %v4953_v18, %v742_v55  ;;  %v1186_v15 = vmul.f32 %v5082_v49, %v5082_v49  ;;  %v1187_v7 = vmul.f32 %v5084_v13, %v5084_v13  ;;  %v6635_v50 = vlaneseq }
 0x2e8   : > { %v1175_v58 = vadd.f32 %v1174_v25, %v1165_v56  ;;  %v1176_v44 = vadd.f32 %v1173_v60, %v1166_v38  ;;  %v1182_v6 = vadd.f32 %v1177_v20, %v1173_v60  ;;  %v1258_v2 = vstv %s3110_s28  ;;  %v6641_v20 = vld [vmem:[#allocation20_spill] sm:$0xff]  ;;  %s3673_s28 = smov 123  }
 0x2e9   : > { %v5103_v27 = vand.u32 127, %v6635_v50  ;;  %v1257_v3 = vadd.s32 24, %v4131_v61  ;;  %v758_v31 = vmul.f32 %v4973_v28, %v757_v21  ;;  %v744_v10 = vadd.f32 %v4953_v18, %v743_v8 }
 0x2ea   : > { %v1180_v33 = vadd.f32 %v1179_v9, %v1175_v58  ;;  %v1181_v32 = vadd.f32 %v1176_v44, %v1174_v25  ;;  %v1185_v16 = vmul.f32 0.012345679, %v1182_v6  ;;  %v751_v12 = vand.u32 2147483648, %v4913_v47  ;;  %v5161_v6 = vld [vmem:[#allocation2 + $0x8] sm:$0xff] }
 0x2eb   : > { %vm1273_vm13 = vcmp.lt.s32.totalorder %v5103_v27, 16  ;;  %v1261_v41 = vadd.s32 %v1258_v2, %v1257_v3  ;;  %v749_v45 = vand.u32 2147483647, %v4913_v47  ;;  %v759_v63 = vadd.f32 %v4973_v28, %v758_v31 }
 0x2ec   : > { %v1183_v4 = vmul.f32 0.012345679, %v1180_v33  ;;  %v1184_v30 = vmul.f32 0.012345679, %v1181_v32  ;;  %v1191_v39 = vsub.f32 %v1185_v16, %v1188_v37  ;;  %v748_v47 = vsel %vm5122_vm14, %v4953_v18, %v744_v10  ;;  %v6640_v18 = vld [vmem:[#allocation21_spill] sm:$0xff]  ;;  %v3504_v33 = vld [vmem:[#allocation2 + $0x18] sm:$0xff] }
 0x2ed   : > { %vm1266_vm15 = vcmp.ge.s32.totalorder %v1261_v41, 16  ;;  %vm1269_vm7 = vcmp.lt.s32.totalorder %v1261_v41, 32  ;;  %v766_v48 = vand.u32 2147483648, %v4919_v22  ;;  %v1255_v26 = vadd.s32 8, %v4131_v61 }
 0x2ee   : > { %v1189_v1 = vsub.f32 %v1183_v4, %v1186_v15  ;;  %v1190_v55 = vsub.f32 %v1184_v30, %v1187_v7  ;;  %v5109_v14 = vmul.f32 1.0125, %v1191_v39  ;;  %vm1272_vm8 = vmand %vm1266_vm15, %vm1269_vm7  ;;  %v752_v43 = vor.u32 1.1754944e-38, %v751_v12 }
 0x2ef   : > { %vm5140_vm11 = vmand %vm1272_vm8, %vm1273_vm13  ;;  %v764_v24 = vand.u32 2147483647, %v4919_v22  ;;  %v1256_v35 = vadd.s32 16, %v4131_v61  ;;  %vm750_vm12 = vcmp.eq.f32.partialorder %v749_v45, 8.507059e+37  ;;  %v734_v46 = vsub.f32 %v6640_v18, %v4849_v19  ;;  %v5165_v19 = vld [vmem:[#allocation2 + $0x10] sm:$0xff] }
 0x2f0   : > { %v5115_v0 = vmul.f32 1.0125, %v1189_v1  ;;  %v5117_v42 = vmul.f32 1.0125, %v1190_v55  ;;  %v5120_v23 = vadd.f32 1e-06, %v5109_v14  ;;  %vm762_vm15 = vmor %vm760_vm9, %vm761_vm10  ;;  %v753_v53 = vsel %vm750_vm12, %v752_v43, %v748_v47 }
 0x2f1   : > { %v763_v29 = vsel %vm762_vm15, %v4973_v28, %v759_v63  ;;  %v767_v54 = vor.u32 1.1754944e-38, %v766_v48  ;;  %v1259_v5 = vadd.s32 %v1258_v2, %v1255_v26  ;;  %vm765_vm14 = vcmp.eq.f32.partialorder %v764_v24, 8.507059e+37  ;;  %v6642_v48 = vld [vmem:[#allocation51_spill] sm:$0xff] }
 0x2f2   : > { %v5129_v17 = vadd.f32 1e-06, %v5115_v0  ;;  %v5132_v51 = vadd.f32 1e-06, %v5117_v42  ;;  %3206 = vrcp.f32 %v5120_v23  ;;  %v5156_v56 = vadd.s32 %v1258_v2, %v1256_v35 }
 0x2f3   : > { %v735_v60 = vsub.f32 %v6641_v20, %v4855_v36  ;;  %v754_v25 = vmul.f32 %v753_v53, %v734_v46  ;;  %v768_v58 = vsel %vm765_vm14, %v767_v54, %v763_v29  ;;  %v1195_v28 = vsub.f32 %v5161_v6, %v5082_v49 }
 0x2f4   : > { %3208 = vrcp.f32 %v5129_v17  ;;  %v1196_v21 = vsub.f32 %v5165_v19, %v5084_v13  ;;  %v1197_v32 = vsub.f32 %v3504_v33, %v5080_v40  ;;  %vm1264_vm7 = vcmp.ge.s32.totalorder %v1259_v5, 16 }
 0x2f5   : > { %3210 = vrcp.f32 %v5132_v51  ;;  %v1242_v16 = vand.u32 2147483648, %v5120_v23  ;;  %vm1265_vm8 = vcmp.ge.s32.totalorder %v5156_v56, 16  ;;  %v1240_v15 = vand.u32 2147483647, %v5120_v23 }
 0x2f6   : > { %v1210_v13 = vand.u32 2147483647, %v5129_v17  ;;  %v1212_v7 = vand.u32 2147483648, %v5129_v17  ;;  %vm1236_vm10 = vweird.f32 %v5120_v23  ;;  %v1227_v2 = vand.u32 2147483648, %v5132_v51 }
 0x2f7   : > { %v1225_v39 = vand.u32 2147483647, %v5132_v51  ;;  %v1243_v3 = vor.u32 1.1754944e-38, %v1242_v16  ;;  %vm1206_vm0 = vweird.f32 %v5129_v17  ;;  %vm1241_vm1 = vcmp.eq.f32.partialorder %v1240_v15, 8.507059e+37 }
 0x2f8   : > { %v3207_v57 = vpop.eup %3206  ;;  %v1213_v31 = vor.u32 1.1754944e-38, %v1212_v7  ;;  %vm1221_vm4 = vweird.f32 %v5132_v51  ;;  %vm1211_vm6 = vcmp.eq.f32.partialorder %v1210_v13, 8.507059e+37  ;;  %v1228_v59 = vor.u32 1.1754944e-38, %v1227_v2 }
 0x2f9   : > { %v1232_v22 = vmul.f32 %v3207_v57, %v5120_v23  ;;  %vm1237_vm9 = vweird.f32 %v3207_v57  ;;  %vm1267_vm2 = vcmp.lt.s32.totalorder %v1259_v5, 32  ;;  %v769_v43 = vmul.f32 %v768_v58, %v735_v60 }
 0x2fa   : > { %v3209_v38 = vpop.eup %3208  ;;  %vm1238_vm14 = vmor %vm1236_vm10, %vm1237_vm9  ;;  %vm1226_vm9 = vcmp.eq.f32.partialorder %v1225_v39, 8.507059e+37  ;;  %vm1268_vm10 = vcmp.lt.s32.totalorder %v5156_v56, 32  ;;  %v1572_v13 = vrot.slane %v5161_v6, 4  ;;  %v6517_v7 = vrot.slane %v5165_v19, 4 }
 0x2fb   : > { %v3211_v44 = vpop.eup %3210  ;;  %v1202_v9 = vmul.f32 %v3209_v38, %v5129_v17  ;;  %v1233_v37 = vsub.f32 1.0, %v1232_v22  ;;  %vm1207_vm12 = vweird.f32 %v3209_v38 }
 0x2fc   : > { %v1217_v36 = vmul.f32 %v3211_v44, %v5132_v51  ;;  %vm1222_vm15 = vweird.f32 %v3211_v44  ;;  %vm1208_vm3 = vmor %vm1206_vm0, %vm1207_vm12 }
 0x2fd   : > { %v1203_v8 = vsub.f32 1.0, %v1202_v9  ;;  %v1234_v49 = vmul.f32 %v3207_v57, %v1233_v37  ;;  %vm1223_vm5 = vmor %vm1221_vm4, %vm1222_vm15 }
 0x2fe   : > { %v1218_v50 = vsub.f32 1.0, %v1217_v36  ;;  %vm1270_vm0 = vmand %vm1264_vm7, %vm1267_vm2  ;;  %vm6644_vm2 = vcmp.lt.s32.totalorder %v4131_v61, 6  ;;  %v6518_v36 = vrot.slane %v5165_v19, 3 }
 0x2ff   : > { %v1204_v40 = vmul.f32 %v3209_v38, %v1203_v8  ;;  %v1235_v4 = vadd.f32 %v3207_v57, %v1234_v49 }
 0x300   : > { %v1219_v30 = vmul.f32 %v3211_v44, %v1218_v50  ;;  %v5311_v8 = vpop.permute.xlu2 %1298 }
 0x301   : > { %v1205_v1 = vadd.f32 %v3209_v38, %v1204_v40  ;;  %v1239_v55 = vsel %vm1238_vm14, %v3207_v57, %v1235_v4 }
 0x302   : > { %v1220_v41 = vadd.f32 %v3211_v44, %v1219_v30  ;;  %v1244_v10 = vsel %vm1241_vm1, %v1243_v3, %v1239_v55  ;;  %vm1271_vm1 = vmand %vm1265_vm8, %vm1268_vm10  ;;  %vm6667_vm10 = vcmp.lt.s32.totalorder %v4131_v61, 2 }
 0x303   : > { %v1209_v23 = vsel %vm1208_vm3, %v3209_v38, %v1205_v1  ;;  %v1245_v12 = vmul.f32 %v1244_v10, %v1197_v32  ;;  %vm1274_vm3 = vmand %vm1270_vm0, %vm1273_vm13  ;;  %v1426_v32 = vrot.slane %v5161_v6, 3 }
 0x304   : > { %v1214_v45 = vsel %vm1211_vm6, %v1213_v31, %v1209_v23  ;;  %v1224_v63 = vsel %vm1223_vm5, %v3211_v44, %v1220_v41  ;;  %vm1275_vm4 = vmand %vm1271_vm1, %vm1273_vm13  ;;  %vm6647_vm6 = vcmp.lt.s32.totalorder %v4131_v61, 5  ;;  %vm6649_vm13 = vcmp.lt.s32.totalorder %v4131_v61, 4 }
 0x305   : > { %v1215_v17 = vmul.f32 %v1214_v45, %v1195_v28  ;;  %v1229_v47 = vsel %vm1226_vm9, %v1228_v59, %v1224_v63  ;;  %v1248_v26 = vsub.f32 %v1245_v12, %v6642_v48  ;;  %vm6645_vm5 = vmmov %vm6644_vm2  ;;  %vm6669_vm1 = vcmp.lt.s32.totalorder %v4131_v61, 1 }
 0x306   : > { %v1230_v24 = vmul.f32 %v1229_v47, %v1196_v21  ;;  %vm6653_vm7 = vmmov %vm6647_vm6 }
 0x307   : > { %v1246_v51 = vsub.f32 %v1215_v17, %v754_v25  ;;  %v1251_v35 = vmul.f32 %v1248_v26, %v5109_v14  ;;  %vm6654_vm8 = vmmov %vm6647_vm6 }
 0x308   : > { %v1247_v53 = vsub.f32 %v1230_v24, %v769_v43  ;;  %v5289_v16 = vsel %vm6654_vm8, %v1426_v32, %v6518_v36  ;;  %vm6655_vm12 = vmmov %vm6649_vm13 }
 0x309   : > { %v1249_v29 = vmul.f32 %v1246_v51, %v5115_v0  ;;  %v1254_v57 = vand.u32 2147483647, %v1251_v35  ;;  %v5339_v50 = vsel %vm6655_vm12, %v1572_v13, %v6517_v7  ;;  %vm6657_vm15 = vmmov %vm6655_vm12  ;;  %v1718_v35 = vrot.slane %v5161_v6, 5 }
 0x30a   : > { %v1250_v18 = vmul.f32 %v1247_v53, %v5117_v42  ;;  %6656 = vst [vmem:[#allocation25_spill] sm:$0xff] %v5339_v50  ;;  %v6516_v53 = vrot.slane %v5165_v19, 5  ;;  %vm6668_vm0 = vmmov %vm6667_vm10 }
 0x30b   : > { %v1252_v46 = vand.u32 2147483647, %v1249_v29  ;;  %v5197_v54 = vsel %vm5140_vm11, %v1254_v57, 0.0  ;;  %vm6651_vm11 = vcmp.lt.s32.totalorder %v4131_v61, 3 }
 0x30c   : > { %6643 = vst [vmem:[#allocation24_spill] sm:$0xff] %v5197_v54  ;;  %v1253_v14 = vand.u32 2147483647, %v1250_v18  ;;  %v2428_v20 = vrot.slane %v5197_v54, 2  ;;  %v2572_v60 = vrot.slane %v5197_v54, 3  ;;  %v2716_v25 = vrot.slane %v5197_v54, 4  ;;  %vm6659_vm14 = vmmov %vm6651_vm11 }
 0x30d   : > { %v5199_v5 = vsel %vm1274_vm3, %v1252_v46, 0.0  ;;  %v2860_v44 = vrot.slane %v5197_v54, 5  ;;  %v5448_v18 = vsel %vm6659_vm14, %v1718_v35, %v6516_v53  ;;  %vm6661_vm9 = vmmov %vm6651_vm11 }
 0x30e   : > { %v5201_v56 = vsel %vm1275_vm4, %v1253_v14, 0.0  ;;  %v1283_v0 = vrot.slane %v5199_v5, 2  ;;  %v1429_v37 = vrot.slane %v5199_v5, 3  ;;  %v1575_v2 = vrot.slane %v5199_v5, 4  ;;  %6660 = vst [vmem:[#allocation35_spill] sm:$0xff] %v5448_v18  ;;  %vm6670_vm3 = vmmov %vm6669_vm1 }
 0x30f   : > { %v1284_v22 = vrot.slane %v5201_v56, 2  ;;  %v1430_v27 = vrot.slane %v5201_v56, 3  ;;  %v1576_v38 = vrot.slane %v5201_v56, 4  ;;  %v1722_v62 = vrot.slane %v5201_v56, 5 }
 0x310   : > { %v1721_v14 = vrot.slane %v5199_v5, 5  ;;  %vm6679_vm4 = vcmp.lt.s32.totalorder %v4131_v61, 7 }
 0x311   : > { %v5207_v42 = vsel %vm6644_vm2, %v1283_v0, %v1284_v22  ;;  %v5223_v58 = vsel %vm6645_vm5, %v1284_v22, %v2428_v20  ;;  %v5228_v28 = vsel %vm6647_vm6, %v1430_v27, %v2572_v60  ;;  %v5234_v21 = vsel %vm6649_vm13, %v1576_v38, %v2716_v25  ;;  %vm6681_vm2 = vmmov %vm6679_vm4 }
 0x312   : > { %1318 = vrot.lane.b32.xlu2 %v5207_v42, %s3666_s10  ;;  %1306 = vrot.lane.b32.xlu0 %v5207_v42, %s3672_s30  ;;  %6646 = vst [vmem:[#allocation32_spill] sm:$0xff] %v5223_v58  ;;  %v5240_v9 = vsel %vm6651_vm11, %v1722_v62, %v2860_v44  ;;  %v5275_v33 = vsel %vm6653_vm7, %v1429_v37, %v1430_v27  ;;  %vm6696_vm13 = vmmov %vm6655_vm12 }
 0x313   : > { %1294 = vrot.lane.b32.xlu1 %v5207_v42, %s3671_s24  ;;  %6648 = vst [vmem:[#allocation22_spill] sm:$0xff] %v5228_v28  ;;  %v5356_v30 = vsel %vm6657_vm15, %v1575_v2, %v1576_v38  ;;  %v5467_v27 = vsel %vm6661_vm9, %v1721_v14, %v1722_v62  ;;  %v1300_v37 = vsub.f32 %v5165_v19, %v5311_v8  ;;  %vm6699_vm11 = vmmov %vm6661_vm9 }
 0x314   : > { %6650 = vst [vmem:[#allocation28_spill] sm:$0xff] %v5234_v21 }
 0x315   : > { %6652 = vst [vmem:[#allocation34_spill] sm:$0xff] %v5240_v9  ;;  %v1301_v14 = vand.u32 2147483647, %v1300_v37 }
 0x316   : > { %6658 = vst [vmem:[#allocation27_spill] sm:$0xff] %v5356_v30 }
 0x317   : > { %6662 = vst [vmem:[#allocation37_spill] sm:$0xff] %v5467_v27  ;;  %v1302_v36 = vmul.f32 -0.5, %v1301_v14 }
 0x318   : > { %v5350_v4 = vpop.permute.xlu0 %1286 }
 0x319   : > { %v1288_v32 = vsub.f32 %v5165_v19, %v5350_v4 }
 0x31a   : > { %1334 = vrot.lane.b32.xlu2 %v4878_v52, %s3664_s4  ;;  %1322 = vrot.lane.b32.xlu0 %v4878_v52, %s3665_s6 }
 0x31b   : > { %1310 = vrot.lane.b32.xlu1 %v4878_v52, %s3666_s10  ;;  %v1289_v53 = vand.u32 2147483647, %v1288_v32 }
 0x31d   : > { %v1290_v4 = vmul.f32 -0.5, %v1289_v53 }
 0x31f   : > { %v1291_v14 = vmul.f32 1.442695, %v1290_v4 }
 0x322   : > { %1354 = vrot.lane.b32.xlu2 %v5207_v42, %s3663_s27  ;;  %1342 = vrot.lane.b32.xlu0 %v5207_v42, %s3664_s4 }
 0x323   : > { %1330 = vrot.lane.b32.xlu1 %v5207_v42, %s3665_s6 }
 0x32a   : > { %1378 = vrot.lane.b32.xlu2 %v4878_v52, %s3668_s20  ;;  %1366 = vrot.lane.b32.xlu0 %v4878_v52, %s3667_s19 }
 0x32b   : > { %1346 = vrot.lane.b32.xlu1 %v4878_v52, %s3663_s27 }
 0x332   : > { %1398 = vrot.lane.b32.xlu2 %v5207_v42, %s3669_s22  ;;  %1386 = vrot.lane.b32.xlu0 %v5207_v42, %s3668_s20 }
 0x333   : > { %1374 = vrot.lane.b32.xlu1 %v5207_v42, %s3667_s19 }
 0x33a   : > { %1414 = vrot.lane.b32.xlu2 %v4878_v52, %s3673_s28  ;;  %1402 = vrot.lane.b32.xlu0 %v4878_v52, %s3670_s23 }
 0x33b   : > { %1390 = vrot.lane.b32.xlu1 %v4878_v52, %s3669_s22 }
 0x342   : > { %1440 = vrot.lane.b32.xlu2 %v5275_v33, %s3671_s24  ;;  %1422 = vrot.lane.b32.xlu0 %v5207_v42, %s3673_s28 }
 0x343   : > { %1410 = vrot.lane.b32.xlu1 %v5207_v42, %s3670_s23 }
 0x34a   : > { %1456 = vrot.lane.b32.xlu2 %v5289_v16, %s3666_s10  ;;  %1444 = vrot.lane.b32.xlu0 %v5289_v16, %s3672_s30 }
 0x34b   : > { %1432 = vrot.lane.b32.xlu1 %v5289_v16, %s3671_s24 }
 0x352   : > { %1476 = vrot.lane.b32.xlu2 %v5275_v33, %s3665_s6  ;;  %1464 = vrot.lane.b32.xlu0 %v5275_v33, %s3666_s10 }
 0x353   : > { %1452 = vrot.lane.b32.xlu1 %v5275_v33, %s3672_s30 }
 0x35a   : > { %1492 = vrot.lane.b32.xlu2 %v5289_v16, %s3663_s27  ;;  %1480 = vrot.lane.b32.xlu0 %v5289_v16, %s3664_s4 }
 0x35b   : > { %1468 = vrot.lane.b32.xlu1 %v5289_v16, %s3665_s6 }
 0x362   : > { %1520 = vrot.lane.b32.xlu2 %v5275_v33, %s3667_s19  ;;  %1500 = vrot.lane.b32.xlu0 %v5275_v33, %s3663_s27 }
 0x363   : > { %1488 = vrot.lane.b32.xlu1 %v5275_v33, %s3664_s4 }
 0x36a   : > { %1536 = vrot.lane.b32.xlu2 %v5289_v16, %s3669_s22  ;;  %1524 = vrot.lane.b32.xlu0 %v5289_v16, %s3668_s20 }
 0x36b   : > { %1512 = vrot.lane.b32.xlu1 %v5289_v16, %s3667_s19 }
 0x36c   : > { %v5323_v49 = vpop.permute.xlu2 %1318 }
 0x372   : > { %1556 = vrot.lane.b32.xlu2 %v5275_v33, %s3670_s23  ;;  %1544 = vrot.lane.b32.xlu0 %v5275_v33, %s3669_s22 }
 0x373   : > { %1532 = vrot.lane.b32.xlu1 %v5275_v33, %s3668_s20 }
 0x374   : > { %v5331_v15 = vpop.permute.xlu2 %1334 }
 0x375   : > { %v1336_v53 = vsub.f32 %v5165_v19, %v5331_v15 }
 0x377   : > { %v1337_v58 = vand.u32 2147483647, %v1336_v53 }
 0x37a   : > { %1578 = vrot.lane.b32.xlu2 %v5339_v50, %s3671_s24  ;;  %1560 = vrot.lane.b32.xlu0 %v5289_v16, %s3673_s28 }
 0x37b   : > { %1548 = vrot.lane.b32.xlu1 %v5289_v16, %s3670_s23 }
 0x37c   : > { %v5347_v40 = vpop.permute.xlu2 %1354 }
 0x382   : > { %1598 = vrot.lane.b32.xlu2 %v5356_v30, %s3672_s30  ;;  %1586 = vrot.lane.b32.xlu0 %v5356_v30, %s3671_s24 }
 0x383   : > { %1568 = vrot.lane.b32.xlu1 %v5275_v33, %s3673_s28 }
 0x384   : > { %v5364_v39 = vpop.permute.xlu2 %1378  ;;  %v5366_v3 = vpop.permute.xlu0 %1306 }
 0x385   : > { %v5368_v1 = vpop.permute.xlu1 %1294 }
 0x38a   : > { %1614 = vrot.lane.b32.xlu2 %v5339_v50, %s3665_s6  ;;  %1602 = vrot.lane.b32.xlu0 %v5339_v50, %s3666_s10 }
 0x38b   : > { %1590 = vrot.lane.b32.xlu1 %v5339_v50, %s3672_s30 }
 0x38c   : > { %v5376_v55 = vpop.permute.xlu2 %1398  ;;  %v5378_v31 = vpop.permute.xlu0 %1322 }
 0x38d   : > { %v5380_v41 = vpop.permute.xlu1 %1310  ;;  %v1324_v11 = vsub.f32 %v5165_v19, %v5378_v31 }
 0x38e   : > { %v1312_v2 = vsub.f32 %v5165_v19, %v5380_v41 }
 0x38f   : > { %v1325_v21 = vand.u32 2147483647, %v1324_v11  ;;  %v1358_v11 = vsub.f32 %v5165_v19, %v4878_v52 }
 0x390   : > { %v1313_v7 = vand.u32 2147483647, %v1312_v2  ;;  %v1303_v2 = vmul.f32 1.442695, %v1302_v36 }
 0x391   : > { %v1359_v53 = vand.u32 2147483647, %v1358_v11 }
 0x392   : > { %1634 = vrot.lane.b32.xlu2 %v5356_v30, %s3664_s4  ;;  %1622 = vrot.lane.b32.xlu0 %v5356_v30, %s3665_s6  ;;  %v1314_v9 = vmul.f32 -0.5, %v1313_v7  ;;  %3212 = vpow2.f32 %v1303_v2  ;;  %v1326_v7 = vmul.f32 -0.5, %v1325_v21 }
 0x393   : > { %1610 = vrot.lane.b32.xlu1 %v5356_v30, %s3666_s10  ;;  %3214 = vpow2.f32 %v1291_v14 }
 0x394   : > { %v5388_v10 = vpop.permute.xlu2 %1414  ;;  %v5390_v23 = vpop.permute.xlu0 %1342  ;;  %v1315_v28 = vmul.f32 1.442695, %v1314_v9  ;;  %v1327_v4 = vmul.f32 1.442695, %v1326_v7 }
 0x395   : > { %v5392_v59 = vpop.permute.xlu1 %1330 }
 0x396   : > { %3216 = vpow2.f32 %v1315_v28 }
 0x397   : > { %3218 = vpow2.f32 %v1327_v4 }
 0x398   : > { %v3213_v2 = vpop.eup %3212 }
 0x399   : > { %v3215_v14 = vpop.eup %3214 }
 0x39a   : > { %1658 = vrot.lane.b32.xlu2 %v5339_v50, %s3667_s19  ;;  %1638 = vrot.lane.b32.xlu0 %v5339_v50, %s3663_s27  ;;  %v1296_v7 = vmul.f32 %v3215_v14, %v5368_v1 }
 0x39b   : > { %1626 = vrot.lane.b32.xlu1 %v5339_v50, %s3664_s4 }
 0x39c   : > { %v5400_v12 = vpop.permute.xlu2 %1440  ;;  %v5402_v45 = vpop.permute.xlu0 %1366 }
 0x39d   : > { %v5404_v63 = vpop.permute.xlu1 %1346  ;;  %v3217_v52 = vpop.eup %3216 }
 0x39e   : > { %v1348_v31 = vsub.f32 %v5165_v19, %v5404_v63  ;;  %v1338_v63 = vmul.f32 -0.5, %v1337_v58  ;;  %v1308_v58 = vmul.f32 %v3213_v2, %v5366_v3  ;;  %v1320_v3 = vmul.f32 %v3217_v52, %v5323_v49 }
 0x3a0   : > { %v1349_v34 = vand.u32 2147483647, %v1348_v31  ;;  %v1368_v31 = vsub.f32 %v5165_v19, %v5402_v45  ;;  %v1339_v54 = vmul.f32 1.442695, %v1338_v63  ;;  %v1380_v45 = vsub.f32 %v5165_v19, %v5364_v39 }
 0x3a1   : > { %v1309_v39 = vadd.f32 %v1308_v58, %v1296_v7  ;;  %v1864_v58 = vrot.slane %v5161_v6, 6 }
 0x3a2   : > { %1678 = vrot.lane.b32.xlu2 %v5356_v30, %s3668_s20  ;;  %1666 = vrot.lane.b32.xlu0 %v5356_v30, %s3667_s19  ;;  %v1350_v21 = vmul.f32 -0.5, %v1349_v34  ;;  %v1360_v34 = vmul.f32 -0.5, %v1359_v53  ;;  %v1369_v63 = vand.u32 2147483647, %v1368_v31  ;;  %v1868_v53 = vrot.slane %v5201_v56, 6 }
 0x3a3   : > { %1646 = vrot.lane.b32.xlu1 %v5356_v30, %s3663_s27  ;;  %3220 = vpow2.f32 %v1339_v54 }
 0x3a4   : > { %v5412_v17 = vpop.permute.xlu2 %1456  ;;  %v5414_v47 = vpop.permute.xlu0 %1386  ;;  %v1351_v28 = vmul.f32 1.442695, %v1350_v21  ;;  %v1361_v1 = vmul.f32 1.442695, %v1360_v34  ;;  %v1370_v31 = vmul.f32 -0.5, %v1369_v63 }
 0x3a5   : > { %v5416_v48 = vpop.permute.xlu1 %1374 }
 0x3a6   : > { %3222 = vpow2.f32 %v1351_v28 }
 0x3a7   : > { %3224 = vpow2.f32 %v1361_v1 }
 0x3aa   : > { %1694 = vrot.lane.b32.xlu2 %v5339_v50, %s3670_s23  ;;  %1682 = vrot.lane.b32.xlu0 %v5339_v50, %s3669_s22 }
 0x3ab   : > { %1670 = vrot.lane.b32.xlu1 %v5339_v50, %s3668_s20 }
 0x3ac   : > { %v5424_v26 = vpop.permute.xlu2 %1476  ;;  %v5426_v43 = vpop.permute.xlu0 %1402 }
 0x3ad   : > { %v5428_v24 = vpop.permute.xlu1 %1390  ;;  %v1404_v54 = vsub.f32 %v5165_v19, %v5426_v43 }
 0x3ae   : > { %v1392_v4 = vsub.f32 %v5165_v19, %v5428_v24 }
 0x3b2   : > { %1714 = vrot.lane.b32.xlu2 %v5356_v30, %s3673_s28  ;;  %1702 = vrot.lane.b32.xlu0 %v5356_v30, %s3670_s23 }
 0x3b3   : > { %1690 = vrot.lane.b32.xlu1 %v5356_v30, %s3669_s22 }
 0x3b4   : > { %v5436_v51 = vpop.permute.xlu2 %1492  ;;  %v5440_v29 = vpop.permute.xlu0 %1422 }
 0x3b5   : > { %v5442_v57 = vpop.permute.xlu1 %1410 }
 0x3ba   : > { %1736 = vrot.lane.b32.xlu2 %v5448_v18, %s3672_s30  ;;  %1724 = vrot.lane.b32.xlu0 %v5448_v18, %s3671_s24 }
 0x3bb   : > { %1706 = vrot.lane.b32.xlu1 %v5339_v50, %s3673_s28  ;;  %v1393_v50 = vand.u32 2147483647, %v1392_v4  ;;  %v1865_v4 = vrot.slane %v5165_v19, 6 }
 0x3bc   : > { %v5456_v46 = vpop.permute.xlu2 %1520  ;;  %v5459_v0 = vpop.permute.xlu0 %1444 }
 0x3bd   : > { %v5461_v22 = vpop.permute.xlu1 %1432 }
 0x3c2   : > { %1756 = vrot.lane.b32.xlu2 %v5467_v27, %s3666_s10  ;;  %1744 = vrot.lane.b32.xlu0 %v5467_v27, %s3672_s30 }
 0x3c3   : > { %1732 = vrot.lane.b32.xlu1 %v5467_v27, %s3671_s24 }
 0x3c4   : > { %v5475_v38 = vpop.permute.xlu2 %1536  ;;  %v5477_v20 = vpop.permute.xlu0 %1464 }
 0x3c5   : > { %v5479_v60 = vpop.permute.xlu1 %1452 }
 0x3ca   : > { %1772 = vrot.lane.b32.xlu2 %v5448_v18, %s3664_s4  ;;  %1760 = vrot.lane.b32.xlu0 %v5448_v18, %s3665_s6 }
 0x3cb   : > { %1748 = vrot.lane.b32.xlu1 %v5448_v18, %s3666_s10 }
 0x3cc   : > { %v5487_v62 = vpop.permute.xlu2 %1556  ;;  %v5489_v25 = vpop.permute.xlu0 %1480 }
 0x3cd   : > { %6663 = vst [vmem:[#allocation30_spill] sm:$0xff] %v5487_v62  ;;  %v5491_v44 = vpop.permute.xlu1 %1468  ;;  %v1321_v62 = vadd.f32 %v1320_v3, %v1309_v39  ;;  %v1405_v3 = vand.u32 2147483647, %v1404_v54  ;;  %v1446_v54 = vsub.f32 %v5165_v19, %v5459_v0 }
 0x3d2   : > { %1792 = vrot.lane.b32.xlu2 %v5467_v27, %s3663_s27  ;;  %1780 = vrot.lane.b32.xlu0 %v5467_v27, %s3664_s4 }
 0x3d3   : > { %1768 = vrot.lane.b32.xlu1 %v5467_v27, %s3665_s6 }
 0x3d4   : > { %v5503_v13 = vpop.permute.xlu2 %1578  ;;  %v5507_v35 = vpop.permute.xlu0 %1500 }
 0x3d5   : > { %v5509_v8 = vpop.permute.xlu1 %1488 }
 0x3da   : > { %1816 = vrot.lane.b32.xlu2 %v5448_v18, %s3668_s20  ;;  %1804 = vrot.lane.b32.xlu0 %v5448_v18, %s3667_s19 }
 0x3db   : > { %1784 = vrot.lane.b32.xlu1 %v5448_v18, %s3663_s27 }
 0x3dc   : > { %v5519_v41 = vpop.permute.xlu2 %1598  ;;  %v5521_v37 = vpop.permute.xlu0 %1524 }
 0x3dd   : > { %6664 = vst [vmem:[#allocation36_spill] sm:$0xff] %v5519_v41  ;;  %v5523_v32 = vpop.permute.xlu1 %1512  ;;  %v1381_v41 = vand.u32 2147483647, %v1380_v45  ;;  %v1394_v45 = vmul.f32 -0.5, %v1393_v50 }
 0x3df   : > { %v1382_v28 = vmul.f32 -0.5, %v1381_v41  ;;  %v1416_v41 = vsub.f32 %v5165_v19, %v5388_v10  ;;  %v1406_v10 = vmul.f32 -0.5, %v1405_v3 }
 0x3e1   : > { %v1383_v1 = vmul.f32 1.442695, %v1382_v28 }
 0x3e2   : > { %1836 = vrot.lane.b32.xlu2 %v5467_v27, %s3669_s22  ;;  %1824 = vrot.lane.b32.xlu0 %v5467_v27, %s3668_s20 }
 0x3e3   : > { %1812 = vrot.lane.b32.xlu1 %v5467_v27, %s3667_s19 }
 0x3e4   : > { %v5537_v36 = vpop.permute.xlu2 %1614  ;;  %v5539_v9 = vpop.permute.xlu0 %1544 }
 0x3e5   : > { %6665 = vst [vmem:[#allocation26_spill] sm:$0xff] %v5539_v9  ;;  %v5541_v15 = vpop.permute.xlu1 %1532  ;;  %v1305_v9 = vadd.f32 %v3215_v14, %v3213_v2  ;;  %v1371_v14 = vmul.f32 1.442695, %v1370_v31  ;;  %v5595_v31 = vsel %vm6668_vm0, %v1864_v58, %v1865_v4 }
 0x3e7   : > { %v1317_v2 = vadd.f32 %v3217_v52, %v1305_v9  ;;  %3226 = vpow2.f32 %v1371_v14  ;;  %v1395_v52 = vmul.f32 1.442695, %v1394_v45 }
 0x3e8   : > { %3228 = vpow2.f32 %v1383_v1  ;;  %v1470_v1 = vsub.f32 %v5165_v19, %v5491_v44 }
 0x3e9   : > { %3230 = vpow2.f32 %v1395_v52 }
 0x3ea   : > { %1852 = vrot.lane.b32.xlu2 %v5448_v18, %s3673_s28  ;;  %1840 = vrot.lane.b32.xlu0 %v5448_v18, %s3670_s23 }
 0x3eb   : > { %1828 = vrot.lane.b32.xlu1 %v5448_v18, %s3669_s22  ;;  %v1867_v18 = vrot.slane %v5199_v5, 6 }
 0x3ec   : > { %v5555_v11 = vpop.permute.xlu2 %1634  ;;  %v5559_v21 = vpop.permute.xlu0 %1560 }
 0x3ed   : > { %6666 = vst [vmem:[#allocation38_spill] sm:$0xff] %v5555_v11  ;;  %v5561_v30 = vpop.permute.xlu1 %1548  ;;  %v3219_v11 = vpop.eup %3218  ;;  %v5568_v24 = vsel %vm6667_vm10, %v1867_v18, %v1868_v53 }
 0x3ee   : > { %v3221_v49 = vpop.eup %3220  ;;  %v1332_v18 = vmul.f32 %v3219_v11, %v5392_v59  ;;  %v1434_v59 = vsub.f32 %v5165_v19, %v5461_v22  ;;  %v1329_v50 = vadd.f32 %v3219_v11, %v1317_v2 }
 0x3ef   : > { %v3223_v7 = vpop.eup %3222  ;;  %v1344_v39 = vmul.f32 %v3221_v49, %v5390_v23 }
 0x3f0   : > { %v1333_v53 = vadd.f32 %v1332_v18, %v1321_v62  ;;  %v1356_v9 = vmul.f32 %v3223_v7, %v5347_v40  ;;  %v3225_v62 = vpop.eup %3224  ;;  %v1435_v22 = vand.u32 2147483647, %v1434_v59  ;;  %v1341_v11 = vadd.f32 %v3221_v49, %v1329_v50 }
 0x3f1   : > { %v1364_v2 = vmul.f32 %v3225_v62, %v5207_v42  ;;  %v3227_v45 = vpop.eup %3226  ;;  %v1458_v59 = vsub.f32 %v5165_v19, %v5412_v17  ;;  %v1447_v49 = vand.u32 2147483647, %v1446_v54 }
 0x3f2   : > { %1878 = vrot.lane.b32.xlu2 %v5568_v24, %s3671_s24  ;;  %1860 = vrot.lane.b32.xlu0 %v5467_v27, %s3673_s28  ;;  %v1345_v18 = vadd.f32 %v1344_v39, %v1333_v53  ;;  %v1353_v4 = vadd.f32 %v3223_v7, %v1341_v11  ;;  %v1407_v53 = vmul.f32 1.442695, %v1406_v10  ;;  %v3229_v0 = vpop.eup %3228  ;;  %v1482_v11 = vsub.f32 %v5165_v19, %v5489_v25 }
 0x3f3   : > { %1848 = vrot.lane.b32.xlu1 %v5467_v27, %s3670_s23  ;;  %v1417_v27 = vand.u32 2147483647, %v1416_v41  ;;  %v1436_v41 = vmul.f32 -0.5, %v1435_v22  ;;  %v3231_v42 = vpop.eup %3230  ;;  %v1459_v50 = vand.u32 2147483647, %v1458_v59  ;;  %v1448_v52 = vmul.f32 -0.5, %v1447_v49 }
 0x3f4   : > { %v5579_v34 = vpop.permute.xlu2 %1658  ;;  %v5582_v43 = vpop.permute.xlu0 %1586  ;;  %v1357_v40 = vadd.f32 %v1356_v9, %v1345_v18  ;;  %v1376_v9 = vmul.f32 %v3227_v45, %v5416_v48  ;;  %3232 = vpow2.f32 %v1407_v53  ;;  %v1471_v18 = vand.u32 2147483647, %v1470_v1 }
 0x3f5   : > { %v5584_v63 = vpop.permute.xlu1 %1568  ;;  %v1418_v14 = vmul.f32 -0.5, %v1417_v27  ;;  %v1363_v27 = vadd.f32 %v3225_v62, %v1353_v4  ;;  %v1437_v7 = vmul.f32 1.442695, %v1436_v41  ;;  %v1388_v62 = vmul.f32 %v3229_v0, %v5414_v47 }
 0x3f6   : > { %v1365_v3 = vadd.f32 %v1364_v2, %v1357_v40  ;;  %v1400_v22 = vmul.f32 %v3231_v42, %v5376_v55  ;;  %v1460_v2 = vmul.f32 -0.5, %v1459_v50  ;;  %v1449_v4 = vmul.f32 1.442695, %v1448_v52 }
 0x3f7   : > { %v1419_v39 = vmul.f32 1.442695, %v1418_v14  ;;  %v1373_v40 = vadd.f32 %v3227_v45, %v1363_v27  ;;  %v1472_v53 = vmul.f32 -0.5, %v1471_v18  ;;  %v1494_v47 = vsub.f32 %v5165_v19, %v5436_v51 }
 0x3f8   : > { %v1377_v17 = vadd.f32 %v1376_v9, %v1365_v3  ;;  %v1483_v59 = vand.u32 2147483647, %v1482_v11  ;;  %v1461_v25 = vmul.f32 1.442695, %v1460_v2  ;;  %v1504_v27 = vsub.f32 %v5165_v19, %v5289_v16 }
 0x3f9   : > { %3234 = vpow2.f32 %v1419_v39  ;;  %v1385_v3 = vadd.f32 %v3229_v0, %v1373_v40  ;;  %v1473_v0 = vmul.f32 1.442695, %v1472_v53  ;;  %v1514_v52 = vsub.f32 %v5165_v19, %v5523_v32 }
 0x3fa   : > { %1894 = vrot.lane.b32.xlu2 %v5595_v31, %s3666_s10  ;;  %1882 = vrot.lane.b32.xlu0 %v5595_v31, %s3672_s30  ;;  %3236 = vpow2.f32 %v1437_v7  ;;  %v1389_v54 = vadd.f32 %v1388_v62, %v1377_v17  ;;  %v3233_v14 = vpop.eup %3232  ;;  %v1495_v17 = vand.u32 2147483647, %v1494_v47  ;;  %v1484_v50 = vmul.f32 -0.5, %v1483_v59 }
 0x3fb   : > { %1870 = vrot.lane.b32.xlu1 %v5595_v31, %s3671_s24  ;;  %v1412_v45 = vmul.f32 %v3233_v14, %v5442_v57  ;;  %v1397_v39 = vadd.f32 %v3231_v42, %v1385_v3  ;;  %3238 = vpow2.f32 %v1449_v4  ;;  %v1505_v62 = vand.u32 2147483647, %v1504_v27 }
 0x3fc   : > { %v5603_v23 = vpop.permute.xlu2 %1678  ;;  %v5607_v28 = vpop.permute.xlu0 %1602  ;;  %v1401_v41 = vadd.f32 %v1400_v22, %v1389_v54  ;;  %3240 = vpow2.f32 %v1461_v25  ;;  %v1496_v16 = vmul.f32 -0.5, %v1495_v17  ;;  %v1485_v11 = vmul.f32 1.442695, %v1484_v50 }
 0x3fd   : > { %v5609_v58 = vpop.permute.xlu1 %1590  ;;  %v1409_v18 = vadd.f32 %v3233_v14, %v1397_v39  ;;  %3242 = vpow2.f32 %v1473_v0  ;;  %v1515_v54 = vand.u32 2147483647, %v1514_v52  ;;  %v1526_v2 = vsub.f32 %v5165_v19, %v5521_v37 }
 0x3fe   : > { %v1413_v7 = vadd.f32 %v1412_v45, %v1401_v41  ;;  %v1506_v41 = vmul.f32 -0.5, %v1505_v62  ;;  %v1497_v59 = vmul.f32 1.442695, %v1496_v16  ;;  %3244 = vpow2.f32 %v1485_v11 }
 0x3ff   : > { %v3235_v55 = vpop.eup %3234  ;;  %v1516_v45 = vmul.f32 -0.5, %v1515_v54  ;;  %v1527_v0 = vand.u32 2147483647, %v1526_v2  ;;  %v1550_v37 = vsub.f32 %v5165_v19, %v5561_v30 }
 0x400   : > { %v3237_v1 = vpop.eup %3236  ;;  %v1424_v57 = vmul.f32 %v3235_v55, %v5440_v29  ;;  %v1507_v27 = vmul.f32 1.442695, %v1506_v41  ;;  %3246 = vpow2.f32 %v1497_v59  ;;  %v1580_v41 = vsub.f32 %v5165_v19, %v5503_v13 }
 0x401   : > { %v1442_v42 = vmul.f32 %v3237_v1, %v5400_v12  ;;  %v3239_v40 = vpop.eup %3238  ;;  %v1421_v12 = vadd.f32 %v3235_v55, %v1409_v18  ;;  %v1538_v55 = vsub.f32 %v5165_v19, %v5475_v38  ;;  %v2010_v13 = vrot.slane %v5161_v6, 7 }
 0x402   : > { %1914 = vrot.lane.b32.xlu2 %v5568_v24, %s3665_s6  ;;  %1902 = vrot.lane.b32.xlu0 %v5568_v24, %s3666_s10  ;;  %v1425_v22 = vadd.f32 %v1424_v57, %v1413_v7  ;;  %v3241_v53 = vpop.eup %3240  ;;  %v1454_v3 = vmul.f32 %v3239_v40, %v5479_v60  ;;  %v1551_v57 = vand.u32 2147483647, %v1550_v37  ;;  %3248 = vpow2.f32 %v1507_v27 }
 0x403   : > { %1890 = vrot.lane.b32.xlu1 %v5568_v24, %s3672_s30  ;;  %v3243_v47 = vpop.eup %3242  ;;  %v1439_v25 = vadd.f32 %v3237_v1, %v1421_v12  ;;  %v1466_v7 = vmul.f32 %v3241_v53, %v5477_v20  ;;  %v1517_v1 = vmul.f32 1.442695, %v1516_v45  ;;  %v1539_v50 = vand.u32 2147483647, %v1538_v55 }
 0x404   : > { %v5623_v44 = vpop.permute.xlu2 %1694  ;;  %v5625_v48 = vpop.permute.xlu0 %1622  ;;  %v1443_v29 = vadd.f32 %v1442_v42, %v1425_v22  ;;  %v1478_v17 = vmul.f32 %v3243_v47, %v5424_v26  ;;  %v1528_v20 = vmul.f32 -0.5, %v1527_v0  ;;  %v1562_v22 = vsub.f32 %v5165_v19, %v5559_v21 }
 0x405   : > { %v5627_v10 = vpop.permute.xlu1 %1610  ;;  %v1451_v60 = vadd.f32 %v3239_v40, %v1439_v25  ;;  %v3245_v52 = vpop.eup %3244  ;;  %3250 = vpow2.f32 %v1517_v1  ;;  %v1540_v40 = vmul.f32 -0.5, %v1539_v50  ;;  %v1552_v12 = vmul.f32 -0.5, %v1551_v57 }
 0x406   : > { %v1455_v39 = vadd.f32 %v1454_v3, %v1443_v29  ;;  %v1490_v16 = vmul.f32 %v3245_v52, %v5509_v8  ;;  %v3247_v11 = vpop.eup %3246  ;;  %v1529_v29 = vmul.f32 1.442695, %v1528_v20  ;;  %v1563_v3 = vand.u32 2147483647, %v1562_v22 }
 0x407   : > { %v1463_v62 = vadd.f32 %v3241_v53, %v1451_v60  ;;  %v1592_v53 = vsub.f32 %v5165_v19, %v5609_v58  ;;  %v1541_v21 = vmul.f32 1.442695, %v1540_v40  ;;  %v2011_v0 = vrot.slane %v5165_v19, 7 }
 0x408   : > { %v1467_v38 = vadd.f32 %v1466_v7, %v1455_v39  ;;  %v3249_v8 = vpop.eup %3248  ;;  %3252 = vpow2.f32 %v1529_v29  ;;  %v1553_v39 = vmul.f32 1.442695, %v1552_v12  ;;  %v1581_v27 = vand.u32 2147483647, %v1580_v41 }
 0x409   : > { %v1475_v54 = vadd.f32 %v3243_v47, %v1463_v62  ;;  %v1502_v47 = vmul.f32 %v3247_v11, %v5507_v35  ;;  %v1564_v7 = vmul.f32 -0.5, %v1563_v3  ;;  %v1510_v35 = vmul.f32 %v3249_v8, %v5275_v33 }
 0x40a   : > { %1930 = vrot.lane.b32.xlu2 %v5595_v31, %s3663_s27  ;;  %1918 = vrot.lane.b32.xlu0 %v5595_v31, %s3664_s4  ;;  %v1479_v18 = vadd.f32 %v1478_v17, %v1467_v38  ;;  %v1593_v17 = vand.u32 2147483647, %v1592_v53  ;;  %3254 = vpow2.f32 %v1541_v21  ;;  %v1604_v1 = vsub.f32 %v5165_v19, %v5607_v28 }
 0x40b   : > { %1906 = vrot.lane.b32.xlu1 %v5595_v31, %s3665_s6  ;;  %v3251_v25 = vpop.eup %3250  ;;  %v1487_v45 = vadd.f32 %v3245_v52, %v1475_v54  ;;  %3256 = vpow2.f32 %v1553_v39  ;;  %v5715_v38 = vsel %vm6669_vm1, %v2010_v13, %v2011_v0  ;;  %v1582_v52 = vmul.f32 -0.5, %v1581_v27  ;;  %v6671_v13 = vld [vmem:[#allocation26_spill] sm:$0xff] }
 0x40c   : > { %v5642_v49 = vpop.permute.xlu2 %1714  ;;  %v5644_v9 = vpop.permute.xlu0 %1638  ;;  %v1491_v2 = vadd.f32 %v1490_v16, %v1479_v18  ;;  %v1522_v60 = vmul.f32 %v3251_v25, %v5456_v46  ;;  %v1565_v57 = vmul.f32 1.442695, %v1564_v7  ;;  %v1594_v33 = vmul.f32 -0.5, %v1593_v17  ;;  %v6672_v39 = vld [vmem:[#allocation30_spill] sm:$0xff] }
 0x40d   : > { %v5646_v51 = vpop.permute.xlu1 %1626  ;;  %v1499_v6 = vadd.f32 %v3247_v11, %v1487_v45  ;;  %v1616_v28 = vsub.f32 %v5165_v19, %v5537_v36  ;;  %v2013_v62 = vrot.slane %v5199_v5, 7  ;;  %v1605_v40 = vand.u32 2147483647, %v1604_v1 }
 0x40e   : > { %v1503_v37 = vadd.f32 %v1502_v47, %v1491_v2  ;;  %v3253_v20 = vpop.eup %3252  ;;  %v1628_v16 = vsub.f32 %v5165_v19, %v5646_v51  ;;  %v2014_v29 = vrot.slane %v5201_v56, 7  ;;  %v1583_v2 = vmul.f32 1.442695, %v1582_v52  ;;  %v5756_v52 = vld [vmem:[#allocation2 + $0x10] sm:$0xff] }
 0x40f   : > { %v1509_v22 = vadd.f32 %v3249_v8, %v1499_v6  ;;  %v1534_v41 = vmul.f32 %v3253_v20, %v5541_v15  ;;  %3258 = vpow2.f32 %v1565_v57  ;;  %v1595_v53 = vmul.f32 1.442695, %v1594_v33 }
 0x410   : > { %v1511_v50 = vadd.f32 %v1510_v35, %v1503_v37  ;;  %v3255_v12 = vpop.eup %3254  ;;  %v1617_v8 = vand.u32 2147483647, %v1616_v28  ;;  %v1606_v21 = vmul.f32 -0.5, %v1605_v40  ;;  %v1629_v47 = vand.u32 2147483647, %v1628_v16 }
 0x411   : > { %v3257_v36 = vpop.eup %3256  ;;  %v1519_v3 = vadd.f32 %v3251_v25, %v1509_v22  ;;  %v5738_v51 = vsel %vm6670_vm3, %v2013_v62, %v2014_v29  ;;  %3260 = vpow2.f32 %v1583_v2  ;;  %v1546_v45 = vmul.f32 %v3255_v12, %v6671_v13 }
 0x412   : > { %1958 = vrot.lane.b32.xlu2 %v5568_v24, %s3667_s19  ;;  %1938 = vrot.lane.b32.xlu0 %v5568_v24, %s3663_s27  ;;  %v1523_v46 = vadd.f32 %v1522_v60, %v1511_v50  ;;  %v1558_v0 = vmul.f32 %v3257_v36, %v6672_v39  ;;  %3262 = vpow2.f32 %v1595_v53  ;;  %v1640_v25 = vsub.f32 %v5165_v19, %v5644_v9  ;;  %v6673_v9 = vld [vmem:[#allocation25_spill] sm:$0xff] }
 0x413   : > { %1926 = vrot.lane.b32.xlu1 %v5568_v24, %s3664_s4  ;;  %v1531_v15 = vadd.f32 %v3253_v20, %v1519_v3  ;;  %v1618_v27 = vmul.f32 -0.5, %v1617_v8  ;;  %v1607_v35 = vmul.f32 1.442695, %v1606_v21  ;;  %v1630_v60 = vmul.f32 -0.5, %v1629_v47 }
 0x414   : > { %v5660_v32 = vpop.permute.xlu2 %1736  ;;  %v5664_v14 = vpop.permute.xlu0 %1666  ;;  %v1535_v5 = vadd.f32 %v1534_v41, %v1523_v46  ;;  %v1650_v20 = vsub.f32 %v5756_v52, %v6673_v9  ;;  %v1641_v33 = vand.u32 2147483647, %v1640_v25  ;;  %v1660_v2 = vsub.f32 %v5756_v52, %v5579_v34 }
 0x415   : > { %v5666_v4 = vpop.permute.xlu1 %1646  ;;  %v3259_v17 = vpop.eup %3258  ;;  %v1543_v57 = vadd.f32 %v3255_v12, %v1531_v15  ;;  %v1619_v28 = vmul.f32 1.442695, %v1618_v27  ;;  %3264 = vpow2.f32 %v1607_v35  ;;  %v1631_v16 = vmul.f32 1.442695, %v1630_v60 }
 0x416   : > { %v1547_v37 = vadd.f32 %v1546_v45, %v1535_v5  ;;  %v1570_v62 = vmul.f32 %v3259_v17, %v5584_v63  ;;  %v1651_v41 = vand.u32 2147483647, %v1650_v20  ;;  %v1642_v3 = vmul.f32 -0.5, %v1641_v33 }
 0x417   : > { %v3261_v46 = vpop.eup %3260  ;;  %v1555_v40 = vadd.f32 %v3257_v36, %v1543_v57  ;;  %3266 = vpow2.f32 %v1619_v28  ;;  %v6674_v36 = vld [vmem:[#allocation36_spill] sm:$0xff]  ;;  %v1661_v47 = vand.u32 2147483647, %v1660_v2 }
 0x418   : > { %v1559_v50 = vadd.f32 %v1558_v0, %v1547_v37  ;;  %v3263_v22 = vpop.eup %3262  ;;  %v1588_v63 = vmul.f32 %v3261_v46, %v5582_v43  ;;  %3268 = vpow2.f32 %v1631_v16  ;;  %v1652_v45 = vmul.f32 -0.5, %v1651_v41 }
 0x419   : > { %v1600_v53 = vmul.f32 %v3263_v22, %v6674_v36  ;;  %v1567_v5 = vadd.f32 %v3259_v17, %v1555_v40  ;;  %v1643_v39 = vmul.f32 1.442695, %v1642_v3  ;;  %v1662_v27 = vmul.f32 -0.5, %v1661_v47  ;;  %v6675_v40 = vld [vmem:[#allocation38_spill] sm:$0xff] }
 0x41a   : > { %1974 = vrot.lane.b32.xlu2 %v5595_v31, %s3669_s22  ;;  %1962 = vrot.lane.b32.xlu0 %v5595_v31, %s3668_s20  ;;  %v1571_v29 = vadd.f32 %v1570_v62, %v1559_v50  ;;  %v1653_v60 = vmul.f32 1.442695, %v1652_v45 }
 0x41b   : > { %1950 = vrot.lane.b32.xlu1 %v5595_v31, %s3667_s19  ;;  %v3265_v13 = vpop.eup %3264  ;;  %v1585_v25 = vadd.f32 %v3261_v46, %v1567_v5  ;;  %3270 = vpow2.f32 %v1643_v39  ;;  %v1663_v62 = vmul.f32 1.442695, %v1662_v27 }
 0x41c   : > { %v5681_v30 = vpop.permute.xlu2 %1756  ;;  %v5683_v26 = vpop.permute.xlu0 %1682  ;;  %v1612_v17 = vmul.f32 %v3265_v13, %v5627_v10  ;;  %3272 = vpow2.f32 %v1653_v60 }
 0x41d   : > { %v5685_v42 = vpop.permute.xlu1 %1670  ;;  %v1684_v43 = vsub.f32 %v5756_v52, %v5683_v26  ;;  %v3267_v37 = vpop.eup %3266  ;;  %v1597_v50 = vadd.f32 %v3263_v22, %v1585_v25  ;;  %v1696_v26 = vsub.f32 %v5756_v52, %v5623_v44  ;;  %3274 = vpow2.f32 %v1663_v62 }
 0x41e   : > { %v1672_v12 = vsub.f32 %v5756_v52, %v5685_v42  ;;  %v1589_v42 = vadd.f32 %v1588_v63, %v1571_v29  ;;  %v3269_v35 = vpop.eup %3268  ;;  %v1624_v22 = vmul.f32 %v3267_v37, %v5625_v48 }
 0x41f   : > { %v1685_v10 = vand.u32 2147483647, %v1684_v43  ;;  %v1636_v16 = vmul.f32 %v3269_v35, %v6675_v40  ;;  %v1609_v29 = vadd.f32 %v3265_v13, %v1597_v50  ;;  %v1697_v44 = vand.u32 2147483647, %v1696_v26 }
 0x420   : > { %v1673_v0 = vand.u32 2147483647, %v1672_v12  ;;  %v1601_v15 = vadd.f32 %v1600_v53, %v1589_v42 }
 0x421   : > { %v3271_v3 = vpop.eup %3270  ;;  %v1686_v12 = vmul.f32 -0.5, %v1685_v10  ;;  %v1698_v53 = vmul.f32 -0.5, %v1697_v44 }
 0x422   : > { %1994 = vrot.lane.b32.xlu2 %v5568_v24, %s3670_s23  ;;  %1982 = vrot.lane.b32.xlu0 %v5568_v24, %s3669_s22  ;;  %v1674_v9 = vmul.f32 -0.5, %v1673_v0  ;;  %v1613_v20 = vadd.f32 %v1612_v17, %v1601_v15  ;;  %v1648_v5 = vmul.f32 %v3271_v3, %v5666_v4  ;;  %v3273_v47 = vpop.eup %3272  ;;  %v6676_v17 = vld [vmem:[#allocation27_spill] sm:$0xff] }
 0x423   : > { %1970 = vrot.lane.b32.xlu1 %v5568_v24, %s3668_s20  ;;  %v1687_v45 = vmul.f32 1.442695, %v1686_v12  ;;  %v3275_v27 = vpop.eup %3274  ;;  %v1656_v4 = vmul.f32 %v3273_v47, %v6676_v17  ;;  %v1699_v60 = vmul.f32 1.442695, %v1698_v53 }
 0x424   : > { %v5701_v59 = vpop.permute.xlu2 %1772  ;;  %v5704_v55 = vpop.permute.xlu0 %1702  ;;  %v1675_v2 = vmul.f32 1.442695, %v1674_v9  ;;  %v1625_v41 = vadd.f32 %v1624_v22, %v1613_v20 }
 0x425   : > { %v5706_v58 = vpop.permute.xlu1 %1690 }
 0x426   : > { %v1637_v36 = vadd.f32 %v1636_v16, %v1625_v41  ;;  %3276 = vpow2.f32 %v1675_v2 }
 0x427   : > { %3278 = vpow2.f32 %v1687_v45 }
 0x428   : > { %v1649_v25 = vadd.f32 %v1648_v5, %v1637_v36  ;;  %3280 = vpow2.f32 %v1699_v60 }
 0x42a   : > { %2016 = vrot.lane.b32.xlu2 %v5715_v38, %s3671_s24  ;;  %1998 = vrot.lane.b32.xlu0 %v5595_v31, %s3673_s28  ;;  %v1657_v20 = vadd.f32 %v1656_v4, %v1649_v25 }
 0x42b   : > { %1986 = vrot.lane.b32.xlu1 %v5595_v31, %s3670_s23 }
 0x42c   : > { %v5725_v18 = vpop.permute.xlu2 %1792  ;;  %v5730_v11 = vpop.permute.xlu0 %1724 }
 0x42d   : > { %v5732_v54 = vpop.permute.xlu1 %1706  ;;  %v1726_v48 = vsub.f32 %v5756_v52, %v5730_v11  ;;  %v1738_v11 = vsub.f32 %v5756_v52, %v5660_v32  ;;  %v3277_v50 = vpop.eup %3276  ;;  %v1668_v32 = vmul.f32 %v3275_v27, %v5664_v14 }
 0x42e   : > { %v1708_v33 = vsub.f32 %v5756_v52, %v5732_v54  ;;  %v1621_v54 = vadd.f32 %v3267_v37, %v1609_v29  ;;  %v3279_v44 = vpop.eup %3278 }
 0x42f   : > { %v1727_v43 = vand.u32 2147483647, %v1726_v48  ;;  %v1739_v26 = vand.u32 2147483647, %v1738_v11  ;;  %v1669_v2 = vadd.f32 %v1668_v32, %v1657_v20  ;;  %v3281_v48 = vpop.eup %3280 }
 0x430   : > { %v1709_v63 = vand.u32 2147483647, %v1708_v33  ;;  %v1633_v13 = vadd.f32 %v3269_v35, %v1621_v54 }
 0x431   : > { %v1728_v10 = vmul.f32 -0.5, %v1727_v43  ;;  %v1740_v41 = vmul.f32 -0.5, %v1739_v26  ;;  %v1704_v43 = vmul.f32 %v3281_v48, %v5704_v55 }
 0x432   : > { %2036 = vrot.lane.b32.xlu2 %v5738_v51, %s3672_s30  ;;  %2024 = vrot.lane.b32.xlu0 %v5738_v51, %s3671_s24  ;;  %v1710_v39 = vmul.f32 -0.5, %v1709_v63  ;;  %v1645_v9 = vadd.f32 %v3271_v3, %v1633_v13 }
 0x433   : > { %2006 = vrot.lane.b32.xlu1 %v5568_v24, %s3673_s28  ;;  %v1729_v3 = vmul.f32 1.442695, %v1728_v10  ;;  %v1741_v53 = vmul.f32 1.442695, %v1740_v41 }
 0x434   : > { %v5750_v7 = vpop.permute.xlu2 %1816  ;;  %v5752_v6 = vpop.permute.xlu0 %1744  ;;  %v1711_v35 = vmul.f32 1.442695, %v1710_v39  ;;  %v1655_v22 = vadd.f32 %v3273_v47, %v1645_v9 }
 0x435   : > { %v5754_v1 = vpop.permute.xlu1 %1732 }
 0x436   : > { %3282 = vpow2.f32 %v1711_v35  ;;  %v1665_v14 = vadd.f32 %v3275_v27, %v1655_v22  ;;  %v6677_v27 = vld [vmem:[#allocation35_spill] sm:$0xff] }
 0x437   : > { %3284 = vpow2.f32 %v1729_v3  ;;  %v1796_v17 = vsub.f32 %v5756_v52, %v6677_v27 }
 0x438   : > { %v1677_v47 = vadd.f32 %v3277_v50, %v1665_v14  ;;  %3286 = vpow2.f32 %v1741_v53 }
 0x439   : > { %v1797_v10 = vand.u32 2147483647, %v1796_v17 }
 0x43a   : > { %2052 = vrot.lane.b32.xlu2 %v5715_v38, %s3665_s6  ;;  %2040 = vrot.lane.b32.xlu0 %v5715_v38, %s3666_s10  ;;  %v1689_v4 = vadd.f32 %v3279_v44, %v1677_v47 }
 0x43b   : > { %2028 = vrot.lane.b32.xlu1 %v5715_v38, %s3672_s30 }
 0x43c   : > { %v5773_v34 = vpop.permute.xlu2 %1836  ;;  %v5775_v8 = vpop.permute.xlu0 %1760 }
 0x43d   : > { %v5777_v21 = vpop.permute.xlu1 %1748  ;;  %v1762_v40 = vsub.f32 %v5756_v52, %v5775_v8  ;;  %v1692_v8 = vmul.f32 %v3279_v44, %v5706_v58  ;;  %v3283_v5 = vpop.eup %3282 }
 0x43e   : > { %v1750_v37 = vsub.f32 %v5756_v52, %v5777_v21  ;;  %v1680_v21 = vmul.f32 %v3277_v50, %v5603_v23  ;;  %v1774_v23 = vsub.f32 %v5756_v52, %v5701_v59  ;;  %v3285_v9 = vpop.eup %3284 }
 0x43f   : > { %v1763_v36 = vand.u32 2147483647, %v1762_v40 }
 0x440   : > { %v1751_v33 = vand.u32 2147483647, %v1750_v37  ;;  %v1681_v63 = vadd.f32 %v1680_v21, %v1669_v2  ;;  %v1775_v45 = vand.u32 2147483647, %v1774_v23  ;;  %v1716_v37 = vmul.f32 %v3283_v5, %v5642_v49  ;;  %v3287_v49 = vpop.eup %3286 }
 0x441   : > { %v1734_v21 = vmul.f32 %v3285_v9, %v5754_v1  ;;  %v1746_v1 = vmul.f32 %v3287_v49, %v5752_v6 }
 0x442   : > { %2072 = vrot.lane.b32.xlu2 %v5738_v51, %s3664_s4  ;;  %2060 = vrot.lane.b32.xlu0 %v5738_v51, %s3665_s6  ;;  %v1752_v12 = vmul.f32 -0.5, %v1751_v33  ;;  %v1693_v59 = vadd.f32 %v1692_v8, %v1681_v63  ;;  %v1776_v50 = vmul.f32 -0.5, %v1775_v45  ;;  %v1701_v33 = vadd.f32 %v3281_v48, %v1689_v4 }
 0x443   : > { %2048 = vrot.lane.b32.xlu1 %v5738_v51, %s3666_s10  ;;  %v1798_v63 = vmul.f32 -0.5, %v1797_v10 }
 0x444   : > { %v5790_v57 = vpop.permute.xlu2 %1852  ;;  %v5794_v46 = vpop.permute.xlu0 %1780  ;;  %v1753_v13 = vmul.f32 1.442695, %v1752_v12  ;;  %v1705_v60 = vadd.f32 %v1704_v43, %v1693_v59  ;;  %v1777_v32 = vmul.f32 1.442695, %v1776_v50  ;;  %v1713_v2 = vadd.f32 %v3283_v5, %v1701_v33 }
 0x445   : > { %v5796_v28 = vpop.permute.xlu1 %1768  ;;  %v1818_v12 = vsub.f32 %v5756_v52, %v5750_v7  ;;  %v1799_v5 = vmul.f32 1.442695, %v1798_v63  ;;  %v1854_v50 = vsub.f32 %v5756_v52, %v5790_v57 }
 0x446   : > { %3288 = vpow2.f32 %v1753_v13  ;;  %v1717_v26 = vadd.f32 %v1716_v37, %v1705_v60 }
 0x447   : > { %v1819_v53 = vand.u32 2147483647, %v1818_v12  ;;  %v1855_v33 = vand.u32 2147483647, %v1854_v50 }
 0x449   : > { %v1856_v63 = vmul.f32 -0.5, %v1855_v33 }
 0x44a   : > { %2096 = vrot.lane.b32.xlu2 %v5715_v38, %s3667_s19  ;;  %2076 = vrot.lane.b32.xlu0 %v5715_v38, %s3663_s27 }
 0x44b   : > { %2064 = vrot.lane.b32.xlu1 %v5715_v38, %s3664_s4 }
 0x44c   : > { %v5809_v42 = vpop.permute.xlu2 %1878  ;;  %v5811_v0 = vpop.permute.xlu0 %1804 }
 0x44d   : > { %v1785_v15 = vpop.permute.xlu1 %1784  ;;  %v1806_v55 = vsub.f32 %v5756_v52, %v5811_v0  ;;  %v3289_v40 = vpop.eup %3288  ;;  %v1735_v0 = vadd.f32 %v1734_v21, %v1717_v26 }
 0x44e   : > { %v1786_v54 = vsub.f32 %v5756_v52, %v1785_v15  ;;  %v1764_v15 = vmul.f32 -0.5, %v1763_v36  ;;  %v1758_v36 = vmul.f32 %v3289_v40, %v5681_v30 }
 0x44f   : > { %v1807_v23 = vand.u32 2147483647, %v1806_v55  ;;  %v1747_v48 = vadd.f32 %v1746_v1, %v1735_v0  ;;  %v6678_v0 = vld [vmem:[#allocation37_spill] sm:$0xff] }
 0x450   : > { %v1787_v25 = vand.u32 2147483647, %v1786_v54  ;;  %v1765_v35 = vmul.f32 1.442695, %v1764_v15  ;;  %v1731_v54 = vadd.f32 %v3285_v9, %v1713_v2 }
 0x451   : > { %v1808_v47 = vmul.f32 -0.5, %v1807_v23  ;;  %v1759_v6 = vadd.f32 %v1758_v36, %v1747_v48 }
 0x452   : > { %2116 = vrot.lane.b32.xlu2 %v5738_v51, %s3668_s20  ;;  %2104 = vrot.lane.b32.xlu0 %v5738_v51, %s3667_s19  ;;  %v1788_v20 = vmul.f32 -0.5, %v1787_v25  ;;  %3290 = vpow2.f32 %v1765_v35  ;;  %v1743_v30 = vadd.f32 %v3287_v49, %v1731_v54 }
 0x453   : > { %2084 = vrot.lane.b32.xlu1 %v5738_v51, %s3663_s27  ;;  %3292 = vpow2.f32 %v1777_v32  ;;  %v1809_v17 = vmul.f32 1.442695, %v1808_v47 }
 0x454   : > { %v5826_v62 = vpop.permute.xlu2 %1894  ;;  %v5830_v16 = vpop.permute.xlu0 %1824  ;;  %v1789_v41 = vmul.f32 1.442695, %v1788_v20  ;;  %v1755_v27 = vadd.f32 %v3289_v40, %v1743_v30 }
 0x455   : > { %v5832_v29 = vpop.permute.xlu1 %1812  ;;  %v1896_v48 = vsub.f32 %v5756_v52, %v5826_v62 }
 0x456   : > { %3294 = vpow2.f32 %v1789_v41 }
 0x457   : > { %3296 = vpow2.f32 %v1799_v5  ;;  %v1857_v5 = vmul.f32 1.442695, %v1856_v63 }
 0x458   : > { %v3291_v8 = vpop.eup %3290  ;;  %3298 = vpow2.f32 %v1809_v17 }
 0x459   : > { %v3293_v25 = vpop.eup %3292  ;;  %v1770_v43 = vmul.f32 %v3291_v8, %v5796_v28  ;;  %v1767_v28 = vadd.f32 %v3291_v8, %v1755_v27 }
 0x45a   : > { %2132 = vrot.lane.b32.xlu2 %v5715_v38, %s3670_s23  ;;  %2120 = vrot.lane.b32.xlu0 %v5715_v38, %s3669_s22 }
 0x45b   : > { %2108 = vrot.lane.b32.xlu1 %v5715_v38, %s3668_s20  ;;  %v1771_v60 = vadd.f32 %v1770_v43, %v1759_v6  ;;  %v1779_v2 = vadd.f32 %v3293_v25, %v1767_v28 }
 0x45c   : > { %v5844_v39 = vpop.permute.xlu2 %1914  ;;  %v5846_v58 = vpop.permute.xlu0 %1840 }
 0x45d   : > { %v1829_v11 = vpop.permute.xlu1 %1828  ;;  %v1842_v59 = vsub.f32 %v5756_v52, %v5846_v58  ;;  %v3295_v37 = vpop.eup %3294  ;;  %v1782_v58 = vmul.f32 %v3293_v25, %v5794_v46  ;;  %v1897_v25 = vand.u32 2147483647, %v1896_v48 }
 0x45e   : > { %v1830_v14 = vsub.f32 %v5756_v52, %v1829_v11  ;;  %v1820_v11 = vmul.f32 -0.5, %v1819_v53  ;;  %v1794_v26 = vmul.f32 %v3295_v37, %v5725_v18  ;;  %v3297_v49 = vpop.eup %3296 }
 0x45f   : > { %v1843_v9 = vand.u32 2147483647, %v1842_v59  ;;  %v1783_v57 = vadd.f32 %v1782_v58, %v1771_v60  ;;  %v1802_v12 = vmul.f32 %v3297_v49, %v6678_v0  ;;  %v3299_v23 = vpop.eup %3298  ;;  %v1898_v50 = vmul.f32 -0.5, %v1897_v25 }
 0x460   : > { %v1831_v7 = vand.u32 2147483647, %v1830_v14  ;;  %v1821_v20 = vmul.f32 1.442695, %v1820_v11  ;;  %v1791_v14 = vadd.f32 %v3295_v37, %v1779_v2  ;;  %v1814_v47 = vmul.f32 %v3299_v23, %v5832_v29 }
 0x461   : > { %v1844_v46 = vmul.f32 -0.5, %v1843_v9  ;;  %v1795_v40 = vadd.f32 %v1794_v26, %v1783_v57  ;;  %v2280_v58 = vrot.slane %v5756_v52, 1 }
 0x462   : > { %2152 = vrot.lane.b32.xlu2 %v5738_v51, %s3673_s28  ;;  %2140 = vrot.lane.b32.xlu0 %v5738_v51, %s3670_s23  ;;  %v1832_v4 = vmul.f32 -0.5, %v1831_v7  ;;  %3300 = vpow2.f32 %v1821_v20  ;;  %v1801_v30 = vadd.f32 %v3297_v49, %v1791_v14  ;;  %v5930_v49 = vld [vmem:[#allocation2 + $0x18] sm:$0xff] }
 0x463   : > { %2128 = vrot.lane.b32.xlu1 %v5738_v51, %s3669_s22  ;;  %v1845_v1 = vmul.f32 1.442695, %v1844_v46  ;;  %v1803_v54 = vadd.f32 %v1802_v12, %v1795_v40  ;;  %v2281_v46 = vrot.slane %v5930_v49, 1  ;;  %v1899_v40 = vmul.f32 1.442695, %v1898_v50 }
 0x464   : > { %v5861_v22 = vpop.permute.xlu2 %1930  ;;  %v5863_v44 = vpop.permute.xlu0 %1860  ;;  %v1833_v10 = vmul.f32 1.442695, %v1832_v4  ;;  %v1811_v29 = vadd.f32 %v3299_v23, %v1801_v30 }
 0x465   : > { %v5865_v3 = vpop.permute.xlu1 %1848  ;;  %v1932_v28 = vsub.f32 %v5756_v52, %v5861_v22  ;;  %v1942_v22 = vsub.f32 %v5756_v52, %v5595_v31 }
 0x466   : > { %3302 = vpow2.f32 %v1833_v10 }
 0x467   : > { %3304 = vpow2.f32 %v1845_v1  ;;  %v1933_v23 = vand.u32 2147483647, %v1932_v28  ;;  %v5938_v1 = vsel %vm6679_vm4, %v2280_v58, %v2281_v46  ;;  %v1943_v48 = vand.u32 2147483647, %v1942_v22 }
 0x468   : > { %v3301_v8 = vpop.eup %3300  ;;  %3306 = vpow2.f32 %v1857_v5 }
 0x469   : > { %v1826_v37 = vmul.f32 %v3301_v8, %v5830_v16  ;;  %v1823_v26 = vadd.f32 %v3301_v8, %v1811_v29  ;;  %v2283_v8 = vrot.slane %v5201_v56, 1  ;;  %v1934_v5 = vmul.f32 -0.5, %v1933_v23 }
 0x46a   : > { %2168 = vrot.lane.b32.xlu2 %v5756_v52, %s3672_s30  ;;  %2156 = vrot.lane.b32.xlu0 %v5756_v52, %s3671_s24 }
 0x46b   : > { %2144 = vrot.lane.b32.xlu1 %v5715_v38, %s3673_s28 }
 0x46c   : > { %v5878_v13 = vpop.permute.xlu2 %1958  ;;  %v1883_v45 = vpop.permute.xlu0 %1882 }
 0x46d   : > { %v1871_v15 = vpop.permute.xlu1 %1870  ;;  %v1884_v41 = vsub.f32 %v5756_v52, %v1883_v45  ;;  %v3303_v6 = vpop.eup %3302 }
 0x46e   : > { %v1872_v35 = vsub.f32 %v5756_v52, %v1871_v15  ;;  %v1815_v15 = vadd.f32 %v1814_v47, %v1803_v54  ;;  %v1838_v27 = vmul.f32 %v3303_v6, %v5773_v34  ;;  %v3305_v9 = vpop.eup %3304  ;;  %v1835_v0 = vadd.f32 %v3303_v6, %v1823_v26 }
 0x46f   : > { %v1885_v53 = vand.u32 2147483647, %v1884_v41  ;;  %v1850_v2 = vmul.f32 %v3305_v9, %v5865_v3 }
 0x470   : > { %v1873_v32 = vand.u32 2147483647, %v1872_v35  ;;  %v1827_v60 = vadd.f32 %v1826_v37, %v1815_v15  ;;  %v1847_v3 = vadd.f32 %v3305_v9, %v1835_v0 }
 0x471   : > { %v1886_v43 = vmul.f32 -0.5, %v1885_v53 }
 0x472   : > { %2196 = vrot.lane.b32.xlu2 %v5201_v56, %s3665_s6  ;;  %2176 = vrot.lane.b32.xlu0 %v5201_v56, %s3672_s30  ;;  %v1874_v36 = vmul.f32 -0.5, %v1873_v32  ;;  %v1839_v34 = vadd.f32 %v1838_v27, %v1827_v60  ;;  %v3307_v32 = vpop.eup %3306  ;;  %v1944_v27 = vmul.f32 -0.5, %v1943_v48  ;;  %v1935_v60 = vmul.f32 1.442695, %v1934_v5 }
 0x473   : > { %2164 = vrot.lane.b32.xlu1 %v5201_v56, %s3671_s24  ;;  %v1887_v35 = vmul.f32 1.442695, %v1886_v43  ;;  %v1859_v25 = vadd.f32 %v3307_v32, %v1847_v3 }
 0x474   : > { %v5894_v55 = vpop.permute.xlu2 %1974  ;;  %v5896_v18 = vpop.permute.xlu0 %1902  ;;  %v1875_v62 = vmul.f32 1.442695, %v1874_v36  ;;  %v1851_v63 = vadd.f32 %v1850_v2, %v1839_v34  ;;  %v1862_v36 = vmul.f32 %v3307_v32, %v5863_v44  ;;  %v1945_v58 = vmul.f32 1.442695, %v1944_v27 }
 0x475   : > { %v5898_v21 = vpop.permute.xlu1 %1890  ;;  %v1976_v34 = vsub.f32 %v5756_v52, %v5894_v55 }
 0x476   : > { %3308 = vpow2.f32 %v1875_v62  ;;  %v1863_v31 = vadd.f32 %v1862_v36, %v1851_v63 }
 0x477   : > { %3310 = vpow2.f32 %v1887_v35  ;;  %v1977_v0 = vand.u32 2147483647, %v1976_v34 }
 0x478   : > { %3312 = vpow2.f32 %v1899_v40 }
 0x47a   : > { %2234 = vrot.lane.b32.xlu2 %v5201_v56, %s3667_s19  ;;  %2206 = vrot.lane.b32.xlu0 %v5201_v56, %s3664_s4 }
 0x47b   : > { %2186 = vrot.lane.b32.xlu1 %v5201_v56, %s3666_s10 }
 0x47c   : > { %v5911_v7 = vpop.permute.xlu2 %1994  ;;  %v1919_v59 = vpop.permute.xlu0 %1918 }
 0x47d   : > { %v1907_v45 = vpop.permute.xlu1 %1906  ;;  %v1920_v4 = vsub.f32 %v5756_v52, %v1919_v59  ;;  %v3309_v41 = vpop.eup %3308 }
 0x47e   : > { %v1908_v11 = vsub.f32 %v5756_v52, %v1907_v45  ;;  %v1880_v54 = vmul.f32 %v3309_v41, %v5809_v42  ;;  %v3311_v44 = vpop.eup %3310  ;;  %v6680_v45 = vld [vmem:[#allocation24_spill] sm:$0xff]  ;;  %v1877_v50 = vadd.f32 %v3309_v41, %v1859_v25 }
 0x47f   : > { %v1921_v10 = vand.u32 2147483647, %v1920_v4  ;;  %v2284_v15 = vrot.slane %v6680_v45, 1  ;;  %v3313_v43 = vpop.eup %3312  ;;  %v1892_v37 = vmul.f32 %v3311_v44, %v5898_v21 }
 0x480   : > { %v1909_v17 = vand.u32 2147483647, %v1908_v11  ;;  %v1881_v62 = vadd.f32 %v1880_v54, %v1863_v31 }
 0x481   : > { %v1922_v14 = vmul.f32 -0.5, %v1921_v10  ;;  %v5958_v29 = vsel %vm6681_vm2, %v2283_v8, %v2284_v15  ;;  %v1889_v10 = vadd.f32 %v3311_v44, %v1877_v50 }
 0x482   : > { %2264 = vrot.lane.b32.xlu2 %v5201_v56, %s3670_s23  ;;  %v1910_v20 = vmul.f32 -0.5, %v1909_v17  ;;  %2244 = vrot.lane.b32.xlu0 %v5201_v56, %s3668_s20  ;;  %v1893_v35 = vadd.f32 %v1892_v37, %v1881_v62 }
 0x483   : > { %2216 = vrot.lane.b32.xlu1 %v5201_v56, %s3663_s27  ;;  %v1923_v42 = vmul.f32 1.442695, %v1922_v14  ;;  %v1901_v22 = vadd.f32 %v3313_v43, %v1889_v10  ;;  %v1978_v14 = vmul.f32 -0.5, %v1977_v0 }
 0x484   : > { %v2017_v16 = vpop.permute.xlu2 %2016  ;;  %v5926_v57 = vpop.permute.xlu0 %1938  ;;  %v1911_v12 = vmul.f32 1.442695, %v1910_v20 }
 0x485   : > { %v5928_v33 = vpop.permute.xlu1 %1926  ;;  %v2018_v47 = vsub.f32 %v5756_v52, %v2017_v16  ;;  %v1904_v16 = vmul.f32 %v3313_v43, %v5896_v18 }
 0x486   : > { %3314 = vpow2.f32 %v1911_v12 }
 0x487   : > { %3316 = vpow2.f32 %v1923_v42  ;;  %v2019_v9 = vand.u32 2147483647, %v2018_v47  ;;  %v1905_v2 = vadd.f32 %v1904_v16, %v1893_v35 }
 0x488   : > { %3318 = vpow2.f32 %v1935_v60 }
 0x489   : > { %v2020_v46 = vmul.f32 -0.5, %v2019_v9  ;;  %3320 = vpow2.f32 %v1945_v58 }
 0x48a   : > { %2286 = vrot.lane.b32.xlu2 %v5938_v1, %s3671_s24  ;;  %2268 = vrot.lane.b32.xlu0 %v5756_v52, %s3673_s28 }
 0x48b   : > { %2254 = vrot.lane.b32.xlu1 %v5201_v56, %s3669_s22  ;;  %v2021_v23 = vmul.f32 1.442695, %v2020_v46 }
 0x48c   : > { %v5948_v53 = vpop.permute.xlu2 %2036  ;;  %v1963_v6 = vpop.permute.xlu0 %1962 }
 0x48d   : > { %v1951_v30 = vpop.permute.xlu1 %1950  ;;  %v1964_v11 = vsub.f32 %v5756_v52, %v1963_v6  ;;  %v3315_v4 = vpop.eup %3314 }
 0x48e   : > { %v1952_v59 = vsub.f32 %v5756_v52, %v1951_v30  ;;  %v1916_v26 = vmul.f32 %v3315_v4, %v5844_v39  ;;  %v3317_v41 = vpop.eup %3316  ;;  %v1913_v36 = vadd.f32 %v3315_v4, %v1901_v22  ;;  %v1979_v30 = vmul.f32 1.442695, %v1978_v14 }
 0x48f   : > { %v1965_v21 = vand.u32 2147483647, %v1964_v11  ;;  %v1928_v18 = vmul.f32 %v3317_v41, %v5928_v33  ;;  %v3319_v39 = vpop.eup %3318 }
 0x490   : > { %v1953_v17 = vand.u32 2147483647, %v1952_v59  ;;  %v1917_v63 = vadd.f32 %v1916_v26, %v1905_v2  ;;  %v3321_v44 = vpop.eup %3320  ;;  %v1940_v5 = vmul.f32 %v3319_v39, %v5926_v57  ;;  %v1925_v62 = vadd.f32 %v3317_v41, %v1913_v36 }
 0x491   : > { %v1966_v12 = vmul.f32 -0.5, %v1965_v21  ;;  %v1948_v11 = vmul.f32 %v3321_v44, %v5568_v24 }
 0x492   : > { %v1954_v20 = vmul.f32 -0.5, %v1953_v17  ;;  %2306 = vrot.lane.b32.xlu2 %v5958_v29, %s3672_s30  ;;  %2294 = vrot.lane.b32.xlu0 %v5958_v29, %s3671_s24  ;;  %v1929_v3 = vadd.f32 %v1928_v18, %v1917_v63  ;;  %v1937_v17 = vadd.f32 %v3319_v39, %v1925_v62 }
 0x493   : > { %2276 = vrot.lane.b32.xlu1 %v5201_v56, %s3673_s28  ;;  %v1967_v54 = vmul.f32 1.442695, %v1966_v12 }
 0x494   : > { %v2053_v28 = vpop.permute.xlu2 %2052  ;;  %v1955_v32 = vmul.f32 1.442695, %v1954_v20  ;;  %v5970_v40 = vpop.permute.xlu0 %1982  ;;  %v1941_v59 = vadd.f32 %v1940_v5, %v1929_v3  ;;  %v1947_v16 = vadd.f32 %v3321_v44, %v1937_v17 }
 0x495   : > { %v1971_v55 = vpop.permute.xlu1 %1970  ;;  %v2054_v48 = vsub.f32 %v5756_v52, %v2053_v28 }
 0x496   : > { %3322 = vpow2.f32 %v1955_v32  ;;  %v1949_v4 = vadd.f32 %v1948_v11, %v1941_v59  ;;  %v2088_v11 = vsub.f32 %v5756_v52, %v5715_v38 }
 0x497   : > { %3324 = vpow2.f32 %v2021_v23  ;;  %v2055_v25 = vand.u32 2147483647, %v2054_v48 }
 0x498   : > { %3326 = vpow2.f32 %v1967_v54 }
 0x499   : > { %3328 = vpow2.f32 %v1979_v30  ;;  %v2056_v9 = vmul.f32 -0.5, %v2055_v25 }
 0x49a   : > { %2322 = vrot.lane.b32.xlu2 %v5938_v1, %s3665_s6  ;;  %2310 = vrot.lane.b32.xlu0 %v5938_v1, %s3666_s10 }
 0x49b   : > { %2298 = vrot.lane.b32.xlu1 %v5938_v1, %s3672_s30  ;;  %v2057_v10 = vmul.f32 1.442695, %v2056_v9 }
 0x49c   : > { %v5979_v31 = vpop.permute.xlu2 %2072  ;;  %v1999_v33 = vpop.permute.xlu0 %1998 }
 0x49d   : > { %v1987_v8 = vpop.permute.xlu1 %1986  ;;  %v2000_v42 = vsub.f32 %v5756_v52, %v1999_v33  ;;  %v3323_v6 = vpop.eup %3322 }
 0x49e   : > { %v1988_v47 = vsub.f32 %v5756_v52, %v1987_v8  ;;  %v1960_v43 = vmul.f32 %v3323_v6, %v5878_v13  ;;  %v5989_v57 = vpop.eup %3324  ;;  %v1957_v28 = vadd.f32 %v3323_v6, %v1947_v16 }
 0x49f   : > { %v2001_v45 = vand.u32 2147483647, %v2000_v42  ;;  %v3327_v13 = vpop.eup %3326 }
 0x4a0   : > { %v1989_v15 = vand.u32 2147483647, %v1988_v47  ;;  %v1961_v34 = vadd.f32 %v1960_v43, %v1949_v4  ;;  %v1972_v58 = vmul.f32 %v3327_v13, %v1971_v55  ;;  %v3329_v26 = vpop.eup %3328  ;;  %v1969_v55 = vadd.f32 %v3327_v13, %v1957_v28 }
 0x4a1   : > { %v2002_v37 = vmul.f32 -0.5, %v2001_v45  ;;  %v1984_v2 = vmul.f32 %v3329_v26, %v5970_v40 }
 0x4a2   : > { %v1990_v27 = vmul.f32 -0.5, %v1989_v15  ;;  %2342 = vrot.lane.b32.xlu2 %v5958_v29, %s3664_s4  ;;  %2330 = vrot.lane.b32.xlu0 %v5958_v29, %s3665_s6  ;;  %v1973_v46 = vadd.f32 %v1972_v58, %v1961_v34  ;;  %v1981_v33 = vadd.f32 %v3329_v26, %v1969_v55 }
 0x4a3   : > { %2318 = vrot.lane.b32.xlu1 %v5958_v29, %s3666_s10  ;;  %v2003_v60 = vmul.f32 1.442695, %v2002_v37 }
 0x4a4   : > { %v1991_v24 = vmul.f32 1.442695, %v1990_v27  ;;  %v2097_v50 = vpop.permute.xlu2 %2096  ;;  %v2025_v35 = vpop.permute.xlu0 %2024  ;;  %v1985_v23 = vadd.f32 %v1984_v2, %v1973_v46  ;;  %v2089_v27 = vand.u32 2147483647, %v2088_v11 }
 0x4a5   : > { %v2007_v20 = vpop.permute.xlu1 %2006  ;;  %3330 = vpow2.f32 %v2003_v60  ;;  %v2026_v21 = vmul.f32 %v5989_v57, %v2025_v35  ;;  %v2098_v12 = vsub.f32 %v5756_v52, %v2097_v50 }
 0x4a6   : > { %3332 = vpow2.f32 %v1991_v24  ;;  %v2090_v16 = vmul.f32 -0.5, %v2089_v27 }
 0x4a7   : > { %3334 = vpow2.f32 %v2057_v10  ;;  %v2099_v48 = vand.u32 2147483647, %v2098_v12 }
 0x4a9   : > { %v2100_v59 = vmul.f32 -0.5, %v2099_v48 }
 0x4aa   : > { %2366 = vrot.lane.b32.xlu2 %v5938_v1, %s3667_s19  ;;  %2346 = vrot.lane.b32.xlu0 %v5938_v1, %s3663_s27 }
 0x4ab   : > { %2334 = vrot.lane.b32.xlu1 %v5938_v1, %s3664_s4  ;;  %v3331_v32 = vpop.eup %3330  ;;  %v2101_v37 = vmul.f32 1.442695, %v2100_v59 }
 0x4ac   : > { %v6003_v41 = vpop.permute.xlu2 %2116  ;;  %v3333_v0 = vpop.eup %3332  ;;  %v2008_v54 = vmul.f32 %v3331_v32, %v2007_v20 }
 0x4ad   : > { %v2041_v63 = vpop.permute.xlu0 %2040  ;;  %v2029_v22 = vpop.permute.xlu1 %2028  ;;  %v1996_v18 = vmul.f32 %v3333_v0, %v5911_v7  ;;  %v1993_v7 = vadd.f32 %v3333_v0, %v1981_v33 }
 0x4ae   : > { %v2042_v39 = vsub.f32 %v5756_v52, %v2041_v63  ;;  %v2030_v14 = vsub.f32 %v5756_v52, %v2029_v22  ;;  %v3335_v42 = vpop.eup %3334  ;;  %v2091_v63 = vmul.f32 1.442695, %v2090_v16 }
 0x4af   : > { %v1997_v36 = vadd.f32 %v1996_v18, %v1985_v23  ;;  %v2005_v43 = vadd.f32 %v3331_v32, %v1993_v7 }
 0x4b0   : > { %v2043_v3 = vand.u32 2147483647, %v2042_v39  ;;  %v2031_v40 = vand.u32 2147483647, %v2030_v14 }
 0x4b1   : > { %v2009_v8 = vadd.f32 %v2008_v54, %v1997_v36  ;;  %v2023_v4 = vadd.f32 %v5989_v57, %v2005_v43  ;;  %v2426_v36 = vrot.slane %v5930_v49, 2 }
 0x4b2   : > { %v2044_v44 = vmul.f32 -0.5, %v2043_v3  ;;  %v2032_v5 = vmul.f32 -0.5, %v2031_v40  ;;  %2386 = vrot.lane.b32.xlu2 %v5958_v29, %s3668_s20  ;;  %2374 = vrot.lane.b32.xlu0 %v5958_v29, %s3667_s19  ;;  %v6682_v40 = vld [vmem:[#allocation29_spill] sm:$0xff] }
 0x4b3   : > { %2354 = vrot.lane.b32.xlu1 %v5958_v29, %s3663_s27  ;;  %v2027_v47 = vadd.f32 %v2026_v21, %v2009_v8  ;;  %v6683_v48 = vrot.slane %v6682_v40, 2 }
 0x4b4   : > { %v2045_v6 = vmul.f32 1.442695, %v2044_v44  ;;  %v2033_v30 = vmul.f32 1.442695, %v2032_v5  ;;  %v2133_v62 = vpop.permute.xlu2 %2132 }
 0x4b5   : > { %v2061_v45 = vpop.permute.xlu0 %2060  ;;  %v2049_v15 = vpop.permute.xlu1 %2048  ;;  %v2134_v50 = vsub.f32 %v5756_v52, %v2133_v62  ;;  %v6041_v33 = vsel %vm6645_vm5, %v6683_v48, %v2426_v36  ;;  %v6687_v48 = vld [vmem:[#allocation40_spill] sm:$0xff] }
 0x4b6   : > { %3336 = vpow2.f32 %v2045_v6  ;;  %v2062_v25 = vmul.f32 %v3335_v42, %v2061_v45 }
 0x4b7   : > { %3338 = vpow2.f32 %v2033_v30  ;;  %v2135_v10 = vand.u32 2147483647, %v2134_v50 }
 0x4b8   : > { %3340 = vpow2.f32 %v2101_v37 }
 0x4b9   : > { %v2136_v18 = vmul.f32 -0.5, %v2135_v10 }
 0x4ba   : > { %2402 = vrot.lane.b32.xlu2 %v5938_v1, %s3670_s23  ;;  %2390 = vrot.lane.b32.xlu0 %v5938_v1, %s3669_s22 }
 0x4bb   : > { %2378 = vrot.lane.b32.xlu1 %v5938_v1, %s3668_s20  ;;  %v2137_v3 = vmul.f32 1.442695, %v2136_v18 }
 0x4bc   : > { %v3337_v17 = vpop.eup %3336  ;;  %v6024_v60 = vpop.permute.xlu2 %2152 }
 0x4bd   : > { %v3339_v24 = vpop.eup %3338  ;;  %v2050_v38 = vmul.f32 %v3337_v17, %v2049_v15  ;;  %v2077_v13 = vpop.permute.xlu0 %2076 }
 0x4be   : > { %v2065_v9 = vpop.permute.xlu1 %2064  ;;  %v2035_v35 = vadd.f32 %v3339_v24, %v2023_v4  ;;  %v2038_v20 = vmul.f32 %v3339_v24, %v5948_v53  ;;  %v2078_v34 = vsub.f32 %v5756_v52, %v2077_v13  ;;  %v3341_v55 = vpop.eup %3340  ;;  %v6684_v13 = vld [vmem:[#allocation32_spill] sm:$0xff] }
 0x4bf   : > { %v2066_v21 = vsub.f32 %v5756_v52, %v2065_v9 }
 0x4c0   : > { %v2039_v58 = vadd.f32 %v2038_v20, %v2027_v47  ;;  %v2047_v26 = vadd.f32 %v3337_v17, %v2035_v35  ;;  %v2079_v57 = vand.u32 2147483647, %v2078_v34 }
 0x4c1   : > { %v2067_v28 = vand.u32 2147483647, %v2066_v21 }
 0x4c2   : > { %v2059_v46 = vadd.f32 %v3335_v42, %v2047_v26  ;;  %v2051_v32 = vadd.f32 %v2050_v38, %v2039_v58  ;;  %v2080_v2 = vmul.f32 -0.5, %v2079_v57  ;;  %2422 = vrot.lane.b32.xlu2 %v5958_v29, %s3673_s28  ;;  %2410 = vrot.lane.b32.xlu0 %v5958_v29, %s3670_s23 }
 0x4c3   : > { %v2068_v0 = vmul.f32 -0.5, %v2067_v28  ;;  %2398 = vrot.lane.b32.xlu1 %v5958_v29, %s3669_s22 }
 0x4c4   : > { %v2063_v53 = vadd.f32 %v2062_v25, %v2051_v32  ;;  %v2081_v12 = vmul.f32 1.442695, %v2080_v2  ;;  %v2169_v23 = vpop.permute.xlu2 %2168  ;;  %v6072_v32 = vld [vmem:[#allocation2 + $0x10] sm:$0xff]  ;;  %v6685_v2 = vld [vmem:[#allocation60_spill] sm:$0xff] }
 0x4c5   : > { %v2069_v22 = vmul.f32 1.442695, %v2068_v0  ;;  %v2105_v39 = vpop.permute.xlu0 %2104  ;;  %v2170_v7 = vsub.f32 %v5756_v52, %v2169_v23  ;;  %v2180_v0 = vsub.f32 %v6072_v32, %v6685_v2 }
 0x4c6   : > { %v2085_v14 = vpop.permute.xlu1 %2084  ;;  %3342 = vpow2.f32 %v2081_v12  ;;  %v2106_v54 = vmul.f32 %v3341_v55, %v2105_v39  ;;  %v6686_v39 = vld [vmem:[#allocation57_spill] sm:$0xff] }
 0x4c7   : > { %3344 = vpow2.f32 %v2069_v22  ;;  %v2171_v17 = vand.u32 2147483647, %v2170_v7  ;;  %v2181_v7 = vand.u32 2147483647, %v2180_v0 }
 0x4c8   : > { %3346 = vpow2.f32 %v2091_v63 }
 0x4c9   : > { %3348 = vpow2.f32 %v2137_v3  ;;  %v2172_v34 = vmul.f32 -0.5, %v2171_v17 }
 0x4ca   : > { %2442 = vrot.lane.b32.xlu2 %v6041_v33, %s3672_s30  ;;  %2430 = vrot.lane.b32.xlu0 %v6041_v33, %s3671_s24 }
 0x4cb   : > { %2414 = vrot.lane.b32.xlu1 %v5938_v1, %s3673_s28  ;;  %v2173_v57 = vmul.f32 1.442695, %v2172_v34 }
 0x4cc   : > { %v3343_v8 = vpop.eup %3342  ;;  %v6049_v44 = vpop.permute.xlu2 %2196 }
 0x4cd   : > { %v3345_v5 = vpop.eup %3344  ;;  %v2086_v42 = vmul.f32 %v3343_v8, %v2085_v14  ;;  %v2121_v47 = vpop.permute.xlu0 %2120  ;;  %v2190_v14 = vsub.f32 %v6072_v32, %v6686_v39 }
 0x4ce   : > { %v2109_v6 = vpop.permute.xlu1 %2108  ;;  %v3347_v30 = vpop.eup %3346  ;;  %v2071_v62 = vadd.f32 %v3345_v5, %v2059_v46  ;;  %v2074_v59 = vmul.f32 %v3345_v5, %v5979_v31  ;;  %v2122_v45 = vsub.f32 %v5756_v52, %v2121_v47  ;;  %v6688_v5 = vld [vmem:[#allocation52_spill] sm:$0xff] }
 0x4cf   : > { %v2110_v15 = vsub.f32 %v5756_v52, %v2109_v6  ;;  %v2094_v27 = vmul.f32 %v3347_v30, %v5738_v51  ;;  %v3349_v9 = vpop.eup %3348 }
 0x4d0   : > { %v2075_v25 = vadd.f32 %v2074_v59, %v2063_v53  ;;  %v2083_v11 = vadd.f32 %v3343_v8, %v2071_v62  ;;  %v2123_v43 = vand.u32 2147483647, %v2122_v45  ;;  %v2210_v8 = vsub.f32 %v6072_v32, %v6687_v48 }
 0x4d1   : > { %v2111_v37 = vand.u32 2147483647, %v2110_v15  ;;  %v2191_v59 = vand.u32 2147483647, %v2190_v14  ;;  %v2220_v45 = vsub.f32 %v6072_v32, %v6072_v32 }
 0x4d2   : > { %v2093_v4 = vadd.f32 %v3347_v30, %v2083_v11  ;;  %v2087_v24 = vadd.f32 %v2086_v42, %v2075_v25  ;;  %v2124_v38 = vmul.f32 -0.5, %v2123_v43  ;;  %2462 = vrot.lane.b32.xlu2 %v6684_v13, %s3666_s10  ;;  %2450 = vrot.lane.b32.xlu0 %v6684_v13, %s3672_s30  ;;  %v2200_v42 = vsub.f32 %v6072_v32, %v6688_v5 }
 0x4d3   : > { %v2112_v50 = vmul.f32 -0.5, %v2111_v37  ;;  %2438 = vrot.lane.b32.xlu1 %v6684_v13, %s3671_s24 }
 0x4d4   : > { %v2103_v52 = vadd.f32 %v3341_v55, %v2093_v4  ;;  %v2095_v31 = vadd.f32 %v2094_v27, %v2087_v24  ;;  %v2125_v35 = vmul.f32 1.442695, %v2124_v38  ;;  %v6062_v51 = vpop.permute.xlu2 %2234  ;;  %v2201_v37 = vand.u32 2147483647, %v2200_v42 }
 0x4d5   : > { %v2113_v20 = vmul.f32 1.442695, %v2112_v50  ;;  %v2141_v21 = vpop.permute.xlu0 %2140  ;;  %v2182_v27 = vmul.f32 -0.5, %v2181_v7  ;;  %v2211_v24 = vand.u32 2147483647, %v2210_v8  ;;  %v6689_v50 = vld [vmem:[#allocation41_spill] sm:$0xff] }
 0x4d6   : > { %v2129_v16 = vpop.permute.xlu1 %2128  ;;  %v2107_v58 = vadd.f32 %v2106_v54, %v2095_v31  ;;  %3350 = vpow2.f32 %v2125_v35  ;;  %v2142_v26 = vmul.f32 %v3349_v9, %v2141_v21  ;;  %v2221_v31 = vand.u32 2147483647, %v2220_v45  ;;  %v6690_v35 = vld [vmem:[#allocation47_spill] sm:$0xff] }
 0x4d7   : > { %3352 = vpow2.f32 %v2113_v20  ;;  %v2238_v20 = vsub.f32 %v6072_v32, %v6690_v35  ;;  %v2202_v34 = vmul.f32 -0.5, %v2201_v37  ;;  %v2183_v21 = vmul.f32 1.442695, %v2182_v27 }
 0x4d8   : > { %3354 = vpow2.f32 %v2173_v57 }
 0x4d9   : > { %v2239_v0 = vand.u32 2147483647, %v2238_v20 }
 0x4da   : > { %2478 = vrot.lane.b32.xlu2 %v6041_v33, %s3664_s4  ;;  %2466 = vrot.lane.b32.xlu0 %v6041_v33, %s3665_s6 }
 0x4db   : > { %2454 = vrot.lane.b32.xlu1 %v6041_v33, %s3666_s10 }
 0x4dc   : > { %v3351_v28 = vpop.eup %3350  ;;  %v6070_v10 = vpop.permute.xlu2 %2264 }
 0x4dd   : > { %v3353_v46 = vpop.eup %3352  ;;  %v2130_v55 = vmul.f32 %v3351_v28, %v2129_v16  ;;  %v2157_v53 = vpop.permute.xlu0 %2156  ;;  %v2212_v16 = vmul.f32 -0.5, %v2211_v24 }
 0x4de   : > { %v2145_v12 = vpop.permute.xlu1 %2144  ;;  %v2115_v63 = vadd.f32 %v3353_v46, %v2103_v52  ;;  %v2118_v22 = vmul.f32 %v3353_v46, %v6003_v41  ;;  %v2158_v23 = vsub.f32 %v6072_v32, %v2157_v53  ;;  %v3355_v62 = vpop.eup %3354  ;;  %v2192_v52 = vmul.f32 -0.5, %v2191_v59 }
 0x4df   : > { %v2146_v18 = vsub.f32 %v6072_v32, %v2145_v12  ;;  %v2222_v46 = vmul.f32 -0.5, %v2221_v31 }
 0x4e0   : > { %v2119_v36 = vadd.f32 %v2118_v22, %v2107_v58  ;;  %v2127_v54 = vadd.f32 %v3351_v28, %v2115_v63  ;;  %v2159_v3 = vand.u32 2147483647, %v2158_v23  ;;  %v2193_v28 = vmul.f32 1.442695, %v2192_v52 }
 0x4e1   : > { %v2147_v40 = vand.u32 2147483647, %v2146_v18  ;;  %v2203_v22 = vmul.f32 1.442695, %v2202_v34  ;;  %v2223_v8 = vmul.f32 1.442695, %v2222_v46 }
 0x4e2   : > { %v2139_v47 = vadd.f32 %v3349_v9, %v2127_v54  ;;  %v2131_v41 = vadd.f32 %v2130_v55, %v2119_v36  ;;  %v2160_v6 = vmul.f32 -0.5, %v2159_v3  ;;  %2498 = vrot.lane.b32.xlu2 %v6684_v13, %s3663_s27  ;;  %2486 = vrot.lane.b32.xlu0 %v6684_v13, %s3664_s4  ;;  %v2228_v9 = vsub.f32 %v6072_v32, %v6689_v50  ;;  %v6692_v55 = vld [vmem:[#allocation61_spill] sm:$0xff] }
 0x4e3   : > { %v2148_v30 = vmul.f32 -0.5, %v2147_v40  ;;  %2474 = vrot.lane.b32.xlu1 %v6684_v13, %s3665_s6  ;;  %v2258_v53 = vsub.f32 %v6072_v32, %v6692_v55  ;;  %v2213_v36 = vmul.f32 1.442695, %v2212_v16 }
 0x4e4   : > { %v2143_v15 = vadd.f32 %v2142_v26, %v2131_v41  ;;  %v2161_v25 = vmul.f32 1.442695, %v2160_v6  ;;  %v2287_v43 = vpop.permute.xlu2 %2286  ;;  %v2229_v58 = vand.u32 2147483647, %v2228_v9  ;;  %v6691_v26 = vld [vmem:[#allocation50_spill] sm:$0xff]  ;;  %v2240_v41 = vmul.f32 -0.5, %v2239_v0 }
 0x4e5   : > { %v2149_v11 = vmul.f32 1.442695, %v2148_v30  ;;  %v2177_v17 = vpop.permute.xlu0 %2176  ;;  %v2248_v57 = vsub.f32 %v6072_v32, %v6691_v26  ;;  %v2288_v18 = vsub.f32 %v6072_v32, %v2287_v43  ;;  %v2259_v5 = vand.u32 2147483647, %v2258_v53 }
 0x4e6   : > { %v2165_v4 = vpop.permute.xlu1 %2164  ;;  %3356 = vpow2.f32 %v2161_v25  ;;  %v2178_v38 = vmul.f32 %v3355_v62, %v2177_v17  ;;  %v2230_v40 = vmul.f32 -0.5, %v2229_v58  ;;  %v2241_v27 = vmul.f32 1.442695, %v2240_v41 }
 0x4e7   : > { %3358 = vpow2.f32 %v2149_v11  ;;  %v2249_v48 = vand.u32 2147483647, %v2248_v57  ;;  %v2289_v6 = vand.u32 2147483647, %v2288_v18 }
 0x4e8   : > { %3360 = vpow2.f32 %v2183_v21 }
 0x4e9   : > { %3362 = vpow2.f32 %v2193_v28  ;;  %v2250_v25 = vmul.f32 -0.5, %v2249_v48  ;;  %v2290_v17 = vmul.f32 -0.5, %v2289_v6  ;;  %v6693_v6 = vld [vmem:[#allocation22_spill] sm:$0xff] }
 0x4ea   : > { %2522 = vrot.lane.b32.xlu2 %v6041_v33, %s3668_s20  ;;  %2510 = vrot.lane.b32.xlu0 %v6041_v33, %s3667_s19  ;;  %3364 = vpow2.f32 %v2203_v22 }
 0x4eb   : > { %2490 = vrot.lane.b32.xlu1 %v6041_v33, %s3663_s27  ;;  %3366 = vpow2.f32 %v2213_v36  ;;  %v2251_v35 = vmul.f32 1.442695, %v2250_v25  ;;  %v2291_v26 = vmul.f32 1.442695, %v2290_v17 }
 0x4ec   : > { %v3357_v2 = vpop.eup %3356  ;;  %v6107_v12 = vpop.permute.xlu2 %2306  ;;  %3368 = vpow2.f32 %v2223_v8 }
 0x4ed   : > { %v3359_v63 = vpop.eup %3358  ;;  %v2166_v23 = vmul.f32 %v3357_v2, %v2165_v4  ;;  %v2207_v39 = vpop.permute.xlu0 %2206 }
 0x4ee   : > { %v2187_v14 = vpop.permute.xlu1 %2186  ;;  %v2151_v54 = vadd.f32 %v3359_v63, %v2139_v47  ;;  %v2154_v3 = vmul.f32 %v3359_v63, %v6024_v60  ;;  %v3361_v45 = vpop.eup %3360  ;;  %v2231_v47 = vmul.f32 1.442695, %v2230_v40  ;;  %v2260_v60 = vmul.f32 -0.5, %v2259_v5 }
 0x4ef   : > { %v2188_v43 = vmul.f32 %v3361_v45, %v2187_v14 }
 0x4f0   : > { %v2155_v42 = vadd.f32 %v2154_v3, %v2143_v15  ;;  %v2163_v7 = vadd.f32 %v3357_v2, %v2151_v54  ;;  %3370 = vpow2.f32 %v2231_v47  ;;  %v2261_v34 = vmul.f32 1.442695, %v2260_v60 }
 0x4f1   : > { %3372 = vpow2.f32 %v2241_v27 }
 0x4f2   : > { %v2175_v30 = vadd.f32 %v3355_v62, %v2163_v7  ;;  %v2167_v59 = vadd.f32 %v2166_v23, %v2155_v42  ;;  %2542 = vrot.lane.b32.xlu2 %v6684_v13, %s3669_s22  ;;  %2530 = vrot.lane.b32.xlu0 %v6684_v13, %s3668_s20  ;;  %v3363_v62 = vpop.eup %3362  ;;  %3374 = vpow2.f32 %v2251_v35 }
 0x4f3   : > { %2518 = vrot.lane.b32.xlu1 %v6684_v13, %s3667_s19  ;;  %v2198_v50 = vmul.f32 %v3363_v62, %v6049_v44  ;;  %v3365_v31 = vpop.eup %3364  ;;  %3376 = vpow2.f32 %v2261_v34 }
 0x4f4   : > { %v2185_v15 = vadd.f32 %v3361_v45, %v2175_v30  ;;  %v2179_v11 = vadd.f32 %v2178_v38, %v2167_v59  ;;  %v2323_v37 = vpop.permute.xlu2 %2322  ;;  %v3367_v20 = vpop.eup %3366  ;;  %v2208_v16 = vmul.f32 %v3365_v31, %v2207_v39  ;;  %3378 = vpow2.f32 %v2291_v26 }
 0x4f5   : > { %v2245_v4 = vpop.permute.xlu0 %2244  ;;  %v3369_v38 = vpop.eup %3368  ;;  %v2324_v63 = vsub.f32 %v6072_v32, %v2323_v37 }
 0x4f6   : > { %v2217_v24 = vpop.permute.xlu1 %2216  ;;  %v2195_v9 = vadd.f32 %v3363_v62, %v2185_v15  ;;  %v2189_v52 = vadd.f32 %v2188_v43, %v2179_v11  ;;  %v2226_v2 = vmul.f32 %v3369_v38, %v5201_v56  ;;  %v3371_v53 = vpop.eup %3370  ;;  %v2570_v43 = vrot.slane %v5930_v49, 3 }
 0x4f7   : > { %v2218_v46 = vmul.f32 %v3367_v20, %v2217_v24  ;;  %v2236_v18 = vmul.f32 %v3371_v53, %v6062_v51  ;;  %v3373_v36 = vpop.eup %3372  ;;  %v2325_v8 = vand.u32 2147483647, %v2324_v63 }
 0x4f8   : > { %v2205_v21 = vadd.f32 %v3365_v31, %v2195_v9  ;;  %v2199_v58 = vadd.f32 %v2198_v50, %v2189_v52  ;;  %v2246_v3 = vmul.f32 %v3373_v36, %v2245_v4  ;;  %v3375_v56 = vpop.eup %3374  ;;  %v6694_v4 = vrot.slane %v5165_v19, 3 }
 0x4f9   : > { %v3377_v5 = vpop.eup %3376  ;;  %v2326_v60 = vmul.f32 -0.5, %v2325_v8 }
 0x4fa   : > { %v2215_v57 = vadd.f32 %v3367_v20, %v2205_v21  ;;  %v2209_v28 = vadd.f32 %v2208_v16, %v2199_v58  ;;  %2558 = vrot.lane.b32.xlu2 %v6041_v33, %s3673_s28  ;;  %2546 = vrot.lane.b32.xlu0 %v6041_v33, %s3670_s23  ;;  %v3379_v30 = vpop.eup %3378  ;;  %v2266_v51 = vmul.f32 %v3377_v5, %v6070_v10 }
 0x4fb   : > { %2534 = vrot.lane.b32.xlu1 %v6041_v33, %s3669_s22  ;;  %v2327_v17 = vmul.f32 1.442695, %v2326_v60  ;;  %v6142_v24 = vsel %vm6647_vm6, %v6694_v4, %v2570_v43 }
 0x4fc   : > { %v2225_v44 = vadd.f32 %v3369_v38, %v2215_v57  ;;  %v2219_v0 = vadd.f32 %v2218_v46, %v2209_v28  ;;  %v6125_v55 = vpop.permute.xlu2 %2342 }
 0x4fd   : > { %v2269_v22 = vpop.permute.xlu0 %2268 }
 0x4fe   : > { %v2255_v23 = vpop.permute.xlu1 %2254  ;;  %v2227_v39 = vadd.f32 %v2226_v2, %v2219_v0  ;;  %v2270_v14 = vsub.f32 %v6072_v32, %v2269_v22  ;;  %v2233_v54 = vadd.f32 %v3371_v53, %v2225_v44 }
 0x4ff   : > { %v2256_v41 = vmul.f32 %v3375_v56, %v2255_v23 }
 0x500   : > { %v2237_v40 = vadd.f32 %v2236_v18, %v2227_v39  ;;  %v2271_v48 = vand.u32 2147483647, %v2270_v14  ;;  %v2243_v59 = vadd.f32 %v3373_v36, %v2233_v54  ;;  %v2358_v14 = vsub.f32 %v6072_v32, %v5938_v1 }
 0x502   : > { %v2247_v42 = vadd.f32 %v2246_v3, %v2237_v40  ;;  %v2272_v7 = vmul.f32 -0.5, %v2271_v48  ;;  %2582 = vrot.lane.b32.xlu2 %v6693_v6, %s3671_s24  ;;  %2566 = vrot.lane.b32.xlu0 %v6684_v13, %s3673_s28  ;;  %v2253_v27 = vadd.f32 %v3375_v56, %v2243_v59  ;;  %v2359_v3 = vand.u32 2147483647, %v2358_v14 }
 0x503   : > { %2554 = vrot.lane.b32.xlu1 %v6684_v13, %s3670_s23 }
 0x504   : > { %v2273_v45 = vmul.f32 1.442695, %v2272_v7  ;;  %v2257_v47 = vadd.f32 %v2256_v41, %v2247_v42  ;;  %v2367_v25 = vpop.permute.xlu2 %2366  ;;  %v2263_v10 = vadd.f32 %v3377_v5, %v2253_v27 }
 0x505   : > { %v2295_v11 = vpop.permute.xlu0 %2294  ;;  %v2368_v31 = vsub.f32 %v6072_v32, %v2367_v25 }
 0x506   : > { %v2277_v15 = vpop.permute.xlu1 %2276  ;;  %3380 = vpow2.f32 %v2273_v45  ;;  %v2267_v37 = vadd.f32 %v2266_v51, %v2257_v47  ;;  %v2296_v62 = vmul.f32 %v3379_v30, %v2295_v11  ;;  %v2360_v47 = vmul.f32 -0.5, %v2359_v3 }
 0x507   : > { %3382 = vpow2.f32 %v2327_v17  ;;  %v2369_v28 = vand.u32 2147483647, %v2368_v31 }
 0x508   : > { %v2361_v17 = vmul.f32 1.442695, %v2360_v47 }
 0x509   : > { %v2370_v22 = vmul.f32 -0.5, %v2369_v28 }
 0x50a   : > { %2598 = vrot.lane.b32.xlu2 %v6142_v24, %s3666_s10  ;;  %2586 = vrot.lane.b32.xlu0 %v6142_v24, %s3672_s30 }
 0x50b   : > { %2574 = vrot.lane.b32.xlu1 %v6142_v24, %s3671_s24  ;;  %v2371_v36 = vmul.f32 1.442695, %v2370_v22 }
 0x50c   : > { %v3381_v49 = vpop.eup %3380  ;;  %v6150_v50 = vpop.permute.xlu2 %2386 }
 0x50d   : > { %v2275_v9 = vadd.f32 %v3381_v49, %v2263_v10  ;;  %v2278_v52 = vmul.f32 %v3381_v49, %v2277_v15  ;;  %v2311_v20 = vpop.permute.xlu0 %2310  ;;  %v3383_v2 = vpop.eup %3382 }
 0x50e   : > { %v2299_v35 = vpop.permute.xlu1 %2298  ;;  %v2312_v21 = vsub.f32 %v6072_v32, %v2311_v20 }
 0x50f   : > { %v2300_v34 = vsub.f32 %v6072_v32, %v2299_v35  ;;  %v2293_v16 = vadd.f32 %v3379_v30, %v2275_v9  ;;  %v2279_v58 = vadd.f32 %v2278_v52, %v2267_v37 }
 0x510   : > { %v2313_v26 = vand.u32 2147483647, %v2312_v21 }
 0x511   : > { %v2301_v38 = vand.u32 2147483647, %v2300_v34  ;;  %v2297_v57 = vadd.f32 %v2296_v62, %v2279_v58 }
 0x512   : > { %v2314_v44 = vmul.f32 -0.5, %v2313_v26  ;;  %2618 = vrot.lane.b32.xlu2 %v6693_v6, %s3665_s6  ;;  %2606 = vrot.lane.b32.xlu0 %v6693_v6, %s3666_s10 }
 0x513   : > { %v2302_v46 = vmul.f32 -0.5, %v2301_v38  ;;  %2594 = vrot.lane.b32.xlu1 %v6693_v6, %s3672_s30 }
 0x514   : > { %v2315_v53 = vmul.f32 1.442695, %v2314_v44  ;;  %v2403_v63 = vpop.permute.xlu2 %2402 }
 0x515   : > { %v2303_v0 = vmul.f32 1.442695, %v2302_v46  ;;  %v2331_v18 = vpop.permute.xlu0 %2330  ;;  %v2404_v1 = vsub.f32 %v6072_v32, %v2403_v63 }
 0x516   : > { %v2319_v23 = vpop.permute.xlu1 %2318  ;;  %v2332_v39 = vmul.f32 %v3383_v2, %v2331_v18 }
 0x517   : > { %3384 = vpow2.f32 %v2303_v0  ;;  %v2405_v11 = vand.u32 2147483647, %v2404_v1 }
 0x518   : > { %3386 = vpow2.f32 %v2315_v53 }
 0x519   : > { %3388 = vpow2.f32 %v2371_v36  ;;  %v2406_v49 = vmul.f32 -0.5, %v2405_v11 }
 0x51a   : > { %2634 = vrot.lane.b32.xlu2 %v6142_v24, %s3663_s27  ;;  %2622 = vrot.lane.b32.xlu0 %v6142_v24, %s3664_s4 }
 0x51b   : > { %2610 = vrot.lane.b32.xlu1 %v6142_v24, %s3665_s6  ;;  %v2407_v35 = vmul.f32 1.442695, %v2406_v49 }
 0x51c   : > { %v6169_v40 = vpop.permute.xlu2 %2422 }
 0x51d   : > { %v3385_v54 = vpop.eup %3384  ;;  %v2347_v42 = vpop.permute.xlu0 %2346 }
 0x51e   : > { %v3387_v48 = vpop.eup %3386  ;;  %v2305_v56 = vadd.f32 %v3385_v54, %v2293_v16  ;;  %v2308_v8 = vmul.f32 %v3385_v54, %v6107_v12  ;;  %v2335_v5 = vpop.permute.xlu1 %2334  ;;  %v2348_v30 = vsub.f32 %v6072_v32, %v2347_v42 }
 0x51f   : > { %v2320_v7 = vmul.f32 %v3387_v48, %v2319_v23  ;;  %v2336_v41 = vsub.f32 %v6072_v32, %v2335_v5  ;;  %v3389_v12 = vpop.eup %3388 }
 0x520   : > { %v2309_v59 = vadd.f32 %v2308_v8, %v2297_v57  ;;  %v2317_v51 = vadd.f32 %v3387_v48, %v2305_v56  ;;  %v2349_v25 = vand.u32 2147483647, %v2348_v30 }
 0x521   : > { %v2337_v45 = vand.u32 2147483647, %v2336_v41  ;;  %v6200_v41 = vld [vmem:[#allocation2 + $0x18] sm:$0xff] }
 0x522   : > { %v2329_v60 = vadd.f32 %v3383_v2, %v2317_v51  ;;  %v2321_v15 = vadd.f32 %v2320_v7, %v2309_v59  ;;  %v2350_v37 = vmul.f32 -0.5, %v2349_v25  ;;  %2662 = vrot.lane.b32.xlu2 %v6693_v6, %s3667_s19  ;;  %2642 = vrot.lane.b32.xlu0 %v6693_v6, %s3663_s27  ;;  %v2714_v30 = vrot.slane %v6200_v41, 4 }
 0x523   : > { %v2338_v43 = vmul.f32 -0.5, %v2337_v45  ;;  %2630 = vrot.lane.b32.xlu1 %v6693_v6, %s3664_s4  ;;  %v6695_v45 = vrot.slane %v5165_v19, 4 }
 0x524   : > { %v2333_v62 = vadd.f32 %v2332_v39, %v2321_v15  ;;  %v2351_v4 = vmul.f32 1.442695, %v2350_v37  ;;  %v2443_v10 = vpop.permute.xlu2 %2442 }
 0x525   : > { %v2339_v27 = vmul.f32 1.442695, %v2338_v43  ;;  %v2375_v52 = vpop.permute.xlu0 %2374  ;;  %v2444_v38 = vsub.f32 %v6072_v32, %v2443_v10  ;;  %v6207_v47 = vsel %vm6696_vm13, %v6695_v45, %v2714_v30 }
 0x526   : > { %v2355_v9 = vpop.permute.xlu1 %2354  ;;  %v2376_v31 = vmul.f32 %v3389_v12, %v2375_v52 }
 0x527   : > { %3390 = vpow2.f32 %v2339_v27  ;;  %v2445_v14 = vand.u32 2147483647, %v2444_v38 }
 0x528   : > { %3392 = vpow2.f32 %v2351_v4 }
 0x529   : > { %3394 = vpow2.f32 %v2361_v17 }
 0x52a   : > { %2678 = vrot.lane.b32.xlu2 %v6142_v24, %s3669_s22  ;;  %2666 = vrot.lane.b32.xlu0 %v6142_v24, %s3668_s20  ;;  %3396 = vpow2.f32 %v2407_v35 }
 0x52b   : > { %2654 = vrot.lane.b32.xlu1 %v6142_v24, %s3667_s19 }
 0x52c   : > { %v6187_v34 = vpop.permute.xlu2 %2462 }
 0x52d   : > { %v3391_v20 = vpop.eup %3390  ;;  %v2391_v57 = vpop.permute.xlu0 %2390 }
 0x52e   : > { %v3393_v21 = vpop.eup %3392  ;;  %v2341_v16 = vadd.f32 %v3391_v20, %v2329_v60  ;;  %v2344_v58 = vmul.f32 %v3391_v20, %v6125_v55  ;;  %v2379_v26 = vpop.permute.xlu1 %2378  ;;  %v2392_v2 = vsub.f32 %v6072_v32, %v2391_v57 }
 0x52f   : > { %v3395_v28 = vpop.eup %3394  ;;  %v2356_v46 = vmul.f32 %v3393_v21, %v2355_v9  ;;  %v2380_v44 = vsub.f32 %v6072_v32, %v2379_v26 }
 0x530   : > { %v2345_v0 = vadd.f32 %v2344_v58, %v2333_v62  ;;  %v2353_v53 = vadd.f32 %v3393_v21, %v2341_v16  ;;  %v2393_v22 = vand.u32 2147483647, %v2392_v2  ;;  %v2364_v39 = vmul.f32 %v3395_v28, %v5958_v29  ;;  %v3397_v54 = vpop.eup %3396 }
 0x531   : > { %v2381_v63 = vand.u32 2147483647, %v2380_v44  ;;  %v2446_v29 = vmul.f32 -0.5, %v2445_v14 }
 0x532   : > { %v2363_v23 = vadd.f32 %v3395_v28, %v2353_v53  ;;  %v2357_v18 = vadd.f32 %v2356_v46, %v2345_v0  ;;  %v2394_v36 = vmul.f32 -0.5, %v2393_v22  ;;  %2698 = vrot.lane.b32.xlu2 %v6693_v6, %s3670_s23  ;;  %2686 = vrot.lane.b32.xlu0 %v6693_v6, %s3669_s22 }
 0x533   : > { %v2382_v55 = vmul.f32 -0.5, %v2381_v63  ;;  %2674 = vrot.lane.b32.xlu1 %v6693_v6, %s3668_s20  ;;  %v2447_v51 = vmul.f32 1.442695, %v2446_v29 }
 0x534   : > { %v2373_v3 = vadd.f32 %v3389_v12, %v2363_v23  ;;  %v2365_v48 = vadd.f32 %v2364_v39, %v2357_v18  ;;  %v2395_v8 = vmul.f32 1.442695, %v2394_v36  ;;  %v2479_v1 = vpop.permute.xlu2 %2478 }
 0x535   : > { %v2383_v56 = vmul.f32 1.442695, %v2382_v55  ;;  %v2411_v7 = vpop.permute.xlu0 %2410  ;;  %v2480_v37 = vsub.f32 %v6072_v32, %v2479_v1 }
 0x536   : > { %v2377_v5 = vadd.f32 %v2376_v31, %v2365_v48  ;;  %v2399_v42 = vpop.permute.xlu1 %2398  ;;  %v2412_v59 = vmul.f32 %v3397_v54, %v2411_v7 }
 0x537   : > { %3398 = vpow2.f32 %v2383_v56  ;;  %v2481_v20 = vand.u32 2147483647, %v2480_v37 }
 0x538   : > { %3400 = vpow2.f32 %v2395_v8 }
 0x539   : > { %3402 = vpow2.f32 %v2447_v51  ;;  %v2482_v46 = vmul.f32 -0.5, %v2481_v20 }
 0x53a   : > { %2718 = vrot.lane.b32.xlu2 %v6207_v47, %s3671_s24  ;;  %2702 = vrot.lane.b32.xlu0 %v6142_v24, %s3673_s28 }
 0x53b   : > { %2690 = vrot.lane.b32.xlu1 %v6142_v24, %s3670_s23  ;;  %v2483_v53 = vmul.f32 1.442695, %v2482_v46 }
 0x53c   : > { %v6215_v60 = vpop.permute.xlu2 %2498 }
 0x53d   : > { %v3399_v25 = vpop.eup %3398  ;;  %v2431_v62 = vpop.permute.xlu0 %2430 }
 0x53e   : > { %v3401_v15 = vpop.eup %3400  ;;  %v2385_v11 = vadd.f32 %v3399_v25, %v2373_v3  ;;  %v2388_v43 = vmul.f32 %v3399_v25, %v6150_v50  ;;  %v2415_v12 = vpop.permute.xlu1 %2414  ;;  %v2432_v4 = vsub.f32 %v6072_v32, %v2431_v62  ;;  %v6697_v50 = vld [vmem:[#allocation28_spill] sm:$0xff] }
 0x53f   : > { %v2400_v27 = vmul.f32 %v3401_v15, %v2399_v42  ;;  %v2416_v17 = vsub.f32 %v6072_v32, %v2415_v12  ;;  %v3403_v58 = vpop.eup %3402 }
 0x540   : > { %v2397_v10 = vadd.f32 %v3401_v15, %v2385_v11  ;;  %v2389_v49 = vadd.f32 %v2388_v43, %v2377_v5  ;;  %v2433_v52 = vand.u32 2147483647, %v2432_v4  ;;  %v2502_v11 = vsub.f32 %v6072_v32, %v6041_v33 }
 0x541   : > { %v2417_v9 = vand.u32 2147483647, %v2416_v17 }
 0x542   : > { %v2409_v31 = vadd.f32 %v3397_v54, %v2397_v10  ;;  %v2401_v35 = vadd.f32 %v2400_v27, %v2389_v49  ;;  %v2434_v16 = vmul.f32 -0.5, %v2433_v52  ;;  %2738 = vrot.lane.b32.xlu2 %v6697_v50, %s3672_s30  ;;  %2726 = vrot.lane.b32.xlu0 %v6697_v50, %s3671_s24  ;;  %v2503_v27 = vand.u32 2147483647, %v2502_v11 }
 0x543   : > { %v2418_v21 = vmul.f32 -0.5, %v2417_v9  ;;  %2710 = vrot.lane.b32.xlu1 %v6693_v6, %s3673_s28 }
 0x544   : > { %v2413_v38 = vadd.f32 %v2412_v59, %v2401_v35  ;;  %v2435_v57 = vmul.f32 1.442695, %v2434_v16  ;;  %v2523_v28 = vpop.permute.xlu2 %2522  ;;  %v2504_v10 = vmul.f32 -0.5, %v2503_v27 }
 0x545   : > { %v2419_v26 = vmul.f32 1.442695, %v2418_v21  ;;  %v2451_v2 = vpop.permute.xlu0 %2450  ;;  %v2524_v14 = vsub.f32 %v6072_v32, %v2523_v28 }
 0x546   : > { %v2439_v44 = vpop.permute.xlu1 %2438  ;;  %v2452_v0 = vmul.f32 %v3403_v58, %v2451_v2 }
 0x547   : > { %3404 = vpow2.f32 %v2419_v26  ;;  %v2525_v7 = vand.u32 2147483647, %v2524_v14 }
 0x548   : > { %3406 = vpow2.f32 %v2435_v57 }
 0x549   : > { %3408 = vpow2.f32 %v2483_v53  ;;  %v2526_v43 = vmul.f32 -0.5, %v2525_v7 }
 0x54a   : > { %2754 = vrot.lane.b32.xlu2 %v6207_v47, %s3665_s6  ;;  %2742 = vrot.lane.b32.xlu0 %v6207_v47, %s3666_s10 }
 0x54b   : > { %2730 = vrot.lane.b32.xlu1 %v6207_v47, %s3672_s30  ;;  %v2527_v17 = vmul.f32 1.442695, %v2526_v43 }
 0x54c   : > { %v6233_v22 = vpop.permute.xlu2 %2542 }
 0x54d   : > { %v3405_v63 = vpop.eup %3404  ;;  %v2467_v36 = vpop.permute.xlu0 %2466 }
 0x54e   : > { %v3407_v23 = vpop.eup %3406  ;;  %v2421_v18 = vadd.f32 %v3405_v63, %v2409_v31  ;;  %v2424_v39 = vmul.f32 %v3405_v63, %v6169_v40  ;;  %v2455_v55 = vpop.permute.xlu1 %2454  ;;  %v2468_v48 = vsub.f32 %v6072_v32, %v2467_v36 }
 0x54f   : > { %v2440_v54 = vmul.f32 %v3407_v23, %v2439_v44  ;;  %v2456_v3 = vsub.f32 %v6072_v32, %v2455_v55  ;;  %v3409_v40 = vpop.eup %3408 }
 0x550   : > { %v2437_v56 = vadd.f32 %v3407_v23, %v2421_v18  ;;  %v2425_v8 = vadd.f32 %v2424_v39, %v2413_v38  ;;  %v2469_v5 = vand.u32 2147483647, %v2468_v48 }
 0x551   : > { %v2457_v1 = vand.u32 2147483647, %v2456_v3  ;;  %v2858_v3 = vrot.slane %v6200_v41, 5 }
 0x552   : > { %v2449_v29 = vadd.f32 %v3403_v58, %v2437_v56  ;;  %v2441_v42 = vadd.f32 %v2440_v54, %v2425_v8  ;;  %v2470_v59 = vmul.f32 -0.5, %v2469_v5  ;;  %2774 = vrot.lane.b32.xlu2 %v6697_v50, %s3664_s4  ;;  %2762 = vrot.lane.b32.xlu0 %v6697_v50, %s3665_s6  ;;  %v6698_v8 = vrot.slane %v5165_v19, 5 }
 0x553   : > { %v2458_v30 = vmul.f32 -0.5, %v2457_v1  ;;  %2750 = vrot.lane.b32.xlu1 %v6697_v50, %s3666_s10 }
 0x554   : > { %v2453_v51 = vadd.f32 %v2452_v0, %v2441_v42  ;;  %v2471_v25 = vmul.f32 1.442695, %v2470_v59  ;;  %v2559_v15 = vpop.permute.xlu2 %2558  ;;  %v2505_v0 = vmul.f32 1.442695, %v2504_v10  ;;  %v6270_v1 = vsel %vm6699_vm11, %v6698_v8, %v2858_v3 }
 0x555   : > { %v2459_v45 = vmul.f32 1.442695, %v2458_v30  ;;  %v2487_v12 = vpop.permute.xlu0 %2486  ;;  %v2560_v31 = vsub.f32 %v6072_v32, %v2559_v15 }
 0x556   : > { %v2475_v37 = vpop.permute.xlu1 %2474  ;;  %v2488_v62 = vmul.f32 %v3409_v40, %v2487_v12 }
 0x557   : > { %3410 = vpow2.f32 %v2459_v45  ;;  %v2561_v44 = vand.u32 2147483647, %v2560_v31 }
 0x558   : > { %3412 = vpow2.f32 %v2471_v25 }
 0x559   : > { %3414 = vpow2.f32 %v2527_v17  ;;  %v2562_v55 = vmul.f32 -0.5, %v2561_v44 }
 0x55a   : > { %2798 = vrot.lane.b32.xlu2 %v6207_v47, %s3667_s19  ;;  %2778 = vrot.lane.b32.xlu0 %v6207_v47, %s3663_s27  ;;  %3416 = vpow2.f32 %v2505_v0 }
 0x55b   : > { %2766 = vrot.lane.b32.xlu1 %v6207_v47, %s3664_s4  ;;  %v2563_v56 = vmul.f32 1.442695, %v2562_v55 }
 0x55c   : > { %v6253_v33 = vpop.permute.xlu2 %2582 }
 0x55d   : > { %v3411_v4 = vpop.eup %3410  ;;  %v2511_v20 = vpop.permute.xlu0 %2510 }
 0x55e   : > { %v3413_v49 = vpop.eup %3412  ;;  %v2461_v9 = vadd.f32 %v3411_v4, %v2449_v29  ;;  %v2464_v52 = vmul.f32 %v3411_v4, %v6187_v34  ;;  %v2491_v35 = vpop.permute.xlu1 %2490  ;;  %v2512_v58 = vsub.f32 %v6072_v32, %v2511_v20 }
 0x55f   : > { %v2476_v21 = vmul.f32 %v3413_v49, %v2475_v37  ;;  %v2492_v16 = vsub.f32 %v6072_v32, %v2491_v35  ;;  %v3415_v34 = vpop.eup %3414 }
 0x560   : > { %v2473_v38 = vadd.f32 %v3413_v49, %v2461_v9  ;;  %v2465_v26 = vadd.f32 %v2464_v52, %v2453_v51  ;;  %v2513_v28 = vand.u32 2147483647, %v2512_v58  ;;  %v3417_v5 = vpop.eup %3416 }
 0x561   : > { %v2493_v57 = vand.u32 2147483647, %v2492_v16  ;;  %v2508_v15 = vmul.f32 %v3417_v5, %v6684_v13 }
 0x562   : > { %v2477_v46 = vadd.f32 %v2476_v21, %v2465_v26  ;;  %v2485_v2 = vadd.f32 %v3409_v40, %v2473_v38  ;;  %v2514_v63 = vmul.f32 -0.5, %v2513_v28  ;;  %2834 = vrot.lane.b32.xlu2 %v6207_v47, %s3670_s23  ;;  %2810 = vrot.lane.b32.xlu0 %v6207_v47, %s3668_s20 }
 0x563   : > { %v2494_v53 = vmul.f32 -0.5, %v2493_v57  ;;  %2786 = vrot.lane.b32.xlu1 %v6697_v50, %s3663_s27 }
 0x564   : > { %v2489_v23 = vadd.f32 %v2488_v62, %v2477_v46  ;;  %v2515_v39 = vmul.f32 1.442695, %v2514_v63  ;;  %v2599_v14 = vpop.permute.xlu2 %2598 }
 0x565   : > { %v2495_v18 = vmul.f32 1.442695, %v2494_v53  ;;  %v2531_v54 = vpop.permute.xlu0 %2530  ;;  %v2600_v7 = vsub.f32 %v6072_v32, %v2599_v14 }
 0x566   : > { %v2519_v36 = vpop.permute.xlu1 %2518  ;;  %v2532_v48 = vmul.f32 %v3415_v34, %v2531_v54 }
 0x567   : > { %3418 = vpow2.f32 %v2495_v18  ;;  %v2601_v27 = vand.u32 2147483647, %v2600_v7 }
 0x568   : > { %3420 = vpow2.f32 %v2515_v39 }
 0x569   : > { %3422 = vpow2.f32 %v2563_v56  ;;  %v2602_v35 = vmul.f32 -0.5, %v2601_v27 }
 0x56a   : > { %2874 = vrot.lane.b32.xlu2 %v6270_v1, %s3672_s30  ;;  %2846 = vrot.lane.b32.xlu0 %v6207_v47, %s3673_s28 }
 0x56b   : > { %2822 = vrot.lane.b32.xlu1 %v6207_v47, %s3669_s22  ;;  %v2603_v58 = vmul.f32 1.442695, %v2602_v35 }
 0x56c   : > { %v6278_v29 = vpop.permute.xlu2 %2618 }
 0x56d   : > { %v3419_v41 = vpop.eup %3418  ;;  %v2547_v59 = vpop.permute.xlu0 %2546 }
 0x56e   : > { %v3421_v42 = vpop.eup %3420  ;;  %v2497_v19 = vadd.f32 %v3419_v41, %v2485_v2  ;;  %v2500_v61 = vmul.f32 %v3419_v41, %v6215_v60  ;;  %v2535_v30 = vpop.permute.xlu1 %2534  ;;  %v2548_v45 = vsub.f32 %v6072_v32, %v2547_v59 }
 0x56f   : > { %v2520_v40 = vmul.f32 %v3421_v42, %v2519_v36  ;;  %v2536_v51 = vsub.f32 %v6072_v32, %v2535_v30  ;;  %v3423_v4 = vpop.eup %3422 }
 0x570   : > { %v2507_v25 = vadd.f32 %v3417_v5, %v2497_v19  ;;  %v2501_v11 = vadd.f32 %v2500_v61, %v2489_v23  ;;  %v2549_v37 = vand.u32 2147483647, %v2548_v45 }
 0x571   : > { %v2537_v43 = vand.u32 2147483647, %v2536_v51 }
 0x572   : > { %v2517_v12 = vadd.f32 %v3421_v42, %v2507_v25  ;;  %v2509_v62 = vadd.f32 %v2508_v15, %v2501_v11  ;;  %v2550_v60 = vmul.f32 -0.5, %v2549_v37  ;;  %2910 = vrot.lane.b32.xlu2 %v6270_v1, %s3664_s4  ;;  %2886 = vrot.lane.b32.xlu0 %v6270_v1, %s3666_s10 }
 0x573   : > { %v2538_v17 = vmul.f32 -0.5, %v2537_v43  ;;  %2862 = vrot.lane.b32.xlu1 %v6270_v1, %s3671_s24 }
 0x574   : > { %v2521_v10 = vadd.f32 %v2520_v40, %v2509_v62  ;;  %v2529_v49 = vadd.f32 %v3415_v34, %v2517_v12  ;;  %v2551_v9 = vmul.f32 1.442695, %v2550_v60  ;;  %v2635_v52 = vpop.permute.xlu2 %2634 }
 0x575   : > { %v2539_v13 = vmul.f32 1.442695, %v2538_v17  ;;  %v2567_v21 = vpop.permute.xlu0 %2566  ;;  %v2636_v44 = vsub.f32 %v6072_v32, %v2635_v52 }
 0x576   : > { %v2533_v31 = vadd.f32 %v2532_v48, %v2521_v10  ;;  %v2555_v20 = vpop.permute.xlu1 %2554  ;;  %v2568_v16 = vmul.f32 %v3423_v4, %v2567_v21 }
 0x577   : > { %3424 = vpow2.f32 %v2539_v13  ;;  %v2637_v36 = vand.u32 2147483647, %v2636_v44 }
 0x578   : > { %3426 = vpow2.f32 %v2551_v9  ;;  %v6700_v9 = vld [vmem:[#allocation34_spill] sm:$0xff] }
 0x579   : > { %3428 = vpow2.f32 %v2603_v58  ;;  %v2638_v41 = vmul.f32 -0.5, %v2637_v36 }
 0x57a   : > { %2818 = vrot.lane.b32.xlu2 %v6697_v50, %s3668_s20  ;;  %2806 = vrot.lane.b32.xlu0 %v6697_v50, %s3667_s19 }
 0x57b   : > { %2898 = vrot.lane.b32.xlu1 %v6270_v1, %s3665_s6  ;;  %v2639_v30 = vmul.f32 1.442695, %v2638_v41 }
 0x57c   : > { %v6297_v26 = vpop.permute.xlu2 %2662 }
 0x57d   : > { %v3425_v38 = vpop.eup %3424  ;;  %v2587_v0 = vpop.permute.xlu0 %2586 }
 0x57e   : > { %v3427_v57 = vpop.eup %3426  ;;  %v2541_v28 = vadd.f32 %v3425_v38, %v2529_v49  ;;  %v2544_v46 = vmul.f32 %v3425_v38, %v6233_v22  ;;  %v2575_v2 = vpop.permute.xlu1 %2574  ;;  %v2588_v34 = vsub.f32 %v6072_v32, %v2587_v0 }
 0x57f   : > { %v2556_v53 = vmul.f32 %v3427_v57, %v2555_v20  ;;  %v2576_v63 = vsub.f32 %v6072_v32, %v2575_v2  ;;  %v3429_v22 = vpop.eup %3428 }
 0x580   : > { %v2553_v23 = vadd.f32 %v3427_v57, %v2541_v28  ;;  %v2545_v18 = vadd.f32 %v2544_v46, %v2533_v31  ;;  %v2589_v14 = vand.u32 2147483647, %v2588_v34 }
 0x581   : > { %v2577_v39 = vand.u32 2147483647, %v2576_v63 }
 0x582   : > { %v2557_v55 = vadd.f32 %v2556_v53, %v2545_v18  ;;  %v2565_v54 = vadd.f32 %v3423_v4, %v2553_v23  ;;  %v2590_v48 = vmul.f32 -0.5, %v2589_v14  ;;  %2842 = vrot.lane.b32.xlu2 %v6697_v50, %s3670_s23  ;;  %2830 = vrot.lane.b32.xlu0 %v6697_v50, %s3669_s22 }
 0x583   : > { %v2578_v3 = vmul.f32 -0.5, %v2577_v39  ;;  %2922 = vrot.lane.b32.xlu1 %v6270_v1, %s3663_s27 }
 0x584   : > { %v2569_v56 = vadd.f32 %v2568_v16, %v2557_v55  ;;  %v2591_v5 = vmul.f32 1.442695, %v2590_v48  ;;  %v2679_v7 = vpop.permute.xlu2 %2678 }
 0x585   : > { %v2579_v8 = vmul.f32 1.442695, %v2578_v3  ;;  %v2607_v19 = vpop.permute.xlu0 %2606 }
 0x586   : > { %v2595_v42 = vpop.permute.xlu1 %2594  ;;  %v2608_v61 = vmul.f32 %v3429_v22, %v2607_v19 }
 0x587   : > { %3430 = vpow2.f32 %v2579_v8 }
 0x588   : > { %3432 = vpow2.f32 %v2591_v5 }
 0x589   : > { %3434 = vpow2.f32 %v2639_v30 }
 0x58a   : > { %2966 = vrot.lane.b32.xlu2 %v6270_v1, %s3669_s22  ;;  %2954 = vrot.lane.b32.xlu0 %v6270_v1, %s3668_s20 }
 0x58b   : > { %2942 = vrot.lane.b32.xlu1 %v6270_v1, %s3667_s19 }
 0x58c   : > { %v6318_v60 = vpop.permute.xlu2 %2698 }
 0x58d   : > { %v3431_v59 = vpop.eup %3430  ;;  %v2623_v15 = vpop.permute.xlu0 %2622 }
 0x58e   : > { %v3433_v40 = vpop.eup %3432  ;;  %v2581_v51 = vadd.f32 %v3431_v59, %v2565_v54  ;;  %v2584_v45 = vmul.f32 %v3431_v59, %v6253_v33  ;;  %v2611_v25 = vpop.permute.xlu1 %2610  ;;  %v2624_v37 = vsub.f32 %v6072_v32, %v2623_v15  ;;  %v6322_v33 = vld [vmem:[#allocation2 + $0x10] sm:$0xff] }
 0x58f   : > { %v2596_v11 = vmul.f32 %v3433_v40, %v2595_v42  ;;  %v2612_v43 = vsub.f32 %v6072_v32, %v2611_v25  ;;  %v2646_v52 = vsub.f32 %v6322_v33, %v6142_v24  ;;  %v3435_v31 = vpop.eup %3434  ;;  %v2680_v57 = vsub.f32 %v6322_v33, %v2679_v7 }
 0x590   : > { %v2593_v12 = vadd.f32 %v3433_v40, %v2581_v51  ;;  %v2585_v62 = vadd.f32 %v2584_v45, %v2569_v56  ;;  %v2625_v17 = vand.u32 2147483647, %v2624_v37 }
 0x591   : > { %v2613_v27 = vand.u32 2147483647, %v2612_v43  ;;  %v2647_v58 = vand.u32 2147483647, %v2646_v52  ;;  %v2681_v44 = vand.u32 2147483647, %v2680_v57 }
 0x592   : > { %v2597_v4 = vadd.f32 %v2596_v11, %v2585_v62  ;;  %v2605_v10 = vadd.f32 %v3429_v22, %v2593_v12  ;;  %v2626_v13 = vmul.f32 -0.5, %v2625_v17  ;;  %2882 = vrot.lane.b32.xlu2 %v6700_v9, %s3672_s30  ;;  %2870 = vrot.lane.b32.xlu0 %v6700_v9, %s3671_s24 }
 0x593   : > { %v2614_v49 = vmul.f32 -0.5, %v2613_v27  ;;  %2854 = vrot.lane.b32.xlu1 %v6697_v50, %s3673_s28  ;;  %v2648_v28 = vmul.f32 -0.5, %v2647_v58  ;;  %v2682_v54 = vmul.f32 -0.5, %v2681_v44 }
 0x594   : > { %v2609_v32 = vadd.f32 %v2608_v61, %v2597_v4  ;;  %v2627_v20 = vmul.f32 1.442695, %v2626_v13  ;;  %v2719_v24 = vpop.permute.xlu2 %2718 }
 0x595   : > { %v2615_v35 = vmul.f32 1.442695, %v2614_v49  ;;  %v2643_v16 = vpop.permute.xlu0 %2642  ;;  %v2649_v18 = vmul.f32 1.442695, %v2648_v28  ;;  %v2683_v41 = vmul.f32 1.442695, %v2682_v54  ;;  %v2720_v40 = vsub.f32 %v6322_v33, %v2719_v24 }
 0x596   : > { %v2631_v21 = vpop.permute.xlu1 %2630  ;;  %v2644_v38 = vmul.f32 %v3435_v31, %v2643_v16 }
 0x597   : > { %3436 = vpow2.f32 %v2615_v35  ;;  %v2721_v15 = vand.u32 2147483647, %v2720_v40 }
 0x598   : > { %3438 = vpow2.f32 %v2627_v20 }
 0x599   : > { %3440 = vpow2.f32 %v2649_v18  ;;  %v2722_v52 = vmul.f32 -0.5, %v2721_v15 }
 0x59a   : > { %2906 = vrot.lane.b32.xlu2 %v6700_v9, %s3665_s6  ;;  %2990 = vrot.lane.b32.xlu0 %v6270_v1, %s3673_s28  ;;  %s6701_s6 = sand.u32 1, %s3646_s13  }
 0x59b   : > { %2978 = vrot.lane.b32.xlu1 %v6270_v1, %s3670_s23 }
 0x59c   : > { %v6346_v61 = vpop.permute.xlu2 %2738 }
 0x59d   : > { %v3437_v46 = vpop.eup %3436  ;;  %v2667_v34 = vpop.permute.xlu0 %2666 }
 0x59e   : > { %v3439_v2 = vpop.eup %3438  ;;  %v2617_v0 = vadd.f32 %v3437_v46, %v2605_v10  ;;  %v2620_v53 = vmul.f32 %v3437_v46, %v6278_v29  ;;  %v2655_v63 = vpop.permute.xlu1 %2654  ;;  %v2668_v14 = vsub.f32 %v6322_v33, %v2667_v34 }
 0x59f   : > { %v2632_v23 = vmul.f32 %v3439_v2, %v2631_v21  ;;  %v2656_v39 = vsub.f32 %v6322_v33, %v2655_v63  ;;  %v3441_v59 = vpop.eup %3440 }
 0x5a0   : > { %v2629_v55 = vadd.f32 %v3439_v2, %v2617_v0  ;;  %v2621_v36 = vadd.f32 %v2620_v53, %v2609_v32  ;;  %v2669_v48 = vand.u32 2147483647, %v2668_v14  ;;  %v2652_v51 = vmul.f32 %v3441_v59, %v6693_v6 }
 0x5a1   : > { %v2657_v3 = vand.u32 2147483647, %v2656_v39 }
 0x5a2   : > { %v2641_v22 = vadd.f32 %v3435_v31, %v2629_v55  ;;  %v2633_v56 = vadd.f32 %v2632_v23, %v2621_v36  ;;  %v2670_v5 = vmul.f32 -0.5, %v2669_v48  ;;  %2950 = vrot.lane.b32.xlu2 %v6700_v9, %s3667_s19  ;;  %2918 = vrot.lane.b32.xlu0 %v6700_v9, %s3664_s4  ;;  %s3022_s4 = sshll.u32 %s3018_s14, 4  ;;  %s3023_s4 = int_to_ptr.hbm [resolvable:$true] %s3022_s4 }
 0x5a3   : > { %v2658_v8 = vmul.f32 -0.5, %v2657_v3  ;;  %2894 = vrot.lane.b32.xlu1 %v6700_v9, %s3666_s10  ;;  %s3006_s10 = scalar_lea.sflag [#allocation7], %s6701_s6 }
 0x5a4   : > { %v2645_v29 = vadd.f32 %v2644_v38, %v2633_v56  ;;  %v2671_v19 = vmul.f32 1.442695, %v2670_v5  ;;  %v2651_v45 = vadd.f32 %v3441_v59, %v2641_v22  ;;  %v2755_v4 = vpop.permute.xlu2 %2754 }
 0x5a5   : > { %v2659_v42 = vmul.f32 1.442695, %v2658_v8  ;;  %v2687_v30 = vpop.permute.xlu0 %2686  ;;  %v2756_v5 = vsub.f32 %v6322_v33, %v2755_v4 }
 0x5a6   : > { %v2675_v7 = vpop.permute.xlu1 %2674  ;;  %v2653_v43 = vadd.f32 %v2652_v51, %v2645_v29 }
 0x5a7   : > { %3442 = vpow2.f32 %v2659_v42 }
 0x5a8   : > { %3444 = vpow2.f32 %v2671_v19  ;;  %v2757_v19 = vand.u32 2147483647, %v2756_v5 }
 0x5a9   : > { %3446 = vpow2.f32 %v2683_v41 }
 0x5aa   : > { %2986 = vrot.lane.b32.xlu2 %v6700_v9, %s3670_s23  ;;  %2962 = vrot.lane.b32.xlu0 %v6700_v9, %s3668_s20 }
 0x5ab   : > { %2930 = vrot.lane.b32.xlu1 %v6700_v9, %s3663_s27  ;;  %s3020_s27 = sshll.u32 %s60_s11, 4  ;;  %s3021_s27 = int_to_ptr.vmem [resolvable:$true] %s3020_s27 }
 0x5ac   : > { %v6363_v46 = vpop.permute.xlu2 %2774 }
 0x5ad   : > { %v3443_v25 = vpop.eup %3442  ;;  %v2703_v27 = vpop.permute.xlu0 %2702 }
 0x5ae   : > { %v3445_v11 = vpop.eup %3444  ;;  %v2661_v37 = vadd.f32 %v3443_v25, %v2651_v45  ;;  %v2664_v12 = vmul.f32 %v3443_v25, %v6297_v26  ;;  %v2691_v62 = vpop.permute.xlu1 %2690  ;;  %v2704_v10 = vsub.f32 %v6322_v33, %v2703_v27  ;;  %v2723_v26 = vmul.f32 1.442695, %v2722_v52 }
 0x5af   : > { %v3447_v17 = vpop.eup %3446  ;;  %v2692_v6 = vsub.f32 %v6322_v33, %v2691_v62  ;;  %v2676_v13 = vmul.f32 %v3445_v11, %v2675_v7  ;;  %v2790_v62 = vsub.f32 %v6322_v33, %v6207_v47 }
 0x5b0   : > { %v2665_v49 = vadd.f32 %v2664_v12, %v2653_v43  ;;  %v2705_v32 = vand.u32 2147483647, %v2704_v10  ;;  %v2688_v20 = vmul.f32 %v3447_v17, %v2687_v30  ;;  %v2673_v8 = vadd.f32 %v3445_v11, %v2661_v37 }
 0x5b1   : > { %v2693_v31 = vand.u32 2147483647, %v2692_v6  ;;  %v2758_v43 = vmul.f32 -0.5, %v2757_v19 }
 0x5b2   : > { %v2677_v35 = vadd.f32 %v2676_v13, %v2665_v49  ;;  %v2706_v16 = vmul.f32 -0.5, %v2705_v32  ;;  %2998 = vrot.lane.b32.xlu0 %v6700_v9, %s3673_s28  ;;  %v2685_v7 = vadd.f32 %v3447_v17, %v2673_v8  ;;  %v2791_v32 = vand.u32 2147483647, %v2790_v62 }
 0x5b3   : > { %v2694_v21 = vmul.f32 -0.5, %v2693_v31  ;;  %2974 = vrot.lane.b32.xlu1 %v6700_v9, %s3669_s22  ;;  %v2759_v4 = vmul.f32 1.442695, %v2758_v43 }
 0x5b4   : > { %v2689_v58 = vadd.f32 %v2688_v20, %v2677_v35  ;;  %v2707_v57 = vmul.f32 1.442695, %v2706_v16  ;;  %v2799_v36 = vpop.permute.xlu2 %2798 }
 0x5b5   : > { %v2695_v38 = vmul.f32 1.442695, %v2694_v21  ;;  %v2727_v24 = vpop.permute.xlu0 %2726  ;;  %v2800_v49 = vsub.f32 %v6322_v33, %v2799_v36 }
 0x5b6   : > { %v2711_v28 = vpop.permute.xlu1 %2710 }
 0x5b7   : > { %3448 = vpow2.f32 %v2695_v38  ;;  %v2801_v21 = vand.u32 2147483647, %v2800_v49 }
 0x5b8   : > { %3450 = vpow2.f32 %v2707_v57 }
 0x5b9   : > { %3452 = vpow2.f32 %v2723_v26 }
 0x5bc   : > { %v2835_v42 = vpop.permute.xlu2 %2834 }
 0x5bd   : > { %v3449_v44 = vpop.eup %3448  ;;  %v2743_v63 = vpop.permute.xlu0 %2742 }
 0x5be   : > { %v3451_v2 = vpop.eup %3450  ;;  %v2700_v0 = vmul.f32 %v3449_v44, %v6318_v60  ;;  %v2731_v53 = vpop.permute.xlu1 %2730  ;;  %v2744_v56 = vsub.f32 %v6322_v33, %v2743_v63  ;;  %v2697_v45 = vadd.f32 %v3449_v44, %v2685_v7 }
 0x5bf   : > { %v3453_v34 = vpop.eup %3452  ;;  %v2712_v18 = vmul.f32 %v3451_v2, %v2711_v28  ;;  %v2732_v39 = vsub.f32 %v6322_v33, %v2731_v53 }
 0x5c0   : > { %v2701_v23 = vadd.f32 %v2700_v0, %v2689_v58  ;;  %v2728_v55 = vmul.f32 %v3453_v34, %v2727_v24  ;;  %v2745_v29 = vand.u32 2147483647, %v2744_v56  ;;  %v2709_v37 = vadd.f32 %v3451_v2, %v2697_v45 }
 0x5c1   : > { %v2733_v3 = vand.u32 2147483647, %v2732_v39  ;;  %v2792_v58 = vmul.f32 -0.5, %v2791_v32  ;;  %v2802_v24 = vmul.f32 -0.5, %v2801_v21 }
 0x5c2   : > { %v2713_v14 = vadd.f32 %v2712_v18, %v2701_v23  ;;  %v2746_v40 = vmul.f32 -0.5, %v2745_v29  ;;  %v2725_v31 = vadd.f32 %v3453_v34, %v2709_v37 }
 0x5c3   : > { %v2734_v60 = vmul.f32 -0.5, %v2733_v3  ;;  %v2793_v63 = vmul.f32 1.442695, %v2792_v58  ;;  %v2803_v39 = vmul.f32 1.442695, %v2802_v24 }
 0x5c4   : > { %v6367_v54 = vadd.f32 %v2728_v55, %v2713_v14  ;;  %v2747_v12 = vmul.f32 1.442695, %v2746_v40  ;;  %v6382_v13 = vpop.permute.xlu2 %2874  ;;  %v2836_v14 = vsub.f32 %v6322_v33, %v2835_v42 }
 0x5c5   : > { %v6371_v22 = vpop.permute.xlu0 %2762  ;;  %v2735_v41 = vmul.f32 1.442695, %v2734_v60 }
 0x5c6   : > { %v6369_v48 = vpop.permute.xlu1 %2750  ;;  %v2837_v29 = vand.u32 2147483647, %v2836_v14 }
 0x5c7   : > { %3454 = vpow2.f32 %v2735_v41 }
 0x5c8   : > { %3456 = vpow2.f32 %v2747_v12  ;;  %v2876_v12 = vsub.f32 %v6322_v33, %v6382_v13 }
 0x5c9   : > { %3458 = vpow2.f32 %v2759_v4 }
 0x5cc   : > { %v6386_v34 = vpop.permute.xlu2 %2910 }
 0x5cd   : > { %v2779_v59 = vpop.permute.xlu0 %2778  ;;  %v3455_v10 = vpop.eup %3454 }
 0x5ce   : > { %v2767_v30 = vpop.permute.xlu1 %2766  ;;  %v2780_v15 = vsub.f32 %v6322_v33, %v2779_v59  ;;  %v2737_v20 = vadd.f32 %v3455_v10, %v2725_v31  ;;  %v3457_v16 = vpop.eup %3456  ;;  %v2740_v42 = vmul.f32 %v3455_v10, %v6346_v61  ;;  %v2877_v31 = vand.u32 2147483647, %v2876_v12 }
 0x5cf   : > { %v2768_v51 = vsub.f32 %v6322_v33, %v2767_v30  ;;  %v3459_v0 = vpop.eup %3458 }
 0x5d0   : > { %v2781_v27 = vand.u32 2147483647, %v2780_v15  ;;  %v2749_v38 = vadd.f32 %v3457_v16, %v2737_v20  ;;  %v2741_v4 = vadd.f32 %v2740_v42, %v6367_v54  ;;  %v2764_v58 = vmul.f32 %v3459_v0, %v6371_v22 }
 0x5d1   : > { %v2769_v25 = vand.u32 2147483647, %v2768_v51  ;;  %v2838_v51 = vmul.f32 -0.5, %v2837_v29  ;;  %v2912_v54 = vsub.f32 %v6322_v33, %v6386_v34 }
 0x5d2   : > { %v2782_v35 = vmul.f32 -0.5, %v2781_v27  ;;  %v2761_v18 = vadd.f32 %v3459_v0, %v2749_v38  ;;  %v2878_v38 = vmul.f32 -0.5, %v2877_v31 }
 0x5d3   : > { %v2770_v11 = vmul.f32 -0.5, %v2769_v25  ;;  %v2839_v27 = vmul.f32 1.442695, %v2838_v51  ;;  %v2913_v0 = vand.u32 2147483647, %v2912_v54 }
 0x5d4   : > { %v2783_v26 = vmul.f32 1.442695, %v2782_v35  ;;  %v6392_v45 = vpop.permute.xlu2 %2818  ;;  %v2879_v34 = vmul.f32 1.442695, %v2878_v38 }
 0x5d5   : > { %v2811_v6 = vpop.permute.xlu0 %2810  ;;  %v2771_v52 = vmul.f32 1.442695, %v2770_v11 }
 0x5d6   : > { %v6379_v17 = vpop.permute.xlu1 %2786  ;;  %v2812_v47 = vsub.f32 %v6322_v33, %v2811_v6 }
 0x5d7   : > { %3460 = vpow2.f32 %v2771_v52  ;;  %v2752_v52 = vmul.f32 %v3457_v16, %v6369_v48 }
 0x5d8   : > { %v2813_v44 = vand.u32 2147483647, %v2812_v47  ;;  %3462 = vpow2.f32 %v2783_v26 }
 0x5d9   : > { %3464 = vpow2.f32 %v2793_v63  ;;  %v2753_v20 = vadd.f32 %v2752_v52, %v2741_v4 }
 0x5da   : > { %v2814_v55 = vmul.f32 -0.5, %v2813_v44  ;;  %3466 = vpow2.f32 %v2803_v39 }
 0x5dc   : > { %v2815_v41 = vmul.f32 1.442695, %v2814_v55  ;;  %v6407_v48 = vpop.permute.xlu2 %2842 }
 0x5dd   : > { %v2847_v28 = vpop.permute.xlu0 %2846  ;;  %v3461_v53 = vpop.eup %3460 }
 0x5de   : > { %v2823_v57 = vpop.permute.xlu1 %2822  ;;  %v2773_v36 = vadd.f32 %v3461_v53, %v2761_v18  ;;  %v2848_v56 = vsub.f32 %v6322_v33, %v2847_v28  ;;  %v3463_v5 = vpop.eup %3462  ;;  %3468 = vpow2.f32 %v2815_v41 }
 0x5df   : > { %v2824_v2 = vsub.f32 %v6322_v33, %v2823_v57  ;;  %v3465_v40 = vpop.eup %3464  ;;  %v2776_v57 = vmul.f32 %v3461_v53, %v6363_v46  ;;  %v2788_v46 = vmul.f32 %v3463_v5, %v6379_v17 }
 0x5e0   : > { %v2785_v7 = vadd.f32 %v3463_v5, %v2773_v36  ;;  %v2849_v59 = vand.u32 2147483647, %v2848_v56  ;;  %v3467_v43 = vpop.eup %3466  ;;  %v2934_v56 = vsub.f32 %v6322_v33, %v6270_v1 }
 0x5e1   : > { %v2825_v23 = vand.u32 2147483647, %v2824_v2  ;;  %v2765_v2 = vadd.f32 %v2764_v58, %v2753_v20 }
 0x5e2   : > { %v2795_v15 = vadd.f32 %v3465_v40, %v2785_v7  ;;  %v2850_v11 = vmul.f32 -0.5, %v2849_v59  ;;  %v2935_v1 = vand.u32 2147483647, %v2934_v56 }
 0x5e3   : > { %v2826_v3 = vmul.f32 -0.5, %v2825_v23  ;;  %v2777_v18 = vadd.f32 %v2776_v57, %v2765_v2 }
 0x5e4   : > { %v2805_v61 = vadd.f32 %v3467_v43, %v2795_v15  ;;  %v6398_v10 = vpop.eup %3468  ;;  %v2851_v32 = vmul.f32 1.442695, %v2850_v11  ;;  %v2967_v59 = vpop.permute.xlu2 %2966 }
 0x5e5   : > { %v2887_v8 = vpop.permute.xlu0 %2886  ;;  %v2827_v30 = vmul.f32 1.442695, %v2826_v3  ;;  %v2914_v3 = vmul.f32 -0.5, %v2913_v0  ;;  %v2968_v4 = vsub.f32 %v6322_v33, %v2967_v59 }
 0x5e6   : > { %v2863_v60 = vpop.permute.xlu1 %2862  ;;  %v2888_v49 = vsub.f32 %v6322_v33, %v2887_v8  ;;  %v2817_v26 = vadd.f32 %v6398_v10, %v2805_v61  ;;  %v2789_v8 = vadd.f32 %v2788_v46, %v2777_v18 }
 0x5e7   : > { %v2864_v19 = vsub.f32 %v6322_v33, %v2863_v60  ;;  %3470 = vpow2.f32 %v2827_v30  ;;  %v2915_v42 = vmul.f32 1.442695, %v2914_v3 }
 0x5e8   : > { %3472 = vpow2.f32 %v2839_v27  ;;  %v2889_v47 = vand.u32 2147483647, %v2888_v49 }
 0x5e9   : > { %v2865_v25 = vand.u32 2147483647, %v2864_v19  ;;  %3474 = vpow2.f32 %v2851_v32  ;;  %v2796_v19 = vmul.f32 %v3465_v40, %v6697_v50 }
 0x5ea   : > { %v2890_v63 = vmul.f32 -0.5, %v2889_v47  ;;  %v2969_v47 = vand.u32 2147483647, %v2968_v4 }
 0x5eb   : > { %v2866_v6 = vmul.f32 -0.5, %v2865_v25  ;;  %v2797_v15 = vadd.f32 %v2796_v19, %v2789_v8 }
 0x5ec   : > { %v2891_v53 = vmul.f32 1.442695, %v2890_v63  ;;  %v2883_v54 = vpop.permute.xlu2 %2882 }
 0x5ed   : > { %v2807_v62 = vpop.permute.xlu0 %2806  ;;  %v3471_v13 = vpop.eup %3470  ;;  %v2867_v21 = vmul.f32 1.442695, %v2866_v6  ;;  %v2820_v6 = vmul.f32 %v6398_v10, %v6392_v45  ;;  %v2970_v10 = vmul.f32 -0.5, %v2969_v47 }
 0x5ee   : > { %v2899_v37 = vpop.permute.xlu1 %2898  ;;  %v2829_v28 = vadd.f32 %v3471_v13, %v2817_v26  ;;  %v3473_v23 = vpop.eup %3472  ;;  %v2808_v51 = vmul.f32 %v3467_v43, %v2807_v62  ;;  %v2936_v43 = vmul.f32 -0.5, %v2935_v1 }
 0x5ef   : > { %v2900_v35 = vsub.f32 %v6322_v33, %v2899_v37  ;;  %3476 = vpow2.f32 %v2867_v21  ;;  %v3475_v55 = vpop.eup %3474 }
 0x5f0   : > { %v2841_v14 = vadd.f32 %v3473_v23, %v2829_v28  ;;  %3478 = vpow2.f32 %v2879_v34  ;;  %v2809_v27 = vadd.f32 %v2808_v51, %v2797_v15  ;;  %v2937_v58 = vmul.f32 1.442695, %v2936_v43 }
 0x5f1   : > { %v2901_v16 = vand.u32 2147483647, %v2900_v35  ;;  %3480 = vpow2.f32 %v2891_v53 }
 0x5f2   : > { %v2853_v41 = vadd.f32 %v3475_v55, %v2841_v14  ;;  %v2821_v20 = vadd.f32 %v2820_v6, %v2809_v27  ;;  %v2971_v14 = vmul.f32 1.442695, %v2970_v10 }
 0x5f3   : > { %v2902_v39 = vmul.f32 -0.5, %v2901_v16 }
 0x5f4   : > { %v2907_v3 = vpop.permute.xlu2 %2906 }
 0x5f5   : > { %v2831_v44 = vpop.permute.xlu0 %2830  ;;  %v6413_v60 = vpop.eup %3476  ;;  %v2903_v29 = vmul.f32 1.442695, %v2902_v39 }
 0x5f6   : > { %v2923_v24 = vpop.permute.xlu1 %2922  ;;  %v2869_v25 = vadd.f32 %v6413_v60, %v2853_v41  ;;  %v3479_v37 = vpop.eup %3478  ;;  %v2832_v49 = vmul.f32 %v3471_v13, %v2831_v44 }
 0x5f7   : > { %v2924_v22 = vsub.f32 %v6322_v33, %v2923_v24  ;;  %3482 = vpow2.f32 %v2903_v29  ;;  %v3481_v62 = vpop.eup %3480  ;;  %v2844_v24 = vmul.f32 %v3473_v23, %v6407_v48  ;;  %v2884_v19 = vmul.f32 %v3479_v37, %v2883_v54 }
 0x5f8   : > { %3484 = vpow2.f32 %v2915_v42  ;;  %v2881_v40 = vadd.f32 %v3479_v37, %v2869_v25  ;;  %v2833_v26 = vadd.f32 %v2832_v49, %v2821_v20 }
 0x5f9   : > { %v2925_v36 = vand.u32 2147483647, %v2924_v22 }
 0x5fa   : > { %v2893_v21 = vadd.f32 %v3481_v62, %v2881_v40  ;;  %v2845_v2 = vadd.f32 %v2844_v24, %v2833_v26 }
 0x5fb   : > { %v2926_v17 = vmul.f32 -0.5, %v2925_v36 }
 0x5fc   : > { %v2951_v27 = vpop.permute.xlu2 %2950 }
 0x5fd   : > { %v2955_v30 = vpop.permute.xlu0 %2954  ;;  %v2927_v50 = vmul.f32 1.442695, %v2926_v17  ;;  %v3483_v35 = vpop.eup %3482 }
 0x5fe   : > { %v2943_v7 = vpop.permute.xlu1 %2942  ;;  %v2956_v11 = vsub.f32 %v6322_v33, %v2955_v30  ;;  %v3485_v16 = vpop.eup %3484  ;;  %v2905_v28 = vadd.f32 %v3483_v35, %v2893_v21  ;;  %v2908_v42 = vmul.f32 %v3483_v35, %v2907_v3 }
 0x5ff   : > { %v2944_v5 = vsub.f32 %v6322_v33, %v2943_v7  ;;  %3486 = vpow2.f32 %v2927_v50 }
 0x600   : > { %v2957_v52 = vand.u32 2147483647, %v2956_v11  ;;  %3488 = vpow2.f32 %v2937_v58  ;;  %v2917_v63 = vadd.f32 %v3485_v16, %v2905_v28 }
 0x601   : > { %v2945_v12 = vand.u32 2147483647, %v2944_v5 }
 0x602   : > { %v2958_v57 = vmul.f32 -0.5, %v2957_v52 }
 0x603   : > { %v2946_v61 = vmul.f32 -0.5, %v2945_v12 }
 0x604   : > { %v2959_v44 = vmul.f32 1.442695, %v2958_v57  ;;  %v2987_v26 = vpop.permute.xlu2 %2986 }
 0x605   : > { %v2871_v32 = vpop.permute.xlu0 %2870  ;;  %v2947_v38 = vmul.f32 1.442695, %v2946_v61  ;;  %v3487_v13 = vpop.eup %3486 }
 0x606   : > { %v2855_v31 = vpop.permute.xlu1 %2854  ;;  %v2929_v46 = vadd.f32 %v3487_v13, %v2917_v63  ;;  %v2872_v48 = vmul.f32 %v6413_v60, %v2871_v32  ;;  %v3489_v53 = vpop.eup %3488 }
 0x607   : > { %v2856_v45 = vmul.f32 %v3475_v55, %v2855_v31  ;;  %3490 = vpow2.f32 %v2947_v38 }
 0x608   : > { %3492 = vpow2.f32 %v2959_v44  ;;  %v2939_v41 = vadd.f32 %v3489_v53, %v2929_v46 }
 0x609   : > { %v2857_v34 = vadd.f32 %v2856_v45, %v2845_v2  ;;  %3494 = vpow2.f32 %v2971_v14 }
 0x60b   : > { %v2873_v56 = vadd.f32 %v2872_v48, %v2857_v34 }
 0x60d   : > { %v2991_v0 = vpop.permute.xlu0 %2990  ;;  %v3491_v36 = vpop.eup %3490  ;;  %v2885_v5 = vadd.f32 %v2884_v19, %v2873_v56 }
 0x60e   : > { %v2979_v22 = vpop.permute.xlu1 %2978  ;;  %v2992_v39 = vsub.f32 %v6322_v33, %v2991_v0  ;;  %v2949_v30 = vadd.f32 %v3491_v36, %v2939_v41  ;;  %v3493_v51 = vpop.eup %3492  ;;  %v2952_v31 = vmul.f32 %v3491_v36, %v2951_v27 }
 0x60f   : > { %v2980_v18 = vsub.f32 %v6322_v33, %v2979_v22  ;;  %v3495_v15 = vpop.eup %3494 }
 0x610   : > { %v2993_v55 = vand.u32 2147483647, %v2992_v39  ;;  %v2961_v1 = vadd.f32 %v3493_v51, %v2949_v30 }
 0x611   : > { %v2981_v23 = vand.u32 2147483647, %v2980_v18 }
 0x612   : > { %v2994_v29 = vmul.f32 -0.5, %v2993_v55  ;;  %v2973_v50 = vadd.f32 %v3495_v15, %v2961_v1 }
 0x613   : > { %v2982_v8 = vmul.f32 -0.5, %v2981_v23 }
 0x614   : > { %v2995_v17 = vmul.f32 1.442695, %v2994_v29 }
 0x615   : > { %v2983_v7 = vmul.f32 1.442695, %v2982_v8  ;;  %v2919_v33 = vpop.permute.xlu0 %2918 }
 0x616   : > { %v2895_v59 = vpop.permute.xlu1 %2894  ;;  %v2920_v37 = vmul.f32 %v3485_v16, %v2919_v33 }
 0x617   : > { %3496 = vpow2.f32 %v2983_v7  ;;  %v2896_v60 = vmul.f32 %v3481_v62, %v2895_v59  ;;  %v2940_v62 = vmul.f32 %v3489_v53, %v6700_v9 }
 0x618   : > { %3498 = vpow2.f32 %v2995_v17 }
 0x619   : > { %v2897_v25 = vadd.f32 %v2896_v60, %v2885_v5 }
 0x61b   : > { %v2909_v12 = vadd.f32 %v2908_v42, %v2897_v25 }
 0x61d   : > { %v3497_v11 = vpop.eup %3496  ;;  %v2963_v4 = vpop.permute.xlu0 %2962  ;;  %v2921_v43 = vadd.f32 %v2920_v37, %v2909_v12 }
 0x61e   : > { %v2931_v40 = vpop.permute.xlu1 %2930  ;;  %v2985_v49 = vadd.f32 %v3497_v11, %v2973_v50  ;;  %v3499_v61 = vpop.eup %3498  ;;  %v2964_v21 = vmul.f32 %v3493_v51, %v2963_v4  ;;  %v2988_v9 = vmul.f32 %v3497_v11, %v2987_v26 }
 0x61f   : > { %v2932_v6 = vmul.f32 %v3487_v13, %v2931_v40 }
 0x620   : > { %v2997_v35 = vadd.f32 %v3499_v61, %v2985_v49 }
 0x621   : > { %v2933_v52 = vadd.f32 %v2932_v6, %v2921_v43 }
 0x622   : > { %3500 = vrcp.f32 %v2997_v35 }
 0x623   : > { %v2941_v32 = vadd.f32 %v2940_v62, %v2933_v52 }
 0x625   : > { %v2953_v20 = vadd.f32 %v2952_v31, %v2941_v32  ;;  %v2999_v38 = vpop.permute.xlu0 %2998 }
 0x626   : > { %v2975_v47 = vpop.permute.xlu1 %2974  ;;  %v3000_v28 = vmul.f32 %v3499_v61, %v2999_v38 }
 0x627   : > { %v2965_v58 = vadd.f32 %v2964_v21, %v2953_v20  ;;  %v2976_v54 = vmul.f32 %v3495_v15, %v2975_v47 }
 0x628   : > { %v3501_v45 = vpop.eup %3500 }
 0x629   : > { %v2977_v57 = vadd.f32 %v2976_v54, %v2965_v58 }
 0x62b   : > { %v2989_v16 = vadd.f32 %v2988_v9, %v2977_v57 }
 0x62d   : > { %v3001_v24 = vadd.f32 %v3000_v28, %v2989_v16 }
 0x62f   : > { %v3003_v10 = vmul.f32 %v3501_v45, %v3001_v24 }
 0x631   : > { %3004 = vst [vmem:[%s60_s11] sm:$0xff] %v3003_v10 }
 0x632   : > { %3139 = dma.vmem_to_hbm [thread:$0]  (%p3742_p8), %s3021_s27, 128, %s3023_s4, %s3006_s10  }
 0x633 PF: > { %p3145_p10 = scmp.ge.s32.totalorder %s3658_s16, 1  ;;  %s3034_s19 = sand.u32 1, %s3642_s12  }
 0x634   : > { %s3035_s20 = scalar_lea.sflag [#allocation7], %s3034_s19 }
 0x635   : > { %p3142_p11 = pnand %p3145_p10, %p3731_p4 }
 0x637   : > { %p3143_p12 = pneg %p3142_p11 }
 0x639   : > { %3637 = dma.done.wait (%p3143_p12), %s3035_s20, 128  }
 0x63a   : > { %3639 = vsyncadd (%p3143_p12), %s3035_s20, 4294967168  ;;  %s16_s16 = sadd.s32 1, %s3658_s16   ;;  %s6702_s12 = smov %s3646_s13 }
 0x63b   : > { %p13_p13 = scmp.ge.s32.totalorder %s16_s16, 5   ;;  %s6703_s13 = smov %s3740_s25 }
 0x63c   : > { %s6704_s14 = smov %s6707_s17  ;;  %s6705_s15 = smov %s6711_s18 }
 0x63d   :  { %15 = sbr.rel (!%p13_p13) target bundleno = 4 (0x4), region = 63 }
 0x642   :  { %3041 = vsyncpa [#allocation7], 1 }
 0x643   :  { %3043 = vsyncpa [#allocation7 + $0x1], 1 }
 0x644   :  { %3044 = vsyncmov [#allocation5] }
 0x647   :  { %s3045_s21 = vpop.sfrf %3044 }
 0x648   :  { %p3136_p0 = scmp.ne.s32.totalorder %s3045_s21, 0 }
 0x64a   :  { %3049 = shalt.err (%p3136_p0)  }
 0x64b   :  { %3051 = vsyncmov [#allocation5 + $0x1] }
 0x64e   :  { %s3052_s26 = vpop.sfrf %3051 }
 0x64f   :  { %p3137_p1 = scmp.ne.s32.totalorder %s3052_s26, 0 }
 0x651   :  { %3056 = shalt.err (%p3137_p1)  }
 0x652   :  { %3058 = vsyncmov [#allocation5 + $0x2] }
 0x655   :  { %s3059_s29 = vpop.sfrf %3058 }
 0x656   :  { %p3138_p2 = scmp.ne.s32.totalorder %s3059_s29, 0 }
 0x658   :  { %3063 = shalt.err (%p3138_p2)  }

</bundles_post_ra>
